<compile_context>
chip_gen: v5e
topology: v5e:2x2
jax: 0.10.0
libtpu: 0.0.40
codegen_flags: <defaults>
</compile_context>

<pallas_src>
import jax
import jax.numpy as jnp
from jax.experimental import pallas as pl
from jax.experimental.pallas import tpu as pltpu

LANE = 128
_VMEM_LIMIT = 32 * 1024 * 1024   # fits v5e/v6e/v7x; per-step blocks are small


def _round_up(x, m):
    return (x + m - 1) // m * m


def _pick_band_rows(h, bytes_per_row, max_bytes, cap):
    """Largest divisor of h (<= cap) whose band stays under max_bytes."""
    best = 1
    for d in range(1, min(h, cap) + 1):
        if h % d == 0 and d * bytes_per_row <= max_bytes:
            best = d
    return best


def _pad_channels(x, ci_pad):
    ci = x.shape[-1]
    if ci == ci_pad:
        return x
    return jnp.pad(x, ((0, 0), (0, 0), (0, 0), (0, ci_pad - ci)))


# ----------------------------------------------------------------------------
# Kernel 1: ConvTranspose2d(kernel=2, stride=2), row-banded.
# The 2x2 scatter is folded into the output layout (N, H, 2, W, 2*Cp), which
# reinterprets to (N, 2H, 2W, Cp) with a free contiguous reshape.
# ----------------------------------------------------------------------------
def _up_kernel(x_ref, w_ref, b_ref, o_ref):
    # x_ref: (1, TH, W, Cin) bf16
    # w_ref: (2, Cin, 2*Cp) bf16     per dh; columns ordered (dw, c)
    # b_ref: (1, 2*Cp) f32
    # o_ref: (1, TH, 2, W, 2*Cp) bf16
    th, w, cin = x_ref.shape[1], x_ref.shape[2], x_ref.shape[3]
    two_cp = w_ref.shape[2]
    x = x_ref[0].reshape(th * w, cin)
    b = b_ref[...]
    halves = []
    for dh in range(2):
        r = jnp.dot(x, w_ref[dh], preferred_element_type=jnp.float32) + b
        halves.append(r.reshape(th, 1, w, two_cp))
    o_ref[0] = jnp.concatenate(halves, axis=1).astype(o_ref.dtype)


def conv_transpose_2x2_s2(x, w_up, b_row, cp):
    """x (N,H,W,Cin) bf16, w_up (2,Cin,2*cp) bf16, b_row (1,2*cp) f32
       -> (N, 2H, 2W, cp) bf16 (output channels zero-padded to cp)."""
    N, H, W, Cin = x.shape
    assert W % 8 == 0, "width must be a multiple of 8 (sublane tile)"
    th = _pick_band_rows(H, 2 * W * 2 * cp * 2, 2 * 1024 * 1024, cap=32)
    y = pl.pallas_call(
        _up_kernel,
        out_shape=jax.ShapeDtypeStruct((N, H, 2, W, 2 * cp), jnp.bfloat16),
        grid=(N, H // th),
        in_specs=[
            pl.BlockSpec((1, th, W, Cin), lambda n, t: (n, t, 0, 0)),
            pl.BlockSpec((2, Cin, 2 * cp), lambda n, t: (0, 0, 0)),
            pl.BlockSpec((1, 2 * cp), lambda n, t: (0, 0)),
        ],
        out_specs=pl.BlockSpec((1, th, 2, W, 2 * cp),
                               lambda n, t: (n, t, 0, 0, 0)),
        compiler_params=pltpu.CompilerParams(
            dimension_semantics=("parallel", "parallel"),
            vmem_limit_bytes=_VMEM_LIMIT),
    )(x, w_up, b_row)
    # (N, H, 2, W, 2, cp) -> (N, 2H, 2W, cp): contiguous merges only.
    return y.reshape(N, 2 * H, 2 * W, cp)


# ----------------------------------------------------------------------------
# Kernel 2: 3x3 "same" conv over the implicit channel-concat of several parts,
# TH output rows per grid step, optional fused InstanceNorm+ReLU on a part's
# input rows, per-band InstanceNorm partial sums in the epilogue.
# ----------------------------------------------------------------------------
def _make_conv_kernel(part_cfg, th, w_img, cp):
    """part_cfg: tuple of (ci, normalize) per concat part."""
    def kernel(*refs):
        t = pl.program_id(1)
        last = pl.num_programs(1) - 1
        idx = 0
        windows = []
        for _ci, do_norm in part_cfg:
            prev_ref, main_ref, next_ref = refs[idx], refs[idx + 1], refs[idx + 2]
            idx += 3
            # (TH+2, W, Ci): rows t*TH-1 .. t*TH+TH of this part (clamped refs).
            win = jnp.concatenate(
                [prev_ref[0], main_ref[0], next_ref[0]], axis=0)
            if do_norm:
                mean_ref, rstd_ref = refs[idx], refs[idx + 1]
                idx += 2
                winf = (win.astype(jnp.float32) - mean_ref[...]) * rstd_ref[...]
                win = jnp.maximum(winf, 0.0).astype(jnp.bfloat16)
            # Zero the halo rows that fall outside the image (H padding).
            rows = jax.lax.broadcasted_iota(jnp.int32, (th + 2, 1, 1), 0)
            bad = ((t == 0) & (rows == 0)) | ((t == last) & (rows == th + 1))
            windows.append(jnp.where(bad, jnp.zeros_like(win), win))
        w_ref, b_ref = refs[idx], refs[idx + 1]
        y_ref, st_ref = refs[idx + 2], refs[idx + 3]

        # kh-fused im2col LHS.  Only outer-dim bf16 slices and 128-aligned lane
        # concats; channel order: part-major, kh-major, ci-minor.
        pieces = []
        for win in windows:
            for kh in range(3):
                pieces.append(win[kh:kh + th])
        lhs = jnp.concatenate(pieces, axis=-1).reshape(th * w_img, -1)

        # One MXU dot per kw tap; the horizontal shift (and the W zero padding)
        # is applied to the f32 result with offset<=2 f32 sublane slices.
        acc = jnp.zeros((th, w_img, cp), jnp.float32)
        for kw in range(3):
            u = jnp.dot(lhs, w_ref[kw], preferred_element_type=jnp.float32)
            u = jnp.pad(u.reshape(th, w_img, cp), ((0, 0), (1, 1), (0, 0)))
            acc = acc + u[:, kw:kw + w_img, :]

        y = (acc + b_ref[...]).astype(jnp.bfloat16)   # bias once, at the end
        y_ref[0] = y
        # InstanceNorm partial sums for this band, from the bf16-rounded
        # activation the next stage actually reads; one (2, Cp) store per band.
        yf = y.astype(jnp.float32).reshape(th * w_img, cp)
        s1 = jnp.sum(yf, axis=0, keepdims=True)
        s2 = jnp.sum(yf * yf, axis=0, keepdims=True)
        st_ref[0, 0] = jnp.concatenate([s1, s2], axis=0)

    return kernel


def conv3x3_band(parts, w_all, bias_row, cp):
    """Conv2d(k=3, pad=1) over the channel-concat of `parts`.

    parts: list of (x (N,H,W,Ci) bf16, norm) where norm is None or a
           (mean, rstd) pair of (N,1,Ci) f32 arrays applied (+ReLU) to that
           part's rows inside the kernel.  Every Ci must be a LANE multiple.
    Returns (y (N,H,W,cp) bf16, stats (N, num_bands, 2, cp) f32).
    """
    N, H, W, _ = parts[0][0].shape
    assert W % 8 == 0, "width must be a multiple of 8 (sublane tile)"
    th = _pick_band_rows(H, W * cp * 4, 256 * 1024, cap=32)
    nb = H // th

    part_cfg, in_specs, args = [], [], []
    for x, norm in parts:
        ci = x.shape[-1]
        part_cfg.append((ci, norm is not None))
        in_specs.append(pl.BlockSpec(
            (1, 1, W, ci),
            lambda n, t, TH=th: (n, jnp.maximum(t * TH - 1, 0), 0, 0)))
        in_specs.append(pl.BlockSpec((1, th, W, ci), lambda n, t: (n, t, 0, 0)))
        in_specs.append(pl.BlockSpec(
            (1, 1, W, ci),
            lambda n, t, TH=th, HH=H: (n, jnp.minimum((t + 1) * TH, HH - 1), 0, 0)))
        args += [x, x, x]
        if norm is not None:
            mean, rstd = norm
            in_specs.append(pl.BlockSpec((1, 1, ci), lambda n, t: (n, 0, 0)))
            in_specs.append(pl.BlockSpec((1, 1, ci), lambda n, t: (n, 0, 0)))
            args += [mean, rstd]
    in_specs.append(pl.BlockSpec(w_all.shape, lambda n, t: (0, 0, 0)))
    in_specs.append(pl.BlockSpec((1, cp), lambda n, t: (0, 0)))
    args += [w_all, bias_row]

    y, st = pl.pallas_call(
        _make_conv_kernel(tuple(part_cfg), th, W, cp),
        out_shape=(jax.ShapeDtypeStruct((N, H, W, cp), jnp.bfloat16),
                   jax.ShapeDtypeStruct((N, nb, 2, cp), jnp.float32)),
        grid=(N, nb),
        in_specs=in_specs,
        out_specs=(pl.BlockSpec((1, th, W, cp), lambda n, t: (n, t, 0, 0)),
                   pl.BlockSpec((1, 1, 2, cp), lambda n, t: (n, t, 0, 0))),
        compiler_params=pltpu.CompilerParams(
            dimension_semantics=("parallel", "parallel"),
            vmem_limit_bytes=_VMEM_LIMIT),
    )(*args)
    return y, st


# ----------------------------------------------------------------------------
# Kernel 3: normalize + ReLU with precomputed per-(n,c) mean / rstd, big tiles.
# ----------------------------------------------------------------------------
def _norm_relu_kernel(y_ref, mean_ref, rstd_ref, o_ref):
    y = y_ref[...].astype(jnp.float32)
    o_ref[...] = jnp.maximum((y - mean_ref[...]) * rstd_ref[...],
                             0.0).astype(o_ref.dtype)


def _normalize_relu(y, mean, rstd):
    N, H, W, cp = y.shape
    th = _pick_band_rows(H, W * cp * 2, 2 * 1024 * 1024, cap=H)
    return pl.pallas_call(
        _norm_relu_kernel,
        out_shape=jax.ShapeDtypeStruct((N, H, W, cp), jnp.bfloat16),
        grid=(N, H // th),
        in_specs=[pl.BlockSpec((1, th, W, cp), lambda n, t: (n, t, 0, 0)),
                  pl.BlockSpec((1, 1, cp), lambda n, t: (n, 0, 0)),
                  pl.BlockSpec((1, 1, cp), lambda n, t: (n, 0, 0))],
        out_specs=pl.BlockSpec((1, th, W, cp), lambda n, t: (n, t, 0, 0)),
        compiler_params=pltpu.CompilerParams(
            dimension_semantics=("parallel", "parallel"),
            vmem_limit_bytes=_VMEM_LIMIT),
    )(y, mean, rstd)


# ----------------------------------------------------------------------------
# Weight / statistics helpers (wrapper side, XLA)
# ----------------------------------------------------------------------------
def _prep_part_w(w_oihw, ci_pad, cp):
    # (co, ci, 3, 3) -> (kh, kw, ci_pad, cp) f32, zero padded.
    wk = jnp.transpose(w_oihw, (2, 3, 1, 0))
    return jnp.pad(wk, ((0, 0), (0, 0),
                        (0, ci_pad - wk.shape[2]),
                        (0, cp - wk.shape[3])))


def _merge_part_weights(part_ws, cp):
    # -> (3_kw, K_all, cp) bf16; rows ordered part-major, kh-major, ci-minor.
    per_kw = []
    for kw in range(3):
        rows = [w[:, kw].reshape(3 * w.shape[2], cp) for w in part_ws]
        per_kw.append(jnp.concatenate(rows, axis=0))
    return jnp.stack(per_kw, axis=0).astype(jnp.bfloat16)


def _mean_rstd(stats, num_px):
    # stats: (N, nb, 2, cp) per-band [sum, sum_sq] partials.
    # TODO(synk): E[x^2]-E[x]^2 can cancel for very large H*W; use Welford.
    tot = stats.sum(axis=1)
    mean = tot[:, 0] / num_px
    var = jnp.maximum(tot[:, 1] / num_px - mean * mean, 0.0)
    rstd = jax.lax.rsqrt(var + 1e-5)
    n, cp = mean.shape
    return mean.reshape(n, 1, cp), rstd.reshape(n, 1, cp)


# ----------------------------------------------------------------------------
# Unet_up forward (public wrapper: NCHW in / NCHW out)
# ----------------------------------------------------------------------------
def unet_up_forward(x_nchw, x_encode_nchw, params):
    out_chan = params["up_b"].shape[0]
    cp = _round_up(out_chan, LANE)                 # lane-dense output channels

    x = jnp.transpose(x_nchw, (0, 2, 3, 1)).astype(jnp.bfloat16)
    xe = jnp.transpose(x_encode_nchw, (0, 2, 3, 1)).astype(jnp.bfloat16)
    N, H0, W0, c_in = x.shape
    ce = xe.shape[-1]
    ce_pad = _round_up(ce, LANE)                   # lane-aligned skip channels
    Hc, Wc = 2 * H0, 2 * W0
    assert xe.shape[1] == Hc and xe.shape[2] == Wc

    # --- up: ConvTranspose2d(k=2, s=2) ---------------------------------------
    w_up = jnp.pad(params["up_w"], ((0, 0), (0, cp - out_chan), (0, 0), (0, 0)))
    w_up = jnp.transpose(w_up, (2, 0, 3, 1)).reshape(2, c_in, 2 * cp)
    b_up = jnp.pad(params["up_b"], (0, cp - out_chan)).astype(jnp.float32)
    x_up = conv_transpose_2x2_s2(x, w_up.astype(jnp.bfloat16),
                                 jnp.tile(b_up, 2).reshape(1, 2 * cp), cp)

    # --- conv1 over the implicit concat([x_encode, x_up], channels) ----------
    xe_l = _pad_channels(xe, ce_pad)               # 128-aligned lane concat
    w1 = params["w1"]
    w1_all = _merge_part_weights(
        [_prep_part_w(w1[:, :ce], ce_pad, cp),
         _prep_part_w(w1[:, ce:], cp, cp)], cp)
    b1 = jnp.pad(params["b1"], (0, cp - out_chan)).astype(jnp.float32).reshape(1, cp)
    y1, st1 = conv3x3_band([(xe_l, None), (x_up, None)], w1_all, b1, cp)
    m1, r1 = _mean_rstd(st1, Hc * Wc)

    # --- conv2, with InstanceNorm+ReLU of y1 fused into its input path -------
    w2_all = _merge_part_weights([_prep_part_w(params["w2"], cp, cp)], cp)
    b2 = jnp.pad(params["b2"], (0, cp - out_chan)).astype(jnp.float32).reshape(1, cp)
    y2, st2 = conv3x3_band([(y1, (m1, r1))], w2_all, b2, cp)
    m2, r2 = _mean_rstd(st2, Hc * Wc)

    # --- final InstanceNorm + ReLU (mem-bound, large row tiles) ---------------
    out = _normalize_relu(y2, m2, r2)
    out = out[..., :out_chan].astype(jnp.float32)
    return jnp.transpose(out, (0, 3, 1, 2))        # back to NCHW
    # Dropout is identity (eval mode).


def init_params(key, in_chan, out_chan):
    ks = jax.random.split(key, 6)
    s = 0.1
    return {
        "up_w": s * jax.random.normal(ks[0], (in_chan, out_chan, 2, 2), jnp.float32),
        "up_b": s * jax.random.normal(ks[1], (out_chan,), jnp.float32),
        "w1":   s * jax.random.normal(ks[2], (out_chan, in_chan, 3, 3), jnp.float32),
        "b1":   s * jax.random.normal(ks[3], (out_chan,), jnp.float32),
        "w2":   s * jax.random.normal(ks[4], (out_chan, out_chan, 3, 3), jnp.float32),
        "b2":   s * jax.random.normal(ks[5], (out_chan,), jnp.float32),
    }


# Pure-JAX (f32, XLA conv) reference for validation.
def reference_forward(x_nchw, x_encode_nchw, params):
    up_w, up_b = params["up_w"], params["up_b"]
    N, _, h, w = x_nchw.shape
    co = up_b.shape[0]
    y = jnp.einsum("nihw,ioab->nohawb", x_nchw, up_w).reshape(N, co, 2 * h, 2 * w)
    y = y + up_b[None, :, None, None]
    xcat = jnp.concatenate([x_encode_nchw, y], axis=1)

    def conv3(z, wk, bk):
        o = jax.lax.conv_general_dilated(
            z, wk, window_strides=(1, 1), padding=((1, 1), (1, 1)),
            dimension_numbers=("NCHW", "OIHW", "NCHW"))
        return o + bk[None, :, None, None]

    def inorm_relu(z):
        m = z.mean(axis=(2, 3), keepdims=True)
        v = jnp.square(z - m).mean(axis=(2, 3), keepdims=True)
        return jnp.maximum((z - m) * jax.lax.rsqrt(v + 1e-5), 0.0)

    z = inorm_relu(conv3(xcat, params["w1"], params["b1"]))
    z = inorm_relu(conv3(z, params["w2"], params["b2"]))
    return z


if __name__ == "__main__":
    key = jax.random.PRNGKey(0)
    in_chan, out_chan = 8, 4          # in_chan = 2 * out_chan (standard UNet)
    N, H, W = 2, 8, 8                 # decoder feature x: (N, in_chan, 8, 8)

    kx, ke, kp = jax.random.split(key, 3)
    x = jax.random.normal(kx, (N, in_chan, H, W), jnp.float32)            # NCHW
    x_encode = jax.random.normal(
        ke, (N, in_chan - out_chan, 2 * H, 2 * W), jnp.float32)
    params = init_params(kp, in_chan, out_chan)

    out = jax.jit(unet_up_forward)(x, x_encode, params)
    out = jax.block_until_ready(out)

    assert out.shape == (N, out_chan, 2 * H, 2 * W)
    assert bool(jnp.isfinite(out).all())

    ref = reference_forward(x, x_encode, params)
    err = float(jnp.max(jnp.abs(out - ref)))
    assert err < 0.3, f"kernel vs reference mismatch: max abs err {err}"

    print("KERNEL_OK")
</pallas_src>

<mosaic_0001>
module attributes {stable_mosaic.version = 11 : i64} {
  func.func @_up_kernel(%arg0: i32, %arg1: i32, %arg2: memref<1x8x8x8xbf16, #tpu.memory_space<vmem>>, %arg3: memref<2x8x256xbf16, #tpu.memory_space<vmem>>, %arg4: memref<1x256xf32, #tpu.memory_space<vmem>>, %arg5: memref<1x8x2x8x256xbf16, #tpu.memory_space<vmem>>) attributes {dimension_semantics = [#tpu.dimension_semantics<parallel>, #tpu.dimension_semantics<parallel>], iteration_bounds = array<i64: 2, 1>, scalar_prefetch = 0 : i64, scratch_operands = 0 : i64, tpu.core_type = #tpu.core_type<tc>, window_params = [{transform_indices = @transform_0, window_bounds = array<i64: 1, 8, 8, 8>}, {pipeline_mode = #tpu.pipeline_mode<synchronous>, transform_indices = @transform_1, window_bounds = array<i64: 2, 8, 256>}, {pipeline_mode = #tpu.pipeline_mode<synchronous>, transform_indices = @transform_2, window_bounds = array<i64: 1, 256>}, {transform_indices = @transform_3, window_bounds = array<i64: 1, 8, 2, 8, 256>}]} {
    %c0 = arith.constant 0 : index
    %c0_0 = arith.constant 0 : index
    %c0_1 = arith.constant 0 : index
    %c0_2 = arith.constant 0 : index
    %0 = vector.load %arg2[%c0, %c0_0, %c0_1, %c0_2] : memref<1x8x8x8xbf16, #tpu.memory_space<vmem>>, vector<1x8x8x8xbf16>
    %1 = vector.shape_cast %0 : vector<1x8x8x8xbf16> to vector<8x8x8xbf16>
    %2 = vector.shape_cast %1 : vector<8x8x8xbf16> to vector<64x8xbf16>
    %c0_3 = arith.constant 0 : index
    %c0_4 = arith.constant 0 : index
    %3 = vector.load %arg4[%c0_3, %c0_4] : memref<1x256xf32, #tpu.memory_space<vmem>>, vector<1x256xf32>
    %c0_5 = arith.constant 0 : index
    %c0_6 = arith.constant 0 : index
    %c0_7 = arith.constant 0 : index
    %4 = vector.load %arg3[%c0_5, %c0_6, %c0_7] : memref<2x8x256xbf16, #tpu.memory_space<vmem>>, vector<1x8x256xbf16>
    %5 = vector.shape_cast %4 : vector<1x8x256xbf16> to vector<8x256xbf16>
    %cst = arith.constant dense<0.000000e+00> : vector<64x256xf32>
    %6 = tpu.matmul %2, %5, %cst {dimension_numbers = #tpu.dot_dimension_numbers<[1], [0], [0], [1], [0, 0, 1, 1], [], []>} : vector<64x8xbf16>, vector<8x256xbf16>, vector<64x256xf32> -> vector<64x256xf32>
    %7 = vector.broadcast %3 : vector<1x256xf32> to vector<64x256xf32>
    %8 = arith.addf %6, %7 : vector<64x256xf32>
    %9 = vector.shape_cast %8 : vector<64x256xf32> to vector<8x1x8x256xf32>
    %c1 = arith.constant 1 : index
    %c0_8 = arith.constant 0 : index
    %c0_9 = arith.constant 0 : index
    %10 = vector.load %arg3[%c1, %c0_8, %c0_9] : memref<2x8x256xbf16, #tpu.memory_space<vmem>>, vector<1x8x256xbf16>
    %11 = vector.shape_cast %10 : vector<1x8x256xbf16> to vector<8x256xbf16>
    %cst_10 = arith.constant dense<0.000000e+00> : vector<64x256xf32>
    %12 = tpu.matmul %2, %11, %cst_10 {dimension_numbers = #tpu.dot_dimension_numbers<[1], [0], [0], [1], [0, 0, 1, 1], [], []>} : vector<64x8xbf16>, vector<8x256xbf16>, vector<64x256xf32> -> vector<64x256xf32>
    %13 = vector.broadcast %3 : vector<1x256xf32> to vector<64x256xf32>
    %14 = arith.addf %12, %13 : vector<64x256xf32>
    %15 = vector.shape_cast %14 : vector<64x256xf32> to vector<8x1x8x256xf32>
    %16 = tpu.concatenate %9, %15 in 1 : vector<8x1x8x256xf32>, vector<8x1x8x256xf32> -> vector<8x2x8x256xf32>
    %17 = arith.truncf %16 : vector<8x2x8x256xf32> to vector<8x2x8x256xbf16>
    %c0_11 = arith.constant 0 : index
    %c0_12 = arith.constant 0 : index
    %c0_13 = arith.constant 0 : index
    %c0_14 = arith.constant 0 : index
    %c0_15 = arith.constant 0 : index
    %18 = vector.load %arg5[%c0_11, %c0_12, %c0_13, %c0_14, %c0_15] : memref<1x8x2x8x256xbf16, #tpu.memory_space<vmem>>, vector<1x8x2x8x256xbf16>
    %19 = vector.shape_cast %18 : vector<1x8x2x8x256xbf16> to vector<8x2x8x256xbf16>
    %20 = vector.shape_cast %17 : vector<8x2x8x256xbf16> to vector<1x8x2x8x256xbf16>
    tpu.vector_store %arg5[%c0_11, %c0_12, %c0_13, %c0_14, %c0_15], %20 {strides = array<i32>} : memref<1x8x2x8x256xbf16, #tpu.memory_space<vmem>>, vector<1x8x2x8x256xbf16>,
    return
  }
  func.func @transform_0(%arg0: i32, %arg1: i32) -> (i32, i32, i32, i32) {
    %c0_i32 = arith.constant 0 : i32
    %c0_i32_0 = arith.constant 0 : i32
    %c0_i32_1 = arith.constant 0 : i32
    return %arg0, %arg1, %c0_i32, %c0_i32_0 : i32, i32, i32, i32
  }
  func.func @transform_1(%arg0: i32, %arg1: i32) -> (i32, i32, i32) {
    %c0_i32 = arith.constant 0 : i32
    %c0_i32_0 = arith.constant 0 : i32
    %c0_i32_1 = arith.constant 0 : i32
    %c0_i32_2 = arith.constant 0 : i32
    return %c0_i32, %c0_i32_0, %c0_i32_1 : i32, i32, i32
  }
  func.func @transform_2(%arg0: i32, %arg1: i32) -> (i32, i32) {
    %c0_i32 = arith.constant 0 : i32
    %c0_i32_0 = arith.constant 0 : i32
    %c0_i32_1 = arith.constant 0 : i32
    return %c0_i32, %c0_i32_0 : i32, i32
  }
  func.func @transform_3(%arg0: i32, %arg1: i32) -> (i32, i32, i32, i32, i32) {
    %c0_i32 = arith.constant 0 : i32
    %c0_i32_0 = arith.constant 0 : i32
    %c0_i32_1 = arith.constant 0 : i32
    %c0_i32_2 = arith.constant 0 : i32
    return %arg0, %arg1, %c0_i32, %c0_i32_0, %c0_i32_1 : i32, i32, i32, i32, i32
  }
}

module attributes {stable_mosaic.version = 11 : i64} {
  func.func @kernel(%arg0: i32, %arg1: i32, %arg2: memref<1x1x16x128xbf16, #tpu.memory_space<vmem>>, %arg3: memref<1x16x16x128xbf16, #tpu.memory_space<vmem>>, %arg4: memref<1x1x16x128xbf16, #tpu.memory_space<vmem>>, %arg5: memref<1x1x16x128xbf16, #tpu.memory_space<vmem>>, %arg6: memref<1x16x16x128xbf16, #tpu.memory_space<vmem>>, %arg7: memref<1x1x16x128xbf16, #tpu.memory_space<vmem>>, %arg8: memref<3x768x128xbf16, #tpu.memory_space<vmem>>, %arg9: memref<1x128xf32, #tpu.memory_space<vmem>>, %arg10: memref<1x16x16x128xbf16, #tpu.memory_space<vmem>>, %arg11: memref<1x1x2x128xf32, #tpu.memory_space<vmem>>) attributes {dimension_semantics = [#tpu.dimension_semantics<parallel>, #tpu.dimension_semantics<parallel>], iteration_bounds = array<i64: 2, 1>, scalar_prefetch = 0 : i64, scratch_operands = 0 : i64, tpu.core_type = #tpu.core_type<tc>, window_params = [{transform_indices = @transform_0, window_bounds = array<i64: 1, 1, 16, 128>}, {transform_indices = @transform_1, window_bounds = array<i64: 1, 16, 16, 128>}, {transform_indices = @transform_2, window_bounds = array<i64: 1, 1, 16, 128>}, {transform_indices = @transform_3, window_bounds = array<i64: 1, 1, 16, 128>}, {transform_indices = @transform_4, window_bounds = array<i64: 1, 16, 16, 128>}, {transform_indices = @transform_5, window_bounds = array<i64: 1, 1, 16, 128>}, {pipeline_mode = #tpu.pipeline_mode<synchronous>, transform_indices = @transform_6, window_bounds = array<i64: 3, 768, 128>}, {pipeline_mode = #tpu.pipeline_mode<synchronous>, transform_indices = @transform_7, window_bounds = array<i64: 1, 128>}, {transform_indices = @transform_8, window_bounds = array<i64: 1, 16, 16, 128>}, {transform_indices = @transform_9, window_bounds = array<i64: 1, 1, 2, 128>}]} {
    %c0 = arith.constant 0 : index
    %c0_0 = arith.constant 0 : index
    %c0_1 = arith.constant 0 : index
    %c0_2 = arith.constant 0 : index
    %0 = vector.load %arg2[%c0, %c0_0, %c0_1, %c0_2] : memref<1x1x16x128xbf16, #tpu.memory_space<vmem>>, vector<1x1x16x128xbf16>
    %1 = vector.shape_cast %0 : vector<1x1x16x128xbf16> to vector<1x16x128xbf16>
    %c0_3 = arith.constant 0 : index
    %c0_4 = arith.constant 0 : index
    %c0_5 = arith.constant 0 : index
    %c0_6 = arith.constant 0 : index
    %2 = vector.load %arg3[%c0_3, %c0_4, %c0_5, %c0_6] : memref<1x16x16x128xbf16, #tpu.memory_space<vmem>>, vector<1x16x16x128xbf16>
    %3 = vector.shape_cast %2 : vector<1x16x16x128xbf16> to vector<16x16x128xbf16>
    %c0_7 = arith.constant 0 : index
    %c0_8 = arith.constant 0 : index
    %c0_9 = arith.constant 0 : index
    %c0_10 = arith.constant 0 : index
    %4 = vector.load %arg4[%c0_7, %c0_8, %c0_9, %c0_10] : memref<1x1x16x128xbf16, #tpu.memory_space<vmem>>, vector<1x1x16x128xbf16>
    %5 = vector.shape_cast %4 : vector<1x1x16x128xbf16> to vector<1x16x128xbf16>
    %6 = tpu.concatenate %1, %3, %5 in 0 : vector<1x16x128xbf16>, vector<16x16x128xbf16>, vector<1x16x128xbf16> -> vector<18x16x128xbf16>
    %7 = tpu.iota {dimensions = array<i32: 0>} : vector<18x1x1xi32>
    %c0_i32 = arith.constant 0 : i32
    %8 = arith.cmpi eq, %arg1, %c0_i32 : i32
    %c0_i32_11 = arith.constant 0 : i32
    %9 = vector.broadcast %c0_i32_11 : i32 to vector<18x1x1xi32>
    %10 = arith.cmpi eq, %7, %9 : vector<18x1x1xi32>
    %11 = vector.broadcast %8 : i1 to vector<18x1x1xi1>
    %12 = arith.andi %11, %10 : vector<18x1x1xi1>
    %c0_i32_12 = arith.constant 0 : i32
    %13 = arith.cmpi eq, %arg1, %c0_i32_12 : i32
    %c17_i32 = arith.constant 17 : i32
    %14 = vector.broadcast %c17_i32 : i32 to vector<18x1x1xi32>
    %15 = arith.cmpi eq, %7, %14 : vector<18x1x1xi32>
    %16 = vector.broadcast %13 : i1 to vector<18x1x1xi1>
    %17 = arith.andi %16, %15 : vector<18x1x1xi1>
    %18 = arith.ori %12, %17 : vector<18x1x1xi1>
    %cst = arith.constant 0.000000e+00 : bf16
    %19 = vector.broadcast %cst : bf16 to vector<18x16x128xbf16>
    %20 = vector.shape_cast %18 : vector<18x1x1xi1> to vector<18x1x1xi1>
    %21 = vector.broadcast %20 : vector<18x1x1xi1> to vector<18x16x128xi1>
    %22 = arith.select %21, %19, %6 : vector<18x16x128xi1>, vector<18x16x128xbf16>
    %c0_13 = arith.constant 0 : index
    %c0_14 = arith.constant 0 : index
    %c0_15 = arith.constant 0 : index
    %c0_16 = arith.constant 0 : index
    %23 = vector.load %arg5[%c0_13, %c0_14, %c0_15, %c0_16] : memref<1x1x16x128xbf16, #tpu.memory_space<vmem>>, vector<1x1x16x128xbf16>
    %24 = vector.shape_cast %23 : vector<1x1x16x128xbf16> to vector<1x16x128xbf16>
    %c0_17 = arith.constant 0 : index
    %c0_18 = arith.constant 0 : index
    %c0_19 = arith.constant 0 : index
    %c0_20 = arith.constant 0 : index
    %25 = vector.load %arg6[%c0_17, %c0_18, %c0_19, %c0_20] : memref<1x16x16x128xbf16, #tpu.memory_space<vmem>>, vector<1x16x16x128xbf16>
    %26 = vector.shape_cast %25 : vector<1x16x16x128xbf16> to vector<16x16x128xbf16>
    %c0_21 = arith.constant 0 : index
    %c0_22 = arith.constant 0 : index
    %c0_23 = arith.constant 0 : index
    %c0_24 = arith.constant 0 : index
    %27 = vector.load %arg7[%c0_21, %c0_22, %c0_23, %c0_24] : memref<1x1x16x128xbf16, #tpu.memory_space<vmem>>, vector<1x1x16x128xbf16>
    %28 = vector.shape_cast %27 : vector<1x1x16x128xbf16> to vector<1x16x128xbf16>
    %29 = tpu.concatenate %24, %26, %28 in 0 : vector<1x16x128xbf16>, vector<16x16x128xbf16>, vector<1x16x128xbf16> -> vector<18x16x128xbf16>
    %30 = tpu.iota {dimensions = array<i32: 0>} : vector<18x1x1xi32>
    %c0_i32_25 = arith.constant 0 : i32
    %31 = arith.cmpi eq, %arg1, %c0_i32_25 : i32
    %c0_i32_26 = arith.constant 0 : i32
    %32 = vector.broadcast %c0_i32_26 : i32 to vector<18x1x1xi32>
    %33 = arith.cmpi eq, %30, %32 : vector<18x1x1xi32>
    %34 = vector.broadcast %31 : i1 to vector<18x1x1xi1>
    %35 = arith.andi %34, %33 : vector<18x1x1xi1>
    %c0_i32_27 = arith.constant 0 : i32
    %36 = arith.cmpi eq, %arg1, %c0_i32_27 : i32
    %c17_i32_28 = arith.constant 17 : i32
    %37 = vector.broadcast %c17_i32_28 : i32 to vector<18x1x1xi32>
    %38 = arith.cmpi eq, %30, %37 : vector<18x1x1xi32>
    %39 = vector.broadcast %36 : i1 to vector<18x1x1xi1>
    %40 = arith.andi %39, %38 : vector<18x1x1xi1>
    %41 = arith.ori %35, %40 : vector<18x1x1xi1>
    %cst_29 = arith.constant 0.000000e+00 : bf16
    %42 = vector.broadcast %cst_29 : bf16 to vector<18x16x128xbf16>
    %43 = vector.shape_cast %41 : vector<18x1x1xi1> to vector<18x1x1xi1>
    %44 = vector.broadcast %43 : vector<18x1x1xi1> to vector<18x16x128xi1>
    %45 = arith.select %44, %42, %29 : vector<18x16x128xi1>, vector<18x16x128xbf16>
    %46 = vector.extract_strided_slice %22 {offsets = [0, 0, 0], sizes = [16, 16, 128], strides = [1, 1, 1]} : vector<18x16x128xbf16> to vector<16x16x128xbf16>
    %47 = vector.extract_strided_slice %22 {offsets = [1, 0, 0], sizes = [16, 16, 128], strides = [1, 1, 1]} : vector<18x16x128xbf16> to vector<16x16x128xbf16>
    %48 = vector.extract_strided_slice %22 {offsets = [2, 0, 0], sizes = [16, 16, 128], strides = [1, 1, 1]} : vector<18x16x128xbf16> to vector<16x16x128xbf16>
    %49 = vector.extract_strided_slice %45 {offsets = [0, 0, 0], sizes = [16, 16, 128], strides = [1, 1, 1]} : vector<18x16x128xbf16> to vector<16x16x128xbf16>
    %50 = vector.extract_strided_slice %45 {offsets = [1, 0, 0], sizes = [16, 16, 128], strides = [1, 1, 1]} : vector<18x16x128xbf16> to vector<16x16x128xbf16>
    %51 = vector.extract_strided_slice %45 {offsets = [2, 0, 0], sizes = [16, 16, 128], strides = [1, 1, 1]} : vector<18x16x128xbf16> to vector<16x16x128xbf16>
    %52 = tpu.concatenate %46, %47, %48, %49, %50, %51 in 2 : vector<16x16x128xbf16>, vector<16x16x128xbf16>, vector<16x16x128xbf16>, vector<16x16x128xbf16>, vector<16x16x128xbf16>, vector<16x16x128xbf16> -> vector<16x16x768xbf16>
    %53 = vector.shape_cast %52 : vector<16x16x768xbf16> to vector<256x768xbf16>
    %cst_30 = arith.constant 0.000000e+00 : f32
    %54 = vector.broadcast %cst_30 : f32 to vector<16x16x128xf32>
    %c0_31 = arith.constant 0 : index
    %c0_32 = arith.constant 0 : index
    %c0_33 = arith.constant 0 : index
    %55 = vector.load %arg8[%c0_31, %c0_32, %c0_33] : memref<3x768x128xbf16, #tpu.memory_space<vmem>>, vector<1x768x128xbf16>
    %56 = vector.shape_cast %55 : vector<1x768x128xbf16> to vector<768x128xbf16>
    %cst_34 = arith.constant dense<0.000000e+00> : vector<256x128xf32>
    %57 = tpu.matmul %53, %56, %cst_34 {dimension_numbers = #tpu.dot_dimension_numbers<[1], [0], [0], [1], [0, 0, 1, 1], [], []>} : vector<256x768xbf16>, vector<768x128xbf16>, vector<256x128xf32> -> vector<256x128xf32>
    %58 = vector.shape_cast %57 : vector<256x128xf32> to vector<16x16x128xf32>
    %c0_i32_35 = arith.constant 0 : i32
    %59 = arith.sitofp %c0_i32_35 : i32 to f32
    %60 = vector.broadcast %59 : f32 to vector<16x1x128xf32>
    %61 = tpu.concatenate %60, %58 in 1 : vector<16x1x128xf32>, vector<16x16x128xf32> -> vector<16x17x128xf32>
    %62 = vector.broadcast %59 : f32 to vector<16x1x128xf32>
    %63 = tpu.concatenate %61, %62 in 1 : vector<16x17x128xf32>, vector<16x1x128xf32> -> vector<16x18x128xf32>
    %64 = vector.extract_strided_slice %63 {offsets = [0, 0, 0], sizes = [16, 16, 128], strides = [1, 1, 1]} : vector<16x18x128xf32> to vector<16x16x128xf32>
    %65 = arith.addf %54, %64 : vector<16x16x128xf32>
    %c1 = arith.constant 1 : index
    %c0_36 = arith.constant 0 : index
    %c0_37 = arith.constant 0 : index
    %66 = vector.load %arg8[%c1, %c0_36, %c0_37] : memref<3x768x128xbf16, #tpu.memory_space<vmem>>, vector<1x768x128xbf16>
    %67 = vector.shape_cast %66 : vector<1x768x128xbf16> to vector<768x128xbf16>
    %cst_38 = arith.constant dense<0.000000e+00> : vector<256x128xf32>
    %68 = tpu.matmul %53, %67, %cst_38 {dimension_numbers = #tpu.dot_dimension_numbers<[1], [0], [0], [1], [0, 0, 1, 1], [], []>} : vector<256x768xbf16>, vector<768x128xbf16>, vector<256x128xf32> -> vector<256x128xf32>
    %69 = vector.shape_cast %68 : vector<256x128xf32> to vector<16x16x128xf32>
    %c0_i32_39 = arith.constant 0 : i32
    %70 = arith.sitofp %c0_i32_39 : i32 to f32
    %71 = vector.broadcast %70 : f32 to vector<16x1x128xf32>
    %72 = tpu.concatenate %71, %69 in 1 : vector<16x1x128xf32>, vector<16x16x128xf32> -> vector<16x17x128xf32>
    %73 = vector.broadcast %70 : f32 to vector<16x1x128xf32>
    %74 = tpu.concatenate %72, %73 in 1 : vector<16x17x128xf32>, vector<16x1x128xf32> -> vector<16x18x128xf32>
    %75 = vector.extract_strided_slice %74 {offsets = [0, 1, 0], sizes = [16, 16, 128], strides = [1, 1, 1]} : vector<16x18x128xf32> to vector<16x16x128xf32>
    %76 = arith.addf %65, %75 : vector<16x16x128xf32>
    %c2 = arith.constant 2 : index
    %c0_40 = arith.constant 0 : index
    %c0_41 = arith.constant 0 : index
    %77 = vector.load %arg8[%c2, %c0_40, %c0_41] : memref<3x768x128xbf16, #tpu.memory_space<vmem>>, vector<1x768x128xbf16>
    %78 = vector.shape_cast %77 : vector<1x768x128xbf16> to vector<768x128xbf16>
    %cst_42 = arith.constant dense<0.000000e+00> : vector<256x128xf32>
    %79 = tpu.matmul %53, %78, %cst_42 {dimension_numbers = #tpu.dot_dimension_numbers<[1], [0], [0], [1], [0, 0, 1, 1], [], []>} : vector<256x768xbf16>, vector<768x128xbf16>, vector<256x128xf32> -> vector<256x128xf32>
    %80 = vector.shape_cast %79 : vector<256x128xf32> to vector<16x16x128xf32>
    %c0_i32_43 = arith.constant 0 : i32
    %81 = arith.sitofp %c0_i32_43 : i32 to f32
    %82 = vector.broadcast %81 : f32 to vector<16x1x128xf32>
    %83 = tpu.concatenate %82, %80 in 1 : vector<16x1x128xf32>, vector<16x16x128xf32> -> vector<16x17x128xf32>
    %84 = vector.broadcast %81 : f32 to vector<16x1x128xf32>
    %85 = tpu.concatenate %83, %84 in 1 : vector<16x17x128xf32>, vector<16x1x128xf32> -> vector<16x18x128xf32>
    %86 = vector.extract_strided_slice %85 {offsets = [0, 2, 0], sizes = [16, 16, 128], strides = [1, 1, 1]} : vector<16x18x128xf32> to vector<16x16x128xf32>
    %87 = arith.addf %76, %86 : vector<16x16x128xf32>
    %c0_44 = arith.constant 0 : index
    %c0_45 = arith.constant 0 : index
    %88 = vector.load %arg9[%c0_44, %c0_45] : memref<1x128xf32, #tpu.memory_space<vmem>>, vector<1x128xf32>
    %89 = vector.shape_cast %88 : vector<1x128xf32> to vector<1x1x128xf32>
    %90 = vector.broadcast %89 : vector<1x1x128xf32> to vector<16x16x128xf32>
    %91 = arith.addf %87, %90 : vector<16x16x128xf32>
    %92 = arith.truncf %91 : vector<16x16x128xf32> to vector<16x16x128xbf16>
    %c0_46 = arith.constant 0 : index
    %c0_47 = arith.constant 0 : index
    %c0_48 = arith.constant 0 : index
    %c0_49 = arith.constant 0 : index
    %93 = vector.load %arg10[%c0_46, %c0_47, %c0_48, %c0_49] : memref<1x16x16x128xbf16, #tpu.memory_space<vmem>>, vector<1x16x16x128xbf16>
    %94 = vector.shape_cast %93 : vector<1x16x16x128xbf16> to vector<16x16x128xbf16>
    %95 = vector.shape_cast %92 : vector<16x16x128xbf16> to vector<1x16x16x128xbf16>
    tpu.vector_store %arg10[%c0_46, %c0_47, %c0_48, %c0_49], %95 {strides = array<i32>} : memref<1x16x16x128xbf16, #tpu.memory_space<vmem>>, vector<1x16x16x128xbf16>,
    %96 = arith.extf %92 : vector<16x16x128xbf16> to vector<16x16x128xf32>
    %97 = vector.shape_cast %96 : vector<16x16x128xf32> to vector<256x128xf32>
    %cst_50 = arith.constant dense<0.000000e+00> : vector<128xf32>
    %98 = vector.multi_reduction <add>, %97, %cst_50 [0] : vector<256x128xf32> to vector<128xf32>
    %99 = vector.shape_cast %98 : vector<128xf32> to vector<1x128xf32>
    %100 = arith.mulf %97, %97 : vector<256x128xf32>
    %cst_51 = arith.constant dense<0.000000e+00> : vector<128xf32>
    %101 = vector.multi_reduction <add>, %100, %cst_51 [0] : vector<256x128xf32> to vector<128xf32>
    %102 = vector.shape_cast %101 : vector<128xf32> to vector<1x128xf32>
    %103 = tpu.concatenate %99, %102 in 0 : vector<1x128xf32>, vector<1x128xf32> -> vector<2x128xf32>
    %c0_52 = arith.constant 0 : index
    %c0_53 = arith.constant 0 : index
    %c0_54 = arith.constant 0 : index
    %c0_55 = arith.constant 0 : index
    %104 = vector.load %arg11[%c0_52, %c0_53, %c0_54, %c0_55] : memref<1x1x2x128xf32, #tpu.memory_space<vmem>>, vector<1x1x2x128xf32>
    %105 = vector.shape_cast %104 : vector<1x1x2x128xf32> to vector<2x128xf32>
    %106 = vector.shape_cast %103 : vector<2x128xf32> to vector<1x1x2x128xf32>
    tpu.vector_store %arg11[%c0_52, %c0_53, %c0_54, %c0_55], %106 {strides = array<i32>} : memref<1x1x2x128xf32, #tpu.memory_space<vmem>>, vector<1x1x2x128xf32>,
    return
  }
  func.func @transform_0(%arg0: i32, %arg1: i32) -> (i32, i32, i32, i32) {
    %c16_i32 = arith.constant 16 : i32
    %0 = arith.muli %arg1, %c16_i32 : i32
    %c1_i32 = arith.constant 1 : i32
    %1 = arith.subi %0, %c1_i32 : i32
    %c0_i32 = arith.constant 0 : i32
    %2 = arith.maxsi %1, %c0_i32 : i32
    %c0_i32_0 = arith.constant 0 : i32
    %c0_i32_1 = arith.constant 0 : i32
    %c0_i32_2 = arith.constant 0 : i32
    return %arg0, %2, %c0_i32_0, %c0_i32_1 : i32, i32, i32, i32
  }
  func.func @transform_1(%arg0: i32, %arg1: i32) -> (i32, i32, i32, i32) {
    %c0_i32 = arith.constant 0 : i32
    %c0_i32_0 = arith.constant 0 : i32
    %c0_i32_1 = arith.constant 0 : i32
    return %arg0, %arg1, %c0_i32, %c0_i32_0 : i32, i32, i32, i32
  }
  func.func @transform_2(%arg0: i32, %arg1: i32) -> (i32, i32, i32, i32) {
    %c1_i32 = arith.constant 1 : i32
    %0 = arith.addi %arg1, %c1_i32 : i32
    %c16_i32 = arith.constant 16 : i32
    %1 = arith.muli %0, %c16_i32 : i32
    %c15_i32 = arith.constant 15 : i32
    %2 = arith.minsi %1, %c15_i32 : i32
    %c0_i32 = arith.constant 0 : i32
    %c0_i32_0 = arith.constant 0 : i32
    %c0_i32_1 = arith.constant 0 : i32
    return %arg0, %2, %c0_i32, %c0_i32_0 : i32, i32, i32, i32
  }
  func.func @transform_3(%arg0: i32, %arg1: i32) -> (i32, i32, i32, i32) {
    %c16_i32 = arith.constant 16 : i32
    %0 = arith.muli %arg1, %c16_i32 : i32
    %c1_i32 = arith.constant 1 : i32
    %1 = arith.subi %0, %c1_i32 : i32
    %c0_i32 = arith.constant 0 : i32
    %2 = arith.maxsi %1, %c0_i32 : i32
    %c0_i32_0 = arith.constant 0 : i32
    %c0_i32_1 = arith.constant 0 : i32
    %c0_i32_2 = arith.constant 0 : i32
    return %arg0, %2, %c0_i32_0, %c0_i32_1 : i32, i32, i32, i32
  }
  func.func @transform_4(%arg0: i32, %arg1: i32) -> (i32, i32, i32, i32) {
    %c0_i32 = arith.constant 0 : i32
    %c0_i32_0 = arith.constant 0 : i32
    %c0_i32_1 = arith.constant 0 : i32
    return %arg0, %arg1, %c0_i32, %c0_i32_0 : i32, i32, i32, i32
  }
  func.func @transform_5(%arg0: i32, %arg1: i32) -> (i32, i32, i32, i32) {
    %c1_i32 = arith.constant 1 : i32
    %0 = arith.addi %arg1, %c1_i32 : i32
    %c16_i32 = arith.constant 16 : i32
    %1 = arith.muli %0, %c16_i32 : i32
    %c15_i32 = arith.constant 15 : i32
    %2 = arith.minsi %1, %c15_i32 : i32
    %c0_i32 = arith.constant 0 : i32
    %c0_i32_0 = arith.constant 0 : i32
    %c0_i32_1 = arith.constant 0 : i32
    return %arg0, %2, %c0_i32, %c0_i32_0 : i32, i32, i32, i32
  }
  func.func @transform_6(%arg0: i32, %arg1: i32) -> (i32, i32, i32) {
    %c0_i32 = arith.constant 0 : i32
    %c0_i32_0 = arith.constant 0 : i32
    %c0_i32_1 = arith.constant 0 : i32
    %c0_i32_2 = arith.constant 0 : i32
    return %c0_i32, %c0_i32_0, %c0_i32_1 : i32, i32, i32
  }
  func.func @transform_7(%arg0: i32, %arg1: i32) -> (i32, i32) {
    %c0_i32 = arith.constant 0 : i32
    %c0_i32_0 = arith.constant 0 : i32
    %c0_i32_1 = arith.constant 0 : i32
    return %c0_i32, %c0_i32_0 : i32, i32
  }
  func.func @transform_8(%arg0: i32, %arg1: i32) -> (i32, i32, i32, i32) {
    %c0_i32 = arith.constant 0 : i32
    %c0_i32_0 = arith.constant 0 : i32
    %c0_i32_1 = arith.constant 0 : i32
    return %arg0, %arg1, %c0_i32, %c0_i32_0 : i32, i32, i32, i32
  }
  func.func @transform_9(%arg0: i32, %arg1: i32) -> (i32, i32, i32, i32) {
    %c0_i32 = arith.constant 0 : i32
    %c0_i32_0 = arith.constant 0 : i32
    %c0_i32_1 = arith.constant 0 : i32
    return %arg0, %arg1, %c0_i32, %c0_i32_0 : i32, i32, i32, i32
  }
}

module attributes {stable_mosaic.version = 11 : i64} {
  func.func @kernel(%arg0: i32, %arg1: i32, %arg2: memref<1x1x16x128xbf16, #tpu.memory_space<vmem>>, %arg3: memref<1x16x16x128xbf16, #tpu.memory_space<vmem>>, %arg4: memref<1x1x16x128xbf16, #tpu.memory_space<vmem>>, %arg5: memref<1x1x128xf32, #tpu.memory_space<vmem>>, %arg6: memref<1x1x128xf32, #tpu.memory_space<vmem>>, %arg7: memref<3x384x128xbf16, #tpu.memory_space<vmem>>, %arg8: memref<1x128xf32, #tpu.memory_space<vmem>>, %arg9: memref<1x16x16x128xbf16, #tpu.memory_space<vmem>>, %arg10: memref<1x1x2x128xf32, #tpu.memory_space<vmem>>) attributes {dimension_semantics = [#tpu.dimension_semantics<parallel>, #tpu.dimension_semantics<parallel>], iteration_bounds = array<i64: 2, 1>, scalar_prefetch = 0 : i64, scratch_operands = 0 : i64, tpu.core_type = #tpu.core_type<tc>, window_params = [{transform_indices = @transform_0, window_bounds = array<i64: 1, 1, 16, 128>}, {transform_indices = @transform_1, window_bounds = array<i64: 1, 16, 16, 128>}, {transform_indices = @transform_2, window_bounds = array<i64: 1, 1, 16, 128>}, {transform_indices = @transform_3, window_bounds = array<i64: 1, 1, 128>}, {transform_indices = @transform_4, window_bounds = array<i64: 1, 1, 128>}, {pipeline_mode = #tpu.pipeline_mode<synchronous>, transform_indices = @transform_5, window_bounds = array<i64: 3, 384, 128>}, {pipeline_mode = #tpu.pipeline_mode<synchronous>, transform_indices = @transform_6, window_bounds = array<i64: 1, 128>}, {transform_indices = @transform_7, window_bounds = array<i64: 1, 16, 16, 128>}, {transform_indices = @transform_8, window_bounds = array<i64: 1, 1, 2, 128>}]} {
    %c0 = arith.constant 0 : index
    %c0_0 = arith.constant 0 : index
    %c0_1 = arith.constant 0 : index
    %c0_2 = arith.constant 0 : index
    %0 = vector.load %arg2[%c0, %c0_0, %c0_1, %c0_2] : memref<1x1x16x128xbf16, #tpu.memory_space<vmem>>, vector<1x1x16x128xbf16>
    %1 = vector.shape_cast %0 : vector<1x1x16x128xbf16> to vector<1x16x128xbf16>
    %c0_3 = arith.constant 0 : index
    %c0_4 = arith.constant 0 : index
    %c0_5 = arith.constant 0 : index
    %c0_6 = arith.constant 0 : index
    %2 = vector.load %arg3[%c0_3, %c0_4, %c0_5, %c0_6] : memref<1x16x16x128xbf16, #tpu.memory_space<vmem>>, vector<1x16x16x128xbf16>
    %3 = vector.shape_cast %2 : vector<1x16x16x128xbf16> to vector<16x16x128xbf16>
    %c0_7 = arith.constant 0 : index
    %c0_8 = arith.constant 0 : index
    %c0_9 = arith.constant 0 : index
    %c0_10 = arith.constant 0 : index
    %4 = vector.load %arg4[%c0_7, %c0_8, %c0_9, %c0_10] : memref<1x1x16x128xbf16, #tpu.memory_space<vmem>>, vector<1x1x16x128xbf16>
    %5 = vector.shape_cast %4 : vector<1x1x16x128xbf16> to vector<1x16x128xbf16>
    %6 = tpu.concatenate %1, %3, %5 in 0 : vector<1x16x128xbf16>, vector<16x16x128xbf16>, vector<1x16x128xbf16> -> vector<18x16x128xbf16>
    %7 = arith.extf %6 : vector<18x16x128xbf16> to vector<18x16x128xf32>
    %c0_11 = arith.constant 0 : index
    %c0_12 = arith.constant 0 : index
    %c0_13 = arith.constant 0 : index
    %8 = vector.load %arg5[%c0_11, %c0_12, %c0_13] : memref<1x1x128xf32, #tpu.memory_space<vmem>>, vector<1x1x128xf32>
    %9 = vector.broadcast %8 : vector<1x1x128xf32> to vector<18x16x128xf32>
    %10 = arith.subf %7, %9 : vector<18x16x128xf32>
    %c0_14 = arith.constant 0 : index
    %c0_15 = arith.constant 0 : index
    %c0_16 = arith.constant 0 : index
    %11 = vector.load %arg6[%c0_14, %c0_15, %c0_16] : memref<1x1x128xf32, #tpu.memory_space<vmem>>, vector<1x1x128xf32>
    %12 = vector.broadcast %11 : vector<1x1x128xf32> to vector<18x16x128xf32>
    %13 = arith.mulf %10, %12 : vector<18x16x128xf32>
    %cst = arith.constant 0.000000e+00 : f32
    %14 = vector.broadcast %cst : f32 to vector<18x16x128xf32>
    %15 = arith.maximumf %13, %14 : vector<18x16x128xf32>
    %16 = arith.truncf %15 : vector<18x16x128xf32> to vector<18x16x128xbf16>
    %17 = tpu.iota {dimensions = array<i32: 0>} : vector<18x1x1xi32>
    %c0_i32 = arith.constant 0 : i32
    %18 = arith.cmpi eq, %arg1, %c0_i32 : i32
    %c0_i32_17 = arith.constant 0 : i32
    %19 = vector.broadcast %c0_i32_17 : i32 to vector<18x1x1xi32>
    %20 = arith.cmpi eq, %17, %19 : vector<18x1x1xi32>
    %21 = vector.broadcast %18 : i1 to vector<18x1x1xi1>
    %22 = arith.andi %21, %20 : vector<18x1x1xi1>
    %c0_i32_18 = arith.constant 0 : i32
    %23 = arith.cmpi eq, %arg1, %c0_i32_18 : i32
    %c17_i32 = arith.constant 17 : i32
    %24 = vector.broadcast %c17_i32 : i32 to vector<18x1x1xi32>
    %25 = arith.cmpi eq, %17, %24 : vector<18x1x1xi32>
    %26 = vector.broadcast %23 : i1 to vector<18x1x1xi1>
    %27 = arith.andi %26, %25 : vector<18x1x1xi1>
    %28 = arith.ori %22, %27 : vector<18x1x1xi1>
    %cst_19 = arith.constant 0.000000e+00 : bf16
    %29 = vector.broadcast %cst_19 : bf16 to vector<18x16x128xbf16>
    %30 = vector.shape_cast %28 : vector<18x1x1xi1> to vector<18x1x1xi1>
    %31 = vector.broadcast %30 : vector<18x1x1xi1> to vector<18x16x128xi1>
    %32 = arith.select %31, %29, %16 : vector<18x16x128xi1>, vector<18x16x128xbf16>
    %33 = vector.extract_strided_slice %32 {offsets = [0, 0, 0], sizes = [16, 16, 128], strides = [1, 1, 1]} : vector<18x16x128xbf16> to vector<16x16x128xbf16>
    %34 = vector.extract_strided_slice %32 {offsets = [1, 0, 0], sizes = [16, 16, 128], strides = [1, 1, 1]} : vector<18x16x128xbf16> to vector<16x16x128xbf16>
    %35 = vector.extract_strided_slice %32 {offsets = [2, 0, 0], sizes = [16, 16, 128], strides = [1, 1, 1]} : vector<18x16x128xbf16> to vector<16x16x128xbf16>
    %36 = tpu.concatenate %33, %34, %35 in 2 : vector<16x16x128xbf16>, vector<16x16x128xbf16>, vector<16x16x128xbf16> -> vector<16x16x384xbf16>
    %37 = vector.shape_cast %36 : vector<16x16x384xbf16> to vector<256x384xbf16>
    %cst_20 = arith.constant 0.000000e+00 : f32
    %38 = vector.broadcast %cst_20 : f32 to vector<16x16x128xf32>
    %c0_21 = arith.constant 0 : index
    %c0_22 = arith.constant 0 : index
    %c0_23 = arith.constant 0 : index
    %39 = vector.load %arg7[%c0_21, %c0_22, %c0_23] : memref<3x384x128xbf16, #tpu.memory_space<vmem>>, vector<1x384x128xbf16>
    %40 = vector.shape_cast %39 : vector<1x384x128xbf16> to vector<384x128xbf16>
    %cst_24 = arith.constant dense<0.000000e+00> : vector<256x128xf32>
    %41 = tpu.matmul %37, %40, %cst_24 {dimension_numbers = #tpu.dot_dimension_numbers<[1], [0], [0], [1], [0, 0, 1, 1], [], []>} : vector<256x384xbf16>, vector<384x128xbf16>, vector<256x128xf32> -> vector<256x128xf32>
    %42 = vector.shape_cast %41 : vector<256x128xf32> to vector<16x16x128xf32>
    %c0_i32_25 = arith.constant 0 : i32
    %43 = arith.sitofp %c0_i32_25 : i32 to f32
    %44 = vector.broadcast %43 : f32 to vector<16x1x128xf32>
    %45 = tpu.concatenate %44, %42 in 1 : vector<16x1x128xf32>, vector<16x16x128xf32> -> vector<16x17x128xf32>
    %46 = vector.broadcast %43 : f32 to vector<16x1x128xf32>
    %47 = tpu.concatenate %45, %46 in 1 : vector<16x17x128xf32>, vector<16x1x128xf32> -> vector<16x18x128xf32>
    %48 = vector.extract_strided_slice %47 {offsets = [0, 0, 0], sizes = [16, 16, 128], strides = [1, 1, 1]} : vector<16x18x128xf32> to vector<16x16x128xf32>
    %49 = arith.addf %38, %48 : vector<16x16x128xf32>
    %c1 = arith.constant 1 : index
    %c0_26 = arith.constant 0 : index
    %c0_27 = arith.constant 0 : index
    %50 = vector.load %arg7[%c1, %c0_26, %c0_27] : memref<3x384x128xbf16, #tpu.memory_space<vmem>>, vector<1x384x128xbf16>
    %51 = vector.shape_cast %50 : vector<1x384x128xbf16> to vector<384x128xbf16>
    %cst_28 = arith.constant dense<0.000000e+00> : vector<256x128xf32>
    %52 = tpu.matmul %37, %51, %cst_28 {dimension_numbers = #tpu.dot_dimension_numbers<[1], [0], [0], [1], [0, 0, 1, 1], [], []>} : vector<256x384xbf16>, vector<384x128xbf16>, vector<256x128xf32> -> vector<256x128xf32>
    %53 = vector.shape_cast %52 : vector<256x128xf32> to vector<16x16x128xf32>
    %c0_i32_29 = arith.constant 0 : i32
    %54 = arith.sitofp %c0_i32_29 : i32 to f32
    %55 = vector.broadcast %54 : f32 to vector<16x1x128xf32>
    %56 = tpu.concatenate %55, %53 in 1 : vector<16x1x128xf32>, vector<16x16x128xf32> -> vector<16x17x128xf32>
    %57 = vector.broadcast %54 : f32 to vector<16x1x128xf32>
    %58 = tpu.concatenate %56, %57 in 1 : vector<16x17x128xf32>, vector<16x1x128xf32> -> vector<16x18x128xf32>
    %59 = vector.extract_strided_slice %58 {offsets = [0, 1, 0], sizes = [16, 16, 128], strides = [1, 1, 1]} : vector<16x18x128xf32> to vector<16x16x128xf32>
    %60 = arith.addf %49, %59 : vector<16x16x128xf32>
    %c2 = arith.constant 2 : index
    %c0_30 = arith.constant 0 : index
    %c0_31 = arith.constant 0 : index
    %61 = vector.load %arg7[%c2, %c0_30, %c0_31] : memref<3x384x128xbf16, #tpu.memory_space<vmem>>, vector<1x384x128xbf16>
    %62 = vector.shape_cast %61 : vector<1x384x128xbf16> to vector<384x128xbf16>
    %cst_32 = arith.constant dense<0.000000e+00> : vector<256x128xf32>
    %63 = tpu.matmul %37, %62, %cst_32 {dimension_numbers = #tpu.dot_dimension_numbers<[1], [0], [0], [1], [0, 0, 1, 1], [], []>} : vector<256x384xbf16>, vector<384x128xbf16>, vector<256x128xf32> -> vector<256x128xf32>
    %64 = vector.shape_cast %63 : vector<256x128xf32> to vector<16x16x128xf32>
    %c0_i32_33 = arith.constant 0 : i32
    %65 = arith.sitofp %c0_i32_33 : i32 to f32
    %66 = vector.broadcast %65 : f32 to vector<16x1x128xf32>
    %67 = tpu.concatenate %66, %64 in 1 : vector<16x1x128xf32>, vector<16x16x128xf32> -> vector<16x17x128xf32>
    %68 = vector.broadcast %65 : f32 to vector<16x1x128xf32>
    %69 = tpu.concatenate %67, %68 in 1 : vector<16x17x128xf32>, vector<16x1x128xf32> -> vector<16x18x128xf32>
    %70 = vector.extract_strided_slice %69 {offsets = [0, 2, 0], sizes = [16, 16, 128], strides = [1, 1, 1]} : vector<16x18x128xf32> to vector<16x16x128xf32>
    %71 = arith.addf %60, %70 : vector<16x16x128xf32>
    %c0_34 = arith.constant 0 : index
    %c0_35 = arith.constant 0 : index
    %72 = vector.load %arg8[%c0_34, %c0_35] : memref<1x128xf32, #tpu.memory_space<vmem>>, vector<1x128xf32>
    %73 = vector.shape_cast %72 : vector<1x128xf32> to vector<1x1x128xf32>
    %74 = vector.broadcast %73 : vector<1x1x128xf32> to vector<16x16x128xf32>
    %75 = arith.addf %71, %74 : vector<16x16x128xf32>
    %76 = arith.truncf %75 : vector<16x16x128xf32> to vector<16x16x128xbf16>
    %c0_36 = arith.constant 0 : index
    %c0_37 = arith.constant 0 : index
    %c0_38 = arith.constant 0 : index
    %c0_39 = arith.constant 0 : index
    %77 = vector.load %arg9[%c0_36, %c0_37, %c0_38, %c0_39] : memref<1x16x16x128xbf16, #tpu.memory_space<vmem>>, vector<1x16x16x128xbf16>
    %78 = vector.shape_cast %77 : vector<1x16x16x128xbf16> to vector<16x16x128xbf16>
    %79 = vector.shape_cast %76 : vector<16x16x128xbf16> to vector<1x16x16x128xbf16>
    tpu.vector_store %arg9[%c0_36, %c0_37, %c0_38, %c0_39], %79 {strides = array<i32>} : memref<1x16x16x128xbf16, #tpu.memory_space<vmem>>, vector<1x16x16x128xbf16>,
    %80 = arith.extf %76 : vector<16x16x128xbf16> to vector<16x16x128xf32>
    %81 = vector.shape_cast %80 : vector<16x16x128xf32> to vector<256x128xf32>
    %cst_40 = arith.constant dense<0.000000e+00> : vector<128xf32>
    %82 = vector.multi_reduction <add>, %81, %cst_40 [0] : vector<256x128xf32> to vector<128xf32>
    %83 = vector.shape_cast %82 : vector<128xf32> to vector<1x128xf32>
    %84 = arith.mulf %81, %81 : vector<256x128xf32>
    %cst_41 = arith.constant dense<0.000000e+00> : vector<128xf32>
    %85 = vector.multi_reduction <add>, %84, %cst_41 [0] : vector<256x128xf32> to vector<128xf32>
    %86 = vector.shape_cast %85 : vector<128xf32> to vector<1x128xf32>
    %87 = tpu.concatenate %83, %86 in 0 : vector<1x128xf32>, vector<1x128xf32> -> vector<2x128xf32>
    %c0_42 = arith.constant 0 : index
    %c0_43 = arith.constant 0 : index
    %c0_44 = arith.constant 0 : index
    %c0_45 = arith.constant 0 : index
    %88 = vector.load %arg10[%c0_42, %c0_43, %c0_44, %c0_45] : memref<1x1x2x128xf32, #tpu.memory_space<vmem>>, vector<1x1x2x128xf32>
    %89 = vector.shape_cast %88 : vector<1x1x2x128xf32> to vector<2x128xf32>
    %90 = vector.shape_cast %87 : vector<2x128xf32> to vector<1x1x2x128xf32>
    tpu.vector_store %arg10[%c0_42, %c0_43, %c0_44, %c0_45], %90 {strides = array<i32>} : memref<1x1x2x128xf32, #tpu.memory_space<vmem>>, vector<1x1x2x128xf32>,
    return
  }
  func.func @transform_0(%arg0: i32, %arg1: i32) -> (i32, i32, i32, i32) {
    %c16_i32 = arith.constant 16 : i32
    %0 = arith.muli %arg1, %c16_i32 : i32
    %c1_i32 = arith.constant 1 : i32
    %1 = arith.subi %0, %c1_i32 : i32
    %c0_i32 = arith.constant 0 : i32
    %2 = arith.maxsi %1, %c0_i32 : i32
    %c0_i32_0 = arith.constant 0 : i32
    %c0_i32_1 = arith.constant 0 : i32
    %c0_i32_2 = arith.constant 0 : i32
    return %arg0, %2, %c0_i32_0, %c0_i32_1 : i32, i32, i32, i32
  }
  func.func @transform_1(%arg0: i32, %arg1: i32) -> (i32, i32, i32, i32) {
    %c0_i32 = arith.constant 0 : i32
    %c0_i32_0 = arith.constant 0 : i32
    %c0_i32_1 = arith.constant 0 : i32
    return %arg0, %arg1, %c0_i32, %c0_i32_0 : i32, i32, i32, i32
  }
  func.func @transform_2(%arg0: i32, %arg1: i32) -> (i32, i32, i32, i32) {
    %c1_i32 = arith.constant 1 : i32
    %0 = arith.addi %arg1, %c1_i32 : i32
    %c16_i32 = arith.constant 16 : i32
    %1 = arith.muli %0, %c16_i32 : i32
    %c15_i32 = arith.constant 15 : i32
    %2 = arith.minsi %1, %c15_i32 : i32
    %c0_i32 = arith.constant 0 : i32
    %c0_i32_0 = arith.constant 0 : i32
    %c0_i32_1 = arith.constant 0 : i32
    return %arg0, %2, %c0_i32, %c0_i32_0 : i32, i32, i32, i32
  }
  func.func @transform_3(%arg0: i32, %arg1: i32) -> (i32, i32, i32) {
    %c0_i32 = arith.constant 0 : i32
    %c0_i32_0 = arith.constant 0 : i32
    %c0_i32_1 = arith.constant 0 : i32
    return %arg0, %c0_i32, %c0_i32_0 : i32, i32, i32
  }
  func.func @transform_4(%arg0: i32, %arg1: i32) -> (i32, i32, i32) {
    %c0_i32 = arith.constant 0 : i32
    %c0_i32_0 = arith.constant 0 : i32
    %c0_i32_1 = arith.constant 0 : i32
    return %arg0, %c0_i32, %c0_i32_0 : i32, i32, i32
  }
  func.func @transform_5(%arg0: i32, %arg1: i32) -> (i32, i32, i32) {
    %c0_i32 = arith.constant 0 : i32
    %c0_i32_0 = arith.constant 0 : i32
    %c0_i32_1 = arith.constant 0 : i32
    %c0_i32_2 = arith.constant 0 : i32
    return %c0_i32, %c0_i32_0, %c0_i32_1 : i32, i32, i32
  }
  func.func @transform_6(%arg0: i32, %arg1: i32) -> (i32, i32) {
    %c0_i32 = arith.constant 0 : i32
    %c0_i32_0 = arith.constant 0 : i32
    %c0_i32_1 = arith.constant 0 : i32
    return %c0_i32, %c0_i32_0 : i32, i32
  }
  func.func @transform_7(%arg0: i32, %arg1: i32) -> (i32, i32, i32, i32) {
    %c0_i32 = arith.constant 0 : i32
    %c0_i32_0 = arith.constant 0 : i32
    %c0_i32_1 = arith.constant 0 : i32
    return %arg0, %arg1, %c0_i32, %c0_i32_0 : i32, i32, i32, i32
  }
  func.func @transform_8(%arg0: i32, %arg1: i32) -> (i32, i32, i32, i32) {
    %c0_i32 = arith.constant 0 : i32
    %c0_i32_0 = arith.constant 0 : i32
    %c0_i32_1 = arith.constant 0 : i32
    return %arg0, %arg1, %c0_i32, %c0_i32_0 : i32, i32, i32, i32
  }
}

module attributes {stable_mosaic.version = 11 : i64} {
  func.func @_norm_relu_kernel(%arg0: i32, %arg1: i32, %arg2: memref<1x16x16x128xbf16, #tpu.memory_space<vmem>>, %arg3: memref<1x1x128xf32, #tpu.memory_space<vmem>>, %arg4: memref<1x1x128xf32, #tpu.memory_space<vmem>>, %arg5: memref<1x16x16x128xbf16, #tpu.memory_space<vmem>>) attributes {dimension_semantics = [#tpu.dimension_semantics<parallel>, #tpu.dimension_semantics<parallel>], iteration_bounds = array<i64: 2, 1>, scalar_prefetch = 0 : i64, scratch_operands = 0 : i64, tpu.core_type = #tpu.core_type<tc>, window_params = [{transform_indices = @transform_0, window_bounds = array<i64: 1, 16, 16, 128>}, {transform_indices = @transform_1, window_bounds = array<i64: 1, 1, 128>}, {transform_indices = @transform_2, window_bounds = array<i64: 1, 1, 128>}, {transform_indices = @transform_3, window_bounds = array<i64: 1, 16, 16, 128>}]} {
    %c0 = arith.constant 0 : index
    %c0_0 = arith.constant 0 : index
    %c0_1 = arith.constant 0 : index
    %c0_2 = arith.constant 0 : index
    %0 = vector.load %arg2[%c0, %c0_0, %c0_1, %c0_2] : memref<1x16x16x128xbf16, #tpu.memory_space<vmem>>, vector<1x16x16x128xbf16>
    %1 = arith.extf %0 : vector<1x16x16x128xbf16> to vector<1x16x16x128xf32>
    %c0_3 = arith.constant 0 : index
    %c0_4 = arith.constant 0 : index
    %c0_5 = arith.constant 0 : index
    %2 = vector.load %arg3[%c0_3, %c0_4, %c0_5] : memref<1x1x128xf32, #tpu.memory_space<vmem>>, vector<1x1x128xf32>
    %3 = vector.shape_cast %2 : vector<1x1x128xf32> to vector<1x1x1x128xf32>
    %4 = vector.broadcast %3 : vector<1x1x1x128xf32> to vector<1x16x16x128xf32>
    %5 = arith.subf %1, %4 : vector<1x16x16x128xf32>
    %c0_6 = arith.constant 0 : index
    %c0_7 = arith.constant 0 : index
    %c0_8 = arith.constant 0 : index
    %6 = vector.load %arg4[%c0_6, %c0_7, %c0_8] : memref<1x1x128xf32, #tpu.memory_space<vmem>>, vector<1x1x128xf32>
    %7 = vector.shape_cast %6 : vector<1x1x128xf32> to vector<1x1x1x128xf32>
    %8 = vector.broadcast %7 : vector<1x1x1x128xf32> to vector<1x16x16x128xf32>
    %9 = arith.mulf %5, %8 : vector<1x16x16x128xf32>
    %cst = arith.constant 0.000000e+00 : f32
    %10 = vector.broadcast %cst : f32 to vector<1x16x16x128xf32>
    %11 = arith.maximumf %9, %10 : vector<1x16x16x128xf32>
    %12 = arith.truncf %11 : vector<1x16x16x128xf32> to vector<1x16x16x128xbf16>
    %c0_9 = arith.constant 0 : index
    %c0_10 = arith.constant 0 : index
    %c0_11 = arith.constant 0 : index
    %c0_12 = arith.constant 0 : index
    %13 = vector.load %arg5[%c0_9, %c0_10, %c0_11, %c0_12] : memref<1x16x16x128xbf16, #tpu.memory_space<vmem>>, vector<1x16x16x128xbf16>
    tpu.vector_store %arg5[%c0_9, %c0_10, %c0_11, %c0_12], %12 {strides = array<i32>} : memref<1x16x16x128xbf16, #tpu.memory_space<vmem>>, vector<1x16x16x128xbf16>,
    return
  }
  func.func @transform_0(%arg0: i32, %arg1: i32) -> (i32, i32, i32, i32) {
    %c0_i32 = arith.constant 0 : i32
    %c0_i32_0 = arith.constant 0 : i32
    %c0_i32_1 = arith.constant 0 : i32
    return %arg0, %arg1, %c0_i32, %c0_i32_0 : i32, i32, i32, i32
  }
  func.func @transform_1(%arg0: i32, %arg1: i32) -> (i32, i32, i32) {
    %c0_i32 = arith.constant 0 : i32
    %c0_i32_0 = arith.constant 0 : i32
    %c0_i32_1 = arith.constant 0 : i32
    return %arg0, %c0_i32, %c0_i32_0 : i32, i32, i32
  }
  func.func @transform_2(%arg0: i32, %arg1: i32) -> (i32, i32, i32) {
    %c0_i32 = arith.constant 0 : i32
    %c0_i32_0 = arith.constant 0 : i32
    %c0_i32_1 = arith.constant 0 : i32
    return %arg0, %c0_i32, %c0_i32_0 : i32, i32, i32
  }
  func.func @transform_3(%arg0: i32, %arg1: i32) -> (i32, i32, i32, i32) {
    %c0_i32 = arith.constant 0 : i32
    %c0_i32_0 = arith.constant 0 : i32
    %c0_i32_1 = arith.constant 0 : i32
    return %arg0, %arg1, %c0_i32, %c0_i32_0 : i32, i32, i32, i32
  }
}

</mosaic_0001>

<bundles_post_ra>
// kernel: tile.8
= control target key start
LH: loop header
LB: loop body
LE: loop exit
PB: predicated region body
PF: predicated region fallthrough
CT: control target
= control target key end

     0   :  { %s22_s0 = inlined_call_operand.vmem [shape: f32[128], index: 0, kind: input, shape index: {}]   ;;  %s23_s1 = inlined_call_operand.vmem [shape: f32[2,128], index: 1, kind: output, shape index: {}]  }
   0x1   :  { %v4_v0 = vld [vmem:[%s22_s0] ss:$0 sm:$0xff] }
   0x2   :  { %5 = vst [vmem:[%s23_s1] sm:$0x3] %v4_v0 }

// kernel: unet_up_forward.4
= control target key start
LH: loop header
LB: loop body
LE: loop exit
PB: predicated region body
PF: predicated region fallthrough
CT: control target
= control target key end

     0   :  { %s645_s12 = smov 0   ;;  %s647_s13 = smov 0   ;;  %s761_s0 = inlined_call_operand.vmem [shape: bf16[2,8,8,8], index: 0, kind: input, shape index: {}]   ;;  %s762_s1 = inlined_call_operand.vmem [shape: bf16[2,8,256], index: 1, kind: input, shape index: {}]   ;;  %s763_s2 = inlined_call_operand.vmem [shape: f32[1,256], index: 2, kind: input, shape index: {}]   ;;  %s764_s3 = inlined_call_operand.vmem [shape: bf16[2,8,2,8,256], index: 3, kind: output, shape index: {}]  }
   0x1   :  { %s649_s14 = smov 0  }
   0x2 LB: > { %s25_s15 = sadd.s32 1, %s619_s13  ;;  %p531_p0 = scmp.ge.s32.totalorder %s623_s14, 1  ;;  %s623_s14 = sphi %s649_s14, %s13_s14   ;;  %s619_s13 = sphi %s647_s13, %s766_s13   ;;  %s615_s12 = sphi %s645_s12, %s765_s12  }
   0x3   : > { %p27_p1 = scmp.ge.s32.totalorder %s25_s15, 2  ;;  %p158_p2 = scmp.lt.s32.totalorder %s623_s14, 3 }
   0x5   : > { %s768_s15 = smov (%p27_p1, %s25_s15), 0  ;;  %p159_p3 = pnand %p531_p0, %p158_p2 }
   0x6   : > { %p192_p4 = scmp.lt.s32.totalorder (!%p159_p3), %s615_s12, 1 }
   0x7   : > { %162 = sbr.rel (%p159_p3) target bundleno = 215 (0xd7), region = 32 }
   0xc   : > { %v222_v0 = vld [vmem:[%s762_s1] sm:$0xff]  ;;  %v560_v1 = vld [vmem:[%s762_s1 + $0x8] sm:$0xff]  ;;  %vm266_vm0 = vcmask 1043456   ;;  %s770_s12 = smov (!%p192_p4, %s615_s12), 1  ;;  %vm253_vm1 = vcmask 64512  }
   0xd   : > { %v249_v2 = vunpack.c.l.b16 %v222_v0  ;;  %v250_v3 = vunpack.c.h.b16 %v222_v0  ;;  %v334_v4 = vunpack.c.l.b16 %v560_v1  ;;  %v335_v5 = vunpack.c.h.b16 %v560_v1  ;;  %s571_s20 = sshll.u32 %s770_s12, 5  ;;  %v221_v18 = vld [vmem:[%s763_s2] sm:$0x3]  ;;  %s572_s26 = sshll.u32 %s770_s12, 7 }
   0xe   : > { %s199_s23 = scalar_lea.vmem %s761_s0, %s571_s20  ;;  %v694_v19 = vperm.slane %v221_v18, 0  ;;  %v696_v20 = vperm.slane %v221_v18, 1  ;;  %s704_s29 = scalar_lea.vmem %s764_s3, %s572_s26 }
   0xf   : > { %v251_v6 = vpack.c.b16 %v249_v2, %v249_v2  ;;  %v252_v7 = vpack.c.b16 %v250_v3, %v250_v3  ;;  %v336_v8 = vpack.c.b16 %v334_v4, %v334_v4  ;;  %v337_v9 = vpack.c.b16 %v335_v5, %v335_v5  ;;  %v573_v14 = vld [vmem:[%s199_s23] sm:$0xff]  ;;  %v574_v15 = vld [vmem:[%s199_s23 + $0x8] sm:$0xff]  ;;  %v575_v16 = vld [vmem:[%s199_s23 + $0x10] sm:$0xff] }
  0x10   : > { %v576_v17 = vld [vmem:[%s199_s23 + $0x18] sm:$0xff] }
  0x11   : > { %v268_v10 = vsel %vm266_vm0, %v251_v6, 0  ;;  %v271_v11 = vsel %vm266_vm0, %v252_v7, 0  ;;  %v339_v12 = vsel %vm266_vm0, %v336_v8, 0  ;;  %v342_v13 = vsel %vm266_vm0, %v337_v9, 0 }
  0x12   : > { %280 = vmatpush.bf16.msra.mxu0 %v268_v10  ;;  %309 = vmatpush.bf16.msra.mxu1 %v271_v11 }
  0x13   : > { %351 = vmatpush.bf16.msra.mxu2 %v339_v12  ;;  %380 = vmatpush.bf16.msra.mxu3 %v342_v13 }
  0x15   : > { %552 = vmatmul.msk.bf16.vlgmr.msra.gmra.mxu0 %vm253_vm1, %v573_v14  ;;  %556 = vmatmul.msk.bf16.vlgmr.msra.gmra.mxu1 %vm253_vm1, %v573_v14 }
  0x16   : > { %561 = vmatmul.msk.bf16.vlgmr.msra.gmra.mxu2 %vm253_vm1, %v573_v14  ;;  %565 = vmatmul.msk.bf16.vlgmr.msra.gmra.mxu3 %vm253_vm1, %v573_v14 }
  0x25   : > { %553 = vmatmul.msk.bf16.gmra.mxu0 %vm253_vm1, %v574_v15  ;;  %557 = vmatmul.msk.bf16.gmra.mxu1 %vm253_vm1, %v574_v15 }
  0x26   : > { %562 = vmatmul.msk.bf16.gmra.mxu2 %vm253_vm1, %v574_v15  ;;  %566 = vmatmul.msk.bf16.gmra.mxu3 %vm253_vm1, %v574_v15 }
  0x35   : > { %554 = vmatmul.msk.bf16.gmra.mxu0 %vm253_vm1, %v575_v16  ;;  %558 = vmatmul.msk.bf16.gmra.mxu1 %vm253_vm1, %v575_v16 }
  0x36   : > { %563 = vmatmul.msk.bf16.gmra.mxu2 %vm253_vm1, %v575_v16  ;;  %567 = vmatmul.msk.bf16.gmra.mxu3 %vm253_vm1, %v575_v16 }
  0x45   : > { %555 = vmatmul.msk.bf16.gmra.mxu0 %vm253_vm1, %v576_v17  ;;  %559 = vmatmul.msk.bf16.gmra.mxu1 %vm253_vm1, %v576_v17 }
  0x46   : > { %564 = vmatmul.msk.bf16.gmra.mxu2 %vm253_vm1, %v576_v17  ;;  %568 = vmatmul.msk.bf16.gmra.mxu3 %vm253_vm1, %v576_v17 }
  0x92   : > { %v282_v21 = vpop.f32.mrf.mxu0  ;;  %v311_v22 = vpop.f32.mrf.mxu1 }
  0x93   : > { %v283_v23 = vadd.f32 %v282_v21, %v694_v19  ;;  %v312_v24 = vadd.f32 %v311_v22, %v696_v20 }
  0x95   : > { %v402_v25 = vpack.c.bf16 %v312_v24, %v283_v23 }
  0x97   : > { %418 = vst [vmem:[%s704_s29] sm:$0xff] %v402_v25 }
  0x99   : > { %v353_v26 = vpop.f32.mrf.mxu2  ;;  %v382_v27 = vpop.f32.mrf.mxu3 }
  0x9a   : > { %v354_v28 = vadd.f32 %v353_v26, %v694_v19  ;;  %v383_v29 = vadd.f32 %v382_v27, %v696_v20  ;;  %v284_v30 = vpop.f32.mrf.mxu0  ;;  %v313_v31 = vpop.f32.mrf.mxu1 }
  0x9b   : > { %v285_v32 = vadd.f32 %v284_v30, %v694_v19  ;;  %v314_v33 = vadd.f32 %v313_v31, %v696_v20 }
  0x9c   : > { %v403_v34 = vpack.c.bf16 %v383_v29, %v354_v28 }
  0x9d   : > { %v404_v35 = vpack.c.bf16 %v314_v33, %v285_v32 }
  0x9e   : > { %419 = vst [vmem:[%s704_s29 + $0x8] sm:$0xff] %v403_v34 }
  0x9f   : > { %420 = vst [vmem:[%s704_s29 + $0x10] sm:$0xff] %v404_v35 }
  0xa1   : > { %v355_v36 = vpop.f32.mrf.mxu2  ;;  %v384_v37 = vpop.f32.mrf.mxu3 }
  0xa2   : > { %v356_v38 = vadd.f32 %v355_v36, %v694_v19  ;;  %v385_v39 = vadd.f32 %v384_v37, %v696_v20  ;;  %v287_v40 = vpop.f32.mrf.mxu0  ;;  %v316_v41 = vpop.f32.mrf.mxu1 }
  0xa3   : > { %v288_v42 = vadd.f32 %v287_v40, %v694_v19  ;;  %v317_v43 = vadd.f32 %v316_v41, %v696_v20 }
  0xa4   : > { %v405_v44 = vpack.c.bf16 %v385_v39, %v356_v38 }
  0xa5   : > { %v406_v45 = vpack.c.bf16 %v317_v43, %v288_v42 }
  0xa6   : > { %421 = vst [vmem:[%s704_s29 + $0x18] sm:$0xff] %v405_v44 }
  0xa7   : > { %422 = vst [vmem:[%s704_s29 + $0x20] sm:$0xff] %v406_v45 }
  0xa9   : > { %v358_v46 = vpop.f32.mrf.mxu2  ;;  %v387_v47 = vpop.f32.mrf.mxu3 }
  0xaa   : > { %v359_v48 = vadd.f32 %v358_v46, %v694_v19  ;;  %v388_v49 = vadd.f32 %v387_v47, %v696_v20  ;;  %v289_v50 = vpop.f32.mrf.mxu0  ;;  %v318_v51 = vpop.f32.mrf.mxu1 }
  0xab   : > { %v290_v52 = vadd.f32 %v289_v50, %v694_v19  ;;  %v319_v53 = vadd.f32 %v318_v51, %v696_v20 }
  0xac   : > { %v407_v54 = vpack.c.bf16 %v388_v49, %v359_v48 }
  0xad   : > { %v408_v55 = vpack.c.bf16 %v319_v53, %v290_v52 }
  0xae   : > { %423 = vst [vmem:[%s704_s29 + $0x28] sm:$0xff] %v407_v54 }
  0xaf   : > { %424 = vst [vmem:[%s704_s29 + $0x30] sm:$0xff] %v408_v55 }
  0xb1   : > { %v360_v56 = vpop.f32.mrf.mxu2  ;;  %v389_v57 = vpop.f32.mrf.mxu3 }
  0xb2   : > { %v361_v58 = vadd.f32 %v360_v56, %v694_v19  ;;  %v390_v59 = vadd.f32 %v389_v57, %v696_v20  ;;  %v292_v60 = vpop.f32.mrf.mxu0  ;;  %v321_v61 = vpop.f32.mrf.mxu1 }
  0xb3   : > { %v293_v62 = vadd.f32 %v292_v60, %v694_v19  ;;  %v322_v63 = vadd.f32 %v321_v61, %v696_v20 }
  0xb4   : > { %v409_v0 = vpack.c.bf16 %v390_v59, %v361_v58 }
  0xb5   : > { %v410_v1 = vpack.c.bf16 %v322_v63, %v293_v62 }
  0xb6   : > { %425 = vst [vmem:[%s704_s29 + $0x38] sm:$0xff] %v409_v0 }
  0xb7   : > { %426 = vst [vmem:[%s704_s29 + $0x40] sm:$0xff] %v410_v1 }
  0xb9   : > { %v363_v2 = vpop.f32.mrf.mxu2  ;;  %v392_v3 = vpop.f32.mrf.mxu3 }
  0xba   : > { %v364_v4 = vadd.f32 %v363_v2, %v694_v19  ;;  %v393_v5 = vadd.f32 %v392_v3, %v696_v20  ;;  %v294_v6 = vpop.f32.mrf.mxu0  ;;  %v323_v7 = vpop.f32.mrf.mxu1 }
  0xbb   : > { %v295_v8 = vadd.f32 %v294_v6, %v694_v19  ;;  %v324_v9 = vadd.f32 %v323_v7, %v696_v20 }
  0xbc   : > { %v411_v10 = vpack.c.bf16 %v393_v5, %v364_v4 }
  0xbd   : > { %v412_v11 = vpack.c.bf16 %v324_v9, %v295_v8 }
  0xbe   : > { %427 = vst [vmem:[%s704_s29 + $0x48] sm:$0xff] %v411_v10 }
  0xbf   : > { %428 = vst [vmem:[%s704_s29 + $0x50] sm:$0xff] %v412_v11 }
  0xc1   : > { %v365_v12 = vpop.f32.mrf.mxu2  ;;  %v394_v13 = vpop.f32.mrf.mxu3 }
  0xc2   : > { %v366_v14 = vadd.f32 %v365_v12, %v694_v19  ;;  %v395_v15 = vadd.f32 %v394_v13, %v696_v20  ;;  %v297_v16 = vpop.f32.mrf.mxu0  ;;  %v326_v17 = vpop.f32.mrf.mxu1 }
  0xc3   : > { %v298_v18 = vadd.f32 %v297_v16, %v694_v19  ;;  %v327_v21 = vadd.f32 %v326_v17, %v696_v20 }
  0xc4   : > { %v413_v22 = vpack.c.bf16 %v395_v15, %v366_v14 }
  0xc5   : > { %v414_v23 = vpack.c.bf16 %v327_v21, %v298_v18 }
  0xc6   : > { %429 = vst [vmem:[%s704_s29 + $0x58] sm:$0xff] %v413_v22 }
  0xc7   : > { %430 = vst [vmem:[%s704_s29 + $0x60] sm:$0xff] %v414_v23 }
  0xc9   : > { %v368_v24 = vpop.f32.mrf.mxu2  ;;  %v397_v25 = vpop.f32.mrf.mxu3 }
  0xca   : > { %v369_v26 = vadd.f32 %v368_v24, %v694_v19  ;;  %v398_v27 = vadd.f32 %v397_v25, %v696_v20  ;;  %v299_v28 = vpop.f32.mrf.mxu0  ;;  %v328_v29 = vpop.f32.mrf.mxu1 }
  0xcb   : > { %v300_v30 = vadd.f32 %v299_v28, %v694_v19  ;;  %v329_v31 = vadd.f32 %v328_v29, %v696_v20 }
  0xcc   : > { %v415_v32 = vpack.c.bf16 %v398_v27, %v369_v26 }
  0xcd   : > { %v416_v33 = vpack.c.bf16 %v329_v31, %v300_v30 }
  0xce   : > { %431 = vst [vmem:[%s704_s29 + $0x68] sm:$0xff] %v415_v32 }
  0xcf   : > { %432 = vst [vmem:[%s704_s29 + $0x70] sm:$0xff] %v416_v33 }
  0xd1   : > { %v370_v34 = vpop.f32.mrf.mxu2  ;;  %v399_v35 = vpop.f32.mrf.mxu3 }
  0xd2   : > { %v371_v36 = vadd.f32 %v370_v34, %v694_v19  ;;  %v400_v37 = vadd.f32 %v399_v35, %v696_v20 }
  0xd4   : > { %v417_v38 = vpack.c.bf16 %v400_v37, %v371_v36 }
  0xd6   : > { %433 = vst [vmem:[%s704_s29 + $0x78] sm:$0xff] %v417_v38 }
  0xd7 PF: > { %s13_s14 = sadd.s32 1, %s623_s14   ;;  %s765_s12 = smov %s619_s13 }
  0xd8   : > { %p10_p5 = scmp.ge.s32.totalorder %s13_s14, 4   ;;  %s766_s13 = smov %s768_s15 }
  0xda   :  { %12 = sbr.rel (!%p10_p5) target bundleno = 2 (0x2), region = 63 }

// kernel: unet_up_forward.7
= control target key start
LH: loop header
LB: loop body
LE: loop exit
PB: predicated region body
PF: predicated region fallthrough
CT: control target
= control target key end

     0   :  { %s846_s12 = smov 0   ;;  %s848_s13 = smov 0   ;;  %s998_s0 = inlined_call_operand.vmem [shape: bf16[2,16,16,128], index: 0, kind: input, shape index: {}]   ;;  %s999_s1 = inlined_call_operand.vmem [shape: f32[2,1,128], index: 1, kind: input, shape index: {}]   ;;  %s1000_s2 = inlined_call_operand.vmem [shape: f32[2,1,128], index: 2, kind: input, shape index: {}]   ;;  %s1001_s3 = inlined_call_operand.vmem [shape: bf16[2,16,16,128], index: 3, kind: output, shape index: {}]  }
   0x1   :  { %s850_s14 = smov 0  }
   0x2 LB: > { %s25_s15 = sadd.s32 1, %s820_s13  ;;  %p593_p0 = scmp.ge.s32.totalorder %s824_s14, 1  ;;  %s824_s14 = sphi %s850_s14, %s13_s14   ;;  %s820_s13 = sphi %s848_s13, %s1003_s13   ;;  %s816_s12 = sphi %s846_s12, %s1002_s12  }
   0x3   : > { %p27_p1 = scmp.ge.s32.totalorder %s25_s15, 2  ;;  %p175_p2 = scmp.lt.s32.totalorder %s824_s14, 3 }
   0x5   : > { %s1005_s15 = smov (%p27_p1, %s25_s15), 0  ;;  %p176_p3 = pnand %p593_p0, %p175_p2 }
   0x6   : > { %p216_p4 = scmp.lt.s32.totalorder (!%p176_p3), %s816_s12, 1 }
   0x7   : > { %179 = sbr.rel (%p176_p3) target bundleno = 58 (0x3a), region = 32 }
   0xc   : > { %s1007_s12 = smov (!%p216_p4, %s816_s12), 1 }
   0xd   : > { %s600_s16 = sshll.u32 %s1007_s12, 7  ;;  %s228_s19 = scalar_lea.vmem %s999_s1, %s1007_s12 }
   0xe   : > { %s876_s22 = scalar_lea.vmem %s998_s0, %s600_s16  ;;  %s231_s25 = scalar_lea.vmem %s1000_s2, %s1007_s12  ;;  %v882_v0 = vld [vmem:[%s228_s19] ss:$0 sm:$0xff] }
   0xf   : > { %v603_v1 = vld [vmem:[%s876_s22] sm:$0xff]   ;;  %v746_v5 = vld [vmem:[%s876_s22 + $0x8] sm:$0xff]   ;;  %v747_v6 = vld [vmem:[%s876_s22 + $0x10] sm:$0xff]   ;;  %s913_s28 = scalar_lea.vmem %s1001_s3, %s600_s16 }
  0x10   : > { %v885_v2 = vld [vmem:[%s231_s25] ss:$0 sm:$0xff]  ;;  %v604_v3 = vunpack.c.l.bf16 %v603_v1  ;;  %v605_v4 = vunpack.c.h.bf16 %v603_v1  ;;  %v748_v7 = vld [vmem:[%s876_s22 + $0x18] sm:$0xff]   ;;  %v608_v8 = vunpack.c.l.bf16 %v746_v5  ;;  %v609_v9 = vunpack.c.h.bf16 %v746_v5  ;;  %v750_v33 = vld [vmem:[%s876_s22 + $0x28] sm:$0xff]  }
  0x11   : > { %v612_v10 = vunpack.c.l.bf16 %v747_v6  ;;  %v613_v11 = vunpack.c.h.bf16 %v747_v6  ;;  %v616_v14 = vunpack.c.l.bf16 %v748_v7  ;;  %v617_v15 = vunpack.c.h.bf16 %v748_v7  ;;  %v749_v28 = vld [vmem:[%s876_s22 + $0x20] sm:$0xff]   ;;  %v751_v38 = vld [vmem:[%s876_s22 + $0x30] sm:$0xff]   ;;  %v752_v43 = vld [vmem:[%s876_s22 + $0x38] sm:$0xff]  }
  0x12   : > { %v311_v12 = vsub.f32 %v604_v3, %v882_v0  ;;  %v312_v13 = vsub.f32 %v605_v4, %v882_v0  ;;  %v313_v16 = vsub.f32 %v608_v8, %v882_v0  ;;  %v314_v17 = vsub.f32 %v609_v9, %v882_v0  ;;  %v753_v1 = vld [vmem:[%s876_s22 + $0x40] sm:$0xff]  }
  0x13   : > { %v315_v18 = vsub.f32 %v612_v10, %v882_v0  ;;  %v316_v19 = vsub.f32 %v613_v11, %v882_v0  ;;  %v317_v22 = vsub.f32 %v616_v14, %v882_v0  ;;  %v318_v23 = vsub.f32 %v617_v15, %v882_v0  ;;  %v754_v11 = vld [vmem:[%s876_s22 + $0x48] sm:$0xff]  }
  0x14   : > { %v347_v20 = vmul.f32 %v885_v2, %v311_v12  ;;  %v348_v21 = vmul.f32 %v885_v2, %v312_v13  ;;  %v349_v24 = vmul.f32 %v885_v2, %v313_v16  ;;  %v350_v25 = vmul.f32 %v885_v2, %v314_v17  ;;  %v755_v16 = vld [vmem:[%s876_s22 + $0x50] sm:$0xff]  }
  0x15   : > { %v351_v26 = vmul.f32 %v885_v2, %v315_v18  ;;  %v352_v27 = vmul.f32 %v885_v2, %v316_v19  ;;  %v353_v31 = vmul.f32 %v885_v2, %v317_v22  ;;  %v354_v32 = vmul.f32 %v885_v2, %v318_v23 }
  0x16   : > { %v379_v29 = vmax.f32 %v347_v20, 0.0  ;;  %v380_v30 = vmax.f32 %v348_v21, 0.0  ;;  %v381_v34 = vmax.f32 %v349_v24, 0.0  ;;  %v382_v35 = vmax.f32 %v350_v25, 0.0  ;;  %v756_v25 = vld [vmem:[%s876_s22 + $0x58] sm:$0xff]  }
  0x17   : > { %v383_v36 = vmax.f32 %v351_v26, 0.0  ;;  %v384_v37 = vmax.f32 %v352_v27, 0.0  ;;  %v385_v40 = vmax.f32 %v353_v31, 0.0  ;;  %v386_v41 = vmax.f32 %v354_v32, 0.0 }
  0x18   : > { %v669_v39 = vpack.c.bf16 %v380_v30, %v379_v29  ;;  %v620_v42 = vunpack.c.l.bf16 %v749_v28  ;;  %v674_v44 = vpack.c.bf16 %v382_v35, %v381_v34  ;;  %v621_v46 = vunpack.c.h.bf16 %v749_v28 }
  0x19   : > { %v679_v45 = vpack.c.bf16 %v384_v37, %v383_v36  ;;  %v624_v47 = vunpack.c.l.bf16 %v750_v33  ;;  %v684_v48 = vpack.c.bf16 %v386_v41, %v385_v40  ;;  %v625_v50 = vunpack.c.h.bf16 %v750_v33 }
  0x1a   : > { %670 = vst [vmem:[%s913_s28] sm:$0xff] %v669_v39   ;;  %v319_v49 = vsub.f32 %v620_v42, %v882_v0  ;;  %v628_v51 = vunpack.c.l.bf16 %v751_v38  ;;  %v320_v52 = vsub.f32 %v621_v46, %v882_v0  ;;  %v629_v54 = vunpack.c.h.bf16 %v751_v38  ;;  %v757_v38 = vld [vmem:[%s876_s22 + $0x60] sm:$0xff]  }
  0x1b   : > { %761 = vst [vmem:[%s913_s28 + $0x8] sm:$0xff] %v674_v44   ;;  %v321_v53 = vsub.f32 %v624_v47, %v882_v0  ;;  %v632_v55 = vunpack.c.l.bf16 %v752_v43  ;;  %v322_v57 = vsub.f32 %v625_v50, %v882_v0  ;;  %v633_v59 = vunpack.c.h.bf16 %v752_v43 }
  0x1c   : > { %762 = vst [vmem:[%s913_s28 + $0x10] sm:$0xff] %v679_v45   ;;  %v355_v56 = vmul.f32 %v885_v2, %v319_v49  ;;  %v323_v58 = vsub.f32 %v628_v51, %v882_v0  ;;  %v356_v60 = vmul.f32 %v885_v2, %v320_v52  ;;  %v324_v62 = vsub.f32 %v629_v54, %v882_v0  ;;  %v758_v51 = vld [vmem:[%s876_s22 + $0x68] sm:$0xff]  }
  0x1d   : > { %763 = vst [vmem:[%s913_s28 + $0x18] sm:$0xff] %v684_v48   ;;  %v357_v61 = vmul.f32 %v885_v2, %v321_v53  ;;  %v325_v63 = vsub.f32 %v632_v55, %v882_v0  ;;  %v358_v4 = vmul.f32 %v885_v2, %v322_v57  ;;  %v326_v6 = vsub.f32 %v633_v59, %v882_v0 }
  0x1e   : > { %v387_v3 = vmax.f32 %v355_v56, 0.0  ;;  %v359_v5 = vmul.f32 %v885_v2, %v323_v58  ;;  %v388_v7 = vmax.f32 %v356_v60, 0.0  ;;  %v360_v9 = vmul.f32 %v885_v2, %v324_v62  ;;  %v759_v60 = vld [vmem:[%s876_s22 + $0x70] sm:$0xff]  }
  0x1f   : > { %v389_v8 = vmax.f32 %v357_v61, 0.0  ;;  %v361_v10 = vmul.f32 %v885_v2, %v325_v63  ;;  %v390_v12 = vmax.f32 %v358_v4, 0.0  ;;  %v362_v14 = vmul.f32 %v885_v2, %v326_v6 }
  0x20   : > { %v391_v13 = vmax.f32 %v359_v5, 0.0  ;;  %v636_v15 = vunpack.c.l.bf16 %v753_v1  ;;  %v689_v17 = vpack.c.bf16 %v388_v7, %v387_v3  ;;  %v392_v18 = vmax.f32 %v360_v9, 0.0  ;;  %v760_v3 = vld [vmem:[%s876_s22 + $0x78] sm:$0xff]  }
  0x21   : > { %v393_v19 = vmax.f32 %v361_v10, 0.0  ;;  %v637_v20 = vunpack.c.h.bf16 %v753_v1  ;;  %v694_v21 = vpack.c.bf16 %v390_v12, %v389_v8  ;;  %v394_v22 = vmax.f32 %v362_v14, 0.0 }
  0x22   : > { %v327_v23 = vsub.f32 %v636_v15, %v882_v0  ;;  %v640_v24 = vunpack.c.l.bf16 %v754_v11  ;;  %764 = vst [vmem:[%s913_s28 + $0x20] sm:$0xff] %v689_v17   ;;  %v699_v26 = vpack.c.bf16 %v392_v18, %v391_v13  ;;  %v641_v28 = vunpack.c.h.bf16 %v754_v11 }
  0x23   : > { %v328_v27 = vsub.f32 %v637_v20, %v882_v0  ;;  %v644_v29 = vunpack.c.l.bf16 %v755_v16  ;;  %765 = vst [vmem:[%s913_s28 + $0x28] sm:$0xff] %v694_v21   ;;  %v704_v30 = vpack.c.bf16 %v394_v22, %v393_v19  ;;  %v645_v33 = vunpack.c.h.bf16 %v755_v16 }
  0x24   : > { %v363_v31 = vmul.f32 %v885_v2, %v327_v23  ;;  %v329_v32 = vsub.f32 %v640_v24, %v882_v0  ;;  %766 = vst [vmem:[%s913_s28 + $0x30] sm:$0xff] %v699_v26   ;;  %v330_v35 = vsub.f32 %v641_v28, %v882_v0  ;;  %v648_v37 = vunpack.c.l.bf16 %v756_v25 }
  0x25   : > { %v364_v34 = vmul.f32 %v885_v2, %v328_v27  ;;  %v331_v36 = vsub.f32 %v644_v29, %v882_v0  ;;  %767 = vst [vmem:[%s913_s28 + $0x38] sm:$0xff] %v704_v30   ;;  %v332_v41 = vsub.f32 %v645_v33, %v882_v0  ;;  %v649_v42 = vunpack.c.h.bf16 %v756_v25 }
  0x26   : > { %v395_v39 = vmax.f32 %v363_v31, 0.0  ;;  %v365_v40 = vmul.f32 %v885_v2, %v329_v32  ;;  %v366_v44 = vmul.f32 %v885_v2, %v330_v35  ;;  %v333_v46 = vsub.f32 %v648_v37, %v882_v0 }
  0x27   : > { %v396_v43 = vmax.f32 %v364_v34, 0.0  ;;  %v367_v45 = vmul.f32 %v885_v2, %v331_v36  ;;  %v368_v48 = vmul.f32 %v885_v2, %v332_v41  ;;  %v334_v49 = vsub.f32 %v649_v42, %v882_v0 }
  0x28   : > { %v397_v47 = vmax.f32 %v365_v40, 0.0  ;;  %v652_v50 = vunpack.c.l.bf16 %v757_v38  ;;  %v398_v53 = vmax.f32 %v366_v44, 0.0  ;;  %v369_v55 = vmul.f32 %v885_v2, %v333_v46 }
  0x29   : > { %v709_v52 = vpack.c.bf16 %v396_v43, %v395_v39  ;;  %v399_v54 = vmax.f32 %v367_v45, 0.0  ;;  %v400_v56 = vmax.f32 %v368_v48, 0.0  ;;  %v370_v57 = vmul.f32 %v885_v2, %v334_v49 }
  0x2a   : > { %v653_v58 = vunpack.c.h.bf16 %v757_v38  ;;  %v335_v59 = vsub.f32 %v652_v50, %v882_v0  ;;  %v714_v61 = vpack.c.bf16 %v398_v53, %v397_v47  ;;  %v401_v62 = vmax.f32 %v369_v55, 0.0 }
  0x2b   : > { %768 = vst [vmem:[%s913_s28 + $0x40] sm:$0xff] %v709_v52   ;;  %v656_v63 = vunpack.c.l.bf16 %v758_v51  ;;  %v657_v1 = vunpack.c.h.bf16 %v758_v51  ;;  %v719_v4 = vpack.c.bf16 %v400_v56, %v399_v54  ;;  %v402_v5 = vmax.f32 %v370_v57, 0.0 }
  0x2c   : > { %v336_v6 = vsub.f32 %v653_v58, %v882_v0  ;;  %v371_v7 = vmul.f32 %v885_v2, %v335_v59  ;;  %769 = vst [vmem:[%s913_s28 + $0x48] sm:$0xff] %v714_v61   ;;  %v660_v10 = vunpack.c.l.bf16 %v759_v60  ;;  %v661_v11 = vunpack.c.h.bf16 %v759_v60 }
  0x2d   : > { %v337_v8 = vsub.f32 %v656_v63, %v882_v0  ;;  %v338_v9 = vsub.f32 %v657_v1, %v882_v0  ;;  %770 = vst [vmem:[%s913_s28 + $0x50] sm:$0xff] %v719_v4   ;;  %v724_v12 = vpack.c.bf16 %v402_v5, %v401_v62  ;;  %v664_v15 = vunpack.c.l.bf16 %v760_v3 }
  0x2e   : > { %v372_v13 = vmul.f32 %v885_v2, %v336_v6  ;;  %v403_v14 = vmax.f32 %v371_v7, 0.0  ;;  %v339_v18 = vsub.f32 %v660_v10, %v882_v0  ;;  %v340_v19 = vsub.f32 %v661_v11, %v882_v0 }
  0x2f   : > { %v373_v16 = vmul.f32 %v885_v2, %v337_v8  ;;  %v374_v17 = vmul.f32 %v885_v2, %v338_v9  ;;  %771 = vst [vmem:[%s913_s28 + $0x58] sm:$0xff] %v724_v12   ;;  %v665_v21 = vunpack.c.h.bf16 %v760_v3  ;;  %v341_v22 = vsub.f32 %v664_v15, %v882_v0 }
  0x30   : > { %v404_v20 = vmax.f32 %v372_v13, 0.0  ;;  %v375_v25 = vmul.f32 %v885_v2, %v339_v18  ;;  %v376_v26 = vmul.f32 %v885_v2, %v340_v19 }
  0x31   : > { %v405_v23 = vmax.f32 %v373_v16, 0.0  ;;  %v406_v24 = vmax.f32 %v374_v17, 0.0  ;;  %v342_v28 = vsub.f32 %v665_v21, %v882_v0  ;;  %v377_v29 = vmul.f32 %v885_v2, %v341_v22 }
  0x32   : > { %v729_v27 = vpack.c.bf16 %v404_v20, %v403_v14  ;;  %v407_v31 = vmax.f32 %v375_v25, 0.0  ;;  %v408_v32 = vmax.f32 %v376_v26, 0.0 }
  0x33   : > { %v734_v30 = vpack.c.bf16 %v406_v24, %v405_v23  ;;  %v378_v33 = vmul.f32 %v885_v2, %v342_v28  ;;  %v409_v34 = vmax.f32 %v377_v29, 0.0 }
  0x34   : > { %772 = vst [vmem:[%s913_s28 + $0x60] sm:$0xff] %v729_v27   ;;  %v739_v35 = vpack.c.bf16 %v408_v32, %v407_v31 }
  0x35   : > { %773 = vst [vmem:[%s913_s28 + $0x68] sm:$0xff] %v734_v30   ;;  %v410_v36 = vmax.f32 %v378_v33, 0.0 }
  0x36   : > { %774 = vst [vmem:[%s913_s28 + $0x70] sm:$0xff] %v739_v35  }
  0x37   : > { %v744_v37 = vpack.c.bf16 %v410_v36, %v409_v34 }
  0x39   : > { %775 = vst [vmem:[%s913_s28 + $0x78] sm:$0xff] %v744_v37  }
  0x3a PF: > { %s13_s14 = sadd.s32 1, %s824_s14   ;;  %s1002_s12 = smov %s820_s13 }
  0x3b   : > { %p10_p5 = scmp.ge.s32.totalorder %s13_s14, 4   ;;  %s1003_s13 = smov %s1005_s15 }
  0x3d   :  { %12 = sbr.rel (!%p10_p5) target bundleno = 2 (0x2), region = 68 }

// kernel: unet_up_forward.6
= control target key start
LH: loop header
LB: loop body
LE: loop exit
PB: predicated region body
PF: predicated region fallthrough
CT: control target
= control target key end

     0   :  { %s4291_s26 = smov 0   ;;  %s4293_s2 = smov 0   ;;  %s5432_s0 = inlined_call_operand.vmem [shape: bf16[2,16,16,128], index: 0, kind: input, shape index: {}, may-alias: {0,1,2}]   ;;  %s5433_s1 = inlined_call_operand.vmem [shape: bf16[2,16,16,128], index: 1, kind: input, shape index: {}, may-alias: {0,1,2}]   ;;  %s5434_s2 = inlined_call_operand.vmem [shape: bf16[2,16,16,128], index: 2, kind: input, shape index: {}, may-alias: {0,1,2}]   ;;  %s5435_s3 = inlined_call_operand.vmem [shape: f32[2,1,128], index: 3, kind: input, shape index: {}]   ;;  %s5436_s4 = inlined_call_operand.vmem [shape: f32[2,1,128], index: 4, kind: input, shape index: {}]   ;;  %s5437_s5 = inlined_call_operand.vmem [shape: bf16[3,384,128], index: 5, kind: input, shape index: {}]   ;;  %s5438_s6 = inlined_call_operand.vmem [shape: f32[1,128], index: 6, kind: input, shape index: {}]   ;;  %s5439_s7 = inlined_call_operand.vmem [shape: bf16[2,16,16,128], index: 7, kind: output, shape index: {0}]   ;;  %s5440_s8 = inlined_call_operand.vmem [shape: f32[2,1,2,128], index: 8, kind: output, shape index: {1}]  }
   0x1   :  { %s4295_s27 = smov 0  }
   0x2 LB: > { %s31_s28 = sadd.s32 1, %s4239_s2  ;;  %p3519_p0 = scmp.ge.s32.totalorder %s4243_s27, 1  ;;  %s4243_s27 = sphi %s4295_s27, %s19_s27   ;;  %s4239_s2 = sphi %s4293_s2, %s5545_s2   ;;  %s4235_s26 = sphi %s4291_s26, %s5544_s26  }
   0x3   : > { %p33_p1 = scmp.ge.s32.totalorder %s31_s28, 2  ;;  %p369_p2 = scmp.lt.s32.totalorder %s4243_s27, 3 }
   0x5   : > { %s5547_s28 = smov (%p33_p1, %s31_s28), 0  ;;  %p370_p3 = pnand %p3519_p0, %p369_p2 }
   0x7   : > { %373 = sbr.rel (%p370_p3) target bundleno = 783 (0x30f), region = 48 }
   0xc   : > { %v3927_v0 = vld [vmem:[%s5437_s5 + $0x38] sm:$0xff]  ;;  %p470_p4 = scmp.lt.s32.totalorder %s4235_s26, 1  ;;  %v3926_v1 = vld [vmem:[%s5437_s5 + $0x30] sm:$0xff]  ;;  %v3925_v3 = vld [vmem:[%s5437_s5 + $0x28] sm:$0xff]  ;;  %v4245_v54 = vmov 0   ;;  %vm1387_vm0 = vcmask 1040384  }
   0xd   : > { %1088 = vmatpush.bf16.msra.mxu0 %v3927_v0  ;;  %4166 = vmatpush.bf16.msra.mxu1 %v3927_v0  ;;  %v3924_v16 = vld [vmem:[%s5437_s5 + $0x20] sm:$0xff]  ;;  %v3923_v27 = vld [vmem:[%s5437_s5 + $0x18] sm:$0xff]  ;;  %v3922_v35 = vld [vmem:[%s5437_s5 + $0x10] sm:$0xff]  ;;  %v820_v55 = vunpack.c.l.b16 %v4245_v54  ;;  %vm2152_vm1 = vcmask 1046528   ;;  %vm2933_vm2 = vcmask 1045504  }
   0xe   : > { %s5549_s26 = smov (!%p470_p4, %s4235_s26), 1  ;;  %4167 = vmatpush.bf16.msra.mxu2 %v3927_v0  ;;  %4168 = vmatpush.bf16.msra.mxu3 %v3927_v0  ;;  %v3921_v50 = vld [vmem:[%s5437_s5 + $0x8] sm:$0xff] }
   0xf   : > { %s3916_s11 = sshll.u32 %s5549_s26, 7  ;;  %s4322_s14 = scalar_lea.vmem %s5435_s3, %s5549_s26 }
  0x10   : > { %s4329_s17 = scalar_lea.vmem %s5433_s1, %s3916_s11  ;;  %s4335_s20 = scalar_lea.vmem %s5436_s4, %s5549_s26  ;;  %v4338_v2 = vld [vmem:[%s4322_s14] ss:$0 sm:$0xff] }
  0x11   : > { %1089 = vmatpush.bf16.msra.mxu0 %v3926_v1  ;;  %4169 = vmatpush.bf16.msra.mxu1 %v3926_v1  ;;  %v4138_v4 = vld [vmem:[%s4329_s17 + $0x18] sm:$0xff]   ;;  %v4345_v7 = vld [vmem:[%s4335_s20] ss:$0 sm:$0xff]  ;;  %s5104_s16 = scalar_lea.vmem %s5439_s7, %s3916_s11  ;;  %s3528_s19 = sshll.u32 %s5549_s26, 1 }
  0x12   : > { %4170 = vmatpush.bf16.msra.mxu2 %v3926_v1  ;;  %4171 = vmatpush.bf16.msra.mxu3 %v3926_v1  ;;  %v4006_v5 = vunpack.c.l.bf16 %v4138_v4  ;;  %v4007_v6 = vunpack.c.h.bf16 %v4138_v4  ;;  %v4142_v8 = vld [vmem:[%s4329_s17 + $0x38] sm:$0xff]   ;;  %v3993_v33 = vld [vmem:[%s4329_s17] sm:$0xff]   ;;  %s520_s23 = scalar_lea.vmem %s5440_s8, %s3528_s19 }
  0x13   : > { %v4146_v9 = vld [vmem:[%s4329_s17 + $0x58] sm:$0xff]   ;;  %v4022_v10 = vunpack.c.l.bf16 %v4142_v8  ;;  %v4023_v11 = vunpack.c.h.bf16 %v4142_v8  ;;  %v4139_v36 = vld [vmem:[%s4329_s17 + $0x20] sm:$0xff]   ;;  %v3994_v39 = vunpack.c.l.bf16 %v3993_v33  ;;  %v3995_v40 = vunpack.c.h.bf16 %v3993_v33 }
  0x14   : > { %v4038_v12 = vunpack.c.l.bf16 %v4146_v9  ;;  %v4039_v13 = vunpack.c.h.bf16 %v4146_v9  ;;  %v606_v14 = vsub.f32 %v4006_v5, %v4338_v2  ;;  %v607_v15 = vsub.f32 %v4007_v6, %v4338_v2  ;;  %v4143_v37 = vld [vmem:[%s4329_s17 + $0x40] sm:$0xff]  }
  0x15   : > { %1090 = vmatpush.bf16.msra.mxu0 %v3925_v3  ;;  %4172 = vmatpush.bf16.msra.mxu1 %v3925_v3  ;;  %v614_v17 = vsub.f32 %v4022_v10, %v4338_v2  ;;  %v615_v18 = vsub.f32 %v4023_v11, %v4338_v2  ;;  %v4147_v41 = vld [vmem:[%s4329_s17 + $0x60] sm:$0xff]   ;;  %v4010_v47 = vunpack.c.l.bf16 %v4139_v36  ;;  %v4011_v48 = vunpack.c.h.bf16 %v4139_v36 }
  0x16   : > { %v622_v19 = vsub.f32 %v4038_v12, %v4338_v2  ;;  %4173 = vmatpush.bf16.msra.mxu2 %v3925_v3  ;;  %4174 = vmatpush.bf16.msra.mxu3 %v3925_v3  ;;  %v646_v20 = vmul.f32 %v4345_v7, %v606_v14  ;;  %v623_v21 = vsub.f32 %v4039_v13, %v4338_v2  ;;  %v4026_v49 = vunpack.c.l.bf16 %v4143_v37  ;;  %v3920_v4 = vld [vmem:[%s5437_s5] sm:$0xff]  ;;  %v3943_v13 = vld [vmem:[%s5437_s5 + $0xb8] sm:$0xff] }
  0x17   : > { %v647_v22 = vmul.f32 %v4345_v7, %v607_v15  ;;  %v654_v23 = vmul.f32 %v4345_v7, %v614_v17  ;;  %v655_v24 = vmul.f32 %v4345_v7, %v615_v18  ;;  %v4027_v51 = vunpack.c.h.bf16 %v4143_v37  ;;  %v3951_v14 = vld [vmem:[%s5437_s5 + $0xf8] sm:$0xff] }
  0x18   : > { %v662_v25 = vmul.f32 %v4345_v7, %v622_v19  ;;  %v663_v26 = vmul.f32 %v4345_v7, %v623_v21  ;;  %v682_v28 = vmax.f32 %v646_v20, 0.0  ;;  %v4042_v52 = vunpack.c.l.bf16 %v4147_v41 }
  0x19   : > { %1091 = vmatpush.bf16.msra.mxu0 %v3924_v16  ;;  %4175 = vmatpush.bf16.msra.mxu1 %v3924_v16  ;;  %v683_v29 = vmax.f32 %v647_v22, 0.0  ;;  %v690_v30 = vmax.f32 %v654_v23, 0.0  ;;  %v691_v31 = vmax.f32 %v655_v24, 0.0  ;;  %v4043_v53 = vunpack.c.h.bf16 %v4147_v41  ;;  %v3935_v23 = vld [vmem:[%s5437_s5 + $0x78] sm:$0xff]  ;;  %v3942_v24 = vld [vmem:[%s5437_s5 + $0xb0] sm:$0xff] }
  0x1a   : > { %4176 = vmatpush.bf16.msra.mxu2 %v3924_v16  ;;  %4177 = vmatpush.bf16.msra.mxu3 %v3924_v16  ;;  %v698_v32 = vmax.f32 %v662_v25, 0.0  ;;  %v699_v34 = vmax.f32 %v663_v26, 0.0  ;;  %v718_v38 = vpack.c.bf16 %v682_v28, %v682_v28  ;;  %v600_v57 = vsub.f32 %v3994_v39, %v4338_v2  ;;  %v3959_v25 = vld [vmem:[%s5437_s5 + $0x138] sm:$0xff]  ;;  %v3934_v39 = vld [vmem:[%s5437_s5 + $0x70] sm:$0xff] }
  0x1b   : > { %v719_v42 = vpack.c.bf16 %v683_v29, %v683_v29  ;;  %v726_v43 = vpack.c.bf16 %v690_v30, %v690_v30  ;;  %v727_v44 = vpack.c.bf16 %v691_v31, %v691_v31  ;;  %v601_v58 = vsub.f32 %v3995_v40, %v4338_v2  ;;  %v4136_v29 = vld [vmem:[%s4329_s17 + $0x8] sm:$0xff]   ;;  %v3958_v41 = vld [vmem:[%s5437_s5 + $0x130] sm:$0xff] }
  0x1c   : > { %v734_v45 = vpack.c.bf16 %v698_v32, %v698_v32  ;;  %v735_v46 = vpack.c.bf16 %v699_v34, %v699_v34  ;;  %v828_v56 = vunpack.c.l.b16 %v718_v38  ;;  %v608_v0 = vsub.f32 %v4010_v47, %v4338_v2  ;;  %v4140_v30 = vld [vmem:[%s4329_s17 + $0x28] sm:$0xff]  }
  0x1d   : > { %1092 = vmatpush.bf16.msra.mxu0 %v3923_v27  ;;  %4178 = vmatpush.bf16.msra.mxu1 %v3923_v27  ;;  %v829_v59 = vunpack.c.l.b16 %v719_v42  ;;  %v836_v60 = vunpack.c.l.b16 %v726_v43  ;;  %v837_v61 = vunpack.c.l.b16 %v727_v44  ;;  %v609_v1 = vsub.f32 %v4011_v48, %v4338_v2  ;;  %v4144_v34 = vld [vmem:[%s4329_s17 + $0x48] sm:$0xff]  }
  0x1e   : > { %4179 = vmatpush.bf16.msra.mxu2 %v3923_v27  ;;  %4180 = vmatpush.bf16.msra.mxu3 %v3923_v27  ;;  %v844_v62 = vunpack.c.l.b16 %v734_v45  ;;  %v845_v63 = vunpack.c.l.b16 %v735_v46  ;;  %v616_v3 = vsub.f32 %v4026_v49, %v4338_v2  ;;  %v617_v5 = vsub.f32 %v4027_v51, %v4338_v2  ;;  %v3950_v27 = vld [vmem:[%s5437_s5 + $0xf0] sm:$0xff]  ;;  %v4148_v38 = vld [vmem:[%s4329_s17 + $0x68] sm:$0xff]  }
  0x1f   : > { %v624_v6 = vsub.f32 %v4042_v52, %v4338_v2  ;;  %v625_v8 = vsub.f32 %v4043_v53, %v4338_v2  ;;  %v640_v9 = vmul.f32 %v4345_v7, %v600_v57  ;;  %v4389_v10 = vpack.c.b16 %v820_v55, %v820_v55  ;;  %v3941_v46 = vld [vmem:[%s5437_s5 + $0xa8] sm:$0xff] }
  0x20   : > { %v4391_v11 = vpack.c.b16 %v829_v59, %v828_v56  ;;  %v4393_v12 = vpack.c.b16 %v837_v61, %v836_v60  ;;  %v641_v15 = vmul.f32 %v4345_v7, %v601_v58  ;;  %v4402_v16 = vpack.c.b16 %v845_v63, %v844_v62  ;;  %v3949_v47 = vld [vmem:[%s5437_s5 + $0xe8] sm:$0xff] }
  0x21   : > { %1093 = vmatpush.bf16.msra.mxu0 %v3922_v35  ;;  %4181 = vmatpush.bf16.msra.mxu1 %v3922_v35  ;;  %v648_v17 = vmul.f32 %v4345_v7, %v608_v0  ;;  %v649_v18 = vmul.f32 %v4345_v7, %v609_v1  ;;  %v656_v19 = vmul.f32 %v4345_v7, %v616_v3  ;;  %v676_v26 = vmax.f32 %v640_v9, 0.0  ;;  %v3933_v60 = vld [vmem:[%s5437_s5 + $0x68] sm:$0xff]  ;;  %v3940_v3 = vld [vmem:[%s5437_s5 + $0xa0] sm:$0xff] }
  0x22   : > { %4182 = vmatpush.bf16.msra.mxu2 %v3922_v35  ;;  %4183 = vmatpush.bf16.msra.mxu3 %v3922_v35  ;;  %v657_v20 = vmul.f32 %v4345_v7, %v617_v5  ;;  %v664_v21 = vmul.f32 %v4345_v7, %v624_v6  ;;  %v665_v22 = vmul.f32 %v4345_v7, %v625_v8  ;;  %v677_v28 = vmax.f32 %v641_v15, 0.0  ;;  %v3957_v61 = vld [vmem:[%s5437_s5 + $0x128] sm:$0xff] }
  0x23   : > { %v684_v31 = vmax.f32 %v648_v17, 0.0  ;;  %v685_v32 = vmax.f32 %v649_v18, 0.0  ;;  %v692_v33 = vmax.f32 %v656_v19, 0.0  ;;  %v712_v40 = vpack.c.bf16 %v676_v26, %v676_v26 }
  0x24   : > { %v693_v35 = vmax.f32 %v657_v20, 0.0  ;;  %v700_v36 = vmax.f32 %v664_v21, 0.0  ;;  %v701_v37 = vmax.f32 %v665_v22, 0.0  ;;  %v3998_v42 = vunpack.c.l.bf16 %v4136_v29  ;;  %v3932_v21 = vld [vmem:[%s5437_s5 + $0x60] sm:$0xff] }
  0x25   : > { %1094 = vmatpush.bf16.msra.mxu0 %v3921_v50  ;;  %4184 = vmatpush.bf16.msra.mxu1 %v3921_v50  ;;  %v3999_v43 = vunpack.c.h.bf16 %v4136_v29  ;;  %v4014_v44 = vunpack.c.l.bf16 %v4140_v30  ;;  %v713_v45 = vpack.c.bf16 %v677_v28, %v677_v28  ;;  %v4015_v48 = vunpack.c.h.bf16 %v4140_v30  ;;  %v3939_v29 = vld [vmem:[%s5437_s5 + $0x98] sm:$0xff] }
  0x26   : > { %4185 = vmatpush.bf16.msra.mxu2 %v3921_v50  ;;  %4186 = vmatpush.bf16.msra.mxu3 %v3921_v50  ;;  %v4030_v49 = vunpack.c.l.bf16 %v4144_v34  ;;  %v4031_v50 = vunpack.c.h.bf16 %v4144_v34  ;;  %v720_v51 = vpack.c.bf16 %v684_v31, %v684_v31  ;;  %v721_v52 = vpack.c.bf16 %v685_v32, %v685_v32  ;;  %v3947_v30 = vld [vmem:[%s5437_s5 + $0xd8] sm:$0xff] }
  0x27   : > { %v728_v53 = vpack.c.bf16 %v692_v33, %v692_v33  ;;  %v4046_v54 = vunpack.c.l.bf16 %v4148_v38  ;;  %v729_v55 = vpack.c.bf16 %v693_v35, %v693_v35  ;;  %v736_v56 = vpack.c.bf16 %v700_v36, %v700_v36 }
  0x28   : > { %v737_v57 = vpack.c.bf16 %v701_v37, %v701_v37  ;;  %v4047_v58 = vunpack.c.h.bf16 %v4148_v38  ;;  %v822_v59 = vunpack.c.l.b16 %v712_v40  ;;  %v602_v62 = vsub.f32 %v3998_v42, %v4338_v2  ;;  %v3931_v40 = vld [vmem:[%s5437_s5 + $0x58] sm:$0xff] }
  0x29   : > { %1095 = vmatpush.bf16.msra.mxu0 %v3920_v4  ;;  %4187 = vmatpush.bf16.msra.mxu1 %v3920_v4  ;;  %v603_v63 = vsub.f32 %v3999_v43, %v4338_v2  ;;  %v610_v0 = vsub.f32 %v4014_v44, %v4338_v2  ;;  %v823_v1 = vunpack.c.l.b16 %v713_v45  ;;  %v611_v5 = vsub.f32 %v4015_v48, %v4338_v2  ;;  %v3938_v45 = vld [vmem:[%s5437_s5 + $0x90] sm:$0xff] }
  0x2a   : > { %4188 = vmatpush.bf16.msra.mxu2 %v3920_v4  ;;  %4189 = vmatpush.bf16.msra.mxu3 %v3920_v4  ;;  %v3948_v4 = vld [vmem:[%s5437_s5 + $0xe0] sm:$0xff]  ;;  %v618_v6 = vsub.f32 %v4030_v49, %v4338_v2  ;;  %v619_v8 = vsub.f32 %v4031_v50, %v4338_v2  ;;  %v830_v9 = vunpack.c.l.b16 %v720_v51  ;;  %v626_v15 = vsub.f32 %v4046_v54, %v4338_v2  ;;  %v4141_v50 = vld [vmem:[%s4329_s17 + $0x30] sm:$0xff]  }
  0x2b   : > { %v839_v17 = vunpack.c.l.b16 %v729_v55  ;;  %v846_v18 = vunpack.c.l.b16 %v736_v56  ;;  %v847_v19 = vunpack.c.l.b16 %v737_v57  ;;  %v627_v20 = vsub.f32 %v4047_v58, %v4338_v2  ;;  %v4145_v51 = vld [vmem:[%s4329_s17 + $0x50] sm:$0xff]  }
  0x2c   : > { %1096 = vmatmul.bf16.vlgmr.msra.gmra.mxu0 %v4389_v10  ;;  %1116 = vmatmul.bf16.vlgmr.msra.gmra.mxu1 %v4391_v11  ;;  %v642_v22 = vmul.f32 %v4345_v7, %v602_v62  ;;  %v651_v26 = vmul.f32 %v4345_v7, %v611_v5  ;;  %v659_v28 = vmul.f32 %v4345_v7, %v619_v8  ;;  %v3930_v55 = vld [vmem:[%s5437_s5 + $0x50] sm:$0xff]  ;;  %v4034_v5 = vunpack.c.l.bf16 %v4145_v51 }
  0x2d   : > { %1136 = vmatmul.bf16.vlgmr.msra.gmra.mxu2 %v4393_v12  ;;  %1156 = vmatmul.bf16.vlgmr.msra.gmra.mxu3 %v4402_v16  ;;  %v4480_v31 = vpack.c.b16 %v823_v1, %v822_v59  ;;  %v666_v33 = vmul.f32 %v4345_v7, %v626_v15  ;;  %v4487_v35 = vpack.c.b16 %v847_v19, %v846_v18  ;;  %v4149_v57 = vld [vmem:[%s4329_s17 + $0x70] sm:$0xff]   ;;  %v4035_v8 = vunpack.c.h.bf16 %v4145_v51  ;;  %v3929_v19 = vld [vmem:[%s5437_s5 + $0x48] sm:$0xff] }
  0x2e   : > { %1266 = vmatpush.bf16.msrb.mxu2 %v3943_v13  ;;  %1709 = vmatpush.bf16.msrb.mxu3 %v3951_v14  ;;  %v831_v13 = vunpack.c.l.b16 %v721_v52  ;;  %v838_v14 = vunpack.c.l.b16 %v728_v53  ;;  %v667_v36 = vmul.f32 %v4345_v7, %v627_v20  ;;  %v678_v37 = vmax.f32 %v642_v22, 0.0  ;;  %v3954_v58 = vld [vmem:[%s5437_s5 + $0x110] sm:$0xff]  ;;  %v3953_v20 = vld [vmem:[%s5437_s5 + $0x108] sm:$0xff] }
  0x2f   : > { %1177 = vmatpush.bf16.msrb.mxu1 %v3935_v23  ;;  %1798 = vmatpush.bf16.msrb.mxu0 %v3959_v25  ;;  %v643_v23 = vmul.f32 %v4345_v7, %v603_v63  ;;  %v3956_v25 = vld [vmem:[%s5437_s5 + $0x120] sm:$0xff]  ;;  %5466 = vst [vmem:[#allocation2_spill] sm:$0xff] %v4487_v35  ;;  %v687_v42 = vmax.f32 %v651_v26, 0.0  ;;  %v695_v44 = vmax.f32 %v659_v28, 0.0  ;;  %v702_v48 = vmax.f32 %v666_v33, 0.0  ;;  %v3937_v63 = vld [vmem:[%s5437_s5 + $0x88] sm:$0xff] }
  0x30   : > { %v4482_v32 = vpack.c.b16 %v831_v13, %v830_v9  ;;  %v4485_v34 = vpack.c.b16 %v839_v17, %v838_v14  ;;  %v703_v49 = vmax.f32 %v667_v36, 0.0  ;;  %v714_v52 = vpack.c.bf16 %v678_v37, %v678_v37  ;;  %v3944_v26 = vld [vmem:[%s5437_s5 + $0xc0] sm:$0xff] }
  0x31   : > { %v679_v38 = vmax.f32 %v643_v23, 0.0  ;;  %v723_v59 = vpack.c.bf16 %v687_v42, %v687_v42  ;;  %v738_v1 = vpack.c.bf16 %v702_v48, %v702_v48  ;;  %v4050_v9 = vunpack.c.l.bf16 %v4149_v57 }
  0x32   : > { %1267 = vmatpush.bf16.msrb.mxu2 %v3942_v24  ;;  %1710 = vmatpush.bf16.msrb.mxu3 %v3950_v27  ;;  %v650_v24 = vmul.f32 %v4345_v7, %v610_v0  ;;  %v658_v27 = vmul.f32 %v4345_v7, %v618_v6  ;;  %v3945_v0 = vld [vmem:[%s5437_s5 + $0xc8] sm:$0xff]  ;;  %v739_v6 = vpack.c.bf16 %v703_v49, %v703_v49  ;;  %v4051_v13 = vunpack.c.h.bf16 %v4149_v57 }
  0x33   : > { %1178 = vmatpush.bf16.msrb.mxu1 %v3934_v39  ;;  %1799 = vmatpush.bf16.msrb.mxu0 %v3958_v41  ;;  %v3955_v41 = vld [vmem:[%s5437_s5 + $0x118] sm:$0xff]  ;;  %v715_v53 = vpack.c.bf16 %v679_v38, %v679_v38  ;;  %v824_v14 = vunpack.c.l.b16 %v714_v52  ;;  %v621_v36 = vsub.f32 %v4035_v8, %v4338_v2  ;;  %v628_v37 = vsub.f32 %v4050_v9, %v4338_v2 }
  0x34   : > { %v686_v39 = vmax.f32 %v650_v24, 0.0  ;;  %v694_v43 = vmax.f32 %v658_v27, 0.0  ;;  %v848_v27 = vunpack.c.l.b16 %v738_v1  ;;  %v849_v33 = vunpack.c.l.b16 %v739_v6 }
  0x35   : > { %v825_v15 = vunpack.c.l.b16 %v715_v53  ;;  %v629_v38 = vsub.f32 %v4051_v13, %v4338_v2  ;;  %v661_v49 = vmul.f32 %v4345_v7, %v621_v36  ;;  %v3989_v36 = vld [vmem:[%s5437_s5 + $0x228] sm:$0xff] }
  0x36   : > { %1268 = vmatpush.bf16.msrb.mxu2 %v3941_v46  ;;  %1711 = vmatpush.bf16.msrb.mxu3 %v3949_v47  ;;  %v3946_v46 = vld [vmem:[%s5437_s5 + $0xd0] sm:$0xff]  ;;  %v722_v54 = vpack.c.bf16 %v686_v39, %v686_v39  ;;  %v4559_v48 = vpack.c.b16 %v849_v33, %v848_v27  ;;  %v3965_v33 = vld [vmem:[%s5437_s5 + $0x168] sm:$0xff] }
  0x37   : > { %1179 = vmatpush.bf16.msrb.mxu1 %v3933_v60  ;;  %1800 = vmatpush.bf16.msrb.mxu0 %v3957_v61  ;;  %v4137_v47 = vld [vmem:[%s4329_s17 + $0x10] sm:$0xff]   ;;  %v730_v60 = vpack.c.bf16 %v694_v43, %v694_v43  ;;  %v731_v61 = vpack.c.bf16 %v695_v44, %v695_v44  ;;  %v4542_v39 = vpack.c.b16 %v825_v15, %v824_v14  ;;  %v697_v57 = vmax.f32 %v661_v49, 0.0  ;;  %v3988_v49 = vld [vmem:[%s5437_s5 + $0x220] sm:$0xff] }
  0x38   : > { %v4002_v56 = vunpack.c.l.bf16 %v4137_v47  ;;  %v4003_v62 = vunpack.c.h.bf16 %v4137_v47  ;;  %v832_v17 = vunpack.c.l.b16 %v722_v54  ;;  %v669_v51 = vmul.f32 %v4345_v7, %v629_v38  ;;  %v3966_v27 = vld [vmem:[%s5437_s5 + $0x170] sm:$0xff] }
  0x39   : > { %v840_v22 = vunpack.c.l.b16 %v730_v60  ;;  %v841_v23 = vunpack.c.l.b16 %v731_v61  ;;  %v3983_v60 = vld [vmem:[%s5437_s5 + $0x1f8] sm:$0xff] }
  0x3a   : > { %1269 = vmatpush.bf16.msrb.mxu2 %v3940_v3  ;;  %1712 = vmatpush.bf16.msrb.mxu3 %v3948_v4  ;;  %v4018_v3 = vunpack.c.l.bf16 %v4141_v50  ;;  %v4019_v4 = vunpack.c.h.bf16 %v4141_v50  ;;  %v604_v18 = vsub.f32 %v4002_v56, %v4338_v2  ;;  %v605_v24 = vsub.f32 %v4003_v62, %v4338_v2  ;;  %v3967_v61 = vld [vmem:[%s5437_s5 + $0x178] sm:$0xff] }
  0x3b   : > { %1180 = vmatpush.bf16.msrb.mxu1 %v3932_v21  ;;  %1801 = vmatpush.bf16.msrb.mxu0 %v3956_v25  ;;  %v833_v21 = vunpack.c.l.b16 %v723_v59  ;;  %v3936_v25 = vld [vmem:[%s5437_s5 + $0x80] sm:$0xff]  ;;  %v668_v50 = vmul.f32 %v4345_v7, %v628_v37  ;;  %v705_v59 = vmax.f32 %v669_v51, 0.0  ;;  %v3991_v62 = vld [vmem:[%s5437_s5 + $0x238] sm:$0xff] }
  0x3c   : > { %1101 = vmatmul.bf16.gmra.mxu0 %v4480_v31  ;;  %1121 = vmatmul.bf16.gmra.mxu1 %v4482_v32  ;;  %v612_v28 = vsub.f32 %v4018_v3, %v4338_v2  ;;  %v644_v43 = vmul.f32 %v4345_v7, %v604_v18  ;;  %v645_v44 = vmul.f32 %v4345_v7, %v605_v24 }
  0x3d   : > { %1141 = vmatmul.bf16.gmra.mxu2 %v4485_v34  ;;  %1161 = vmatmul.bf16.gmra.mxu3 %v4487_v35  ;;  %v4550_v42 = vpack.c.b16 %v833_v21, %v832_v17  ;;  %v741_v8 = vpack.c.bf16 %v705_v59, %v705_v59 }
  0x3e   : > { %1270 = vmatpush.bf16.msrb.mxu2 %v3939_v29  ;;  %1713 = vmatpush.bf16.msrb.mxu3 %v3947_v30  ;;  %v613_v29 = vsub.f32 %v4019_v4, %v4338_v2  ;;  %v620_v30 = vsub.f32 %v4034_v5, %v4338_v2  ;;  %v4554_v2 = vpack.c.b16 %v841_v23, %v840_v22  ;;  %v680_v52 = vmax.f32 %v644_v43, 0.0 }
  0x3f   : > { %1181 = vmatpush.bf16.msrb.mxu1 %v3931_v40  ;;  %1802 = vmatpush.bf16.msrb.mxu0 %v3955_v41  ;;  %v3928_v40 = vld [vmem:[%s5437_s5 + $0x40] sm:$0xff]  ;;  %v681_v53 = vmax.f32 %v645_v44, 0.0  ;;  %v733_v5 = vpack.c.bf16 %v697_v57, %v697_v57 }
  0x40   : > { %v3952_v41 = vld [vmem:[%s5437_s5 + $0x100] sm:$0xff]  ;;  %v660_v47 = vmul.f32 %v4345_v7, %v620_v30  ;;  %v3981_v30 = vld [vmem:[%s5437_s5 + $0x1e8] sm:$0xff] }
  0x41   : > { %v843_v18 = vunpack.c.l.b16 %v733_v5  ;;  %v3987_v5 = vld [vmem:[%s5437_s5 + $0x218] sm:$0xff] }
  0x42   : > { %1271 = vmatpush.bf16.msrb.mxu2 %v3938_v45  ;;  %1714 = vmatpush.bf16.msrb.mxu3 %v3946_v46  ;;  %v652_v45 = vmul.f32 %v4345_v7, %v612_v28  ;;  %v653_v46 = vmul.f32 %v4345_v7, %v613_v29  ;;  %v696_v56 = vmax.f32 %v660_v47, 0.0  ;;  %v3975_v7 = vld [vmem:[%s5437_s5 + $0x1b8] sm:$0xff]  ;;  %v3990_v28 = vld [vmem:[%s5437_s5 + $0x230] sm:$0xff]  ;;  %v3973_v29 = vld [vmem:[%s5437_s5 + $0x1a8] sm:$0xff] }
  0x43   : > { %1182 = vmatpush.bf16.msrb.mxu1 %v3930_v55  ;;  %1803 = vmatpush.bf16.msrb.mxu0 %v3954_v58  ;;  %v704_v58 = vmax.f32 %v668_v50, 0.0  ;;  %v3964_v47 = vld [vmem:[%s5437_s5 + $0x160] sm:$0xff] }
  0x44   : > { %v688_v54 = vmax.f32 %v652_v45, 0.0  ;;  %v689_v55 = vmax.f32 %v653_v46, 0.0  ;;  %v732_v4 = vpack.c.bf16 %v696_v56, %v696_v56 }
  0x45   : > { %v740_v6 = vpack.c.bf16 %v704_v58, %v704_v58 }
  0x46   : > { %1272 = vmatpush.bf16.msrb.mxu2 %v3937_v63  ;;  %1715 = vmatpush.bf16.msrb.mxu3 %v3945_v0  ;;  %v716_v63 = vpack.c.bf16 %v680_v52, %v680_v52  ;;  %v717_v0 = vpack.c.bf16 %v681_v53, %v681_v53  ;;  %v724_v1 = vpack.c.bf16 %v688_v54, %v688_v54  ;;  %v842_v17 = vunpack.c.l.b16 %v732_v4  ;;  %v3963_v4 = vld [vmem:[%s5437_s5 + $0x158] sm:$0xff] }
  0x47   : > { %1183 = vmatpush.bf16.msrb.mxu1 %v3929_v19  ;;  %1804 = vmatpush.bf16.msrb.mxu0 %v3953_v20  ;;  %v725_v3 = vpack.c.bf16 %v689_v55, %v689_v55  ;;  %v850_v19 = vunpack.c.l.b16 %v740_v6  ;;  %v851_v20 = vunpack.c.l.b16 %v741_v8 }
  0x48   : > { %v826_v9 = vunpack.c.l.b16 %v716_v63  ;;  %v827_v13 = vunpack.c.l.b16 %v717_v0  ;;  %v834_v14 = vunpack.c.l.b16 %v724_v1  ;;  %v4584_v23 = vpack.c.b16 %v843_v18, %v842_v17 }
  0x49   : > { %v835_v15 = vunpack.c.l.b16 %v725_v3  ;;  %v4586_v24 = vpack.c.b16 %v851_v20, %v850_v19 }
  0x4a   : > { %1273 = vmatpush.bf16.msrb.mxu2 %v3936_v25  ;;  %1716 = vmatpush.bf16.msrb.mxu3 %v3944_v26  ;;  %v4580_v21 = vpack.c.b16 %v827_v13, %v826_v9  ;;  %v3974_v25 = vld [vmem:[%s5437_s5 + $0x1b0] sm:$0xff] }
  0x4b   : > { %1184 = vmatpush.bf16.msrb.mxu1 %v3928_v40  ;;  %1805 = vmatpush.bf16.msrb.mxu0 %v3952_v41  ;;  %v4582_v22 = vpack.c.b16 %v835_v15, %v834_v14  ;;  %v3982_v26 = vld [vmem:[%s5437_s5 + $0x1f0] sm:$0xff]  ;;  %v3972_v40 = vld [vmem:[%s5437_s5 + $0x1a0] sm:$0xff] }
  0x4c   : > { %1106 = vmatmul.bf16.gmra.mxu0 %v4542_v39  ;;  %1126 = vmatmul.bf16.gmra.mxu1 %v4550_v42  ;;  %v3980_v41 = vld [vmem:[%s5437_s5 + $0x1e0] sm:$0xff] }
  0x4d   : > { %1146 = vmatmul.bf16.gmra.mxu2 %v4554_v2  ;;  %1166 = vmatmul.bf16.gmra.mxu3 %v4559_v48 }
  0x4e   : > { %2490 = vmatpush.bf16.msra.mxu2 %v3975_v7  ;;  %2579 = vmatpush.bf16.msra.mxu3 %v3983_v60 }
  0x4f   : > { %1887 = vmatpush.bf16.msra.mxu1 %v3967_v61  ;;  %2668 = vmatpush.bf16.msra.mxu0 %v3991_v62  ;;  %v3971_v61 = vld [vmem:[%s5437_s5 + $0x198] sm:$0xff] }
  0x50   : > { %v3979_v62 = vld [vmem:[%s5437_s5 + $0x1d8] sm:$0xff] }
  0x52   : > { %2491 = vmatpush.bf16.msra.mxu2 %v3974_v25  ;;  %2580 = vmatpush.bf16.msra.mxu3 %v3982_v26 }
  0x53   : > { %1888 = vmatpush.bf16.msra.mxu1 %v3966_v27  ;;  %2669 = vmatpush.bf16.msra.mxu0 %v3990_v28  ;;  %v3970_v28 = vld [vmem:[%s5437_s5 + $0x190] sm:$0xff] }
  0x56   : > { %2492 = vmatpush.bf16.msra.mxu2 %v3973_v29  ;;  %2581 = vmatpush.bf16.msra.mxu3 %v3981_v30  ;;  %v3978_v29 = vld [vmem:[%s5437_s5 + $0x1d0] sm:$0xff] }
  0x57   : > { %1889 = vmatpush.bf16.msra.mxu1 %v3965_v33  ;;  %2670 = vmatpush.bf16.msra.mxu0 %v3989_v36 }
  0x5a   : > { %2493 = vmatpush.bf16.msra.mxu2 %v3972_v40  ;;  %2582 = vmatpush.bf16.msra.mxu3 %v3980_v41 }
  0x5b   : > { %1890 = vmatpush.bf16.msra.mxu1 %v3964_v47  ;;  %2671 = vmatpush.bf16.msra.mxu0 %v3988_v49  ;;  %v3962_v49 = vld [vmem:[%s5437_s5 + $0x150] sm:$0xff] }
  0x5c   : > { %1111 = vmatmul.bf16.gmra.mxu0 %v4580_v21  ;;  %1131 = vmatmul.bf16.gmra.mxu1 %v4582_v22 }
  0x5d   : > { %1151 = vmatmul.bf16.gmra.mxu2 %v4584_v23  ;;  %1171 = vmatmul.bf16.gmra.mxu3 %v4586_v24 }
  0x5e   : > { %2494 = vmatpush.bf16.msra.mxu2 %v3971_v61  ;;  %2583 = vmatpush.bf16.msra.mxu3 %v3979_v62  ;;  %v3986_v61 = vld [vmem:[%s5437_s5 + $0x210] sm:$0xff] }
  0x5f   : > { %1891 = vmatpush.bf16.msra.mxu1 %v3963_v4  ;;  %2672 = vmatpush.bf16.msra.mxu0 %v3987_v5 }
  0x62   : > { %2495 = vmatpush.bf16.msra.mxu2 %v3970_v28  ;;  %2584 = vmatpush.bf16.msra.mxu3 %v3978_v29 }
  0x63   : > { %1892 = vmatpush.bf16.msra.mxu1 %v3962_v49  ;;  %2673 = vmatpush.bf16.msra.mxu0 %v3986_v61 }
  0x6c   : > { %1185 = vmatmul.bf16.vlgmr.msrb.gmra.mxu1 %v4480_v31  ;;  %1806 = vmatmul.bf16.vlgmr.msrb.gmra.mxu0 %v4480_v31 }
  0x6d   : > { %1274 = vmatmul.bf16.vlgmr.msrb.gmra.mxu2 %v4542_v39  ;;  %1717 = vmatmul.bf16.vlgmr.msrb.gmra.mxu3 %v4389_v10 }
  0x7c   : > { %1190 = vmatmul.bf16.gmra.mxu1 %v4542_v39  ;;  %1811 = vmatmul.bf16.gmra.mxu0 %v4542_v39 }
  0x7d   : > { %1279 = vmatmul.bf16.gmra.mxu2 %v4580_v21  ;;  %1722 = vmatmul.bf16.gmra.mxu3 %v4480_v31 }
  0x8c   : > { %1195 = vmatmul.bf16.gmra.mxu1 %v4580_v21  ;;  %1816 = vmatmul.bf16.gmra.mxu0 %v4580_v21 }
  0x8d   : > { %1284 = vmatmul.bf16.gmra.mxu2 %v4391_v11  ;;  %1727 = vmatmul.bf16.gmra.mxu3 %v4542_v39 }
  0x9c   : > { %1200 = vmatmul.bf16.gmra.mxu1 %v4391_v11  ;;  %1821 = vmatmul.bf16.gmra.mxu0 %v4391_v11 }
  0x9d   : > { %1289 = vmatmul.bf16.gmra.mxu2 %v4482_v32  ;;  %1732 = vmatmul.bf16.gmra.mxu3 %v4580_v21 }
  0xa9   : > { %v4632_v37 = vpop.f32.mrf.mxu0  ;;  %v4634_v38 = vpop.f32.mrf.mxu1 }
  0xac   : > { %1205 = vmatmul.bf16.gmra.mxu1 %v4482_v32  ;;  %1826 = vmatmul.bf16.gmra.mxu0 %v4482_v32 }
  0xad   : > { %1294 = vmatmul.bf16.gmra.mxu2 %v4550_v42  ;;  %1737 = vmatmul.bf16.gmra.mxu3 %v4391_v11 }
  0xb0   : > { %v4646_v43 = vpop.f32.mrf.mxu2  ;;  %v4648_v44 = vpop.f32.mrf.mxu3 }
  0xb1   : > { %v4650_v45 = vpop.f32.mrf.mxu0  ;;  %v4652_v46 = vpop.f32.mrf.mxu1 }
  0xb8   : > { %v4660_v50 = vpop.f32.mrf.mxu2  ;;  %v4662_v51 = vpop.f32.mrf.mxu3 }
  0xb9   : > { %v4664_v52 = vpop.f32.mrf.mxu0  ;;  %v4666_v53 = vpop.f32.mrf.mxu1 }
  0xbc   : > { %1210 = vmatmul.bf16.gmra.mxu1 %v4550_v42  ;;  %1831 = vmatmul.bf16.gmra.mxu0 %v4550_v42 }
  0xbd   : > { %1299 = vmatmul.bf16.gmra.mxu2 %v4582_v22  ;;  %1742 = vmatmul.bf16.gmra.mxu3 %v4482_v32 }
  0xc0   : > { %v4672_v54 = vpop.f32.mrf.mxu2  ;;  %v4674_v55 = vpop.f32.mrf.mxu3 }
  0xc1   : > { %v4676_v56 = vpop.f32.mrf.mxu0  ;;  %v4678_v57 = vpop.f32.mrf.mxu1 }
  0xc8   : > { %v4680_v58 = vpop.f32.mrf.mxu2  ;;  %v4682_v59 = vpop.f32.mrf.mxu3 }
  0xc9   : > { %v4684_v7 = vpop.f32.mrf.mxu0  ;;  %v4686_v60 = vpop.f32.mrf.mxu1 }
  0xcc   : > { %1215 = vmatmul.bf16.gmra.mxu1 %v4582_v22  ;;  %1836 = vmatmul.bf16.gmra.mxu0 %v4582_v22 }
  0xcd   : > { %1304 = vmatmul.bf16.gmra.mxu2 %v4393_v12  ;;  %1747 = vmatmul.bf16.gmra.mxu3 %v4550_v42 }
  0xd0   : > { %v4698_v63 = vpop.f32.mrf.mxu2  ;;  %v4700_v0 = vpop.f32.mrf.mxu3 }
  0xd1   : > { %v4702_v1 = vpop.f32.mrf.mxu0  ;;  %v4704_v3 = vpop.f32.mrf.mxu1 }
  0xd8   : > { %v4712_v6 = vpop.f32.mrf.mxu2  ;;  %v4714_v8 = vpop.f32.mrf.mxu3 }
  0xd9   : > { %v4716_v9 = vpop.f32.mrf.mxu0  ;;  %v4718_v13 = vpop.f32.mrf.mxu1 }
  0xdc   : > { %1220 = vmatmul.bf16.gmra.mxu1 %v4393_v12  ;;  %1841 = vmatmul.bf16.gmra.mxu0 %v4393_v12 }
  0xdd   : > { %1309 = vmatmul.bf16.gmra.mxu2 %v4485_v34  ;;  %1752 = vmatmul.bf16.gmra.mxu3 %v4582_v22 }
  0xe0   : > { %v4724_v14 = vpop.f32.mrf.mxu2  ;;  %v4726_v15 = vpop.f32.mrf.mxu3 }
  0xe1   : > { %v4728_v17 = vpop.f32.mrf.mxu0  ;;  %v4730_v18 = vpop.f32.mrf.mxu1 }
  0xe8   : > { %v4732_v19 = vpop.f32.mrf.mxu2  ;;  %v4734_v20 = vpop.f32.mrf.mxu3 }
  0xe9   : > { %v1186_v25 = vpop.f32.mrf.mxu1  ;;  %v1807_v26 = vpop.f32.mrf.mxu0 }
  0xea   : > { %v1187_v27 = vadd.f32 %v1186_v25, %v4632_v37 }
  0xec   : > { %1225 = vmatmul.bf16.gmra.mxu1 %v4485_v34  ;;  %1846 = vmatmul.bf16.gmra.mxu0 %v4485_v34 }
  0xed   : > { %1314 = vmatmul.bf16.gmra.mxu2 %v4554_v2  ;;  %1757 = vmatmul.bf16.gmra.mxu3 %v4393_v12 }
  0xf0   : > { %v1275_v30 = vpop.f32.mrf.mxu2  ;;  %v1718_v33 = vpop.f32.mrf.mxu3 }
  0xf1   : > { %v4747_v36 = vadd.f32 %v1275_v30, %v1187_v27  ;;  %v4749_v37 = vadd.f32 %v1807_v26, %v1718_v33  ;;  %v1188_v40 = vpop.f32.mrf.mxu1  ;;  %v1809_v41 = vpop.f32.mrf.mxu0 }
  0xf2   : > { %v1189_v47 = vadd.f32 %v1188_v40, %v4650_v45 }
  0xf3   : > { %5467 = vst [vmem:[#allocation3_spill] sm:$0xff] %v4747_v36  ;;  %v5441_v45 = vrot.slane %v4747_v36, 7 }
  0xf8   : > { %v1277_v62 = vpop.f32.mrf.mxu2  ;;  %v1720_v4 = vpop.f32.mrf.mxu3 }
  0xf9   : > { %v1278_v5 = vadd.f32 %v1277_v62, %v1189_v47  ;;  %v4758_v25 = vadd.f32 %v1809_v41, %v1720_v4  ;;  %v1191_v26 = vpop.f32.mrf.mxu1  ;;  %v1812_v27 = vpop.f32.mrf.mxu0 }
  0xfa   : > { %v1192_v28 = vadd.f32 %v1191_v26, %v4664_v52 }
  0xfb   : > { %5468 = vst [vmem:[#allocation4_spill] sm:$0xff] %v4758_v25  ;;  %v1389_v29 = vrot.slane %v1278_v5, 7 }
  0xfc   : > { %1230 = vmatmul.bf16.gmra.mxu1 %v4554_v2  ;;  %1851 = vmatmul.bf16.gmra.mxu0 %v4554_v2 }
  0xfd   : > { %v4767_v30 = vsel %vm1387_vm0, %v5441_v45, %v1389_v29  ;;  %1319 = vmatmul.bf16.gmra.mxu2 %v4584_v23  ;;  %1762 = vmatmul.bf16.gmra.mxu3 %v4485_v34 }
  0xfe   : > { %5469 = vst [vmem:[#allocation5_spill] sm:$0xff] %v4767_v30 }
 0x100   : > { %v1280_v33 = vpop.f32.mrf.mxu2  ;;  %v1723_v40 = vpop.f32.mrf.mxu3 }
 0x101   : > { %v4771_v52 = vadd.f32 %v1280_v33, %v1192_v28  ;;  %v4773_v41 = vadd.f32 %v1812_v27, %v1723_v40  ;;  %v1193_v47 = vpop.f32.mrf.mxu1  ;;  %v1814_v49 = vpop.f32.mrf.mxu0  ;;  %v3977_v27 = vld [vmem:[%s5437_s5 + $0x1c8] sm:$0xff] }
 0x102   : > { %v1194_v61 = vadd.f32 %v1193_v47, %v4676_v56  ;;  %2585 = vmatpush.bf16.msra.mxu3 %v3977_v27 }
 0x103   : > { %v5443_v36 = vrot.slane %v4771_v52, 7 }
 0x108   : > { %v1282_v62 = vpop.f32.mrf.mxu2  ;;  %v1725_v4 = vpop.f32.mrf.mxu3 }
 0x109   : > { %v1283_v5 = vadd.f32 %v1282_v62, %v1194_v61  ;;  %v4776_v26 = vadd.f32 %v1814_v49, %v1725_v4  ;;  %v1196_v29 = vpop.f32.mrf.mxu1  ;;  %v1817_v45 = vpop.f32.mrf.mxu0  ;;  %v3961_v62 = vld [vmem:[%s5437_s5 + $0x148] sm:$0xff] }
 0x10a   : > { %v1197_v30 = vadd.f32 %v1196_v29, %v4684_v7  ;;  %v3969_v7 = vld [vmem:[%s5437_s5 + $0x188] sm:$0xff]  ;;  %1893 = vmatpush.bf16.msra.mxu1 %v3961_v62 }
 0x10b   : > { %v1392_v25 = vrot.slane %v1283_v5, 7  ;;  %2496 = vmatpush.bf16.msra.mxu2 %v3969_v7  ;;  %v3985_v4 = vld [vmem:[%s5437_s5 + $0x208] sm:$0xff] }
 0x10c   : > { %1235 = vmatmul.bf16.gmra.mxu1 %v4584_v23  ;;  %1856 = vmatmul.bf16.gmra.mxu0 %v4584_v23 }
 0x10d   : > { %v4785_v56 = vsel %vm1387_vm0, %v5443_v36, %v1392_v25  ;;  %1324 = vmatmul.bf16.gmra.mxu2 %v4402_v16  ;;  %1767 = vmatmul.bf16.gmra.mxu3 %v4554_v2 }
 0x10e   : > { %2674 = vmatpush.bf16.msra.mxu0 %v3985_v4 }
 0x110   : > { %v1285_v28 = vpop.f32.mrf.mxu2  ;;  %v1728_v33 = vpop.f32.mrf.mxu3 }
 0x111   : > { %v4795_v40 = vadd.f32 %v1285_v28, %v1197_v30  ;;  %v4797_v25 = vadd.f32 %v1817_v45, %v1728_v33  ;;  %v1198_v47 = vpop.f32.mrf.mxu1  ;;  %v1819_v49 = vpop.f32.mrf.mxu0 }
 0x112   : > { %v1199_v61 = vadd.f32 %v1198_v47, %v4702_v1 }
 0x113   : > { %5470 = vst [vmem:[#allocation6_spill] sm:$0xff] %v4795_v40  ;;  %v5444_v1 = vrot.slane %v4795_v40, 7 }
 0x118   : > { %v1287_v5 = vpop.f32.mrf.mxu2  ;;  %v1730_v29 = vpop.f32.mrf.mxu3 }
 0x119   : > { %v1288_v30 = vadd.f32 %v1287_v5, %v1199_v61  ;;  %v4806_v7 = vadd.f32 %v1819_v49, %v1730_v29  ;;  %v1201_v45 = vpop.f32.mrf.mxu1  ;;  %v1822_v27 = vpop.f32.mrf.mxu0 }
 0x11a   : > { %v1202_v28 = vadd.f32 %v1201_v45, %v4716_v9 }
 0x11b   : > { %5471 = vst [vmem:[#allocation7_spill] sm:$0xff] %v4806_v7  ;;  %v1395_v33 = vrot.slane %v1288_v30, 7 }
 0x11c   : > { %1240 = vmatmul.bf16.gmra.mxu1 %v4402_v16  ;;  %1861 = vmatmul.bf16.gmra.mxu0 %v4402_v16 }
 0x11d   : > { %v4815_v47 = vsel %vm1387_vm0, %v5444_v1, %v1395_v33  ;;  %1329 = vmatmul.bf16.gmra.mxu2 %v4487_v35  ;;  %1772 = vmatmul.bf16.gmra.mxu3 %v4584_v23 }
 0x11e   : > { %5472 = vst [vmem:[#allocation8_spill] sm:$0xff] %v4815_v47 }
 0x120   : > { %v1290_v49 = vpop.f32.mrf.mxu2  ;;  %v1733_v61 = vpop.f32.mrf.mxu3 }
 0x121   : > { %v4819_v62 = vadd.f32 %v1290_v49, %v1202_v28  ;;  %v4821_v9 = vadd.f32 %v1822_v27, %v1733_v61  ;;  %v1203_v4 = vpop.f32.mrf.mxu1  ;;  %v1824_v5 = vpop.f32.mrf.mxu0  ;;  %v4150_v28 = vld [vmem:[%s4329_s17 + $0x78] sm:$0xff]  }
 0x122   : > { %v1204_v29 = vadd.f32 %v1203_v4, %v4728_v17  ;;  %v3968_v17 = vld [vmem:[%s5437_s5 + $0x180] sm:$0xff] }
 0x123   : > { %5473 = vst [vmem:[#allocation9_spill] sm:$0xff] %v4819_v62  ;;  %v5446_v40 = vrot.slane %v4819_v62, 7  ;;  %2497 = vmatpush.bf16.msra.mxu2 %v3968_v17 }
 0x124   : > { %5474 = vst [vmem:[#allocation10_spill] sm:$0xff] %v4821_v9 }
 0x128   : > { %v1292_v30 = vpop.f32.mrf.mxu2  ;;  %v1735_v45 = vpop.f32.mrf.mxu3 }
 0x129   : > { %v1293_v36 = vadd.f32 %v1292_v30, %v1204_v29  ;;  %v4824_v33 = vadd.f32 %v1824_v5, %v1735_v45  ;;  %v1206_v1 = vpop.f32.mrf.mxu1  ;;  %v1827_v47 = vpop.f32.mrf.mxu0  ;;  %v4054_v45 = vunpack.c.l.bf16 %v4150_v28 }
 0x12a   : > { %v1207_v49 = vadd.f32 %v1206_v1, %v4634_v38  ;;  %v3960_v38 = vld [vmem:[%s5437_s5 + $0x140] sm:$0xff] }
 0x12b   : > { %5475 = vst [vmem:[#allocation11_spill] sm:$0xff] %v4824_v33  ;;  %v1398_v7 = vrot.slane %v1293_v36, 7  ;;  %v3976_v36 = vld [vmem:[%s5437_s5 + $0x1c0] sm:$0xff]  ;;  %1894 = vmatpush.bf16.msra.mxu1 %v3960_v38 }
 0x12c   : > { %1245 = vmatmul.bf16.gmra.mxu1 %v4487_v35  ;;  %1866 = vmatmul.bf16.gmra.mxu0 %v4487_v35  ;;  %v3984_v1 = vld [vmem:[%s5437_s5 + $0x200] sm:$0xff] }
 0x12d   : > { %v4832_v27 = vsel %vm1387_vm0, %v5446_v40, %v1398_v7  ;;  %1334 = vmatmul.bf16.gmra.mxu2 %v4559_v48  ;;  %1777 = vmatmul.bf16.gmra.mxu3 %v4402_v16  ;;  %v4055_v40 = vunpack.c.h.bf16 %v4150_v28 }
 0x12e   : > { %5476 = vst [vmem:[#allocation12_spill] sm:$0xff] %v4832_v27  ;;  %2586 = vmatpush.bf16.msra.mxu3 %v3976_v36  ;;  %v4218_v27 = vld [vmem:[%s4322_s14] ss:$0 sm:$0xff]  ;;  %2675 = vmatpush.bf16.msra.mxu0 %v3984_v1 }
 0x12f   : > { %v630_v62 = vsub.f32 %v4054_v45, %v4218_v27  ;;  %v631_v33 = vsub.f32 %v4055_v40, %v4218_v27  ;;  %v4219_v40 = vld [vmem:[%s4335_s20] ss:$0 sm:$0xff] }
 0x130   : > { %v1295_v7 = vpop.f32.mrf.mxu2  ;;  %v1738_v61 = vpop.f32.mrf.mxu3 }
 0x131   : > { %v4844_v4 = vadd.f32 %v1295_v7, %v1207_v49  ;;  %v4846_v5 = vadd.f32 %v1827_v47, %v1738_v61  ;;  %v1208_v29 = vpop.f32.mrf.mxu1  ;;  %v1829_v30 = vpop.f32.mrf.mxu0  ;;  %v670_v27 = vmul.f32 %v4219_v40, %v630_v62  ;;  %v671_v45 = vmul.f32 %v4219_v40, %v631_v33 }
 0x132   : > { %v1209_v17 = vadd.f32 %v1208_v29, %v4652_v46 }
 0x133   : > { %5477 = vst [vmem:[#allocation13_spill] sm:$0xff] %v4844_v4  ;;  %v706_v29 = vmax.f32 %v670_v27, 0.0 }
 0x134   : > { %5478 = vst [vmem:[#allocation14_spill] sm:$0xff] %v4846_v5  ;;  %v5448_v5 = vrot.slane %v4844_v4, 7 }
 0x138   : > { %v1297_v47 = vpop.f32.mrf.mxu2  ;;  %v1740_v36 = vpop.f32.mrf.mxu3 }
 0x139   : > { %v1298_v49 = vadd.f32 %v1297_v47, %v1209_v17  ;;  %v4856_v7 = vadd.f32 %v1829_v30, %v1740_v36  ;;  %v1211_v28 = vpop.f32.mrf.mxu1  ;;  %v1832_v61 = vpop.f32.mrf.mxu0  ;;  %v707_v30 = vmax.f32 %v671_v45, 0.0 }
 0x13a   : > { %v1212_v62 = vadd.f32 %v1211_v28, %v4666_v53 }
 0x13b   : > { %5479 = vst [vmem:[#allocation15_spill] sm:$0xff] %v4856_v7  ;;  %v1401_v9 = vrot.slane %v1298_v49, 7  ;;  %v742_v49 = vpack.c.bf16 %v706_v29, %v706_v29  ;;  %v743_v40 = vpack.c.bf16 %v707_v30, %v707_v30 }
 0x13c   : > { %1250 = vmatmul.bf16.gmra.mxu1 %v4559_v48  ;;  %1871 = vmatmul.bf16.gmra.mxu0 %v4559_v48 }
 0x13d   : > { %v4865_v46 = vsel %vm1387_vm0, %v5448_v5, %v1401_v9  ;;  %1339 = vmatmul.bf16.gmra.mxu2 %v4586_v24  ;;  %1782 = vmatmul.bf16.gmra.mxu3 %v4487_v35  ;;  %v886_v9 = vunpack.c.l.b16 %v742_v49  ;;  %v887_v5 = vunpack.c.l.b16 %v743_v40 }
 0x13e   : > { %5480 = vst [vmem:[#allocation16_spill] sm:$0xff] %v4865_v46 }
 0x13f   : > { %v4877_v35 = vpack.c.b16 %v887_v5, %v886_v9 }
 0x140   : > { %v1300_v33 = vpop.f32.mrf.mxu2  ;;  %v1743_v38 = vpop.f32.mrf.mxu3 }
 0x141   : > { %v4870_v1 = vadd.f32 %v1300_v33, %v1212_v62  ;;  %v4872_v17 = vadd.f32 %v1832_v61, %v1743_v38  ;;  %v1213_v47 = vpop.f32.mrf.mxu1  ;;  %v1834_v36 = vpop.f32.mrf.mxu0 }
 0x142   : > { %v1214_v46 = vadd.f32 %v1213_v47, %v4678_v57 }
 0x143   : > { %v5453_v61 = vrot.slane %v4870_v1, 7 }
 0x148   : > { %v1302_v4 = vpop.f32.mrf.mxu2  ;;  %v1745_v7 = vpop.f32.mrf.mxu3 }
 0x149   : > { %v1303_v27 = vadd.f32 %v1302_v4, %v1214_v46  ;;  %v4875_v45 = vadd.f32 %v1834_v36, %v1745_v7  ;;  %v1216_v53 = vpop.f32.mrf.mxu1  ;;  %v1837_v28 = vpop.f32.mrf.mxu0 }
 0x14a   : > { %v1217_v4 = vadd.f32 %v1216_v53, %v4686_v60 }
 0x14b   : > { %v1404_v62 = vrot.slane %v1303_v27, 7 }
 0x14c   : > { %1255 = vmatmul.bf16.gmra.mxu1 %v4586_v24  ;;  %1876 = vmatmul.bf16.gmra.mxu0 %v4586_v24 }
 0x14d   : > { %v4885_v57 = vsel %vm1387_vm0, %v5453_v61, %v1404_v62  ;;  %1344 = vmatmul.bf16.gmra.mxu2 %v4877_v35  ;;  %1787 = vmatmul.bf16.gmra.mxu3 %v4559_v48 }
 0x150   : > { %v1305_v5 = vpop.f32.mrf.mxu2  ;;  %v1748_v7 = vpop.f32.mrf.mxu3 }
 0x151   : > { %v4890_v46 = vadd.f32 %v1305_v5, %v1217_v4  ;;  %v4892_v29 = vadd.f32 %v1837_v28, %v1748_v7  ;;  %v1218_v30 = vpop.f32.mrf.mxu1  ;;  %v1839_v33 = vpop.f32.mrf.mxu0 }
 0x152   : > { %v1219_v38 = vadd.f32 %v1218_v30, %v4704_v3 }
 0x153   : > { %v5452_v62 = vrot.slane %v4890_v46, 7 }
 0x158   : > { %v1307_v47 = vpop.f32.mrf.mxu2  ;;  %v1750_v36 = vpop.f32.mrf.mxu3 }
 0x159   : > { %v1308_v49 = vadd.f32 %v1307_v47, %v1219_v38  ;;  %v4895_v40 = vadd.f32 %v1839_v33, %v1750_v36  ;;  %v1221_v9 = vpop.f32.mrf.mxu1  ;;  %v1842_v27 = vpop.f32.mrf.mxu0 }
 0x15a   : > { %v1222_v3 = vadd.f32 %v1221_v9, %v4718_v13 }
 0x15b   : > { %v1407_v60 = vrot.slane %v1308_v49, 7 }
 0x15c   : > { %1260 = vmatmul.bf16.gmra.mxu1 %v4877_v35  ;;  %1881 = vmatmul.bf16.gmra.mxu0 %v4877_v35 }
 0x15d   : > { %v4903_v53 = vsel %vm1387_vm0, %v5452_v62, %v1407_v60  ;;  %1349 = vmatmul.bf16.gmra.mxu2 %v4389_v10  ;;  %1792 = vmatmul.bf16.gmra.mxu3 %v4586_v24 }
 0x15e   : > { %5481 = vst [vmem:[#allocation17_spill] sm:$0xff] %v4903_v53 }
 0x160   : > { %v1310_v28 = vpop.f32.mrf.mxu2  ;;  %v1753_v4 = vpop.f32.mrf.mxu3 }
 0x161   : > { %v4908_v5 = vadd.f32 %v1310_v28, %v1222_v3  ;;  %v4910_v7 = vadd.f32 %v1842_v27, %v1753_v4  ;;  %v1223_v30 = vpop.f32.mrf.mxu1  ;;  %v1844_v33 = vpop.f32.mrf.mxu0 }
 0x162   : > { %v1224_v38 = vadd.f32 %v1223_v30, %v4730_v18 }
 0x163   : > { %5482 = vst [vmem:[#allocation18_spill] sm:$0xff] %v4908_v5  ;;  %v5454_v53 = vrot.slane %v4908_v5, 7 }
 0x168   : > { %v1312_v47 = vpop.f32.mrf.mxu2  ;;  %v1755_v36 = vpop.f32.mrf.mxu3 }
 0x169   : > { %v1313_v49 = vadd.f32 %v1312_v47, %v1224_v38  ;;  %v4913_v60 = vadd.f32 %v1844_v33, %v1755_v36  ;;  %v1226_v62 = vpop.f32.mrf.mxu1  ;;  %v1847_v61 = vpop.f32.mrf.mxu0 }
 0x16a   : > { %v1227_v18 = vadd.f32 %v1226_v62, %v4646_v43 }
 0x16b   : > { %v1410_v13 = vrot.slane %v1313_v49, 7 }
 0x16c   : > { %1895 = vmatmul.bf16.vlgmr.msra.gmra.mxu1 %v4542_v39  ;;  %2676 = vmatmul.bf16.vlgmr.msra.gmra.mxu0 %v4542_v39 }
 0x16d   : > { %v4921_v9 = vsel %vm1387_vm0, %v5454_v53, %v1410_v13  ;;  %2498 = vmatmul.bf16.vlgmr.msra.gmra.mxu2 %v4389_v10  ;;  %2587 = vmatmul.bf16.vlgmr.msra.gmra.mxu3 %v4480_v31 }
 0x16e   : > { %5483 = vst [vmem:[#allocation19_spill] sm:$0xff] %v4921_v9 }
 0x170   : > { %v1315_v27 = vpop.f32.mrf.mxu2  ;;  %v1758_v3 = vpop.f32.mrf.mxu3 }
 0x171   : > { %v4926_v28 = vadd.f32 %v1315_v27, %v1227_v18  ;;  %v4928_v4 = vadd.f32 %v1847_v61, %v1758_v3  ;;  %v1228_v30 = vpop.f32.mrf.mxu1  ;;  %v1849_v33 = vpop.f32.mrf.mxu0 }
 0x172   : > { %v1229_v38 = vadd.f32 %v1228_v30, %v4660_v50 }
 0x173   : > { %v5456_v5 = vrot.slane %v4926_v28, 7 }
 0x178   : > { %v1317_v47 = vpop.f32.mrf.mxu2  ;;  %v1760_v36 = vpop.f32.mrf.mxu3 }
 0x179   : > { %v1318_v49 = vadd.f32 %v1317_v47, %v1229_v38  ;;  %v4931_v13 = vadd.f32 %v1849_v33, %v1760_v36  ;;  %v1231_v53 = vpop.f32.mrf.mxu1  ;;  %v1852_v9 = vpop.f32.mrf.mxu0 }
 0x17a   : > { %v1232_v50 = vadd.f32 %v1231_v53, %v4672_v54 }
 0x17b   : > { %v1413_v43 = vrot.slane %v1318_v49, 7 }
 0x17c   : > { %1900 = vmatmul.bf16.gmra.mxu1 %v4580_v21  ;;  %2681 = vmatmul.bf16.gmra.mxu0 %v4580_v21 }
 0x17d   : > { %v4939_v61 = vsel %vm1387_vm0, %v5456_v5, %v1413_v43  ;;  %2503 = vmatmul.bf16.gmra.mxu2 %v4480_v31  ;;  %2592 = vmatmul.bf16.gmra.mxu3 %v4542_v39 }
 0x17e   : > { %5484 = vst [vmem:[#allocation20_spill] sm:$0xff] %v4939_v61 }
 0x180   : > { %v1320_v62 = vpop.f32.mrf.mxu2  ;;  %v1763_v18 = vpop.f32.mrf.mxu3 }
 0x181   : > { %v4944_v27 = vadd.f32 %v1320_v62, %v1232_v50  ;;  %v4946_v3 = vadd.f32 %v1852_v9, %v1763_v18  ;;  %v1233_v30 = vpop.f32.mrf.mxu1  ;;  %v1854_v33 = vpop.f32.mrf.mxu0 }
 0x182   : > { %v1234_v38 = vadd.f32 %v1233_v30, %v4680_v58 }
 0x183   : > { %v5457_v61 = vrot.slane %v4944_v27, 7 }
 0x188   : > { %v1322_v47 = vpop.f32.mrf.mxu2  ;;  %v1765_v36 = vpop.f32.mrf.mxu3 }
 0x189   : > { %v1323_v49 = vadd.f32 %v1322_v47, %v1234_v38  ;;  %v4949_v43 = vadd.f32 %v1854_v33, %v1765_v36  ;;  %v1236_v31 = vpop.f32.mrf.mxu1  ;;  %v1857_v5 = vpop.f32.mrf.mxu0 }
 0x18a   : > { %v1237_v58 = vadd.f32 %v1236_v31, %v4698_v63 }
 0x18b   : > { %v1416_v54 = vrot.slane %v1323_v49, 7 }
 0x18c   : > { %1905 = vmatmul.bf16.gmra.mxu1 %v4391_v11  ;;  %2686 = vmatmul.bf16.gmra.mxu0 %v4391_v11 }
 0x18d   : > { %v4957_v53 = vsel %vm1387_vm0, %v5457_v61, %v1416_v54  ;;  %2508 = vmatmul.bf16.gmra.mxu2 %v4542_v39  ;;  %2597 = vmatmul.bf16.gmra.mxu3 %v4580_v21 }
 0x18e   : > { %5485 = vst [vmem:[#allocation21_spill] sm:$0xff] %v4957_v53 }
 0x190   : > { %v1325_v9 = vpop.f32.mrf.mxu2  ;;  %v1768_v50 = vpop.f32.mrf.mxu3 }
 0x191   : > { %v4962_v62 = vadd.f32 %v1325_v9, %v1237_v58  ;;  %v4964_v18 = vadd.f32 %v1857_v5, %v1768_v50  ;;  %v1238_v30 = vpop.f32.mrf.mxu1  ;;  %v1859_v33 = vpop.f32.mrf.mxu0 }
 0x192   : > { %v1239_v38 = vadd.f32 %v1238_v30, %v4712_v6 }
 0x193   : > { %v5458_v53 = vrot.slane %v4962_v62, 7 }
 0x198   : > { %v1327_v47 = vpop.f32.mrf.mxu2  ;;  %v1770_v36 = vpop.f32.mrf.mxu3 }
 0x199   : > { %v1328_v49 = vadd.f32 %v1327_v47, %v1239_v38  ;;  %v4967_v54 = vadd.f32 %v1859_v33, %v1770_v36  ;;  %v1241_v39 = vpop.f32.mrf.mxu1  ;;  %v1862_v61 = vpop.f32.mrf.mxu0 }
 0x19a   : > { %v1242_v6 = vadd.f32 %v1241_v39, %v4724_v14 }
 0x19b   : > { %v1419_v63 = vrot.slane %v1328_v49, 7 }
 0x19c   : > { %1910 = vmatmul.bf16.gmra.mxu1 %v4482_v32  ;;  %2691 = vmatmul.bf16.gmra.mxu0 %v4482_v32 }
 0x19d   : > { %v4975_v5 = vsel %vm1387_vm0, %v5458_v53, %v1419_v63  ;;  %2513 = vmatmul.bf16.gmra.mxu2 %v4580_v21  ;;  %2602 = vmatmul.bf16.gmra.mxu3 %v4391_v11 }
 0x19e   : > { %5486 = vst [vmem:[#allocation22_spill] sm:$0xff] %v4975_v5 }
 0x1a0   : > { %v1330_v31 = vpop.f32.mrf.mxu2  ;;  %v1773_v58 = vpop.f32.mrf.mxu3 }
 0x1a1   : > { %v4980_v9 = vadd.f32 %v1330_v31, %v1242_v6  ;;  %v4982_v50 = vadd.f32 %v1862_v61, %v1773_v58  ;;  %v1243_v30 = vpop.f32.mrf.mxu1  ;;  %v1864_v33 = vpop.f32.mrf.mxu0 }
 0x1a2   : > { %v1244_v38 = vadd.f32 %v1243_v30, %v4732_v19 }
 0x1a3   : > { %v5459_v5 = vrot.slane %v4980_v9, 7 }
 0x1a8   : > { %v1332_v47 = vpop.f32.mrf.mxu2  ;;  %v1775_v36 = vpop.f32.mrf.mxu3 }
 0x1a9   : > { %v1333_v49 = vadd.f32 %v1332_v47, %v1244_v38  ;;  %v4985_v63 = vadd.f32 %v1864_v33, %v1775_v36  ;;  %v1246_v21 = vpop.f32.mrf.mxu1  ;;  %v1867_v53 = vpop.f32.mrf.mxu0 }
 0x1aa   : > { %v1247_v19 = vadd.f32 %v1246_v21, %v4648_v44 }
 0x1ab   : > { %v1422_v14 = vrot.slane %v1333_v49, 7 }
 0x1ac   : > { %1915 = vmatmul.bf16.gmra.mxu1 %v4550_v42  ;;  %2696 = vmatmul.bf16.gmra.mxu0 %v4550_v42 }
 0x1ad   : > { %v4993_v61 = vsel %vm1387_vm0, %v5459_v5, %v1422_v14  ;;  %2518 = vmatmul.bf16.gmra.mxu2 %v4391_v11  ;;  %2607 = vmatmul.bf16.gmra.mxu3 %v4482_v32 }
 0x1ae   : > { %5487 = vst [vmem:[#allocation23_spill] sm:$0xff] %v4993_v61 }
 0x1b0   : > { %v1335_v39 = vpop.f32.mrf.mxu2  ;;  %v1778_v6 = vpop.f32.mrf.mxu3 }
 0x1b1   : > { %v4998_v31 = vadd.f32 %v1335_v39, %v1247_v19  ;;  %v5000_v58 = vadd.f32 %v1867_v53, %v1778_v6  ;;  %v1248_v30 = vpop.f32.mrf.mxu1  ;;  %v1869_v33 = vpop.f32.mrf.mxu0 }
 0x1b2   : > { %v1249_v38 = vadd.f32 %v1248_v30, %v4662_v51 }
 0x1b3   : > { %v5460_v61 = vrot.slane %v4998_v31, 7 }
 0x1b8   : > { %v1337_v47 = vpop.f32.mrf.mxu2  ;;  %v1780_v36 = vpop.f32.mrf.mxu3 }
 0x1b9   : > { %v1338_v49 = vadd.f32 %v1337_v47, %v1249_v38  ;;  %v5003_v14 = vadd.f32 %v1869_v33, %v1780_v36  ;;  %v1251_v11 = vpop.f32.mrf.mxu1  ;;  %v1872_v5 = vpop.f32.mrf.mxu0 }
 0x1ba   : > { %v1252_v51 = vadd.f32 %v1251_v11, %v4674_v55 }
 0x1bb   : > { %v1425_v44 = vrot.slane %v1338_v49, 7 }
 0x1bc   : > { %1920 = vmatmul.bf16.gmra.mxu1 %v4582_v22  ;;  %2701 = vmatmul.bf16.gmra.mxu0 %v4582_v22 }
 0x1bd   : > { %v5011_v53 = vsel %vm1387_vm0, %v5460_v61, %v1425_v44  ;;  %2523 = vmatmul.bf16.gmra.mxu2 %v4482_v32  ;;  %2612 = vmatmul.bf16.gmra.mxu3 %v4550_v42 }
 0x1be   : > { %5488 = vst [vmem:[#allocation24_spill] sm:$0xff] %v5011_v53 }
 0x1c0   : > { %v1340_v21 = vpop.f32.mrf.mxu2  ;;  %v1783_v19 = vpop.f32.mrf.mxu3 }
 0x1c1   : > { %v5016_v39 = vadd.f32 %v1340_v21, %v1252_v51  ;;  %v5018_v6 = vadd.f32 %v1872_v5, %v1783_v19  ;;  %v1253_v30 = vpop.f32.mrf.mxu1  ;;  %v1874_v33 = vpop.f32.mrf.mxu0 }
 0x1c2   : > { %v1254_v38 = vadd.f32 %v1253_v30, %v4682_v59 }
 0x1c3   : > { %v5461_v53 = vrot.slane %v5016_v39, 7 }
 0x1c8   : > { %v1342_v47 = vpop.f32.mrf.mxu2  ;;  %v1785_v36 = vpop.f32.mrf.mxu3 }
 0x1c9   : > { %v1343_v49 = vadd.f32 %v1342_v47, %v1254_v38  ;;  %v5021_v44 = vadd.f32 %v1874_v33, %v1785_v36  ;;  %v1256_v32 = vpop.f32.mrf.mxu1  ;;  %v1877_v61 = vpop.f32.mrf.mxu0 }
 0x1ca   : > { %v1257_v59 = vadd.f32 %v1256_v32, %v4700_v0 }
 0x1cb   : > { %v1428_v55 = vrot.slane %v1343_v49, 7 }
 0x1cc   : > { %1925 = vmatmul.bf16.gmra.mxu1 %v4393_v12  ;;  %2706 = vmatmul.bf16.gmra.mxu0 %v4393_v12 }
 0x1cd   : > { %v5029_v5 = vsel %vm1387_vm0, %v5461_v53, %v1428_v55  ;;  %2528 = vmatmul.bf16.gmra.mxu2 %v4550_v42  ;;  %2617 = vmatmul.bf16.gmra.mxu3 %v4582_v22 }
 0x1ce   : > { %5489 = vst [vmem:[#allocation25_spill] sm:$0xff] %v5029_v5 }
 0x1d0   : > { %v1345_v11 = vpop.f32.mrf.mxu2  ;;  %v1788_v51 = vpop.f32.mrf.mxu3 }
 0x1d1   : > { %v5034_v21 = vadd.f32 %v1345_v11, %v1257_v59  ;;  %v5036_v19 = vadd.f32 %v1877_v61, %v1788_v51  ;;  %v1258_v30 = vpop.f32.mrf.mxu1  ;;  %v1879_v33 = vpop.f32.mrf.mxu0 }
 0x1d2   : > { %v1259_v38 = vadd.f32 %v1258_v30, %v4714_v8 }
 0x1d3   : > { %5490 = vst [vmem:[#allocation26_spill] sm:$0xff] %v5034_v21  ;;  %v5462_v5 = vrot.slane %v5034_v21, 7 }
 0x1d8   : > { %v1347_v47 = vpop.f32.mrf.mxu2  ;;  %v1790_v36 = vpop.f32.mrf.mxu3 }
 0x1d9   : > { %v1348_v49 = vadd.f32 %v1347_v47, %v1259_v38  ;;  %v5039_v55 = vadd.f32 %v1879_v33, %v1790_v36  ;;  %v1261_v42 = vpop.f32.mrf.mxu1  ;;  %v1882_v53 = vpop.f32.mrf.mxu0 }
 0x1da   : > { %v1262_v8 = vadd.f32 %v1261_v42, %v4726_v15 }
 0x1db   : > { %5491 = vst [vmem:[#allocation27_spill] sm:$0xff] %v5039_v55  ;;  %v1431_v0 = vrot.slane %v1348_v49, 7 }
 0x1dc   : > { %1930 = vmatmul.bf16.gmra.mxu1 %v4485_v34  ;;  %2711 = vmatmul.bf16.gmra.mxu0 %v4485_v34 }
 0x1dd   : > { %v5047_v61 = vsel %vm1387_vm0, %v5462_v5, %v1431_v0  ;;  %2533 = vmatmul.bf16.gmra.mxu2 %v4582_v22  ;;  %2622 = vmatmul.bf16.gmra.mxu3 %v4393_v12 }
 0x1de   : > { %5492 = vst [vmem:[#allocation28_spill] sm:$0xff] %v5047_v61 }
 0x1e0   : > { %v1350_v32 = vpop.f32.mrf.mxu2  ;;  %v1793_v59 = vpop.f32.mrf.mxu3 }
 0x1e1   : > { %v5052_v11 = vadd.f32 %v1350_v32, %v1262_v8  ;;  %v5054_v51 = vadd.f32 %v1882_v53, %v1793_v59  ;;  %v1263_v30 = vpop.f32.mrf.mxu1  ;;  %v1884_v33 = vpop.f32.mrf.mxu0 }
 0x1e2   : > { %v1264_v38 = vadd.f32 %v1263_v30, %v4734_v20 }
 0x1e3   : > { %5493 = vst [vmem:[#allocation29_spill] sm:$0xff] %v5052_v11  ;;  %v5463_v61 = vrot.slane %v5052_v11, 7 }
 0x1e4   : > { %5494 = vst [vmem:[#allocation30_spill] sm:$0xff] %v5054_v51 }
 0x1e8   : > { %v1352_v47 = vpop.f32.mrf.mxu2  ;;  %v1795_v36 = vpop.f32.mrf.mxu3 }
 0x1e9   : > { %v1353_v49 = vadd.f32 %v1352_v47, %v1264_v38  ;;  %v5057_v0 = vadd.f32 %v1884_v33, %v1795_v36  ;;  %v1896_v22 = vpop.f32.mrf.mxu1  ;;  %v2677_v5 = vpop.f32.mrf.mxu0 }
 0x1ea   : > { %v1897_v42 = vadd.f32 %v1896_v22, %v4749_v37  ;;  %v5497_v37 = vld [vmem:[#allocation4_spill] sm:$0xff] }
 0x1eb   : > { %5495 = vst [vmem:[#allocation31_spill] sm:$0xff] %v5057_v0  ;;  %v1434_v15 = vrot.slane %v1353_v49, 7 }
 0x1ec   : > { %1935 = vmatmul.bf16.gmra.mxu1 %v4554_v2  ;;  %2716 = vmatmul.bf16.gmra.mxu0 %v4554_v2  ;;  %v2008_v53 = vrot.slane %v1897_v42, 7  ;;  %v5498_v42 = vld [vmem:[#allocation3_spill] sm:$0xff] }
 0x1ed   : > { %v5066_v20 = vsel %vm1387_vm0, %v5463_v61, %v1434_v15  ;;  %2538 = vmatmul.bf16.gmra.mxu2 %v4393_v12  ;;  %2627 = vmatmul.bf16.gmra.mxu3 %v4485_v34  ;;  %v5499_v11 = vrot.slane %v5498_v42, 7 }
 0x1ee   : > { %5496 = vst [vmem:[#allocation32_spill] sm:$0xff] %v5066_v20  ;;  %v2088_v47 = vsel %vm1387_vm0, 0.0, %v2008_v53 }
 0x1ef   : > { %v2153_v12 = vrot.slane %v2088_v47, 1 }
 0x1f0   : > { %v2499_v8 = vpop.f32.mrf.mxu2  ;;  %v2588_v32 = vpop.f32.mrf.mxu3 }
 0x1f1   : > { %v2589_v59 = vadd.f32 %v2588_v32, %v2499_v8  ;;  %v1898_v30 = vpop.f32.mrf.mxu1  ;;  %v2679_v33 = vpop.f32.mrf.mxu0  ;;  %v1468_v8 = vsel %vm1387_vm0, 0.0, %v5499_v11 }
 0x1f2   : > { %v1899_v38 = vadd.f32 %v1898_v30, %v5497_v37 }
 0x1f3   : > { %v2678_v49 = vadd.f32 %v2677_v5, %v2589_v59 }
 0x1f4   : > { %v2009_v36 = vrot.slane %v1899_v38, 7 }
 0x1f5   : > { %v2789_v51 = vrot.slane %v2678_v49, 7 }
 0x1f6   : > { %v2010_v22 = vsel %vm1387_vm0, %v2008_v53, %v2009_v36  ;;  %v2104_v15 = vsel %vm1387_vm0, %v2009_v36, 0.0  ;;  %v5500_v36 = vld [vmem:[#allocation5_spill] sm:$0xff] }
 0x1f7   : > { %v2154_v61 = vrot.slane %v2010_v22, 1  ;;  %v2156_v20 = vrot.slane %v2104_v15, 1  ;;  %v2869_v11 = vsel %vm1387_vm0, 0.0, %v2789_v51 }
 0x1f8   : > { %v2501_v32 = vpop.f32.mrf.mxu2  ;;  %v2590_v0 = vpop.f32.mrf.mxu3 }
 0x1f9   : > { %v2155_v30 = vsel %vm2152_vm1, %v2153_v12, %v2154_v61  ;;  %v2157_v37 = vsel %vm2152_vm1, %v2154_v61, %v2156_v20  ;;  %v2591_v5 = vadd.f32 %v2590_v0, %v2501_v32  ;;  %v1901_v59 = vpop.f32.mrf.mxu1  ;;  %v2682_v53 = vpop.f32.mrf.mxu0  ;;  %v2934_v20 = vrot.slane %v2869_v11, 2 }
 0x1fa   : > { %v2265_v38 = vadd.f32 %v2155_v30, %v1468_v8  ;;  %v2266_v21 = vadd.f32 %v2157_v37, %v5500_v36  ;;  %v1902_v49 = vadd.f32 %v1901_v59, %v4773_v41  ;;  %v5091_v8 = vld [vmem:[%s5438_s6] ss:$0 sm:$0xff] }
 0x1fb   : > { %v2680_v47 = vadd.f32 %v2679_v33, %v2591_v5 }
 0x1fc   : > { %1940 = vmatmul.bf16.gmra.mxu1 %v4584_v23  ;;  %2721 = vmatmul.bf16.gmra.mxu0 %v4584_v23  ;;  %v2011_v41 = vrot.slane %v1902_v49, 7 }
 0x1fd   : > { %v2790_v22 = vrot.slane %v2680_v47, 7  ;;  %2543 = vmatmul.bf16.gmra.mxu2 %v4485_v34  ;;  %2632 = vmatmul.bf16.gmra.mxu3 %v4554_v2 }
 0x1ff   : > { %v2791_v61 = vsel %vm1387_vm0, %v2789_v51, %v2790_v22  ;;  %v2885_v0 = vsel %vm1387_vm0, %v2790_v22, 0.0 }
 0x200   : > { %v2935_v33 = vrot.slane %v2791_v61, 2  ;;  %v2937_v15 = vrot.slane %v2885_v0, 2  ;;  %v2504_v12 = vpop.f32.mrf.mxu2  ;;  %v2593_v42 = vpop.f32.mrf.mxu3  ;;  %v2089_v61 = vsel %vm1387_vm0, 0.0, %v2011_v41 }
 0x201   : > { %v1903_v34 = vpop.f32.mrf.mxu1  ;;  %v2684_v32 = vpop.f32.mrf.mxu0  ;;  %v2594_v37 = vadd.f32 %v2593_v42, %v2504_v12 }
 0x202   : > { %v2936_v30 = vsel %vm2933_vm2, %v2934_v20, %v2935_v33  ;;  %v2938_v51 = vsel %vm2933_vm2, %v2935_v33, %v2937_v15  ;;  %v1904_v5 = vadd.f32 %v1903_v34, %v4776_v26  ;;  %v2158_v33 = vrot.slane %v2089_v61, 1 }
 0x203   : > { %v3046_v59 = vadd.f32 %v2936_v30, %v2265_v38  ;;  %v3047_v36 = vadd.f32 %v2938_v51, %v2266_v21  ;;  %v2683_v49 = vadd.f32 %v2682_v53, %v2594_v37  ;;  %v5501_v53 = vrot.slane %v4771_v52, 7 }
 0x204   : > { %v2012_v47 = vrot.slane %v1904_v5, 7 }
 0x205   : > { %v3082_v11 = vadd.f32 %v5091_v8, %v3046_v59  ;;  %v3083_v22 = vadd.f32 %v5091_v8, %v3047_v36  ;;  %v2792_v37 = vrot.slane %v2683_v49, 7 }
 0x206   : > { %v2013_v0 = vsel %vm1387_vm0, %v2011_v41, %v2012_v47  ;;  %v2105_v26 = vsel %vm1387_vm0, %v2012_v47, 0.0  ;;  %v1469_v41 = vsel %vm1387_vm0, 0.0, %v5501_v53  ;;  %v5502_v53 = vld [vmem:[#allocation7_spill] sm:$0xff] }
 0x207   : > { %v3114_v21 = vpack.c.bf16 %v3082_v11, %v3082_v11  ;;  %v3115_v38 = vpack.c.bf16 %v3083_v22, %v3083_v22  ;;  %v4059_v20 = vpack.c.bf16 %v3083_v22, %v3082_v11  ;;  %v2159_v15 = vrot.slane %v2013_v0, 1 }
 0x208   : > { %v2161_v12 = vrot.slane %v2105_v26, 1  ;;  %v2506_v42 = vpop.f32.mrf.mxu2  ;;  %v2595_v34 = vpop.f32.mrf.mxu3  ;;  %v2870_v49 = vsel %vm1387_vm0, 0.0, %v2792_v37 }
 0x209   : > { %4060 = vst [vmem:[%s5104_s16] sm:$0xff] %v4059_v20   ;;  %v3178_v30 = vunpack.c.l.bf16 %v3114_v21  ;;  %v3179_v51 = vunpack.c.l.bf16 %v3115_v38  ;;  %v2596_v5 = vadd.f32 %v2595_v34, %v2506_v42  ;;  %v1906_v59 = vpop.f32.mrf.mxu1  ;;  %v2687_v36 = vpop.f32.mrf.mxu0  ;;  %v2160_v47 = vsel %vm2152_vm1, %v2158_v33, %v2159_v15 }
 0x20a   : > { %v2162_v11 = vsel %vm2152_vm1, %v2159_v15, %v2161_v12  ;;  %v2267_v26 = vadd.f32 %v2160_v47, %v1469_v41  ;;  %v1907_v38 = vadd.f32 %v1906_v59, %v4797_v25  ;;  %v2939_v25 = vrot.slane %v2870_v49, 2 }
 0x20b   : > { %v3210_v22 = vadd.f32 %v3179_v51, %v3178_v30  ;;  %v3247_v61 = vmul.f32 %v3178_v30, %v3178_v30  ;;  %v3248_v0 = vmul.f32 %v3179_v51, %v3179_v51  ;;  %v2268_v20 = vadd.f32 %v2162_v11, %v4785_v56 }
 0x20c   : > { %v2685_v21 = vadd.f32 %v2684_v32, %v2596_v5  ;;  %1945 = vmatmul.bf16.gmra.mxu1 %v4402_v16  ;;  %2726 = vmatmul.bf16.gmra.mxu0 %v4402_v16  ;;  %v2014_v56 = vrot.slane %v1907_v38, 7 }
 0x20d   : > { %v3279_v52 = vadd.f32 %v3248_v0, %v3247_v61  ;;  %2548 = vmatmul.bf16.gmra.mxu2 %v4554_v2  ;;  %2637 = vmatmul.bf16.gmra.mxu3 %v4584_v23 }
 0x20e   : > { %v2793_v33 = vrot.slane %v2685_v21, 7 }
 0x210   : > { %v2794_v15 = vsel %vm1387_vm0, %v2792_v37, %v2793_v33  ;;  %v2886_v12 = vsel %vm1387_vm0, %v2793_v33, 0.0  ;;  %v2509_v32 = vpop.f32.mrf.mxu2  ;;  %v2598_v42 = vpop.f32.mrf.mxu3  ;;  %v2090_v37 = vsel %vm1387_vm0, 0.0, %v2014_v56 }
 0x211   : > { %v2940_v34 = vrot.slane %v2794_v15, 2  ;;  %v2942_v30 = vrot.slane %v2886_v12, 2  ;;  %v2599_v51 = vadd.f32 %v2598_v42, %v2509_v32  ;;  %v1908_v5 = vpop.f32.mrf.mxu1  ;;  %v2689_v59 = vpop.f32.mrf.mxu0  ;;  %v2163_v12 = vrot.slane %v2090_v37, 1 }
 0x212   : > { %v1909_v2 = vadd.f32 %v1908_v5, %v5502_v53 }
 0x213   : > { %v2941_v41 = vsel %vm2933_vm2, %v2939_v25, %v2940_v34  ;;  %v2943_v47 = vsel %vm2933_vm2, %v2940_v34, %v2942_v30  ;;  %v2688_v21 = vadd.f32 %v2687_v36, %v2599_v51  ;;  %v5503_v25 = vld [vmem:[#allocation6_spill] sm:$0xff] }
 0x214   : > { %v3048_v11 = vadd.f32 %v2941_v41, %v2267_v26  ;;  %v3049_v61 = vadd.f32 %v2943_v47, %v2268_v20  ;;  %v2015_v0 = vrot.slane %v1909_v2, 7  ;;  %v5504_v34 = vrot.slane %v5503_v25, 7 }
 0x215   : > { %v2795_v53 = vrot.slane %v2688_v21, 7 }
 0x216   : > { %v3084_v38 = vadd.f32 %v5091_v8, %v3048_v11  ;;  %v3085_v49 = vadd.f32 %v5091_v8, %v3049_v61  ;;  %v2016_v33 = vsel %vm1387_vm0, %v2014_v56, %v2015_v0  ;;  %v2106_v15 = vsel %vm1387_vm0, %v2015_v0, 0.0 }
 0x217   : > { %v2164_v32 = vrot.slane %v2016_v33, 1  ;;  %v2166_v42 = vrot.slane %v2106_v15, 1  ;;  %v1470_v26 = vsel %vm1387_vm0, 0.0, %v5504_v34  ;;  %v5505_v33 = vld [vmem:[#allocation8_spill] sm:$0xff]  ;;  %v2871_v21 = vsel %vm1387_vm0, 0.0, %v2795_v53 }
 0x218   : > { %v3116_v20 = vpack.c.bf16 %v3084_v38, %v3084_v38  ;;  %v3117_v30 = vpack.c.bf16 %v3085_v49, %v3085_v49  ;;  %v4064_v5 = vpack.c.bf16 %v3085_v49, %v3084_v38  ;;  %v2511_v36 = vpop.f32.mrf.mxu2  ;;  %v2600_v51 = vpop.f32.mrf.mxu3  ;;  %v5506_v38 = vld [vmem:[#allocation2_spill] sm:$0xff] }
 0x219   : > { %v2165_v2 = vsel %vm2152_vm1, %v2163_v12, %v2164_v32  ;;  %v2167_v56 = vsel %vm2152_vm1, %v2164_v32, %v2166_v42  ;;  %v2601_v41 = vadd.f32 %v2600_v51, %v2511_v36  ;;  %v1911_v47 = vpop.f32.mrf.mxu1  ;;  %v2692_v11 = vpop.f32.mrf.mxu0  ;;  %v5507_v12 = vld [vmem:[#allocation10_spill] sm:$0xff] }
 0x21a   : > { %4151 = vst [vmem:[%s5104_s16 + $0x8] sm:$0xff] %v4064_v5   ;;  %v3180_v61 = vunpack.c.l.bf16 %v3116_v20  ;;  %v3181_v37 = vunpack.c.l.bf16 %v3117_v30  ;;  %v2269_v0 = vadd.f32 %v2165_v2, %v1470_v26  ;;  %v2270_v15 = vadd.f32 %v2167_v56, %v5505_v33 }
 0x21b   : > { %v2690_v25 = vadd.f32 %v2689_v59, %v2601_v41  ;;  %v1912_v32 = vadd.f32 %v1911_v47, %v5507_v12  ;;  %v2944_v5 = vrot.slane %v2871_v21, 2 }
 0x21c   : > { %v3211_v34 = vadd.f32 %v3210_v22, %v3180_v61  ;;  %v3249_v55 = vmul.f32 %v3180_v61, %v3180_v61  ;;  %1950 = vmatmul.bf16.gmra.mxu1 %v5506_v38  ;;  %2731 = vmatmul.bf16.gmra.mxu0 %v5506_v38  ;;  %v3250_v26 = vmul.f32 %v3181_v37, %v3181_v37 }
 0x21d   : > { %v2796_v49 = vrot.slane %v2690_v25, 7  ;;  %2553 = vmatmul.bf16.gmra.mxu2 %v4584_v23  ;;  %2642 = vmatmul.bf16.gmra.mxu3 %v4402_v16  ;;  %v2017_v41 = vrot.slane %v1912_v32, 7 }
 0x21e   : > { %v3212_v42 = vadd.f32 %v3211_v34, %v3181_v37  ;;  %v3280_v20 = vadd.f32 %v3279_v52, %v3249_v55  ;;  %v5508_v37 = vld [vmem:[#allocation11_spill] sm:$0xff] }
 0x21f   : > { %v2797_v59 = vsel %vm1387_vm0, %v2795_v53, %v2796_v49  ;;  %v2887_v22 = vsel %vm1387_vm0, %v2796_v49, 0.0  ;;  %v2091_v12 = vsel %vm1387_vm0, 0.0, %v2017_v41 }
 0x220   : > { %v3281_v30 = vadd.f32 %v3280_v20, %v3250_v26  ;;  %v2945_v36 = vrot.slane %v2797_v59, 2  ;;  %v2947_v51 = vrot.slane %v2887_v22, 2  ;;  %v2514_v2 = vpop.f32.mrf.mxu2  ;;  %v2603_v56 = vpop.f32.mrf.mxu3 }
 0x221   : > { %v1913_v61 = vpop.f32.mrf.mxu1  ;;  %v2694_v47 = vpop.f32.mrf.mxu0  ;;  %v2604_v25 = vadd.f32 %v2603_v56, %v2514_v2 }
 0x222   : > { %v2946_v23 = vsel %vm2933_vm2, %v2944_v5, %v2945_v36  ;;  %v2948_v33 = vsel %vm2933_vm2, %v2945_v36, %v2947_v51  ;;  %v1914_v55 = vadd.f32 %v1913_v61, %v5508_v37  ;;  %v2168_v36 = vrot.slane %v2091_v12, 1  ;;  %v5511_v12 = vld [vmem:[#allocation12_spill] sm:$0xff] }
 0x223   : > { %v3050_v52 = vadd.f32 %v2946_v23, %v2269_v0  ;;  %v3051_v53 = vadd.f32 %v2948_v33, %v2270_v15  ;;  %v2693_v32 = vadd.f32 %v2692_v11, %v2604_v25 }
 0x224   : > { %v2018_v34 = vrot.slane %v1914_v55, 7  ;;  %v5509_v55 = vld [vmem:[#allocation9_spill] sm:$0xff] }
 0x225   : > { %v3086_v21 = vadd.f32 %v5091_v8, %v3050_v52  ;;  %v3087_v49 = vadd.f32 %v5091_v8, %v3051_v53  ;;  %v5510_v11 = vrot.slane %v5509_v55, 7  ;;  %v2798_v25 = vrot.slane %v2693_v32, 7 }
 0x226   : > { %v2019_v26 = vsel %vm1387_vm0, %v2017_v41, %v2018_v34  ;;  %v2107_v20 = vsel %vm1387_vm0, %v2018_v34, 0.0 }
 0x227   : > { %v3118_v59 = vpack.c.bf16 %v3086_v21, %v3086_v21  ;;  %v3119_v22 = vpack.c.bf16 %v3087_v49, %v3087_v49  ;;  %v4069_v5 = vpack.c.bf16 %v3087_v49, %v3086_v21  ;;  %v2169_v51 = vrot.slane %v2019_v26, 1 }
 0x228   : > { %v2171_v0 = vrot.slane %v2107_v20, 1  ;;  %v2516_v15 = vpop.f32.mrf.mxu2  ;;  %v2605_v2 = vpop.f32.mrf.mxu3  ;;  %v1471_v41 = vsel %vm1387_vm0, 0.0, %v5510_v11 }
 0x229   : > { %4152 = vst [vmem:[%s5104_s16 + $0x10] sm:$0xff] %v4069_v5   ;;  %v3182_v56 = vunpack.c.l.bf16 %v3118_v59  ;;  %v3183_v61 = vunpack.c.l.bf16 %v3119_v22  ;;  %v2606_v23 = vadd.f32 %v2605_v2, %v2516_v15  ;;  %v1916_v33 = vpop.f32.mrf.mxu1  ;;  %v2697_v37 = vpop.f32.mrf.mxu0  ;;  %v2170_v52 = vsel %vm2152_vm1, %v2168_v36, %v2169_v51  ;;  %v5512_v59 = vld [vmem:[#allocation14_spill] sm:$0xff] }
 0x22a   : > { %v2172_v53 = vsel %vm2152_vm1, %v2169_v51, %v2171_v0  ;;  %v2271_v49 = vadd.f32 %v2170_v52, %v1471_v41  ;;  %v1917_v22 = vadd.f32 %v1916_v33, %v5512_v59 }
 0x22b   : > { %v3213_v34 = vadd.f32 %v3212_v42, %v3182_v56  ;;  %v3251_v21 = vmul.f32 %v3182_v56, %v3182_v56  ;;  %v2272_v26 = vadd.f32 %v2172_v53, %v5511_v12  ;;  %v2695_v20 = vadd.f32 %v2694_v47, %v2606_v23 }
 0x22c   : > { %1955 = vmatmul.bf16.gmra.mxu1 %v4559_v48  ;;  %2736 = vmatmul.bf16.gmra.mxu0 %v4559_v48  ;;  %v3252_v15 = vmul.f32 %v3183_v61, %v3183_v61  ;;  %v2872_v42 = vsel %vm1387_vm0, 0.0, %v2798_v25  ;;  %v2020_v0 = vrot.slane %v1917_v22, 7 }
 0x22d   : > { %v3214_v5 = vadd.f32 %v3213_v34, %v3183_v61  ;;  %v3282_v2 = vadd.f32 %v3281_v30, %v3251_v21  ;;  %2558 = vmatmul.bf16.gmra.mxu2 %v4402_v16  ;;  %2647 = vmatmul.bf16.gmra.mxu3 %v5506_v38  ;;  %v2799_v32 = vrot.slane %v2695_v20, 7  ;;  %v2949_v33 = vrot.slane %v2872_v42, 2  ;;  %v5513_v16 = vld [vmem:[#allocation15_spill] sm:$0xff] }
 0x22f   : > { %v3283_v36 = vadd.f32 %v3282_v2, %v3252_v15  ;;  %v2800_v51 = vsel %vm1387_vm0, %v2798_v25, %v2799_v32  ;;  %v2888_v47 = vsel %vm1387_vm0, %v2799_v32, 0.0  ;;  %v2092_v25 = vsel %vm1387_vm0, 0.0, %v2020_v0 }
 0x230   : > { %v2519_v56 = vpop.f32.mrf.mxu2  ;;  %v2608_v23 = vpop.f32.mrf.mxu3  ;;  %v2950_v55 = vrot.slane %v2800_v51, 2  ;;  %v2952_v11 = vrot.slane %v2888_v47, 2  ;;  %v2173_v32 = vrot.slane %v2092_v25, 1  ;;  %v5516_v25 = vld [vmem:[#allocation16_spill] sm:$0xff] }
 0x231   : > { %v2609_v61 = vadd.f32 %v2608_v23, %v2519_v56  ;;  %v1918_v30 = vpop.f32.mrf.mxu1  ;;  %v2699_v41 = vpop.f32.mrf.mxu0  ;;  %v5514_v56 = vld [vmem:[#allocation13_spill] sm:$0xff] }
 0x232   : > { %v1919_v52 = vadd.f32 %v1918_v30, %v5513_v16  ;;  %v2951_v53 = vsel %vm2933_vm2, %v2949_v33, %v2950_v55  ;;  %v2953_v34 = vsel %vm2933_vm2, %v2950_v55, %v2952_v11  ;;  %v5515_v23 = vrot.slane %v5514_v56, 7 }
 0x233   : > { %v3052_v21 = vadd.f32 %v2951_v53, %v2271_v49  ;;  %v3053_v12 = vadd.f32 %v2953_v34, %v2272_v26  ;;  %v2698_v59 = vadd.f32 %v2697_v37, %v2609_v61 }
 0x234   : > { %v2021_v20 = vrot.slane %v1919_v52, 7  ;;  %v1472_v49 = vsel %vm1387_vm0, 0.0, %v5515_v23 }
 0x235   : > { %v3088_v22 = vadd.f32 %v5091_v8, %v3052_v21  ;;  %v3089_v15 = vadd.f32 %v5091_v8, %v3053_v12  ;;  %v2801_v61 = vrot.slane %v2698_v59, 7 }
 0x236   : > { %v2022_v2 = vsel %vm1387_vm0, %v2020_v0, %v2021_v20  ;;  %v2108_v42 = vsel %vm1387_vm0, %v2021_v20, 0.0 }
 0x237   : > { %v2174_v51 = vrot.slane %v2022_v2, 1  ;;  %v2176_v47 = vrot.slane %v2108_v42, 1  ;;  %v3120_v26 = vpack.c.bf16 %v3088_v22, %v3088_v22  ;;  %v3121_v33 = vpack.c.bf16 %v3089_v15, %v3089_v15 }
 0x238   : > { %v4074_v55 = vpack.c.bf16 %v3089_v15, %v3088_v22  ;;  %v2521_v37 = vpop.f32.mrf.mxu2  ;;  %v2610_v11 = vpop.f32.mrf.mxu3  ;;  %v2873_v59 = vsel %vm1387_vm0, 0.0, %v2801_v61 }
 0x239   : > { %v2175_v30 = vsel %vm2152_vm1, %v2173_v32, %v2174_v51  ;;  %v2177_v0 = vsel %vm2152_vm1, %v2174_v51, %v2176_v47  ;;  %v2611_v16 = vadd.f32 %v2610_v11, %v2521_v37  ;;  %v1921_v52 = vpop.f32.mrf.mxu1  ;;  %v2702_v53 = vpop.f32.mrf.mxu0  ;;  %v3184_v34 = vunpack.c.l.bf16 %v3120_v26 }
 0x23a   : > { %4153 = vst [vmem:[%s5104_s16 + $0x18] sm:$0xff] %v4074_v55   ;;  %v3185_v21 = vunpack.c.l.bf16 %v3121_v33  ;;  %v2273_v12 = vadd.f32 %v2175_v30, %v1472_v49  ;;  %v2274_v20 = vadd.f32 %v2177_v0, %v5516_v25  ;;  %v1922_v15 = vadd.f32 %v1921_v52, %v4872_v17 }
 0x23b   : > { %v2700_v2 = vadd.f32 %v2699_v41, %v2611_v16  ;;  %v3215_v42 = vadd.f32 %v3214_v5, %v3184_v34  ;;  %v3253_v56 = vmul.f32 %v3184_v34, %v3184_v34  ;;  %v2954_v49 = vrot.slane %v2873_v59, 2 }
 0x23c   : > { %1960 = vmatmul.bf16.gmra.mxu1 %v4586_v24  ;;  %2741 = vmatmul.bf16.gmra.mxu0 %v4586_v24  ;;  %v3254_v51 = vmul.f32 %v3185_v21, %v3185_v21  ;;  %v2023_v11 = vrot.slane %v1922_v15, 7 }
 0x23d   : > { %v2802_v22 = vrot.slane %v2700_v2, 7  ;;  %2563 = vmatmul.bf16.gmra.mxu2 %v5506_v38  ;;  %2652 = vmatmul.bf16.gmra.mxu3 %v4559_v48  ;;  %v3216_v32 = vadd.f32 %v3215_v42, %v3185_v21  ;;  %v3284_v47 = vadd.f32 %v3283_v36, %v3253_v56 }
 0x23e   : > { %v2093_v2 = vsel %vm1387_vm0, 0.0, %v2023_v11 }
 0x23f   : > { %v2803_v41 = vsel %vm1387_vm0, %v2801_v61, %v2802_v22  ;;  %v2889_v5 = vsel %vm1387_vm0, %v2802_v22, 0.0  ;;  %v3285_v23 = vadd.f32 %v3284_v47, %v3254_v51  ;;  %v2178_v47 = vrot.slane %v2093_v2, 1 }
 0x240   : > { %v2955_v26 = vrot.slane %v2803_v41, 2  ;;  %v2957_v33 = vrot.slane %v2889_v5, 2  ;;  %v2524_v55 = vpop.f32.mrf.mxu2  ;;  %v2613_v37 = vpop.f32.mrf.mxu3 }
 0x241   : > { %v1923_v30 = vpop.f32.mrf.mxu1  ;;  %v2704_v17 = vpop.f32.mrf.mxu0  ;;  %v2614_v16 = vadd.f32 %v2613_v37, %v2524_v55 }
 0x242   : > { %v2956_v38 = vsel %vm2933_vm2, %v2954_v49, %v2955_v26  ;;  %v2958_v0 = vsel %vm2933_vm2, %v2955_v26, %v2957_v33  ;;  %v1924_v36 = vadd.f32 %v1923_v30, %v4875_v45 }
 0x243   : > { %v3054_v52 = vadd.f32 %v2956_v38, %v2273_v12  ;;  %v3055_v61 = vadd.f32 %v2958_v0, %v2274_v20  ;;  %v2703_v42 = vadd.f32 %v2702_v53, %v2614_v16  ;;  %v5517_v53 = vrot.slane %v4870_v1, 7 }
 0x244   : > { %v2024_v34 = vrot.slane %v1924_v36, 7 }
 0x245   : > { %v3090_v21 = vadd.f32 %v5091_v8, %v3054_v52  ;;  %v3091_v25 = vadd.f32 %v5091_v8, %v3055_v61  ;;  %v1473_v37 = vsel %vm1387_vm0, 0.0, %v5517_v53 }
 0x246   : > { %v2025_v56 = vsel %vm1387_vm0, %v2023_v11, %v2024_v34  ;;  %v2109_v59 = vsel %vm1387_vm0, %v2024_v34, 0.0  ;;  %v2804_v11 = vrot.slane %v2703_v42, 7 }
 0x247   : > { %v3122_v22 = vpack.c.bf16 %v3090_v21, %v3090_v21  ;;  %v3123_v15 = vpack.c.bf16 %v3091_v25, %v3091_v25  ;;  %v4079_v51 = vpack.c.bf16 %v3091_v25, %v3090_v21  ;;  %v2179_v45 = vrot.slane %v2025_v56, 1 }
 0x248   : > { %v2181_v12 = vrot.slane %v2109_v59, 1  ;;  %v2526_v20 = vpop.f32.mrf.mxu2  ;;  %v2615_v41 = vpop.f32.mrf.mxu3 }
 0x249   : > { %4154 = vst [vmem:[%s5104_s16 + $0x20] sm:$0xff] %v4079_v51   ;;  %v3186_v5 = vunpack.c.l.bf16 %v3122_v22  ;;  %v3187_v49 = vunpack.c.l.bf16 %v3123_v15  ;;  %v2616_v26 = vadd.f32 %v2615_v41, %v2526_v20  ;;  %v1926_v33 = vpop.f32.mrf.mxu1  ;;  %v2707_v55 = vpop.f32.mrf.mxu0  ;;  %v2180_v30 = vsel %vm2152_vm1, %v2178_v47, %v2179_v45 }
 0x24a   : > { %v2182_v38 = vsel %vm2152_vm1, %v2179_v45, %v2181_v12  ;;  %v2275_v36 = vadd.f32 %v2180_v30, %v1473_v37  ;;  %v1927_v34 = vadd.f32 %v1926_v33, %v4892_v29 }
 0x24b   : > { %v3217_v0 = vadd.f32 %v3216_v32, %v3186_v5  ;;  %v3255_v16 = vmul.f32 %v3186_v5, %v3186_v5  ;;  %v2276_v52 = vadd.f32 %v2182_v38, %v4885_v57  ;;  %v2705_v61 = vadd.f32 %v2704_v17, %v2616_v26 }
 0x24c   : > { %1965 = vmatmul.bf16.gmra.mxu1 %v4877_v35  ;;  %2746 = vmatmul.bf16.gmra.mxu0 %v4877_v35  ;;  %v3256_v21 = vmul.f32 %v3187_v49, %v3187_v49  ;;  %v2874_v32 = vsel %vm1387_vm0, 0.0, %v2804_v11  ;;  %v2026_v29 = vrot.slane %v1927_v34, 7 }
 0x24d   : > { %v3218_v1 = vadd.f32 %v3217_v0, %v3187_v49  ;;  %v3286_v25 = vadd.f32 %v3285_v23, %v3255_v16  ;;  %2568 = vmatmul.bf16.gmra.mxu2 %v4559_v48  ;;  %2657 = vmatmul.bf16.gmra.mxu3 %v4586_v24  ;;  %v2805_v2 = vrot.slane %v2705_v61, 7  ;;  %v2959_v22 = vrot.slane %v2874_v32, 2 }
 0x24e   : > { %v2094_v49 = vsel %vm1387_vm0, 0.0, %v2026_v29  ;;  %v5518_v16 = vrot.slane %v4890_v46, 7  ;;  %v5519_v46 = vld [vmem:[#allocation17_spill] sm:$0xff] }
 0x24f   : > { %v3287_v42 = vadd.f32 %v3286_v25, %v3256_v21  ;;  %v2806_v57 = vsel %vm1387_vm0, %v2804_v11, %v2805_v2  ;;  %v2890_v17 = vsel %vm1387_vm0, %v2805_v2, 0.0 }
 0x250   : > { %v2529_v56 = vpop.f32.mrf.mxu2  ;;  %v2618_v59 = vpop.f32.mrf.mxu3  ;;  %v2960_v15 = vrot.slane %v2806_v57, 2  ;;  %v2962_v51 = vrot.slane %v2890_v17, 2 }
 0x251   : > { %v2619_v47 = vadd.f32 %v2618_v59, %v2529_v56  ;;  %v1928_v23 = vpop.f32.mrf.mxu1  ;;  %v2709_v45 = vpop.f32.mrf.mxu0 }
 0x252   : > { %v1929_v48 = vadd.f32 %v1928_v23, %v4895_v40  ;;  %v2961_v12 = vsel %vm2933_vm2, %v2959_v22, %v2960_v15  ;;  %v2963_v20 = vsel %vm2933_vm2, %v2960_v15, %v2962_v51  ;;  %v2183_v40 = vrot.slane %v2094_v49, 1 }
 0x253   : > { %v3056_v41 = vadd.f32 %v2961_v12, %v2275_v36  ;;  %v3057_v5 = vadd.f32 %v2963_v20, %v2276_v52  ;;  %v2708_v33 = vadd.f32 %v2707_v55, %v2619_v47  ;;  %v1474_v36 = vsel %vm1387_vm0, 0.0, %v5518_v16 }
 0x254   : > { %v2027_v26 = vrot.slane %v1929_v48, 7 }
 0x255   : > { %v3092_v53 = vadd.f32 %v5091_v8, %v3056_v41  ;;  %v3093_v37 = vadd.f32 %v5091_v8, %v3057_v5  ;;  %v2807_v25 = vrot.slane %v2708_v33, 7 }
 0x256   : > { %v2028_v11 = vsel %vm1387_vm0, %v2026_v29, %v2027_v26  ;;  %v2110_v30 = vsel %vm1387_vm0, %v2027_v26, 0.0 }
 0x257   : > { %v2184_v38 = vrot.slane %v2028_v11, 1  ;;  %v2186_v0 = vrot.slane %v2110_v30, 1  ;;  %v3124_v52 = vpack.c.bf16 %v3092_v53, %v3092_v53  ;;  %v3125_v61 = vpack.c.bf16 %v3093_v37, %v3093_v37 }
 0x258   : > { %v4084_v34 = vpack.c.bf16 %v3093_v37, %v3092_v53  ;;  %v2531_v55 = vpop.f32.mrf.mxu2  ;;  %v2620_v21 = vpop.f32.mrf.mxu3  ;;  %v2875_v48 = vsel %vm1387_vm0, 0.0, %v2807_v25 }
 0x259   : > { %v2185_v32 = vsel %vm2152_vm1, %v2183_v40, %v2184_v38  ;;  %v2187_v2 = vsel %vm2152_vm1, %v2184_v38, %v2186_v0  ;;  %v2621_v57 = vadd.f32 %v2620_v21, %v2531_v55  ;;  %v1931_v17 = vpop.f32.mrf.mxu1  ;;  %v2712_v29 = vpop.f32.mrf.mxu0  ;;  %v3188_v56 = vunpack.c.l.bf16 %v3124_v52 }
 0x25a   : > { %4155 = vst [vmem:[%s5104_s16 + $0x28] sm:$0xff] %v4084_v34   ;;  %v3189_v59 = vunpack.c.l.bf16 %v3125_v61  ;;  %v2277_v22 = vadd.f32 %v2185_v32, %v1474_v36  ;;  %v2278_v15 = vadd.f32 %v2187_v2, %v5519_v46  ;;  %v1932_v20 = vadd.f32 %v1931_v17, %v4910_v7 }
 0x25b   : > { %v2710_v51 = vadd.f32 %v2709_v45, %v2621_v57  ;;  %v3219_v47 = vadd.f32 %v3218_v1, %v3188_v56  ;;  %v3257_v23 = vmul.f32 %v3188_v56, %v3188_v56  ;;  %v2964_v33 = vrot.slane %v2875_v48, 2  ;;  %v5520_v48 = vld [vmem:[#allocation18_spill] sm:$0xff] }
 0x25c   : > { %1970 = vmatmul.bf16.gmra.mxu1 %v4389_v10  ;;  %2751 = vmatmul.bf16.gmra.mxu0 %v4389_v10  ;;  %v3258_v5 = vmul.f32 %v3189_v59, %v3189_v59  ;;  %v2029_v30 = vrot.slane %v1932_v20, 7 }
 0x25d   : > { %v2808_v12 = vrot.slane %v2710_v51, 7  ;;  %2573 = vmatmul.bf16.gmra.mxu2 %v4586_v24  ;;  %2662 = vmatmul.bf16.gmra.mxu3 %v4877_v35  ;;  %v3220_v41 = vadd.f32 %v3219_v47, %v3189_v59  ;;  %v3288_v49 = vadd.f32 %v3287_v42, %v3257_v23 }
 0x25e   : > { %v2095_v34 = vsel %vm1387_vm0, 0.0, %v2029_v30 }
 0x25f   : > { %v2809_v45 = vsel %vm1387_vm0, %v2807_v25, %v2808_v12  ;;  %v2891_v1 = vsel %vm1387_vm0, %v2808_v12, 0.0  ;;  %v3289_v26 = vadd.f32 %v3288_v49, %v3258_v5  ;;  %v2188_v17 = vrot.slane %v2095_v34, 1 }
 0x260   : > { %v2965_v53 = vrot.slane %v2809_v45, 2  ;;  %v2967_v10 = vrot.slane %v2891_v1, 2  ;;  %v2534_v37 = vpop.f32.mrf.mxu2  ;;  %v2623_v11 = vpop.f32.mrf.mxu3 }
 0x261   : > { %v1933_v40 = vpop.f32.mrf.mxu1  ;;  %v2714_v7 = vpop.f32.mrf.mxu0  ;;  %v2624_v38 = vadd.f32 %v2623_v11, %v2534_v37 }
 0x262   : > { %v2966_v24 = vsel %vm2933_vm2, %v2964_v33, %v2965_v53  ;;  %v2968_v35 = vsel %vm2933_vm2, %v2965_v53, %v2967_v10  ;;  %v1934_v42 = vadd.f32 %v1933_v40, %v4913_v60  ;;  %v5522_v53 = vld [vmem:[#allocation19_spill] sm:$0xff] }
 0x263   : > { %v3058_v0 = vadd.f32 %v2966_v24, %v2277_v22  ;;  %v3059_v16 = vadd.f32 %v2968_v35, %v2278_v15  ;;  %v2713_v55 = vadd.f32 %v2712_v29, %v2624_v38  ;;  %v5521_v29 = vrot.slane %v5520_v48, 7 }
 0x264   : > { %v2030_v36 = vrot.slane %v1934_v42, 7  ;;  %v5523_v48 = vrot.slane %v4926_v28, 7  ;;  %v5524_v28 = vld [vmem:[#allocation20_spill] sm:$0xff] }
 0x265   : > { %v3094_v52 = vadd.f32 %v5091_v8, %v3058_v0  ;;  %v3095_v61 = vadd.f32 %v5091_v8, %v3059_v16  ;;  %v1475_v12 = vsel %vm1387_vm0, 0.0, %v5521_v29  ;;  %v2810_v20 = vrot.slane %v2713_v55, 7 }
 0x266   : > { %v2031_v21 = vsel %vm1387_vm0, %v2029_v30, %v2030_v36  ;;  %v2111_v25 = vsel %vm1387_vm0, %v2030_v36, 0.0  ;;  %v1476_v29 = vsel %vm1387_vm0, 0.0, %v5523_v48 }
 0x267   : > { %v3126_v32 = vpack.c.bf16 %v3094_v52, %v3094_v52  ;;  %v3127_v2 = vpack.c.bf16 %v3095_v61, %v3095_v61  ;;  %v4089_v57 = vpack.c.bf16 %v3095_v61, %v3094_v52  ;;  %v2189_v60 = vrot.slane %v2031_v21, 1 }
 0x268   : > { %v2191_v56 = vrot.slane %v2111_v25, 1  ;;  %v2536_v59 = vpop.f32.mrf.mxu2  ;;  %v2625_v22 = vpop.f32.mrf.mxu3  ;;  %v2876_v35 = vsel %vm1387_vm0, 0.0, %v2810_v20 }
 0x269   : > { %4156 = vst [vmem:[%s5104_s16 + $0x30] sm:$0xff] %v4089_v57   ;;  %v3190_v46 = vunpack.c.l.bf16 %v3126_v32  ;;  %v3191_v15 = vunpack.c.l.bf16 %v3127_v2  ;;  %v2626_v51 = vadd.f32 %v2625_v22, %v2536_v59  ;;  %v1936_v47 = vpop.f32.mrf.mxu1  ;;  %v2717_v23 = vpop.f32.mrf.mxu0  ;;  %v2190_v5 = vsel %vm2152_vm1, %v2188_v17, %v2189_v60 }
 0x26a   : > { %v2192_v49 = vsel %vm2152_vm1, %v2189_v60, %v2191_v56  ;;  %v2279_v33 = vadd.f32 %v2190_v5, %v1475_v12  ;;  %v1937_v11 = vadd.f32 %v1936_v47, %v4928_v4  ;;  %v2969_v61 = vrot.slane %v2876_v35, 2 }
 0x26b   : > { %v3221_v45 = vadd.f32 %v3220_v41, %v3190_v46  ;;  %v3259_v1 = vmul.f32 %v3190_v46, %v3190_v46  ;;  %v2280_v10 = vadd.f32 %v2192_v49, %v5522_v53  ;;  %v2715_v37 = vadd.f32 %v2714_v7, %v2626_v51 }
 0x26c   : > { %v3260_v40 = vmul.f32 %v3191_v15, %v3191_v15  ;;  %v2032_v36 = vrot.slane %v1937_v11, 7 }
 0x26d   : > { %v3222_v30 = vadd.f32 %v3221_v45, %v3191_v15  ;;  %v3290_v24 = vadd.f32 %v3289_v26, %v3259_v1  ;;  %v2811_v38 = vrot.slane %v2715_v37, 7 }
 0x26e   : > { %v2096_v17 = vsel %vm1387_vm0, 0.0, %v2032_v36 }
 0x26f   : > { %v3291_v42 = vadd.f32 %v3290_v24, %v3260_v40  ;;  %v2812_v0 = vsel %vm1387_vm0, %v2810_v20, %v2811_v38  ;;  %v2892_v16 = vsel %vm1387_vm0, %v2811_v38, 0.0 }
 0x270   : > { %v2539_v41 = vpop.f32.mrf.mxu2  ;;  %v2628_v52 = vpop.f32.mrf.mxu3  ;;  %v2970_v34 = vrot.slane %v2812_v0, 2  ;;  %v2972_v55 = vrot.slane %v2892_v16, 2 }
 0x271   : > { %v2629_v7 = vadd.f32 %v2628_v52, %v2539_v41  ;;  %v1938_v21 = vpop.f32.mrf.mxu1  ;;  %v2719_v4 = vpop.f32.mrf.mxu0 }
 0x272   : > { %v1939_v25 = vadd.f32 %v1938_v21, %v4931_v13  ;;  %v2971_v26 = vsel %vm2933_vm2, %v2969_v61, %v2970_v34  ;;  %v2973_v32 = vsel %vm2933_vm2, %v2970_v34, %v2972_v55  ;;  %v2193_v13 = vrot.slane %v2096_v17, 1 }
 0x273   : > { %v3060_v2 = vadd.f32 %v2971_v26, %v2279_v33  ;;  %v3061_v57 = vadd.f32 %v2973_v32, %v2280_v10  ;;  %v2718_v56 = vadd.f32 %v2717_v23, %v2629_v7 }
 0x274   : > { %v2033_v60 = vrot.slane %v1939_v25, 7 }
 0x275   : > { %v3096_v59 = vadd.f32 %v5091_v8, %v3060_v2  ;;  %v3097_v22 = vadd.f32 %v5091_v8, %v3061_v57  ;;  %v2813_v45 = vrot.slane %v2718_v56, 7 }
 0x276   : > { %v2034_v46 = vsel %vm1387_vm0, %v2032_v36, %v2033_v60  ;;  %v2112_v15 = vsel %vm1387_vm0, %v2033_v60, 0.0 }
 0x277   : > { %v2194_v51 = vrot.slane %v2034_v46, 1  ;;  %v2196_v47 = vrot.slane %v2112_v15, 1  ;;  %v3128_v12 = vpack.c.bf16 %v3096_v59, %v3096_v59  ;;  %v3129_v20 = vpack.c.bf16 %v3097_v22, %v3097_v22 }
 0x278   : > { %v4094_v5 = vpack.c.bf16 %v3097_v22, %v3096_v59  ;;  %v2541_v23 = vpop.f32.mrf.mxu2  ;;  %v2630_v49 = vpop.f32.mrf.mxu3  ;;  %v2877_v36 = vsel %vm1387_vm0, 0.0, %v2813_v45 }
 0x279   : > { %v2195_v1 = vsel %vm2152_vm1, %v2193_v13, %v2194_v51  ;;  %v2197_v33 = vsel %vm2152_vm1, %v2194_v51, %v2196_v47  ;;  %v2631_v53 = vadd.f32 %v2630_v49, %v2541_v23  ;;  %v1941_v10 = vpop.f32.mrf.mxu1  ;;  %v2722_v37 = vpop.f32.mrf.mxu0  ;;  %v3192_v11 = vunpack.c.l.bf16 %v3128_v12 }
 0x27a   : > { %4157 = vst [vmem:[%s5104_s16 + $0x38] sm:$0xff] %v4094_v5   ;;  %v3193_v40 = vunpack.c.l.bf16 %v3129_v20  ;;  %v2281_v24 = vadd.f32 %v2195_v1, %v1476_v29  ;;  %v2282_v35 = vadd.f32 %v2197_v33, %v5524_v28  ;;  %v1942_v52 = vadd.f32 %v1941_v10, %v4946_v3 }
 0x27b   : > { %v2720_v38 = vadd.f32 %v2719_v4, %v2631_v53  ;;  %v3223_v0 = vadd.f32 %v3222_v30, %v3192_v11  ;;  %v3261_v16 = vmul.f32 %v3192_v11, %v3192_v11  ;;  %v2974_v26 = vrot.slane %v2877_v36, 2 }
 0x27c   : > { %v3262_v34 = vmul.f32 %v3193_v40, %v3193_v40  ;;  %v2035_v30 = vrot.slane %v1942_v52, 7 }
 0x27d   : > { %v2814_v41 = vrot.slane %v2720_v38, 7  ;;  %v3224_v61 = vadd.f32 %v3223_v0, %v3193_v40  ;;  %v3292_v55 = vadd.f32 %v3291_v42, %v3261_v16 }
 0x27e   : > { %v2097_v47 = vsel %vm1387_vm0, 0.0, %v2035_v30 }
 0x27f   : > { %v2815_v7 = vsel %vm1387_vm0, %v2813_v45, %v2814_v41  ;;  %v2893_v21 = vsel %vm1387_vm0, %v2814_v41, 0.0  ;;  %v3293_v25 = vadd.f32 %v3292_v55, %v3262_v34  ;;  %v2198_v49 = vrot.slane %v2097_v47, 1  ;;  %v5526_v41 = vld [vmem:[#allocation21_spill] sm:$0xff] }
 0x280   : > { %v2975_v32 = vrot.slane %v2815_v7, 2  ;;  %v2977_v2 = vrot.slane %v2893_v21, 2  ;;  %v2544_v57 = vpop.f32.mrf.mxu2  ;;  %v2633_v4 = vpop.f32.mrf.mxu3 }
 0x281   : > { %v1943_v17 = vpop.f32.mrf.mxu1  ;;  %v2724_v60 = vpop.f32.mrf.mxu0  ;;  %v2634_v59 = vadd.f32 %v2633_v4, %v2544_v57 }
 0x282   : > { %v2976_v56 = vsel %vm2933_vm2, %v2974_v26, %v2975_v32  ;;  %v2978_v3 = vsel %vm2933_vm2, %v2975_v32, %v2977_v2  ;;  %v1944_v42 = vadd.f32 %v1943_v17, %v4949_v43 }
 0x283   : > { %v3062_v22 = vadd.f32 %v2976_v56, %v2281_v24  ;;  %v3063_v46 = vadd.f32 %v2978_v3, %v2282_v35  ;;  %v2723_v48 = vadd.f32 %v2722_v37, %v2634_v59  ;;  %v5525_v37 = vrot.slane %v4944_v27, 7 }
 0x284   : > { %v2036_v15 = vrot.slane %v1944_v42, 7 }
 0x285   : > { %v3098_v13 = vadd.f32 %v5091_v8, %v3062_v22  ;;  %v3099_v51 = vadd.f32 %v5091_v8, %v3063_v46  ;;  %v1477_v24 = vsel %vm1387_vm0, 0.0, %v5525_v37  ;;  %v2816_v28 = vrot.slane %v2723_v48, 7 }
 0x286   : > { %v2037_v29 = vsel %vm1387_vm0, %v2035_v30, %v2036_v15  ;;  %v2113_v12 = vsel %vm1387_vm0, %v2036_v15, 0.0 }
 0x287   : > { %v3130_v20 = vpack.c.bf16 %v3098_v13, %v3098_v13  ;;  %v3131_v5 = vpack.c.bf16 %v3099_v51, %v3099_v51  ;;  %v4099_v23 = vpack.c.bf16 %v3099_v51, %v3098_v13  ;;  %v2199_v43 = vrot.slane %v2037_v29, 1  ;;  %v5302_v29 = vld [vmem:[%s5438_s6] ss:$0 sm:$0xff] }
 0x288   : > { %v2201_v45 = vrot.slane %v2113_v12, 1  ;;  %v2546_v1 = vpop.f32.mrf.mxu2  ;;  %v2635_v33 = vpop.f32.mrf.mxu3  ;;  %v2878_v27 = vsel %vm1387_vm0, 0.0, %v2816_v28 }
 0x289   : > { %4158 = vst [vmem:[%s5104_s16 + $0x40] sm:$0xff] %v4099_v23   ;;  %v3194_v53 = vunpack.c.l.bf16 %v3130_v20  ;;  %v3195_v10 = vunpack.c.l.bf16 %v3131_v5  ;;  %v2636_v11 = vadd.f32 %v2635_v33, %v2546_v1  ;;  %v1946_v8 = vpop.f32.mrf.mxu1  ;;  %v2727_v40 = vpop.f32.mrf.mxu0  ;;  %v2200_v35 = vsel %vm2152_vm1, %v2198_v49, %v2199_v43 }
 0x28a   : > { %v2202_v38 = vsel %vm2152_vm1, %v2199_v43, %v2201_v45  ;;  %v2283_v36 = vadd.f32 %v2200_v35, %v1477_v24  ;;  %v1947_v55 = vadd.f32 %v1946_v8, %v4964_v18  ;;  %v2979_v56 = vrot.slane %v2878_v27, 2 }
 0x28b   : > { %v3225_v0 = vadd.f32 %v3224_v61, %v3194_v53  ;;  %v3263_v16 = vmul.f32 %v3194_v53, %v3194_v53  ;;  %v2284_v52 = vadd.f32 %v2202_v38, %v5526_v41  ;;  %v2725_v34 = vadd.f32 %v2724_v60, %v2636_v11 }
 0x28c   : > { %v3264_v21 = vmul.f32 %v3195_v10, %v3195_v10  ;;  %v2038_v30 = vrot.slane %v1947_v55, 7  ;;  %v5527_v45 = vrot.slane %v4962_v62, 7  ;;  %v5528_v62 = vld [vmem:[#allocation22_spill] sm:$0xff] }
 0x28d   : > { %v3226_v7 = vadd.f32 %v3225_v0, %v3195_v10  ;;  %v3294_v26 = vadd.f32 %v3293_v25, %v3263_v16  ;;  %v2817_v32 = vrot.slane %v2725_v34, 7 }
 0x28e   : > { %v2098_v51 = vsel %vm1387_vm0, 0.0, %v2038_v30  ;;  %v1478_v1 = vsel %vm1387_vm0, 0.0, %v5527_v45 }
 0x28f   : > { %v3295_v2 = vadd.f32 %v3294_v26, %v3264_v21  ;;  %v2818_v57 = vsel %vm1387_vm0, %v2816_v28, %v2817_v32  ;;  %v2894_v4 = vsel %vm1387_vm0, %v2817_v32, 0.0  ;;  %v2203_v23 = vrot.slane %v2098_v51, 1 }
 0x290   : > { %v2549_v61 = vpop.f32.mrf.mxu2  ;;  %v2638_v17 = vpop.f32.mrf.mxu3  ;;  %v2980_v3 = vrot.slane %v2818_v57, 2  ;;  %v2982_v59 = vrot.slane %v2894_v4, 2 }
 0x291   : > { %v2639_v60 = vadd.f32 %v2638_v17, %v2549_v61  ;;  %v1948_v42 = vpop.f32.mrf.mxu1  ;;  %v2729_v18 = vpop.f32.mrf.mxu0 }
 0x292   : > { %v1949_v22 = vadd.f32 %v1948_v42, %v4967_v54  ;;  %v2981_v25 = vsel %vm2933_vm2, %v2979_v56, %v2980_v3  ;;  %v2983_v46 = vsel %vm2933_vm2, %v2980_v3, %v2982_v59 }
 0x293   : > { %v3064_v15 = vadd.f32 %v2981_v25, %v2283_v36  ;;  %v3065_v13 = vadd.f32 %v2983_v46, %v2284_v52  ;;  %v2728_v48 = vadd.f32 %v2727_v40, %v2639_v60 }
 0x294   : > { %v2039_v47 = vrot.slane %v1949_v22, 7 }
 0x295   : > { %v3100_v12 = vadd.f32 %v5302_v29, %v3064_v15  ;;  %v3101_v20 = vadd.f32 %v5302_v29, %v3065_v13  ;;  %v2819_v40 = vrot.slane %v2728_v48, 7 }
 0x296   : > { %v2040_v54 = vsel %vm1387_vm0, %v2038_v30, %v2039_v47  ;;  %v2114_v5 = vsel %vm1387_vm0, %v2039_v47, 0.0 }
 0x297   : > { %v2204_v49 = vrot.slane %v2040_v54, 1  ;;  %v2206_v43 = vrot.slane %v2114_v5, 1  ;;  %v3132_v33 = vpack.c.bf16 %v3100_v12, %v3100_v12  ;;  %v3133_v53 = vpack.c.bf16 %v3101_v20, %v3101_v20 }
 0x298   : > { %v4104_v10 = vpack.c.bf16 %v3101_v20, %v3100_v12  ;;  %v2551_v11 = vpop.f32.mrf.mxu2  ;;  %v2640_v8 = vpop.f32.mrf.mxu3  ;;  %v2879_v21 = vsel %vm1387_vm0, 0.0, %v2819_v40 }
 0x299   : > { %v2205_v37 = vsel %vm2152_vm1, %v2203_v23, %v2204_v49  ;;  %v2207_v24 = vsel %vm2152_vm1, %v2204_v49, %v2206_v43  ;;  %v2641_v28 = vadd.f32 %v2640_v8, %v2551_v11  ;;  %v1951_v35 = vpop.f32.mrf.mxu1  ;;  %v2732_v38 = vpop.f32.mrf.mxu0  ;;  %v3196_v0 = vunpack.c.l.bf16 %v3132_v33 }
 0x29a   : > { %4159 = vst [vmem:[%s5104_s16 + $0x48] sm:$0xff] %v4104_v10   ;;  %v3197_v16 = vunpack.c.l.bf16 %v3133_v53  ;;  %v2285_v36 = vadd.f32 %v2205_v37, %v1478_v1  ;;  %v2286_v41 = vadd.f32 %v2207_v24, %v5528_v62  ;;  %v1952_v27 = vadd.f32 %v1951_v35, %v4982_v50 }
 0x29b   : > { %v2730_v52 = vadd.f32 %v2729_v18, %v2641_v28  ;;  %v3227_v34 = vadd.f32 %v3226_v7, %v3196_v0  ;;  %v3265_v55 = vmul.f32 %v3196_v0, %v3196_v0  ;;  %v2984_v56 = vrot.slane %v2879_v21, 2 }
 0x29c   : > { %v3266_v57 = vmul.f32 %v3197_v16, %v3197_v16  ;;  %v2041_v7 = vrot.slane %v1952_v27, 7  ;;  %v5529_v24 = vrot.slane %v4980_v9, 7 }
 0x29d   : > { %v2820_v26 = vrot.slane %v2730_v52, 7  ;;  %v3228_v32 = vadd.f32 %v3227_v34, %v3197_v16  ;;  %v3296_v4 = vadd.f32 %v3295_v2, %v3265_v55 }
 0x29e   : > { %v2099_v12 = vsel %vm1387_vm0, 0.0, %v2041_v7  ;;  %v1479_v28 = vsel %vm1387_vm0, 0.0, %v5529_v24 }
 0x29f   : > { %v2821_v30 = vsel %vm1387_vm0, %v2819_v40, %v2820_v26  ;;  %v2895_v61 = vsel %vm1387_vm0, %v2820_v26, 0.0  ;;  %v3297_v17 = vadd.f32 %v3296_v4, %v3266_v57  ;;  %v2208_v45 = vrot.slane %v2099_v12, 1 }
 0x2a0   : > { %v2985_v3 = vrot.slane %v2821_v30, 2  ;;  %v2987_v59 = vrot.slane %v2895_v61, 2  ;;  %v2554_v60 = vpop.f32.mrf.mxu2  ;;  %v2643_v42 = vpop.f32.mrf.mxu3 }
 0x2a1   : > { %v1953_v18 = vpop.f32.mrf.mxu1  ;;  %v2734_v22 = vpop.f32.mrf.mxu0  ;;  %v2644_v46 = vadd.f32 %v2643_v42, %v2554_v60 }
 0x2a2   : > { %v2986_v25 = vsel %vm2933_vm2, %v2984_v56, %v2985_v3  ;;  %v2988_v50 = vsel %vm2933_vm2, %v2985_v3, %v2987_v59  ;;  %v1954_v2 = vadd.f32 %v1953_v18, %v4985_v63 }
 0x2a3   : > { %v3066_v15 = vadd.f32 %v2986_v25, %v2285_v36  ;;  %v3067_v13 = vadd.f32 %v2988_v50, %v2286_v41  ;;  %v2733_v20 = vadd.f32 %v2732_v38, %v2644_v46  ;;  %v5530_v41 = vld [vmem:[#allocation23_spill] sm:$0xff] }
 0x2a4   : > { %v2042_v51 = vrot.slane %v1954_v2, 7 }
 0x2a5   : > { %v3102_v47 = vadd.f32 %v5302_v29, %v3066_v15  ;;  %v3103_v48 = vadd.f32 %v5302_v29, %v3067_v13  ;;  %v2822_v35 = vrot.slane %v2733_v20, 7 }
 0x2a6   : > { %v2043_v54 = vsel %vm1387_vm0, %v2041_v7, %v2042_v51  ;;  %v2115_v5 = vsel %vm1387_vm0, %v2042_v51, 0.0 }
 0x2a7   : > { %v3134_v23 = vpack.c.bf16 %v3102_v47, %v3102_v47  ;;  %v3135_v49 = vpack.c.bf16 %v3103_v48, %v3103_v48  ;;  %v4109_v43 = vpack.c.bf16 %v3103_v48, %v3102_v47  ;;  %v2209_v63 = vrot.slane %v2043_v54, 1 }
 0x2a8   : > { %v2211_v1 = vrot.slane %v2115_v5, 1  ;;  %v2556_v33 = vpop.f32.mrf.mxu2  ;;  %v2645_v53 = vpop.f32.mrf.mxu3  ;;  %v2880_v9 = vsel %vm1387_vm0, 0.0, %v2822_v35  ;;  %v5531_v5 = vrot.slane %v4998_v31, 7  ;;  %v5532_v31 = vld [vmem:[#allocation24_spill] sm:$0xff] }
 0x2a9   : > { %4160 = vst [vmem:[%s5104_s16 + $0x50] sm:$0xff] %v4109_v43   ;;  %v3198_v10 = vunpack.c.l.bf16 %v3134_v23  ;;  %v3199_v11 = vunpack.c.l.bf16 %v3135_v49  ;;  %v2646_v8 = vadd.f32 %v2645_v53, %v2556_v33  ;;  %v1956_v40 = vpop.f32.mrf.mxu1  ;;  %v2737_v37 = vpop.f32.mrf.mxu0  ;;  %v2210_v38 = vsel %vm2152_vm1, %v2208_v45, %v2209_v63 }
 0x2aa   : > { %v2212_v0 = vsel %vm2152_vm1, %v2209_v63, %v2211_v1  ;;  %v2287_v62 = vadd.f32 %v2210_v38, %v1479_v28  ;;  %v1957_v55 = vadd.f32 %v1956_v40, %v5000_v58  ;;  %v2989_v59 = vrot.slane %v2880_v9, 2 }
 0x2ab   : > { %v3229_v16 = vadd.f32 %v3228_v32, %v3198_v10  ;;  %v3267_v36 = vmul.f32 %v3198_v10, %v3198_v10  ;;  %v2288_v52 = vadd.f32 %v2212_v0, %v5530_v41  ;;  %v2735_v34 = vadd.f32 %v2734_v22, %v2646_v8 }
 0x2ac   : > { %v3268_v26 = vmul.f32 %v3199_v11, %v3199_v11  ;;  %v2044_v56 = vrot.slane %v1957_v55, 7  ;;  %v1480_v23 = vsel %vm1387_vm0, 0.0, %v5531_v5 }
 0x2ad   : > { %v3230_v21 = vadd.f32 %v3229_v16, %v3199_v11  ;;  %v3298_v27 = vadd.f32 %v3297_v17, %v3267_v36  ;;  %v2823_v57 = vrot.slane %v2735_v34, 7 }
 0x2ae   : > { %v2100_v2 = vsel %vm1387_vm0, 0.0, %v2044_v56 }
 0x2af   : > { %v3299_v4 = vadd.f32 %v3298_v27, %v3268_v26  ;;  %v2824_v30 = vsel %vm1387_vm0, %v2822_v35, %v2823_v57  ;;  %v2896_v61 = vsel %vm1387_vm0, %v2823_v57, 0.0 }
 0x2b0   : > { %v2559_v32 = vpop.f32.mrf.mxu2  ;;  %v2648_v3 = vpop.f32.mrf.mxu3  ;;  %v2990_v60 = vrot.slane %v2824_v30, 2  ;;  %v2992_v42 = vrot.slane %v2896_v61, 2 }
 0x2b1   : > { %v2649_v7 = vadd.f32 %v2648_v3, %v2559_v32  ;;  %v1958_v18 = vpop.f32.mrf.mxu1  ;;  %v2739_v58 = vpop.f32.mrf.mxu0 }
 0x2b2   : > { %v1959_v22 = vadd.f32 %v1958_v18, %v5003_v14  ;;  %v2991_v17 = vsel %vm2933_vm2, %v2989_v59, %v2990_v60  ;;  %v2993_v25 = vsel %vm2933_vm2, %v2990_v60, %v2992_v42  ;;  %v2213_v14 = vrot.slane %v2100_v2, 1 }
 0x2b3   : > { %v3068_v50 = vadd.f32 %v2991_v17, %v2287_v62  ;;  %v3069_v46 = vadd.f32 %v2993_v25, %v2288_v52  ;;  %v2738_v13 = vadd.f32 %v2737_v37, %v2649_v7 }
 0x2b4   : > { %v2045_v15 = vrot.slane %v1959_v22, 7 }
 0x2b5   : > { %v3104_v51 = vadd.f32 %v5302_v29, %v3068_v50  ;;  %v3105_v47 = vadd.f32 %v5302_v29, %v3069_v46  ;;  %v2825_v33 = vrot.slane %v2738_v13, 7 }
 0x2b6   : > { %v2046_v48 = vsel %vm1387_vm0, %v2044_v56, %v2045_v15  ;;  %v2116_v12 = vsel %vm1387_vm0, %v2045_v15, 0.0 }
 0x2b7   : > { %v2214_v20 = vrot.slane %v2046_v48, 1  ;;  %v2216_v54 = vrot.slane %v2116_v12, 1  ;;  %v3136_v49 = vpack.c.bf16 %v3104_v51, %v3104_v51  ;;  %v3137_v43 = vpack.c.bf16 %v3105_v47, %v3105_v47 }
 0x2b8   : > { %v4114_v45 = vpack.c.bf16 %v3105_v47, %v3104_v51  ;;  %v2561_v63 = vpop.f32.mrf.mxu2  ;;  %v2650_v1 = vpop.f32.mrf.mxu3  ;;  %v2881_v36 = vsel %vm1387_vm0, 0.0, %v2825_v33 }
 0x2b9   : > { %v2215_v53 = vsel %vm2152_vm1, %v2213_v14, %v2214_v20  ;;  %v2217_v10 = vsel %vm2152_vm1, %v2214_v20, %v2216_v54  ;;  %v2651_v11 = vadd.f32 %v2650_v1, %v2561_v63  ;;  %v1961_v8 = vpop.f32.mrf.mxu1  ;;  %v2742_v40 = vpop.f32.mrf.mxu0  ;;  %v3200_v37 = vunpack.c.l.bf16 %v3136_v49 }
 0x2ba   : > { %4161 = vst [vmem:[%s5104_s16 + $0x58] sm:$0xff] %v4114_v45   ;;  %v3201_v24 = vunpack.c.l.bf16 %v3137_v43  ;;  %v2289_v28 = vadd.f32 %v2215_v53, %v1480_v23  ;;  %v2290_v35 = vadd.f32 %v2217_v10, %v5532_v31  ;;  %v1962_v41 = vadd.f32 %v1961_v8, %v5018_v6 }
 0x2bb   : > { %v2740_v38 = vadd.f32 %v2739_v58, %v2651_v11  ;;  %v3231_v0 = vadd.f32 %v3230_v21, %v3200_v37  ;;  %v3269_v16 = vmul.f32 %v3200_v37, %v3200_v37  ;;  %v2994_v57 = vrot.slane %v2881_v36, 2  ;;  %v5534_v11 = vld [vmem:[#allocation25_spill] sm:$0xff] }
 0x2bc   : > { %v3270_v34 = vmul.f32 %v3201_v24, %v3201_v24  ;;  %v2047_v21 = vrot.slane %v1962_v41, 7  ;;  %v5533_v49 = vrot.slane %v5016_v39, 7 }
 0x2bd   : > { %v2826_v62 = vrot.slane %v2740_v38, 7  ;;  %v3232_v52 = vadd.f32 %v3231_v0, %v3201_v24  ;;  %v3300_v55 = vadd.f32 %v3299_v4, %v3269_v16 }
 0x2be   : > { %v2101_v25 = vsel %vm1387_vm0, 0.0, %v2047_v21  ;;  %v1481_v43 = vsel %vm1387_vm0, 0.0, %v5533_v49 }
 0x2bf   : > { %v2827_v26 = vsel %vm1387_vm0, %v2825_v33, %v2826_v62  ;;  %v2897_v27 = vsel %vm1387_vm0, %v2826_v62, 0.0  ;;  %v3301_v9 = vadd.f32 %v3300_v55, %v3270_v34 }
 0x2c0   : > { %v2995_v30 = vrot.slane %v2827_v26, 2  ;;  %v2997_v61 = vrot.slane %v2897_v27, 2  ;;  %v2564_v56 = vpop.f32.mrf.mxu2  ;;  %v2653_v32 = vpop.f32.mrf.mxu3 }
 0x2c1   : > { %v1963_v3 = vpop.f32.mrf.mxu1  ;;  %v2654_v6 = vadd.f32 %v2653_v32, %v2564_v56  ;;  %v2744_v18 = vpop.f32.mrf.mxu0 }
 0x2c2   : > { %v2996_v59 = vsel %vm2933_vm2, %v2994_v57, %v2995_v30  ;;  %v2998_v60 = vsel %vm2933_vm2, %v2995_v30, %v2997_v61  ;;  %v1964_v42 = vadd.f32 %v1963_v3, %v5021_v44  ;;  %v2218_v44 = vrot.slane %v2101_v25, 1  ;;  %v5535_v57 = vld [vmem:[#allocation27_spill] sm:$0xff] }
 0x2c3   : > { %v3070_v4 = vadd.f32 %v2996_v59, %v2289_v28  ;;  %v3071_v7 = vadd.f32 %v2998_v60, %v2290_v35  ;;  %v2743_v50 = vadd.f32 %v2742_v40, %v2654_v6 }
 0x2c4   : > { %v2048_v58 = vrot.slane %v1964_v42, 7 }
 0x2c5   : > { %v3106_v22 = vadd.f32 %v5302_v29, %v3070_v4  ;;  %v3107_v17 = vadd.f32 %v5302_v29, %v3071_v7  ;;  %v2828_v45 = vrot.slane %v2743_v50, 7 }
 0x2c6   : > { %v2049_v46 = vsel %vm1387_vm0, %v2047_v21, %v2048_v58  ;;  %v2117_v2 = vsel %vm1387_vm0, %v2048_v58, 0.0 }
 0x2c7   : > { %v3138_v15 = vpack.c.bf16 %v3106_v22, %v3106_v22  ;;  %v3139_v13 = vpack.c.bf16 %v3107_v17, %v3107_v17  ;;  %v4119_v51 = vpack.c.bf16 %v3107_v17, %v3106_v22  ;;  %v2219_v47 = vrot.slane %v2049_v46, 1  ;;  %v5536_v17 = vld [vmem:[#allocation26_spill] sm:$0xff] }
 0x2c8   : > { %v2221_v48 = vrot.slane %v2117_v2, 1  ;;  %v2566_v12 = vpop.f32.mrf.mxu2  ;;  %v2655_v14 = vpop.f32.mrf.mxu3  ;;  %v2882_v39 = vsel %vm1387_vm0, 0.0, %v2828_v45  ;;  %v5537_v25 = vrot.slane %v5536_v17, 7 }
 0x2c9   : > { %4162 = vst [vmem:[%s5104_s16 + $0x60] sm:$0xff] %v4119_v51   ;;  %v3202_v20 = vunpack.c.l.bf16 %v3138_v15  ;;  %v3203_v54 = vunpack.c.l.bf16 %v3139_v13  ;;  %v2656_v5 = vadd.f32 %v2655_v14, %v2566_v12  ;;  %v1966_v23 = vpop.f32.mrf.mxu1  ;;  %v2220_v63 = vsel %vm2152_vm1, %v2218_v44, %v2219_v47  ;;  %v2747_v35 = vpop.f32.mrf.mxu0 }
 0x2ca   : > { %v2222_v1 = vsel %vm2152_vm1, %v2219_v47, %v2221_v48  ;;  %v2291_v10 = vadd.f32 %v2220_v63, %v1481_v43  ;;  %v1967_v37 = vadd.f32 %v1966_v23, %v5036_v19  ;;  %v2999_v34 = vrot.slane %v2882_v39, 2  ;;  %v5538_v23 = vld [vmem:[#allocation28_spill] sm:$0xff] }
 0x2cb   : > { %v3233_v33 = vadd.f32 %v3232_v52, %v3202_v20  ;;  %v3271_v53 = vmul.f32 %v3202_v20, %v3202_v20  ;;  %v2292_v8 = vadd.f32 %v2222_v1, %v5534_v11  ;;  %v2745_v40 = vadd.f32 %v2744_v18, %v2656_v5 }
 0x2cc   : > { %v3272_v28 = vmul.f32 %v3203_v54, %v3203_v54  ;;  %v2050_v62 = vrot.slane %v1967_v37, 7  ;;  %v1482_v50 = vsel %vm1387_vm0, 0.0, %v5537_v25  ;;  %v5541_v25 = vld [vmem:[#allocation29_spill] sm:$0xff] }
 0x2cd   : > { %v3234_v24 = vadd.f32 %v3233_v33, %v3203_v54  ;;  %v3302_v31 = vadd.f32 %v3301_v9, %v3271_v53  ;;  %v2829_v38 = vrot.slane %v2745_v40, 7  ;;  %v5539_v53 = vld [vmem:[#allocation30_spill] sm:$0xff] }
 0x2ce   : > { %v2102_v21 = vsel %vm1387_vm0, 0.0, %v2050_v62 }
 0x2cf   : > { %v3303_v0 = vadd.f32 %v3302_v31, %v3272_v28  ;;  %v2830_v16 = vsel %vm1387_vm0, %v2828_v45, %v2829_v38  ;;  %v2898_v36 = vsel %vm1387_vm0, %v2829_v38, 0.0  ;;  %v2223_v7 = vrot.slane %v2102_v21, 1 }
 0x2d0   : > { %v2569_v41 = vpop.f32.mrf.mxu2  ;;  %v2658_v52 = vpop.f32.mrf.mxu3  ;;  %v3000_v55 = vrot.slane %v2830_v16, 2  ;;  %v3002_v26 = vrot.slane %v2898_v36, 2 }
 0x2d1   : > { %v2659_v27 = vadd.f32 %v2658_v52, %v2569_v41  ;;  %v1968_v19 = vpop.f32.mrf.mxu1  ;;  %v2749_v22 = vpop.f32.mrf.mxu0 }
 0x2d2   : > { %v1969_v30 = vadd.f32 %v1968_v19, %v5535_v57  ;;  %v3001_v9 = vsel %vm2933_vm2, %v2999_v34, %v3000_v55  ;;  %v3003_v61 = vsel %vm2933_vm2, %v3000_v55, %v3002_v26  ;;  %v5540_v26 = vld [vmem:[#allocation31_spill] sm:$0xff] }
 0x2d3   : > { %v3072_v56 = vadd.f32 %v3001_v9, %v2291_v10  ;;  %v3073_v32 = vadd.f32 %v3003_v61, %v2292_v8  ;;  %v2748_v59 = vadd.f32 %v2747_v35, %v2659_v27 }
 0x2d4   : > { %v2051_v3 = vrot.slane %v1969_v30, 7 }
 0x2d5   : > { %v3108_v60 = vadd.f32 %v5302_v29, %v3072_v56  ;;  %v3109_v6 = vadd.f32 %v5302_v29, %v3073_v32  ;;  %v2831_v44 = vrot.slane %v2748_v59, 7 }
 0x2d6   : > { %v2052_v42 = vsel %vm1387_vm0, %v2050_v62, %v2051_v3  ;;  %v2118_v4 = vsel %vm1387_vm0, %v2051_v3, 0.0 }
 0x2d7   : > { %v2224_v18 = vrot.slane %v2052_v42, 1  ;;  %v2226_v58 = vrot.slane %v2118_v4, 1  ;;  %v3140_v46 = vpack.c.bf16 %v3108_v60, %v3108_v60  ;;  %v3141_v2 = vpack.c.bf16 %v3109_v6, %v3109_v6 }
 0x2d8   : > { %v4124_v15 = vpack.c.bf16 %v3109_v6, %v3108_v60  ;;  %v2571_v13 = vpop.f32.mrf.mxu2  ;;  %v2660_v51 = vpop.f32.mrf.mxu3  ;;  %v2883_v1 = vsel %vm1387_vm0, 0.0, %v2831_v44 }
 0x2d9   : > { %v2225_v47 = vsel %vm2152_vm1, %v2223_v7, %v2224_v18  ;;  %v2227_v48 = vsel %vm2152_vm1, %v2224_v18, %v2226_v58  ;;  %v2661_v12 = vadd.f32 %v2660_v51, %v2571_v13  ;;  %v1971_v14 = vpop.f32.mrf.mxu1  ;;  %v3204_v20 = vunpack.c.l.bf16 %v3140_v46  ;;  %v2752_v62 = vpop.f32.mrf.mxu0 }
 0x2da   : > { %4163 = vst [vmem:[%s5104_s16 + $0x68] sm:$0xff] %v4124_v15   ;;  %v3205_v54 = vunpack.c.l.bf16 %v3141_v2  ;;  %v2293_v5 = vadd.f32 %v2225_v47, %v1482_v50  ;;  %v2294_v49 = vadd.f32 %v2227_v48, %v5538_v23  ;;  %v1972_v10 = vadd.f32 %v1971_v14, %v5539_v53 }
 0x2db   : > { %v2750_v43 = vadd.f32 %v2749_v22, %v2661_v12  ;;  %v3235_v45 = vadd.f32 %v3234_v24, %v3204_v20  ;;  %v3273_v63 = vmul.f32 %v3204_v20, %v3204_v20  ;;  %v3004_v35 = vrot.slane %v2883_v1, 2  ;;  %v5543_v12 = vld [vmem:[#allocation32_spill] sm:$0xff] }
 0x2dc   : > { %v3274_v8 = vmul.f32 %v3205_v54, %v3205_v54  ;;  %v2053_v24 = vrot.slane %v1972_v10, 7  ;;  %v5542_v50 = vrot.slane %v5541_v25, 7 }
 0x2dd   : > { %v2832_v33 = vrot.slane %v2750_v43, 7  ;;  %v3236_v11 = vadd.f32 %v3235_v45, %v3205_v54  ;;  %v3304_v40 = vadd.f32 %v3303_v0, %v3273_v63 }
 0x2de   : > { %v2103_v61 = vsel %vm1387_vm0, 0.0, %v2053_v24  ;;  %v1483_v46 = vsel %vm1387_vm0, 0.0, %v5542_v50 }
 0x2df   : > { %v2833_v37 = vsel %vm1387_vm0, %v2831_v44, %v2832_v33  ;;  %v2899_v28 = vsel %vm1387_vm0, %v2832_v33, 0.0  ;;  %v3305_v31 = vadd.f32 %v3304_v40, %v3274_v8  ;;  %v2228_v6 = vrot.slane %v2103_v61, 1 }
 0x2e0   : > { %v3005_v39 = vrot.slane %v2833_v37, 2  ;;  %v3007_v38 = vrot.slane %v2899_v28, 2  ;;  %v2574_v16 = vpop.f32.mrf.mxu2  ;;  %v2663_v36 = vpop.f32.mrf.mxu3 }
 0x2e1   : > { %v1973_v41 = vpop.f32.mrf.mxu1  ;;  %v2664_v55 = vadd.f32 %v2663_v36, %v2574_v16  ;;  %v2754_v48 = vpop.f32.mrf.mxu0 }
 0x2e2   : > { %v3006_v52 = vsel %vm2933_vm2, %v3004_v35, %v3005_v39  ;;  %v3008_v34 = vsel %vm2933_vm2, %v3005_v39, %v3007_v38  ;;  %v1974_v0 = vadd.f32 %v1973_v41, %v5540_v26 }
 0x2e3   : > { %v3074_v27 = vadd.f32 %v3006_v52, %v2293_v5  ;;  %v3075_v19 = vadd.f32 %v3008_v34, %v2294_v49  ;;  %v2753_v56 = vadd.f32 %v2752_v62, %v2664_v55 }
 0x2e4   : > { %v2054_v57 = vrot.slane %v1974_v0, 7 }
 0x2e5   : > { %v3110_v30 = vadd.f32 %v5302_v29, %v3074_v27  ;;  %v3111_v9 = vadd.f32 %v5302_v29, %v3075_v19  ;;  %v2834_v2 = vrot.slane %v2753_v56, 7 }
 0x2e6   : > { %v2055_v32 = vsel %vm1387_vm0, %v2053_v24, %v2054_v57  ;;  %v2119_v21 = vsel %vm1387_vm0, %v2054_v57, 0.0 }
 0x2e7   : > { %v3142_v3 = vpack.c.bf16 %v3110_v30, %v3110_v30  ;;  %v3143_v59 = vpack.c.bf16 %v3111_v9, %v3111_v9  ;;  %v4129_v60 = vpack.c.bf16 %v3111_v9, %v3110_v30  ;;  %v2229_v42 = vrot.slane %v2055_v32, 1 }
 0x2e8   : > { %v2231_v4 = vrot.slane %v2119_v21, 1  ;;  %v2576_v7 = vpop.f32.mrf.mxu2  ;;  %v2665_v18 = vpop.f32.mrf.mxu3  ;;  %v2884_v49 = vsel %vm1387_vm0, 0.0, %v2834_v2 }
 0x2e9   : > { %4164 = vst [vmem:[%s5104_s16 + $0x70] sm:$0xff] %v4129_v60   ;;  %v3206_v58 = vunpack.c.l.bf16 %v3142_v3  ;;  %v3207_v22 = vunpack.c.l.bf16 %v3143_v59  ;;  %v2666_v17 = vadd.f32 %v2665_v18, %v2576_v7  ;;  %v2230_v15 = vsel %vm2152_vm1, %v2228_v6, %v2229_v42 }
 0x2ea   : > { %v2232_v13 = vsel %vm2152_vm1, %v2229_v42, %v2231_v4  ;;  %v2295_v47 = vadd.f32 %v2230_v15, %v1483_v46  ;;  %v3009_v33 = vrot.slane %v2884_v49, 2 }
 0x2eb   : > { %v3237_v51 = vadd.f32 %v3236_v11, %v3206_v58  ;;  %v3275_v44 = vmul.f32 %v3206_v58, %v3206_v58  ;;  %v2296_v14 = vadd.f32 %v2232_v13, %v5543_v12  ;;  %v2755_v20 = vadd.f32 %v2754_v48, %v2666_v17 }
 0x2ec   : > { %v3276_v5 = vmul.f32 %v3207_v22, %v3207_v22 }
 0x2ed   : > { %v3238_v54 = vadd.f32 %v3237_v51, %v3207_v22  ;;  %v3306_v23 = vadd.f32 %v3305_v31, %v3275_v44  ;;  %v2835_v43 = vrot.slane %v2755_v20, 7 }
 0x2ef   : > { %v3307_v45 = vadd.f32 %v3306_v23, %v3276_v5  ;;  %v2836_v63 = vsel %vm1387_vm0, %v2834_v2, %v2835_v43  ;;  %v2900_v1 = vsel %vm1387_vm0, %v2835_v43, 0.0 }
 0x2f0   : > { %v3010_v53 = vrot.slane %v2836_v63, 2  ;;  %v3012_v10 = vrot.slane %v2900_v1, 2 }
 0x2f2   : > { %v3011_v11 = vsel %vm2933_vm2, %v3009_v33, %v3010_v53  ;;  %v3013_v8 = vsel %vm2933_vm2, %v3010_v53, %v3012_v10 }
 0x2f3   : > { %v3076_v40 = vadd.f32 %v3011_v11, %v2295_v47  ;;  %v3077_v37 = vadd.f32 %v3013_v8, %v2296_v14 }
 0x2f5   : > { %v3112_v28 = vadd.f32 %v5302_v29, %v3076_v40  ;;  %v3113_v31 = vadd.f32 %v5302_v29, %v3077_v37 }
 0x2f7   : > { %v3144_v35 = vpack.c.bf16 %v3112_v28, %v3112_v28  ;;  %v3145_v39 = vpack.c.bf16 %v3113_v31, %v3113_v31  ;;  %v4134_v38 = vpack.c.bf16 %v3113_v31, %v3112_v28 }
 0x2f9   : > { %4165 = vst [vmem:[%s5104_s16 + $0x78] sm:$0xff] %v4134_v38   ;;  %v3208_v16 = vunpack.c.l.bf16 %v3144_v35  ;;  %v3209_v36 = vunpack.c.l.bf16 %v3145_v39 }
 0x2fb   : > { %v3239_v24 = vadd.f32 %v3238_v54, %v3208_v16  ;;  %v3277_v62 = vmul.f32 %v3208_v16, %v3208_v16  ;;  %v3278_v52 = vmul.f32 %v3209_v36, %v3209_v36 }
 0x2fd   : > { %v3240_v41 = vadd.f32 %v3239_v24, %v3209_v36  ;;  %v3308_v34 = vadd.f32 %v3307_v45, %v3277_v62 }
 0x2ff   : > { %v3241_v55 = vrot.slane %v3240_v41, 4  ;;  %v3309_v26 = vadd.f32 %v3308_v34, %v3278_v52 }
 0x301   : > { %v3242_v0 = vadd.f32 %v3241_v55, %v3240_v41  ;;  %v3310_v27 = vrot.slane %v3309_v26, 4 }
 0x303   : > { %v3243_v19 = vrot.slane %v3242_v0, 2  ;;  %v3311_v57 = vadd.f32 %v3310_v27, %v3309_v26 }
 0x305   : > { %v3244_v30 = vadd.f32 %v3243_v19, %v3242_v0  ;;  %v3312_v29 = vrot.slane %v3311_v57, 2 }
 0x307   : > { %v3245_v9 = vrot.slane %v3244_v30, 1  ;;  %v3313_v61 = vadd.f32 %v3312_v29, %v3311_v57 }
 0x309   : > { %v3314_v56 = vrot.slane %v3313_v61, 1  ;;  %v3246_v32 = vadd.f32 %v3245_v9, %v3244_v30 }
 0x30b   : > { %v3315_v21 = vadd.f32 %v3314_v56, %v3313_v61 }
 0x30d   : > { %v3316_v3 = vsel %vm1387_vm0, %v3246_v32, %v3315_v21 }
 0x30e   : > { %3317 = vst [vmem:[%s520_s23] sm:$0x3] %v3316_v3 }
 0x30f PF: > { %s19_s27 = sadd.s32 1, %s4243_s27   ;;  %s5544_s26 = smov %s4239_s2 }
 0x310   : > { %p16_p5 = scmp.ge.s32.totalorder %s19_s27, 4   ;;  %s5545_s2 = smov %s5547_s28 }
 0x312   :  { %18 = sbr.rel (!%p16_p5) target bundleno = 2 (0x2), region = 104 }

// kernel: unet_up_forward.5
= control target key start
LH: loop header
LB: loop body
LE: loop exit
PB: predicated region body
PF: predicated region fallthrough
CT: control target
= control target key end

     0   :  { %s6467_s28 = smov 0   ;;  %s6469_s3 = smov 0   ;;  %s8216_s0 = inlined_call_operand.vmem [shape: bf16[2,16,16,128], index: 0, kind: input, shape index: {}, may-alias: {0,1,2}]   ;;  %s8217_s1 = inlined_call_operand.vmem [shape: bf16[2,16,16,128], index: 1, kind: input, shape index: {}, may-alias: {0,1,2}]   ;;  %s8218_s2 = inlined_call_operand.vmem [shape: bf16[2,16,16,128], index: 2, kind: input, shape index: {}, may-alias: {0,1,2}]   ;;  %s8219_s3 = inlined_call_operand.vmem [shape: bf16[2,16,16,128], index: 3, kind: input, shape index: {}, may-alias: {3,4,5}]   ;;  %s8220_s4 = inlined_call_operand.vmem [shape: bf16[2,16,16,128], index: 4, kind: input, shape index: {}, may-alias: {3,4,5}]   ;;  %s8221_s5 = inlined_call_operand.vmem [shape: bf16[2,16,16,128], index: 5, kind: input, shape index: {}, may-alias: {3,4,5}]   ;;  %s8222_s6 = inlined_call_operand.vmem [shape: bf16[3,768,128], index: 6, kind: input, shape index: {}]   ;;  %s8223_s7 = inlined_call_operand.vmem [shape: f32[1,128], index: 7, kind: input, shape index: {}]   ;;  %s8224_s8 = inlined_call_operand.vmem [shape: bf16[2,16,16,128], index: 8, kind: output, shape index: {0}]   ;;  %s8225_s9 = inlined_call_operand.vmem [shape: f32[2,1,2,128], index: 9, kind: output, shape index: {1}]  }
   0x1   :  { %s6471_s29 = smov 0  }
   0x2 LB: > { %s32_s5 = sadd.s32 1, %s6410_s3  ;;  %p5095_p0 = scmp.ge.s32.totalorder %s6414_s29, 1  ;;  %s6414_s29 = sphi %s6471_s29, %s20_s29   ;;  %s6410_s3 = sphi %s6469_s3, %s8404_s3   ;;  %s6406_s28 = sphi %s6467_s28, %s8403_s28  }
   0x3   : > { %p34_p1 = scmp.ge.s32.totalorder %s32_s5, 2  ;;  %p460_p2 = scmp.lt.s32.totalorder %s6414_s29, 3 }
   0x5   : > { %s8406_s5 = smov (%p34_p1, %s32_s5), 0  ;;  %p461_p3 = pnand %p5095_p0, %p460_p2 }
   0x7   : > { %464 = sbr.rel (%p461_p3) target bundleno = 1362 (0x552), region = 52 }
   0xc   : > { %v6057_v0 = vld [vmem:[%s8222_s6 + $0x38] sm:$0xff]  ;;  %v6056_v2 = vld [vmem:[%s8222_s6 + $0x30] sm:$0xff]  ;;  %v6055_v4 = vld [vmem:[%s8222_s6 + $0x28] sm:$0xff]  ;;  %p593_p4 = scmp.lt.s32.totalorder %s6406_s28, 1  ;;  %v6416_v16 = vmov 0   ;;  %vm2000_vm0 = vcmask 1040384  }
   0xd   : > { %v6065_v1 = vld [vmem:[%s8222_s6 + $0x78] sm:$0xff]  ;;  %6289 = vmatpush.bf16.msra.mxu2 %v6057_v0  ;;  %v6064_v3 = vld [vmem:[%s8222_s6 + $0x70] sm:$0xff]  ;;  %1434 = vmatpush.bf16.msra.mxu0 %v6057_v0  ;;  %v6063_v5 = vld [vmem:[%s8222_s6 + $0x68] sm:$0xff]  ;;  %v866_v17 = vunpack.c.l.b16 %v6416_v16  ;;  %vm3224_vm1 = vcmask 1046528   ;;  %vm4464_vm2 = vcmask 1045504  }
   0xe   : > { %6297 = vmatpush.bf16.msra.mxu3 %v6065_v1  ;;  %1523 = vmatpush.bf16.msra.mxu1 %v6065_v1  ;;  %v6054_v6 = vld [vmem:[%s8222_s6 + $0x20] sm:$0xff]  ;;  %v6053_v8 = vld [vmem:[%s8222_s6 + $0x18] sm:$0xff]  ;;  %v6052_v10 = vld [vmem:[%s8222_s6 + $0x10] sm:$0xff]  ;;  %s8408_s28 = smov (!%p593_p4, %s6406_s28), 1 }
   0xf   : > { %v6062_v7 = vld [vmem:[%s8222_s6 + $0x60] sm:$0xff]  ;;  %v6061_v9 = vld [vmem:[%s8222_s6 + $0x58] sm:$0xff]  ;;  %v6060_v11 = vld [vmem:[%s8222_s6 + $0x50] sm:$0xff]  ;;  %s6534_s16 = sshll.u32 %s8408_s28, 7  ;;  %v6560_v22 = vpack.c.b16 %v866_v17, %v866_v17 }
  0x10   : > { %v6051_v12 = vld [vmem:[%s8222_s6 + $0x8] sm:$0xff]  ;;  %v6050_v14 = vld [vmem:[%s8222_s6] sm:$0xff]  ;;  %s6546_s23 = scalar_lea.vmem %s8217_s1, %s6534_s16  ;;  %v6073_v18 = vld [vmem:[%s8222_s6 + $0xb8] sm:$0xff]  ;;  %s6742_s21 = scalar_lea.vmem %s8220_s4, %s6534_s16 }
  0x11   : > { %6290 = vmatpush.bf16.msra.mxu2 %v6056_v2  ;;  %1435 = vmatpush.bf16.msra.mxu0 %v6056_v2  ;;  %v6059_v13 = vld [vmem:[%s8222_s6 + $0x48] sm:$0xff]  ;;  %v6058_v15 = vld [vmem:[%s8222_s6 + $0x40] sm:$0xff]  ;;  %v6081_v19 = vld [vmem:[%s8222_s6 + $0xf8] sm:$0xff]  ;;  %s7981_s10 = scalar_lea.vmem %s8224_s8, %s6534_s16 }
  0x12   : > { %6298 = vmatpush.bf16.msra.mxu3 %v6064_v3  ;;  %1524 = vmatpush.bf16.msra.mxu1 %v6064_v3  ;;  %v6555_v20 = vld [vmem:[%s6546_s23 + $0x38] sm:$0xff]  ;;  %v6558_v21 = vld [vmem:[%s6546_s23 + $0x40] sm:$0xff]  ;;  %v6072_v26 = vld [vmem:[%s8222_s6 + $0xb0] sm:$0xff] }
  0x13   : > { %v6563_v23 = vld [vmem:[%s6546_s23] sm:$0xff]  ;;  %v6089_v24 = vld [vmem:[%s8222_s6 + $0x138] sm:$0xff]  ;;  %v6080_v27 = vld [vmem:[%s8222_s6 + $0xf0] sm:$0xff] }
  0x14   : > { %v6097_v25 = vld [vmem:[%s8222_s6 + $0x178] sm:$0xff]  ;;  %v6088_v28 = vld [vmem:[%s8222_s6 + $0x130] sm:$0xff]  ;;  %v6071_v30 = vld [vmem:[%s8222_s6 + $0xa8] sm:$0xff] }
  0x15   : > { %6291 = vmatpush.bf16.msra.mxu2 %v6055_v4  ;;  %1436 = vmatpush.bf16.msra.mxu0 %v6055_v4  ;;  %v6096_v29 = vld [vmem:[%s8222_s6 + $0x170] sm:$0xff]  ;;  %v6079_v31 = vld [vmem:[%s8222_s6 + $0xe8] sm:$0xff]  ;;  %v6070_v36 = vld [vmem:[%s8222_s6 + $0xa0] sm:$0xff] }
  0x16   : > { %6299 = vmatpush.bf16.msra.mxu3 %v6063_v5  ;;  %1525 = vmatpush.bf16.msra.mxu1 %v6063_v5  ;;  %v6087_v32 = vld [vmem:[%s8222_s6 + $0x128] sm:$0xff]  ;;  %v6078_v37 = vld [vmem:[%s8222_s6 + $0xe0] sm:$0xff]  ;;  %v6622_v40 = vld [vmem:[%s6546_s23 + $0x50] sm:$0xff] }
  0x17   : > { %v6095_v33 = vld [vmem:[%s8222_s6 + $0x168] sm:$0xff]  ;;  %v6086_v38 = vld [vmem:[%s8222_s6 + $0x120] sm:$0xff]  ;;  %v6625_v41 = vld [vmem:[%s6546_s23 + $0x10] sm:$0xff] }
  0x18   : > { %v6600_v34 = vld [vmem:[%s6546_s23 + $0x48] sm:$0xff]  ;;  %v6094_v39 = vld [vmem:[%s8222_s6 + $0x160] sm:$0xff]  ;;  %v6069_v42 = vld [vmem:[%s8222_s6 + $0x98] sm:$0xff] }
  0x19   : > { %6292 = vmatpush.bf16.msra.mxu2 %v6054_v6  ;;  %1437 = vmatpush.bf16.msra.mxu0 %v6054_v6  ;;  %v6603_v35 = vld [vmem:[%s6546_s23 + $0x8] sm:$0xff]  ;;  %v6077_v43 = vld [vmem:[%s8222_s6 + $0xd8] sm:$0xff]  ;;  %v6068_v48 = vld [vmem:[%s8222_s6 + $0x90] sm:$0xff] }
  0x1a   : > { %6300 = vmatpush.bf16.msra.mxu3 %v6062_v7  ;;  %1526 = vmatpush.bf16.msra.mxu1 %v6062_v7  ;;  %v6085_v44 = vld [vmem:[%s8222_s6 + $0x118] sm:$0xff]  ;;  %v6076_v49 = vld [vmem:[%s8222_s6 + $0xd0] sm:$0xff]  ;;  %v6666_v52 = vld [vmem:[%s6546_s23 + $0x60] sm:$0xff] }
  0x1b   : > { %v6093_v45 = vld [vmem:[%s8222_s6 + $0x158] sm:$0xff]  ;;  %v6084_v50 = vld [vmem:[%s8222_s6 + $0x110] sm:$0xff]  ;;  %v6669_v53 = vld [vmem:[%s6546_s23 + $0x20] sm:$0xff] }
  0x1c   : > { %v6644_v46 = vld [vmem:[%s6546_s23 + $0x58] sm:$0xff]  ;;  %v6092_v51 = vld [vmem:[%s8222_s6 + $0x150] sm:$0xff]  ;;  %v6067_v54 = vld [vmem:[%s8222_s6 + $0x88] sm:$0xff] }
  0x1d   : > { %6293 = vmatpush.bf16.msra.mxu2 %v6053_v8  ;;  %1438 = vmatpush.bf16.msra.mxu0 %v6053_v8  ;;  %v6647_v47 = vld [vmem:[%s6546_s23 + $0x18] sm:$0xff]  ;;  %v6075_v55 = vld [vmem:[%s8222_s6 + $0xc8] sm:$0xff]  ;;  %v6066_v60 = vld [vmem:[%s8222_s6 + $0x80] sm:$0xff] }
  0x1e   : > { %6301 = vmatpush.bf16.msra.mxu3 %v6061_v9  ;;  %1527 = vmatpush.bf16.msra.mxu1 %v6061_v9  ;;  %v6083_v56 = vld [vmem:[%s8222_s6 + $0x108] sm:$0xff]  ;;  %v6074_v61 = vld [vmem:[%s8222_s6 + $0xc0] sm:$0xff]  ;;  %v6710_v0 = vld [vmem:[%s6546_s23 + $0x70] sm:$0xff] }
  0x1f   : > { %v6091_v57 = vld [vmem:[%s8222_s6 + $0x148] sm:$0xff]  ;;  %v6082_v62 = vld [vmem:[%s8222_s6 + $0x100] sm:$0xff]  ;;  %v6713_v1 = vld [vmem:[%s6546_s23 + $0x30] sm:$0xff] }
  0x20   : > { %v6688_v58 = vld [vmem:[%s6546_s23 + $0x68] sm:$0xff]  ;;  %v6090_v63 = vld [vmem:[%s8222_s6 + $0x140] sm:$0xff]  ;;  %v6105_v2 = vld [vmem:[%s8222_s6 + $0x1b8] sm:$0xff] }
  0x21   : > { %6294 = vmatpush.bf16.msra.mxu2 %v6052_v10  ;;  %1439 = vmatpush.bf16.msra.mxu0 %v6052_v10  ;;  %v6691_v59 = vld [vmem:[%s6546_s23 + $0x28] sm:$0xff]  ;;  %v6113_v3 = vld [vmem:[%s8222_s6 + $0x1f8] sm:$0xff]  ;;  %v6745_v7 = vld [vmem:[%s6742_s21] sm:$0xff] }
  0x22   : > { %6302 = vmatpush.bf16.msra.mxu3 %v6060_v11  ;;  %1528 = vmatpush.bf16.msra.mxu1 %v6060_v11  ;;  %v6121_v4 = vld [vmem:[%s8222_s6 + $0x238] sm:$0xff]  ;;  %v6748_v8 = vld [vmem:[%s6742_s21 + $0x8] sm:$0xff] }
  0x23   : > { %v6729_v5 = vld [vmem:[%s6546_s23 + $0x78] sm:$0xff] }
  0x24   : > { %v6129_v6 = vld [vmem:[%s8222_s6 + $0x278] sm:$0xff] }
  0x25   : > { %6295 = vmatpush.bf16.msra.mxu2 %v6051_v12  ;;  %1440 = vmatpush.bf16.msra.mxu0 %v6051_v12  ;;  %v6104_v12 = vld [vmem:[%s8222_s6 + $0x1b0] sm:$0xff] }
  0x26   : > { %6303 = vmatpush.bf16.msra.mxu3 %v6059_v13  ;;  %1529 = vmatpush.bf16.msra.mxu1 %v6059_v13  ;;  %v6112_v13 = vld [vmem:[%s8222_s6 + $0x1f0] sm:$0xff] }
  0x29   : > { %6296 = vmatpush.bf16.msra.mxu2 %v6050_v14  ;;  %1441 = vmatpush.bf16.msra.mxu0 %v6050_v14 }
  0x2a   : > { %6304 = vmatpush.bf16.msra.mxu3 %v6058_v15  ;;  %1530 = vmatpush.bf16.msra.mxu1 %v6058_v15 }
  0x2c   : > { %1482 = vmatmul.bf16.vlgmr.msra.gmra.mxu2 %v6555_v20  ;;  %1442 = vmatmul.bf16.vlgmr.msra.gmra.mxu0 %v6560_v22 }
  0x2d   : > { %1612 = vmatpush.bf16.msrb.mxu2 %v6073_v18  ;;  %1571 = vmatmul.bf16.vlgmr.msra.gmra.mxu3 %v6558_v21 }
  0x2e   : > { %1701 = vmatpush.bf16.msrb.mxu3 %v6081_v19  ;;  %1531 = vmatmul.bf16.vlgmr.msra.gmra.mxu1 %v6563_v23 }
  0x2f   : > { %1790 = vmatpush.bf16.msrb.mxu0 %v6089_v24  ;;  %1879 = vmatpush.bf16.msrb.mxu1 %v6097_v25  ;;  %v6120_v24 = vld [vmem:[%s8222_s6 + $0x230] sm:$0xff] }
  0x31   : > { %1613 = vmatpush.bf16.msrb.mxu2 %v6072_v26 }
  0x32   : > { %1702 = vmatpush.bf16.msrb.mxu3 %v6080_v27 }
  0x33   : > { %1791 = vmatpush.bf16.msrb.mxu0 %v6088_v28  ;;  %1880 = vmatpush.bf16.msrb.mxu1 %v6096_v29  ;;  %v6128_v28 = vld [vmem:[%s8222_s6 + $0x270] sm:$0xff] }
  0x34   : > { %v6775_v29 = vld [vmem:[%s6742_s21 + $0x10] sm:$0xff] }
  0x35   : > { %1614 = vmatpush.bf16.msrb.mxu2 %v6071_v30 }
  0x36   : > { %1703 = vmatpush.bf16.msrb.mxu3 %v6079_v31 }
  0x37   : > { %1792 = vmatpush.bf16.msrb.mxu0 %v6087_v32  ;;  %1881 = vmatpush.bf16.msrb.mxu1 %v6095_v33 }
  0x39   : > { %1615 = vmatpush.bf16.msrb.mxu2 %v6070_v36 }
  0x3a   : > { %1704 = vmatpush.bf16.msrb.mxu3 %v6078_v37 }
  0x3b   : > { %1793 = vmatpush.bf16.msrb.mxu0 %v6086_v38  ;;  %1882 = vmatpush.bf16.msrb.mxu1 %v6094_v39 }
  0x3c   : > { %1487 = vmatmul.bf16.gmra.mxu2 %v6558_v21  ;;  %1447 = vmatmul.bf16.gmra.mxu0 %v6563_v23 }
  0x3d   : > { %1576 = vmatmul.bf16.gmra.mxu3 %v6600_v34  ;;  %1616 = vmatpush.bf16.msrb.mxu2 %v6069_v42 }
  0x3e   : > { %1536 = vmatmul.bf16.gmra.mxu1 %v6603_v35  ;;  %1705 = vmatpush.bf16.msrb.mxu3 %v6077_v43 }
  0x3f   : > { %1794 = vmatpush.bf16.msrb.mxu0 %v6085_v44  ;;  %1883 = vmatpush.bf16.msrb.mxu1 %v6093_v45 }
  0x41   : > { %1617 = vmatpush.bf16.msrb.mxu2 %v6068_v48  ;;  %v6790_v48 = vld [vmem:[%s6742_s21 + $0x18] sm:$0xff] }
  0x42   : > { %1706 = vmatpush.bf16.msrb.mxu3 %v6076_v49 }
  0x43   : > { %1795 = vmatpush.bf16.msrb.mxu0 %v6084_v50  ;;  %1884 = vmatpush.bf16.msrb.mxu1 %v6092_v51 }
  0x45   : > { %1618 = vmatpush.bf16.msrb.mxu2 %v6067_v54  ;;  %v6103_v54 = vld [vmem:[%s8222_s6 + $0x1a8] sm:$0xff] }
  0x46   : > { %1707 = vmatpush.bf16.msrb.mxu3 %v6075_v55  ;;  %v6111_v55 = vld [vmem:[%s8222_s6 + $0x1e8] sm:$0xff] }
  0x47   : > { %1796 = vmatpush.bf16.msrb.mxu0 %v6083_v56  ;;  %1885 = vmatpush.bf16.msrb.mxu1 %v6091_v57 }
  0x49   : > { %1619 = vmatpush.bf16.msrb.mxu2 %v6066_v60 }
  0x4a   : > { %1708 = vmatpush.bf16.msrb.mxu3 %v6074_v61 }
  0x4b   : > { %1797 = vmatpush.bf16.msrb.mxu0 %v6082_v62  ;;  %1886 = vmatpush.bf16.msrb.mxu1 %v6090_v63 }
  0x4c   : > { %1492 = vmatmul.bf16.gmra.mxu2 %v6600_v34  ;;  %1452 = vmatmul.bf16.gmra.mxu0 %v6603_v35 }
  0x4d   : > { %1581 = vmatmul.bf16.gmra.mxu3 %v6622_v40  ;;  %2514 = vmatpush.bf16.msra.mxu2 %v6105_v2  ;;  %v6119_v2 = vld [vmem:[%s8222_s6 + $0x228] sm:$0xff] }
  0x4e   : > { %1541 = vmatmul.bf16.gmra.mxu1 %v6625_v41  ;;  %2603 = vmatpush.bf16.msra.mxu3 %v6113_v3 }
  0x4f   : > { %2692 = vmatpush.bf16.msra.mxu0 %v6121_v4  ;;  %2781 = vmatpush.bf16.msra.mxu1 %v6129_v6 }
  0x51   : > { %2515 = vmatpush.bf16.msra.mxu2 %v6104_v12 }
  0x52   : > { %2604 = vmatpush.bf16.msra.mxu3 %v6112_v13 }
  0x53   : > { %2693 = vmatpush.bf16.msra.mxu0 %v6120_v24  ;;  %2782 = vmatpush.bf16.msra.mxu1 %v6128_v28 }
  0x55   : > { %2516 = vmatpush.bf16.msra.mxu2 %v6103_v54 }
  0x56   : > { %2605 = vmatpush.bf16.msra.mxu3 %v6111_v55 }
  0x57   : > { %2694 = vmatpush.bf16.msra.mxu0 %v6119_v2  ;;  %v6126_v2 = vld [vmem:[%s8222_s6 + $0x260] sm:$0xff] }
  0x5c   : > { %1497 = vmatmul.bf16.gmra.mxu2 %v6622_v40  ;;  %1457 = vmatmul.bf16.gmra.mxu0 %v6625_v41 }
  0x5d   : > { %1586 = vmatmul.bf16.gmra.mxu3 %v6644_v46 }
  0x5e   : > { %1546 = vmatmul.bf16.gmra.mxu1 %v6647_v47 }
  0x6c   : > { %1502 = vmatmul.bf16.gmra.mxu2 %v6644_v46  ;;  %1462 = vmatmul.bf16.gmra.mxu0 %v6647_v47 }
  0x6d   : > { %1591 = vmatmul.bf16.gmra.mxu3 %v6666_v52 }
  0x6e   : > { %1551 = vmatmul.bf16.gmra.mxu1 %v6669_v53 }
  0x7c   : > { %1507 = vmatmul.bf16.gmra.mxu2 %v6666_v52  ;;  %1467 = vmatmul.bf16.gmra.mxu0 %v6669_v53 }
  0x7d   : > { %1596 = vmatmul.bf16.gmra.mxu3 %v6688_v58 }
  0x7e   : > { %1556 = vmatmul.bf16.gmra.mxu1 %v6691_v59 }
  0x8c   : > { %1512 = vmatmul.bf16.gmra.mxu2 %v6688_v58  ;;  %1472 = vmatmul.bf16.gmra.mxu0 %v6691_v59 }
  0x8d   : > { %1601 = vmatmul.bf16.gmra.mxu3 %v6710_v0 }
  0x8e   : > { %1561 = vmatmul.bf16.gmra.mxu1 %v6713_v1 }
  0x9c   : > { %1517 = vmatmul.bf16.gmra.mxu2 %v6710_v0  ;;  %1477 = vmatmul.bf16.gmra.mxu0 %v6713_v1 }
  0x9d   : > { %1606 = vmatmul.bf16.gmra.mxu3 %v6729_v5 }
  0x9e   : > { %1566 = vmatmul.bf16.gmra.mxu1 %v6555_v20 }
  0xa9   : > { %v1443_v9 = vpop.f32.mrf.mxu0 }
  0xab   : > { %v1532_v10 = vpop.f32.mrf.mxu1 }
  0xac   : > { %v6750_v11 = vadd.f32 %v1532_v10, %v1443_v9  ;;  %1620 = vmatmul.bf16.vlgmr.msrb.gmra.mxu2 %v6603_v35  ;;  %1798 = vmatmul.bf16.vlgmr.msrb.gmra.mxu0 %v6745_v7  ;;  %v6127_v9 = vld [vmem:[%s8222_s6 + $0x268] sm:$0xff]  ;;  %v6817_v10 = vld [vmem:[%s6742_s21 + $0x20] sm:$0xff] }
  0xad   : > { %1709 = vmatmul.bf16.vlgmr.msrb.gmra.mxu3 %v6560_v22  ;;  %2783 = vmatpush.bf16.msra.mxu1 %v6127_v9 }
  0xae   : > { %1887 = vmatmul.bf16.vlgmr.msrb.gmra.mxu1 %v6748_v8 }
  0xaf   : > { %v1483_v14 = vpop.f32.mrf.mxu2 }
  0xb0   : > { %v1572_v15 = vpop.f32.mrf.mxu3 }
  0xb1   : > { %v6762_v16 = vadd.f32 %v1572_v15, %v1483_v14  ;;  %v1445_v17 = vpop.f32.mrf.mxu0  ;;  %2784 = vmatpush.bf16.msra.mxu1 %v6126_v2 }
  0xb3   : > { %v1534_v18 = vpop.f32.mrf.mxu1 }
  0xb4   : > { %v6764_v19 = vadd.f32 %v1534_v18, %v1445_v17 }
  0xb7   : > { %v1485_v25 = vpop.f32.mrf.mxu2 }
  0xb8   : > { %v1574_v26 = vpop.f32.mrf.mxu3 }
  0xb9   : > { %v6769_v27 = vadd.f32 %v1574_v26, %v1485_v25  ;;  %v1448_v30 = vpop.f32.mrf.mxu0 }
  0xbb   : > { %v1537_v31 = vpop.f32.mrf.mxu1 }
  0xbc   : > { %v6777_v32 = vadd.f32 %v1537_v31, %v1448_v30  ;;  %1625 = vmatmul.bf16.gmra.mxu2 %v6625_v41  ;;  %1803 = vmatmul.bf16.gmra.mxu0 %v6748_v8 }
  0xbd   : > { %1714 = vmatmul.bf16.gmra.mxu3 %v6745_v7 }
  0xbe   : > { %1892 = vmatmul.bf16.gmra.mxu1 %v6775_v29 }
  0xbf   : > { %v1488_v33 = vpop.f32.mrf.mxu2 }
  0xc0   : > { %v1577_v36 = vpop.f32.mrf.mxu3 }
  0xc1   : > { %v6783_v37 = vadd.f32 %v1577_v36, %v1488_v33  ;;  %v1450_v38 = vpop.f32.mrf.mxu0  ;;  %v6832_v33 = vld [vmem:[%s6742_s21 + $0x28] sm:$0xff] }
  0xc3   : > { %v1539_v39 = vpop.f32.mrf.mxu1 }
  0xc4   : > { %v6785_v42 = vadd.f32 %v1539_v39, %v1450_v38  ;;  %v6102_v39 = vld [vmem:[%s8222_s6 + $0x1a0] sm:$0xff] }
  0xc5   : > { %2517 = vmatpush.bf16.msra.mxu2 %v6102_v39  ;;  %v6874_v39 = vld [vmem:[%s6742_s21 + $0x38] sm:$0xff] }
  0xc6   : > { %8262 = vst [vmem:[#allocation3_spill] sm:$0xff] %v6874_v39 }
  0xc7   : > { %v1490_v43 = vpop.f32.mrf.mxu2 }
  0xc8   : > { %v1579_v44 = vpop.f32.mrf.mxu3 }
  0xc9   : > { %v6787_v45 = vadd.f32 %v1579_v44, %v1490_v43  ;;  %v1453_v49 = vpop.f32.mrf.mxu0  ;;  %v6110_v43 = vld [vmem:[%s8222_s6 + $0x1e0] sm:$0xff] }
  0xca   : > { %2606 = vmatpush.bf16.msra.mxu3 %v6110_v43 }
  0xcb   : > { %v1542_v50 = vpop.f32.mrf.mxu1 }
  0xcc   : > { %v6792_v51 = vadd.f32 %v1542_v50, %v1453_v49  ;;  %1630 = vmatmul.bf16.gmra.mxu2 %v6647_v47  ;;  %1808 = vmatmul.bf16.gmra.mxu0 %v6775_v29 }
  0xcd   : > { %1719 = vmatmul.bf16.gmra.mxu3 %v6748_v8 }
  0xce   : > { %1897 = vmatmul.bf16.gmra.mxu1 %v6790_v48 }
  0xcf   : > { %v1493_v56 = vpop.f32.mrf.mxu2 }
  0xd0   : > { %v1582_v57 = vpop.f32.mrf.mxu3 }
  0xd1   : > { %v6804_v60 = vadd.f32 %v1582_v57, %v1493_v56  ;;  %v1455_v61 = vpop.f32.mrf.mxu0  ;;  %v6118_v56 = vld [vmem:[%s8222_s6 + $0x220] sm:$0xff] }
  0xd2   : > { %2695 = vmatpush.bf16.msra.mxu0 %v6118_v56 }
  0xd3   : > { %v1544_v62 = vpop.f32.mrf.mxu1 }
  0xd4   : > { %v6806_v63 = vadd.f32 %v1544_v62, %v1455_v61 }
  0xd7   : > { %v1495_v3 = vpop.f32.mrf.mxu2 }
  0xd8   : > { %v1584_v4 = vpop.f32.mrf.mxu3 }
  0xd9   : > { %v6811_v6 = vadd.f32 %v1584_v4, %v1495_v3  ;;  %v1458_v12 = vpop.f32.mrf.mxu0  ;;  %v6859_v3 = vld [vmem:[%s6742_s21 + $0x30] sm:$0xff] }
  0xda   : > { %8261 = vst [vmem:[#allocation2_spill] sm:$0xff] %v6859_v3 }
  0xdb   : > { %v1547_v13 = vpop.f32.mrf.mxu1 }
  0xdc   : > { %v6819_v14 = vadd.f32 %v1547_v13, %v1458_v12  ;;  %1635 = vmatmul.bf16.gmra.mxu2 %v6669_v53  ;;  %1813 = vmatmul.bf16.gmra.mxu0 %v6790_v48 }
  0xdd   : > { %1724 = vmatmul.bf16.gmra.mxu3 %v6775_v29 }
  0xde   : > { %1902 = vmatmul.bf16.gmra.mxu1 %v6817_v10 }
  0xdf   : > { %v1498_v15 = vpop.f32.mrf.mxu2 }
  0xe0   : > { %v1587_v17 = vpop.f32.mrf.mxu3 }
  0xe1   : > { %v6825_v18 = vadd.f32 %v1587_v17, %v1498_v15  ;;  %v1460_v24 = vpop.f32.mrf.mxu0 }
  0xe3   : > { %v1549_v25 = vpop.f32.mrf.mxu1 }
  0xe4   : > { %v6827_v26 = vadd.f32 %v1549_v25, %v1460_v24 }
  0xe7   : > { %v1500_v28 = vpop.f32.mrf.mxu2 }
  0xe8   : > { %v1589_v30 = vpop.f32.mrf.mxu3 }
  0xe9   : > { %v6829_v31 = vadd.f32 %v1589_v30, %v1500_v28  ;;  %v1463_v53 = vpop.f32.mrf.mxu0 }
  0xeb   : > { %v1552_v36 = vpop.f32.mrf.mxu1 }
  0xec   : > { %v6834_v38 = vadd.f32 %v1552_v36, %v1463_v53  ;;  %1640 = vmatmul.bf16.gmra.mxu2 %v6691_v59  ;;  %1818 = vmatmul.bf16.gmra.mxu0 %v6817_v10 }
  0xed   : > { %1729 = vmatmul.bf16.gmra.mxu3 %v6790_v48 }
  0xee   : > { %1907 = vmatmul.bf16.gmra.mxu1 %v6832_v33 }
  0xef   : > { %v1503_v44 = vpop.f32.mrf.mxu2 }
  0xf0   : > { %v1592_v49 = vpop.f32.mrf.mxu3 }
  0xf1   : > { %v6846_v59 = vadd.f32 %v1592_v49, %v1503_v44  ;;  %v1465_v50 = vpop.f32.mrf.mxu0  ;;  %v6101_v49 = vld [vmem:[%s8222_s6 + $0x198] sm:$0xff] }
  0xf2   : > { %2518 = vmatpush.bf16.msra.mxu2 %v6101_v49 }
  0xf3   : > { %v1554_v54 = vpop.f32.mrf.mxu1 }
  0xf4   : > { %v6848_v55 = vadd.f32 %v1554_v54, %v1465_v50  ;;  %v6109_v50 = vld [vmem:[%s8222_s6 + $0x1d8] sm:$0xff] }
  0xf5   : > { %2607 = vmatpush.bf16.msra.mxu3 %v6109_v50 }
  0xf7   : > { %v1505_v57 = vpop.f32.mrf.mxu2 }
  0xf8   : > { %v1594_v61 = vpop.f32.mrf.mxu3 }
  0xf9   : > { %v6853_v62 = vadd.f32 %v1594_v61, %v1505_v57  ;;  %v1468_v4 = vpop.f32.mrf.mxu0 }
  0xfb   : > { %v1557_v9 = vpop.f32.mrf.mxu1 }
  0xfc   : > { %v6861_v12 = vadd.f32 %v1557_v9, %v1468_v4  ;;  %1645 = vmatmul.bf16.gmra.mxu2 %v6713_v1  ;;  %1823 = vmatmul.bf16.gmra.mxu0 %v6832_v33 }
  0xfd   : > { %1734 = vmatmul.bf16.gmra.mxu3 %v6817_v10 }
  0xfe   : > { %1912 = vmatmul.bf16.gmra.mxu1 %v6859_v3 }
  0xff   : > { %v1508_v13 = vpop.f32.mrf.mxu2 }
 0x100   : > { %v1597_v15 = vpop.f32.mrf.mxu3 }
 0x101   : > { %v6867_v17 = vadd.f32 %v1597_v15, %v1508_v13  ;;  %v1470_v24 = vpop.f32.mrf.mxu0  ;;  %v6895_v15 = vld [vmem:[%s6742_s21 + $0x40] sm:$0xff] }
 0x103   : > { %v1559_v25 = vpop.f32.mrf.mxu1 }
 0x104   : > { %v6869_v28 = vadd.f32 %v1559_v25, %v1470_v24 }
 0x107   : > { %v1510_v30 = vpop.f32.mrf.mxu2 }
 0x108   : > { %v1599_v53 = vpop.f32.mrf.mxu3 }
 0x109   : > { %v6871_v36 = vadd.f32 %v1599_v53, %v1510_v30  ;;  %v1473_v1 = vpop.f32.mrf.mxu0  ;;  %v6117_v30 = vld [vmem:[%s8222_s6 + $0x218] sm:$0xff] }
 0x10a   : > { %2696 = vmatpush.bf16.msra.mxu0 %v6117_v30 }
 0x10b   : > { %v1562_v43 = vpop.f32.mrf.mxu1 }
 0x10c   : > { %v6876_v44 = vadd.f32 %v1562_v43, %v1473_v1  ;;  %1650 = vmatmul.bf16.gmra.mxu2 %v6555_v20  ;;  %1828 = vmatmul.bf16.gmra.mxu0 %v6859_v3 }
 0x10d   : > { %1739 = vmatmul.bf16.gmra.mxu3 %v6832_v33 }
 0x10e   : > { %1917 = vmatmul.bf16.gmra.mxu1 %v6874_v39 }
 0x10f   : > { %v1513_v54 = vpop.f32.mrf.mxu2 }
 0x110   : > { %v1602_v56 = vpop.f32.mrf.mxu3 }
 0x111   : > { %v6888_v20 = vadd.f32 %v1602_v56, %v1513_v54  ;;  %v1475_v57 = vpop.f32.mrf.mxu0  ;;  %v6125_v56 = vld [vmem:[%s8222_s6 + $0x258] sm:$0xff] }
 0x112   : > { %2785 = vmatpush.bf16.msra.mxu1 %v6125_v56 }
 0x113   : > { %8263 = vst [vmem:[#allocation4_spill] sm:$0xff] %v6888_v20  ;;  %v1564_v61 = vpop.f32.mrf.mxu1 }
 0x114   : > { %v6890_v2 = vadd.f32 %v1564_v61, %v1475_v57 }
 0x117   : > { %v1515_v4 = vpop.f32.mrf.mxu2 }
 0x118   : > { %v1604_v9 = vpop.f32.mrf.mxu3 }
 0x119   : > { %v6892_v13 = vadd.f32 %v1604_v9, %v1515_v4  ;;  %v1478_v24 = vpop.f32.mrf.mxu0  ;;  %v6916_v9 = vld [vmem:[%s6742_s21 + $0x48] sm:$0xff] }
 0x11b   : > { %8264 = vst [vmem:[#allocation5_spill] sm:$0xff] %v6892_v13  ;;  %v1567_v25 = vpop.f32.mrf.mxu1  ;;  %v6116_v13 = vld [vmem:[%s8222_s6 + $0x210] sm:$0xff] }
 0x11c   : > { %v6900_v53 = vadd.f32 %v1567_v25, %v1478_v24  ;;  %1655 = vmatmul.bf16.gmra.mxu2 %v6558_v21  ;;  %1833 = vmatmul.bf16.gmra.mxu0 %v6874_v39 }
 0x11d   : > { %1744 = vmatmul.bf16.gmra.mxu3 %v6859_v3  ;;  %2697 = vmatpush.bf16.msra.mxu0 %v6116_v13 }
 0x11e   : > { %1922 = vmatmul.bf16.gmra.mxu1 %v6895_v15 }
 0x11f   : > { %v1518_v1 = vpop.f32.mrf.mxu2 }
 0x120   : > { %v1607_v43 = vpop.f32.mrf.mxu3 }
 0x121   : > { %v6906_v49 = vadd.f32 %v1607_v43, %v1518_v1  ;;  %v1480_v50 = vpop.f32.mrf.mxu0 }
 0x123   : > { %8265 = vst [vmem:[#allocation6_spill] sm:$0xff] %v6906_v49  ;;  %v1569_v54 = vpop.f32.mrf.mxu1 }
 0x124   : > { %v6911_v57 = vadd.f32 %v1569_v54, %v1480_v50 }
 0x127   : > { %v1520_v21 = vpop.f32.mrf.mxu2 }
 0x128   : > { %v1609_v61 = vpop.f32.mrf.mxu3 }
 0x129   : > { %v6913_v4 = vadd.f32 %v1609_v61, %v1520_v21  ;;  %v1799_v24 = vpop.f32.mrf.mxu0  ;;  %v6100_v21 = vld [vmem:[%s8222_s6 + $0x190] sm:$0xff] }
 0x12a   : > { %2519 = vmatpush.bf16.msra.mxu2 %v6100_v21 }
 0x12b   : > { %8266 = vst [vmem:[#allocation7_spill] sm:$0xff] %v6913_v4  ;;  %v1888_v25 = vpop.f32.mrf.mxu1 }
 0x12c   : > { %1660 = vmatmul.bf16.gmra.mxu2 %v6600_v34  ;;  %1838 = vmatmul.bf16.gmra.mxu0 %v6895_v15  ;;  %v6108_v34 = vld [vmem:[%s8222_s6 + $0x1d0] sm:$0xff] }
 0x12d   : > { %1749 = vmatmul.bf16.gmra.mxu3 %v6874_v39 }
 0x12e   : > { %1927 = vmatmul.bf16.gmra.mxu1 %v6916_v9  ;;  %2608 = vmatpush.bf16.msra.mxu3 %v6108_v34 }
 0x12f   : > { %v1621_v30 = vpop.f32.mrf.mxu2 }
 0x130   : > { %v1710_v1 = vpop.f32.mrf.mxu3  ;;  %v1622_v43 = vadd.f32 %v1621_v30, %v6750_v11  ;;  %v6933_v30 = vld [vmem:[%s6742_s21 + $0x50] sm:$0xff] }
 0x131   : > { %v1801_v54 = vpop.f32.mrf.mxu0 }
 0x132   : > { %v1711_v50 = vadd.f32 %v1710_v1, %v1622_v43 }
 0x133   : > { %v1890_v56 = vpop.f32.mrf.mxu1 }
 0x134   : > { %v1800_v61 = vadd.f32 %v1799_v24, %v1711_v50 }
 0x136   : > { %v6929_v39 = vadd.f32 %v1888_v25, %v1800_v61 }
 0x137   : > { %v1623_v4 = vpop.f32.mrf.mxu2 }
 0x138   : > { %v1712_v49 = vpop.f32.mrf.mxu3  ;;  %v1624_v11 = vadd.f32 %v1623_v4, %v6764_v19 }
 0x139   : > { %v1804_v43 = vpop.f32.mrf.mxu0 }
 0x13a   : > { %v1713_v1 = vadd.f32 %v1712_v49, %v1624_v11  ;;  %v8229_v49 = vrot.slane %v6929_v39, 7 }
 0x13b   : > { %v1893_v3 = vpop.f32.mrf.mxu1 }
 0x13c   : > { %v1802_v20 = vadd.f32 %v1801_v54, %v1713_v1  ;;  %1665 = vmatmul.bf16.gmra.mxu2 %v6622_v40  ;;  %1843 = vmatmul.bf16.gmra.mxu0 %v6916_v9  ;;  %v6956_v1 = vld [vmem:[%s6742_s21 + $0x58] sm:$0xff] }
 0x13d   : > { %1754 = vmatmul.bf16.gmra.mxu3 %v6895_v15 }
 0x13e   : > { %1932 = vmatmul.bf16.gmra.mxu1 %v6933_v30  ;;  %v1891_v24 = vadd.f32 %v1890_v56, %v1802_v20  ;;  %v6124_v20 = vld [vmem:[%s8222_s6 + $0x250] sm:$0xff] }
 0x13f   : > { %v1626_v19 = vpop.f32.mrf.mxu2  ;;  %2786 = vmatpush.bf16.msra.mxu1 %v6124_v20 }
 0x140   : > { %v1715_v4 = vpop.f32.mrf.mxu3  ;;  %v2002_v25 = vrot.slane %v1891_v24, 7  ;;  %v1627_v50 = vadd.f32 %v1626_v19, %v6777_v32 }
 0x141   : > { %v1806_v21 = vpop.f32.mrf.mxu0 }
 0x142   : > { %v6947_v40 = vsel %vm2000_vm0, %v8229_v49, %v2002_v25  ;;  %v1716_v54 = vadd.f32 %v1715_v4, %v1627_v50 }
 0x143   : > { %v1895_v34 = vpop.f32.mrf.mxu1 }
 0x144   : > { %v1805_v13 = vadd.f32 %v1804_v43, %v1716_v54 }
 0x146   : > { %v6952_v56 = vadd.f32 %v1893_v3, %v1805_v13 }
 0x147   : > { %v1628_v61 = vpop.f32.mrf.mxu2 }
 0x148   : > { %v1717_v11 = vpop.f32.mrf.mxu3  ;;  %v1629_v32 = vadd.f32 %v1628_v61, %v6785_v42  ;;  %v8228_v54 = vrot.slane %v6952_v56, 7 }
 0x149   : > { %v1809_v19 = vpop.f32.mrf.mxu0 }
 0x14a   : > { %v1718_v24 = vadd.f32 %v1717_v11, %v1629_v32  ;;  %v6107_v11 = vld [vmem:[%s8222_s6 + $0x1c8] sm:$0xff] }
 0x14b   : > { %v1898_v25 = vpop.f32.mrf.mxu1  ;;  %2609 = vmatpush.bf16.msra.mxu3 %v6107_v11 }
 0x14c   : > { %v1807_v4 = vadd.f32 %v1806_v21, %v1718_v24  ;;  %1670 = vmatmul.bf16.gmra.mxu2 %v6644_v46  ;;  %1848 = vmatmul.bf16.gmra.mxu0 %v6933_v30 }
 0x14d   : > { %1759 = vmatmul.bf16.gmra.mxu3 %v6916_v9 }
 0x14e   : > { %1937 = vmatmul.bf16.gmra.mxu1 %v6956_v1  ;;  %v1896_v3 = vadd.f32 %v1895_v34, %v1807_v4  ;;  %v6099_v34 = vld [vmem:[%s8222_s6 + $0x188] sm:$0xff] }
 0x14f   : > { %v1631_v43 = vpop.f32.mrf.mxu2  ;;  %2520 = vmatpush.bf16.msra.mxu2 %v6099_v34 }
 0x150   : > { %v1720_v50 = vpop.f32.mrf.mxu3  ;;  %v2005_v42 = vrot.slane %v1896_v3, 7  ;;  %v1632_v20 = vadd.f32 %v1631_v43, %v6792_v51  ;;  %v6979_v43 = vld [vmem:[%s6742_s21 + $0x60] sm:$0xff] }
 0x151   : > { %v1811_v13 = vpop.f32.mrf.mxu0 }
 0x152   : > { %v6967_v21 = vsel %vm2000_vm0, %v8228_v54, %v2005_v42  ;;  %v1721_v46 = vadd.f32 %v1720_v50, %v1632_v20  ;;  %v6115_v54 = vld [vmem:[%s8222_s6 + $0x208] sm:$0xff] }
 0x153   : > { %v1900_v61 = vpop.f32.mrf.mxu1  ;;  %2698 = vmatpush.bf16.msra.mxu0 %v6115_v54 }
 0x154   : > { %v1810_v32 = vadd.f32 %v1809_v19, %v1721_v46 }
 0x156   : > { %v6975_v51 = vadd.f32 %v1898_v25, %v1810_v32 }
 0x157   : > { %v1633_v24 = vpop.f32.mrf.mxu2 }
 0x158   : > { %v1722_v4 = vpop.f32.mrf.mxu3  ;;  %v1634_v3 = vadd.f32 %v1633_v24, %v6806_v63  ;;  %v8231_v46 = vrot.slane %v6975_v51, 7 }
 0x159   : > { %v1814_v42 = vpop.f32.mrf.mxu0 }
 0x15a   : > { %v1723_v50 = vadd.f32 %v1722_v4, %v1634_v3 }
 0x15b   : > { %v1903_v20 = vpop.f32.mrf.mxu1 }
 0x15c   : > { %v1812_v49 = vadd.f32 %v1811_v13, %v1723_v50  ;;  %1675 = vmatmul.bf16.gmra.mxu2 %v6666_v52  ;;  %1853 = vmatmul.bf16.gmra.mxu0 %v6956_v1  ;;  %v7002_v50 = vld [vmem:[%s6742_s21 + $0x68] sm:$0xff] }
 0x15d   : > { %1764 = vmatmul.bf16.gmra.mxu3 %v6933_v30 }
 0x15e   : > { %1942 = vmatmul.bf16.gmra.mxu1 %v6979_v43  ;;  %v1901_v19 = vadd.f32 %v1900_v61, %v1812_v49  ;;  %v6123_v49 = vld [vmem:[%s8222_s6 + $0x248] sm:$0xff] }
 0x15f   : > { %v1636_v63 = vpop.f32.mrf.mxu2  ;;  %2787 = vmatpush.bf16.msra.mxu1 %v6123_v49 }
 0x160   : > { %v1725_v25 = vpop.f32.mrf.mxu3  ;;  %v2008_v34 = vrot.slane %v1901_v19, 7  ;;  %v1637_v11 = vadd.f32 %v1636_v63, %v6819_v14 }
 0x161   : > { %v1816_v32 = vpop.f32.mrf.mxu0 }
 0x162   : > { %v6993_v52 = vsel %vm2000_vm0, %v8231_v46, %v2008_v34  ;;  %v1726_v13 = vadd.f32 %v1725_v25, %v1637_v11 }
 0x163   : > { %v1905_v24 = vpop.f32.mrf.mxu1 }
 0x164   : > { %v1815_v54 = vadd.f32 %v1814_v42, %v1726_v13 }
 0x166   : > { %v6998_v61 = vadd.f32 %v1903_v20, %v1815_v54 }
 0x167   : > { %v1638_v4 = vpop.f32.mrf.mxu2 }
 0x168   : > { %v1727_v3 = vpop.f32.mrf.mxu3  ;;  %v1639_v14 = vadd.f32 %v1638_v4, %v6827_v26  ;;  %v8230_v13 = vrot.slane %v6998_v61, 7 }
 0x169   : > { %v1819_v63 = vpop.f32.mrf.mxu0 }
 0x16a   : > { %v1728_v19 = vadd.f32 %v1727_v3, %v1639_v14  ;;  %v6106_v3 = vld [vmem:[%s8222_s6 + $0x1c0] sm:$0xff] }
 0x16b   : > { %v1908_v34 = vpop.f32.mrf.mxu1  ;;  %2610 = vmatpush.bf16.msra.mxu3 %v6106_v3 }
 0x16c   : > { %v1817_v25 = vadd.f32 %v1816_v32, %v1728_v19  ;;  %1680 = vmatmul.bf16.gmra.mxu2 %v6688_v58  ;;  %1858 = vmatmul.bf16.gmra.mxu0 %v6979_v43 }
 0x16d   : > { %1769 = vmatmul.bf16.gmra.mxu3 %v6956_v1 }
 0x16e   : > { %1947 = vmatmul.bf16.gmra.mxu1 %v7002_v50  ;;  %v1906_v42 = vadd.f32 %v1905_v24, %v1817_v25  ;;  %v6098_v24 = vld [vmem:[%s8222_s6 + $0x180] sm:$0xff] }
 0x16f   : > { %v1641_v20 = vpop.f32.mrf.mxu2  ;;  %2521 = vmatpush.bf16.msra.mxu2 %v6098_v24 }
 0x170   : > { %v1730_v11 = vpop.f32.mrf.mxu3  ;;  %v2011_v26 = vrot.slane %v1906_v42, 7  ;;  %v1642_v49 = vadd.f32 %v1641_v20, %v6834_v38  ;;  %v7025_v20 = vld [vmem:[%s6742_s21 + $0x70] sm:$0xff] }
 0x171   : > { %v1821_v54 = vpop.f32.mrf.mxu0 }
 0x172   : > { %v7013_v32 = vsel %vm2000_vm0, %v8230_v13, %v2011_v26  ;;  %v1731_v58 = vadd.f32 %v1730_v11, %v1642_v49  ;;  %v6114_v13 = vld [vmem:[%s8222_s6 + $0x200] sm:$0xff] }
 0x173   : > { %v1910_v4 = vpop.f32.mrf.mxu1  ;;  %2699 = vmatpush.bf16.msra.mxu0 %v6114_v13 }
 0x174   : > { %v1820_v14 = vadd.f32 %v1819_v63, %v1731_v58 }
 0x176   : > { %v7021_v38 = vadd.f32 %v1908_v34, %v1820_v14 }
 0x177   : > { %v1643_v19 = vpop.f32.mrf.mxu2 }
 0x178   : > { %v1732_v25 = vpop.f32.mrf.mxu3  ;;  %v1644_v42 = vadd.f32 %v1643_v19, %v6848_v55  ;;  %v8232_v58 = vrot.slane %v7021_v38, 7 }
 0x179   : > { %v1824_v26 = vpop.f32.mrf.mxu0 }
 0x17a   : > { %v1733_v11 = vadd.f32 %v1732_v25, %v1644_v42 }
 0x17b   : > { %v1913_v49 = vpop.f32.mrf.mxu1 }
 0x17c   : > { %v1822_v46 = vadd.f32 %v1821_v54, %v1733_v11  ;;  %1685 = vmatmul.bf16.gmra.mxu2 %v6710_v0  ;;  %1863 = vmatmul.bf16.gmra.mxu0 %v7002_v50  ;;  %v6049_v11 = vld [vmem:[%s6742_s21 + $0x78] sm:$0xff] }
 0x17d   : > { %1774 = vmatmul.bf16.gmra.mxu3 %v6979_v43 }
 0x17e   : > { %1952 = vmatmul.bf16.gmra.mxu1 %v7025_v20  ;;  %v1911_v63 = vadd.f32 %v1910_v4, %v1822_v46  ;;  %v6122_v46 = vld [vmem:[%s8222_s6 + $0x240] sm:$0xff] }
 0x17f   : > { %v1646_v55 = vpop.f32.mrf.mxu2  ;;  %2788 = vmatpush.bf16.msra.mxu1 %v6122_v46 }
 0x180   : > { %v1735_v34 = vpop.f32.mrf.mxu3  ;;  %v2014_v24 = vrot.slane %v1911_v63, 7  ;;  %v1647_v3 = vadd.f32 %v1646_v55, %v6861_v12 }
 0x181   : > { %v1826_v14 = vpop.f32.mrf.mxu0 }
 0x182   : > { %v7039_v0 = vsel %vm2000_vm0, %v8232_v58, %v2014_v24  ;;  %v1736_v54 = vadd.f32 %v1735_v34, %v1647_v3 }
 0x183   : > { %v1915_v19 = vpop.f32.mrf.mxu1 }
 0x184   : > { %v1825_v13 = vadd.f32 %v1824_v26, %v1736_v54 }
 0x186   : > { %v7044_v4 = vadd.f32 %v1913_v49, %v1825_v13 }
 0x187   : > { %v1648_v25 = vpop.f32.mrf.mxu2 }
 0x188   : > { %v1737_v42 = vpop.f32.mrf.mxu3  ;;  %v1649_v12 = vadd.f32 %v1648_v25, %v6869_v28  ;;  %v8241_v3 = vrot.slane %v7044_v4, 7  ;;  %v6137_v25 = vld [vmem:[%s8222_s6 + $0x2b8] sm:$0xff] }
 0x189   : > { %v1829_v55 = vpop.f32.mrf.mxu0  ;;  %2870 = vmatpush.bf16.msrb.mxu2 %v6137_v25 }
 0x18a   : > { %v1738_v63 = vadd.f32 %v1737_v42, %v1649_v12 }
 0x18b   : > { %v1918_v24 = vpop.f32.mrf.mxu1 }
 0x18c   : > { %v1827_v58 = vadd.f32 %v1826_v14, %v1738_v63  ;;  %1690 = vmatmul.bf16.gmra.mxu2 %v6729_v5  ;;  %1868 = vmatmul.bf16.gmra.mxu0 %v7025_v20 }
 0x18d   : > { %1779 = vmatmul.bf16.gmra.mxu3 %v7002_v50 }
 0x18e   : > { %1957 = vmatmul.bf16.gmra.mxu1 %v6049_v11  ;;  %v1916_v26 = vadd.f32 %v1915_v19, %v1827_v58  ;;  %v6145_v58 = vld [vmem:[%s8222_s6 + $0x2f8] sm:$0xff] }
 0x18f   : > { %v1651_v34 = vpop.f32.mrf.mxu2  ;;  %2959 = vmatpush.bf16.msrb.mxu3 %v6145_v58 }
 0x190   : > { %v1740_v49 = vpop.f32.mrf.mxu3  ;;  %v2017_v54 = vrot.slane %v1916_v26, 7  ;;  %v1652_v28 = vadd.f32 %v1651_v34, %v6876_v44 }
 0x191   : > { %v1831_v5 = vpop.f32.mrf.mxu0 }
 0x192   : > { %v7056_v46 = vsel %vm2000_vm0, %v8241_v3, %v2017_v54  ;;  %v1741_v14 = vadd.f32 %v1740_v49, %v1652_v28  ;;  %v6153_v54 = vld [vmem:[%s8222_s6 + $0x338] sm:$0xff] }
 0x193   : > { %v1920_v13 = vpop.f32.mrf.mxu1  ;;  %3754 = vmatpush.bf16.msrb.mxu0 %v6153_v54 }
 0x194   : > { %v1830_v19 = vadd.f32 %v1829_v55, %v1741_v14 }
 0x196   : > { %v7064_v44 = vadd.f32 %v1918_v24, %v1830_v19 }
 0x197   : > { %v1653_v42 = vpop.f32.mrf.mxu2 }
 0x198   : > { %v1742_v12 = vpop.f32.mrf.mxu3  ;;  %v1654_v63 = vadd.f32 %v1653_v42, %v6890_v2  ;;  %v8240_v2 = vrot.slane %v7064_v44, 7 }
 0x199   : > { %v1834_v34 = vpop.f32.mrf.mxu0 }
 0x19a   : > { %v1743_v26 = vadd.f32 %v1742_v12, %v1654_v63 }
 0x19b   : > { %v1923_v49 = vpop.f32.mrf.mxu1 }
 0x19c   : > { %v1832_v28 = vadd.f32 %v1831_v5, %v1743_v26  ;;  %1695 = vmatmul.bf16.gmra.mxu2 %v6560_v22  ;;  %1873 = vmatmul.bf16.gmra.mxu0 %v6049_v11  ;;  %v6161_v11 = vld [vmem:[%s8222_s6 + $0x378] sm:$0xff] }
 0x19d   : > { %1784 = vmatmul.bf16.gmra.mxu3 %v7025_v20  ;;  %3843 = vmatpush.bf16.msrb.mxu1 %v6161_v11 }
 0x19e   : > { %1962 = vmatmul.bf16.gmra.mxu1 %v6560_v22  ;;  %v1921_v55 = vadd.f32 %v1920_v13, %v1832_v28 }
 0x19f   : > { %v1656_v24 = vpop.f32.mrf.mxu2 }
 0x1a0   : > { %v1745_v14 = vpop.f32.mrf.mxu3  ;;  %v2020_v25 = vrot.slane %v1921_v55, 7  ;;  %v1657_v58 = vadd.f32 %v1656_v24, %v6900_v53 }
 0x1a1   : > { %v1836_v42 = vpop.f32.mrf.mxu0 }
 0x1a2   : > { %v7078_v5 = vsel %vm2000_vm0, %v8240_v2, %v2020_v25  ;;  %v1746_v19 = vadd.f32 %v1745_v14, %v1657_v58 }
 0x1a3   : > { %v1925_v12 = vpop.f32.mrf.mxu1 }
 0x1a4   : > { %v1835_v13 = vadd.f32 %v1834_v34, %v1746_v19 }
 0x1a6   : > { %v7083_v63 = vadd.f32 %v1923_v49, %v1835_v13 }
 0x1a7   : > { %v1658_v26 = vpop.f32.mrf.mxu2 }
 0x1a8   : > { %8267 = vst [vmem:[#allocation8_spill] sm:$0xff] %v7083_v63  ;;  %v1747_v54 = vpop.f32.mrf.mxu3  ;;  %v1659_v53 = vadd.f32 %v1658_v26, %v6911_v57  ;;  %v8233_v58 = vrot.slane %v7083_v63, 7  ;;  %v6144_v26 = vld [vmem:[%s8222_s6 + $0x2f0] sm:$0xff] }
 0x1a9   : > { %v1839_v55 = vpop.f32.mrf.mxu0  ;;  %2960 = vmatpush.bf16.msrb.mxu3 %v6144_v26 }
 0x1aa   : > { %v1748_v28 = vadd.f32 %v1747_v54, %v1659_v53 }
 0x1ab   : > { %v1928_v24 = vpop.f32.mrf.mxu1 }
 0x1ac   : > { %v1837_v25 = vadd.f32 %v1836_v42, %v1748_v28  ;;  %2522 = vmatmul.bf16.vlgmr.msra.gmra.mxu2 %v6560_v22  ;;  %2700 = vmatmul.bf16.vlgmr.msra.gmra.mxu0 %v6603_v35 }
 0x1ad   : > { %2611 = vmatmul.bf16.vlgmr.msra.gmra.mxu3 %v6563_v23 }
 0x1ae   : > { %2789 = vmatmul.bf16.vlgmr.msra.gmra.mxu1 %v6560_v22  ;;  %v1926_v34 = vadd.f32 %v1925_v12, %v1837_v25  ;;  %v6136_v12 = vld [vmem:[%s8222_s6 + $0x2b0] sm:$0xff] }
 0x1af   : > { %v1661_v14 = vpop.f32.mrf.mxu2  ;;  %2871 = vmatpush.bf16.msrb.mxu2 %v6136_v12 }
 0x1b0   : > { %v1750_v49 = vpop.f32.mrf.mxu3  ;;  %v2023_v19 = vrot.slane %v1926_v34, 7  ;;  %v1662_v57 = vadd.f32 %v1661_v14, %v6762_v16 }
 0x1b1   : > { %v1841_v13 = vpop.f32.mrf.mxu0 }
 0x1b2   : > { %v7095_v42 = vsel %vm2000_vm0, %v8233_v58, %v2023_v19  ;;  %v1751_v11 = vadd.f32 %v1750_v49, %v1662_v57  ;;  %v6152_v19 = vld [vmem:[%s8222_s6 + $0x330] sm:$0xff]  ;;  %v7110_v58 = vld [vmem:[%s6546_s23] sm:$0xff] }
 0x1b3   : > { %8268 = vst [vmem:[#allocation9_spill] sm:$0xff] %v7095_v42  ;;  %v1930_v23 = vpop.f32.mrf.mxu1  ;;  %3755 = vmatpush.bf16.msrb.mxu0 %v6152_v19  ;;  %v7411_v42 = vld [vmem:[%s6742_s21] sm:$0xff] }
 0x1b4   : > { %v1840_v54 = vadd.f32 %v1839_v55, %v1751_v11 }
 0x1b6   : > { %v7103_v16 = vadd.f32 %v1928_v24, %v1840_v54 }
 0x1b7   : > { %v1663_v53 = vpop.f32.mrf.mxu2 }
 0x1b8   : > { %8269 = vst [vmem:[#allocation10_spill] sm:$0xff] %v7103_v16  ;;  %v1752_v28 = vpop.f32.mrf.mxu3  ;;  %v1664_v25 = vadd.f32 %v1663_v53, %v6769_v27  ;;  %v8239_v11 = vrot.slane %v7103_v16, 7 }
 0x1b9   : > { %v1844_v14 = vpop.f32.mrf.mxu0 }
 0x1ba   : > { %v1753_v34 = vadd.f32 %v1752_v28, %v1664_v25 }
 0x1bb   : > { %v1933_v49 = vpop.f32.mrf.mxu1 }
 0x1bc   : > { %v1842_v57 = vadd.f32 %v1841_v13, %v1753_v34  ;;  %2527 = vmatmul.bf16.gmra.mxu2 %v7110_v58  ;;  %2705 = vmatmul.bf16.gmra.mxu0 %v6625_v41 }
 0x1bd   : > { %2616 = vmatmul.bf16.gmra.mxu3 %v6603_v35 }
 0x1be   : > { %2794 = vmatmul.bf16.gmra.mxu1 %v6745_v7  ;;  %v1931_v55 = vadd.f32 %v1930_v23, %v1842_v57  ;;  %v6160_v7 = vld [vmem:[%s8222_s6 + $0x370] sm:$0xff] }
 0x1bf   : > { %v1666_v27 = vpop.f32.mrf.mxu2  ;;  %3844 = vmatpush.bf16.msrb.mxu1 %v6160_v7 }
 0x1c0   : > { %v1755_v24 = vpop.f32.mrf.mxu3  ;;  %v2026_v12 = vrot.slane %v1931_v55, 7  ;;  %v1667_v26 = vadd.f32 %v1666_v27, %v6783_v37  ;;  %v7130_v27 = vld [vmem:[%s6546_s23 + $0x8] sm:$0xff] }
 0x1c1   : > { %v1846_v41 = vpop.f32.mrf.mxu0 }
 0x1c2   : > { %v7121_v13 = vsel %vm2000_vm0, %v8239_v11, %v2026_v12  ;;  %v1756_v35 = vadd.f32 %v1755_v24, %v1667_v26  ;;  %v7134_v24 = vld [vmem:[%s6546_s23 + $0x10] sm:$0xff]  ;;  %v6157_v11 = vld [vmem:[%s8222_s6 + $0x358] sm:$0xff] }
 0x1c3   : > { %8270 = vst [vmem:[#allocation11_spill] sm:$0xff] %v7121_v13  ;;  %v1935_v54 = vpop.f32.mrf.mxu1 }
 0x1c4   : > { %v1845_v23 = vadd.f32 %v1844_v14, %v1756_v35 }
 0x1c6   : > { %v7126_v53 = vadd.f32 %v1933_v49, %v1845_v23 }
 0x1c7   : > { %v1668_v28 = vpop.f32.mrf.mxu2 }
 0x1c8   : > { %8271 = vst [vmem:[#allocation12_spill] sm:$0xff] %v7126_v53  ;;  %v1757_v37 = vpop.f32.mrf.mxu3  ;;  %v1669_v25 = vadd.f32 %v1668_v28, %v6787_v45  ;;  %v8238_v45 = vrot.slane %v7126_v53, 7 }
 0x1c9   : > { %v1849_v19 = vpop.f32.mrf.mxu0 }
 0x1ca   : > { %v1758_v34 = vadd.f32 %v1757_v37, %v1669_v25 }
 0x1cb   : > { %v1938_v57 = vpop.f32.mrf.mxu1 }
 0x1cc   : > { %v1847_v55 = vadd.f32 %v1846_v41, %v1758_v34  ;;  %2532 = vmatmul.bf16.gmra.mxu2 %v7130_v27  ;;  %2710 = vmatmul.bf16.gmra.mxu0 %v6647_v47  ;;  %v6135_v47 = vld [vmem:[%s8222_s6 + $0x2a8] sm:$0xff] }
 0x1cd   : > { %2621 = vmatmul.bf16.gmra.mxu3 %v7134_v24  ;;  %2872 = vmatpush.bf16.msrb.mxu2 %v6135_v47 }
 0x1ce   : > { %2799 = vmatmul.bf16.gmra.mxu1 %v6748_v8  ;;  %v1936_v14 = vadd.f32 %v1935_v54, %v1847_v55  ;;  %v6143_v8 = vld [vmem:[%s8222_s6 + $0x2e8] sm:$0xff] }
 0x1cf   : > { %v1671_v49 = vpop.f32.mrf.mxu2  ;;  %2961 = vmatpush.bf16.msrb.mxu3 %v6143_v8 }
 0x1d0   : > { %v1760_v12 = vpop.f32.mrf.mxu3  ;;  %v2029_v26 = vrot.slane %v1936_v14, 7  ;;  %v1672_v35 = vadd.f32 %v1671_v49, %v6804_v60 }
 0x1d1   : > { %v1851_v23 = vpop.f32.mrf.mxu0 }
 0x1d2   : > { %v7144_v41 = vsel %vm2000_vm0, %v8238_v45, %v2029_v26  ;;  %v1761_v7 = vadd.f32 %v1760_v12, %v1672_v35  ;;  %v6151_v12 = vld [vmem:[%s8222_s6 + $0x328] sm:$0xff]  ;;  %v7160_v35 = vld [vmem:[%s6546_s23 + $0x18] sm:$0xff] }
 0x1d3   : > { %8272 = vst [vmem:[#allocation13_spill] sm:$0xff] %v7144_v41  ;;  %v1940_v28 = vpop.f32.mrf.mxu1  ;;  %3756 = vmatpush.bf16.msrb.mxu0 %v6151_v12 }
 0x1d4   : > { %v1850_v54 = vadd.f32 %v1849_v19, %v1761_v7  ;;  %v7164_v19 = vld [vmem:[%s6546_s23 + $0x20] sm:$0xff] }
 0x1d6   : > { %v7152_v60 = vadd.f32 %v1938_v57, %v1850_v54 }
 0x1d7   : > { %v1673_v37 = vpop.f32.mrf.mxu2 }
 0x1d8   : > { %8273 = vst [vmem:[#allocation14_spill] sm:$0xff] %v7152_v60  ;;  %v1762_v25 = vpop.f32.mrf.mxu3  ;;  %v1674_v34 = vadd.f32 %v1673_v37, %v6811_v6  ;;  %v8234_v47 = vrot.slane %v7152_v60, 7 }
 0x1d9   : > { %v1854_v14 = vpop.f32.mrf.mxu0 }
 0x1da   : > { %v1763_v55 = vadd.f32 %v1762_v25, %v1674_v34 }
 0x1db   : > { %v1943_v49 = vpop.f32.mrf.mxu1 }
 0x1dc   : > { %v1852_v26 = vadd.f32 %v1851_v23, %v1763_v55  ;;  %2537 = vmatmul.bf16.gmra.mxu2 %v7134_v24  ;;  %2715 = vmatmul.bf16.gmra.mxu0 %v7164_v19 }
 0x1dd   : > { %2626 = vmatmul.bf16.gmra.mxu3 %v7160_v35 }
 0x1de   : > { %2804 = vmatmul.bf16.gmra.mxu1 %v6775_v29  ;;  %v1941_v6 = vadd.f32 %v1940_v28, %v1852_v26  ;;  %v6159_v29 = vld [vmem:[%s8222_s6 + $0x368] sm:$0xff] }
 0x1df   : > { %v1676_v57 = vpop.f32.mrf.mxu2  ;;  %3845 = vmatpush.bf16.msrb.mxu1 %v6159_v29 }
 0x1e0   : > { %v1765_v7 = vpop.f32.mrf.mxu3  ;;  %v2032_v8 = vrot.slane %v1941_v6, 7  ;;  %v1677_v23 = vadd.f32 %v1676_v57, %v6825_v18 }
 0x1e1   : > { %v1856_v25 = vpop.f32.mrf.mxu0 }
 0x1e2   : > { %v7173_v54 = vsel %vm2000_vm0, %v8234_v47, %v2032_v8  ;;  %v1766_v37 = vadd.f32 %v1765_v7, %v1677_v23  ;;  %v7184_v7 = vld [vmem:[%s6546_s23 + $0x28] sm:$0xff] }
 0x1e3   : > { %8274 = vst [vmem:[#allocation15_spill] sm:$0xff] %v7173_v54  ;;  %v1945_v34 = vpop.f32.mrf.mxu1 }
 0x1e4   : > { %v1855_v28 = vadd.f32 %v1854_v14, %v1766_v37 }
 0x1e6   : > { %v7178_v55 = vadd.f32 %v1943_v49, %v1855_v28 }
 0x1e7   : > { %v1678_v12 = vpop.f32.mrf.mxu2 }
 0x1e8   : > { %8275 = vst [vmem:[#allocation16_spill] sm:$0xff] %v7178_v55  ;;  %v1767_v26 = vpop.f32.mrf.mxu3  ;;  %v1679_v18 = vadd.f32 %v1678_v12, %v6829_v31  ;;  %v8235_v37 = vrot.slane %v7178_v55, 7 }
 0x1e9   : > { %v1859_v57 = vpop.f32.mrf.mxu0 }
 0x1ea   : > { %v1768_v6 = vadd.f32 %v1767_v26, %v1679_v18 }
 0x1eb   : > { %v1948_v8 = vpop.f32.mrf.mxu1 }
 0x1ec   : > { %v1857_v47 = vadd.f32 %v1856_v25, %v1768_v6  ;;  %2542 = vmatmul.bf16.gmra.mxu2 %v7160_v35  ;;  %2720 = vmatmul.bf16.gmra.mxu0 %v7184_v7 }
 0x1ed   : > { %2631 = vmatmul.bf16.gmra.mxu3 %v7164_v19 }
 0x1ee   : > { %2809 = vmatmul.bf16.gmra.mxu1 %v6790_v48  ;;  %v1946_v14 = vadd.f32 %v1945_v34, %v1857_v47  ;;  %v6134_v48 = vld [vmem:[%s8222_s6 + $0x2a0] sm:$0xff] }
 0x1ef   : > { %v1681_v49 = vpop.f32.mrf.mxu2  ;;  %v6142_v47 = vld [vmem:[%s8222_s6 + $0x2e0] sm:$0xff]  ;;  %2873 = vmatpush.bf16.msrb.mxu2 %v6134_v48 }
 0x1f0   : > { %v1770_v23 = vpop.f32.mrf.mxu3  ;;  %v2035_v31 = vrot.slane %v1946_v14, 7  ;;  %v1682_v29 = vadd.f32 %v1681_v49, %v6846_v59  ;;  %2962 = vmatpush.bf16.msrb.mxu3 %v6142_v47 }
 0x1f1   : > { %v1861_v12 = vpop.f32.mrf.mxu0 }
 0x1f2   : > { %v7193_v25 = vsel %vm2000_vm0, %v8235_v37, %v2035_v31  ;;  %v1771_v28 = vadd.f32 %v1770_v23, %v1682_v29  ;;  %v6150_v29 = vld [vmem:[%s8222_s6 + $0x320] sm:$0xff] }
 0x1f3   : > { %8276 = vst [vmem:[#allocation17_spill] sm:$0xff] %v7193_v25  ;;  %v1950_v26 = vpop.f32.mrf.mxu1  ;;  %3757 = vmatpush.bf16.msrb.mxu0 %v6150_v29 }
 0x1f4   : > { %v1860_v34 = vadd.f32 %v1859_v57, %v1771_v28  ;;  %v7210_v57 = vld [vmem:[%s6546_s23 + $0x30] sm:$0xff] }
 0x1f6   : > { %v7201_v59 = vadd.f32 %v1948_v8, %v1860_v34 }
 0x1f7   : > { %v1683_v18 = vpop.f32.mrf.mxu2 }
 0x1f8   : > { %8277 = vst [vmem:[#allocation18_spill] sm:$0xff] %v7201_v59  ;;  %v1772_v6 = vpop.f32.mrf.mxu3  ;;  %v1684_v14 = vadd.f32 %v1683_v18, %v6853_v62  ;;  %v8236_v48 = vrot.slane %v7201_v59, 7 }
 0x1f9   : > { %v1864_v23 = vpop.f32.mrf.mxu0 }
 0x1fa   : > { %v1773_v49 = vadd.f32 %v1772_v6, %v1684_v14 }
 0x1fb   : > { %v1953_v31 = vpop.f32.mrf.mxu1 }
 0x1fc   : > { %v1862_v37 = vadd.f32 %v1861_v12, %v1773_v49  ;;  %2547 = vmatmul.bf16.gmra.mxu2 %v7164_v19  ;;  %2725 = vmatmul.bf16.gmra.mxu0 %v7210_v57 }
 0x1fd   : > { %2636 = vmatmul.bf16.gmra.mxu3 %v7184_v7 }
 0x1fe   : > { %2814 = vmatmul.bf16.gmra.mxu1 %v6817_v10  ;;  %v1951_v8 = vadd.f32 %v1950_v26, %v1862_v37  ;;  %v6158_v10 = vld [vmem:[%s8222_s6 + $0x360] sm:$0xff] }
 0x1ff   : > { %v1686_v62 = vpop.f32.mrf.mxu2  ;;  %3846 = vmatpush.bf16.msrb.mxu1 %v6158_v10  ;;  %v8280_v10 = vld [vmem:[#allocation4_spill] sm:$0xff] }
 0x200   : > { %v1775_v28 = vpop.f32.mrf.mxu3  ;;  %v2038_v47 = vrot.slane %v1951_v8, 7  ;;  %v1687_v34 = vadd.f32 %v1686_v62, %v6867_v17 }
 0x201   : > { %v1866_v6 = vpop.f32.mrf.mxu0 }
 0x202   : > { %v7219_v12 = vsel %vm2000_vm0, %v8236_v48, %v2038_v47  ;;  %v1776_v18 = vadd.f32 %v1775_v28, %v1687_v34  ;;  %v7230_v28 = vld [vmem:[%s6546_s23 + $0x38] sm:$0xff] }
 0x203   : > { %8278 = vst [vmem:[#allocation19_spill] sm:$0xff] %v7219_v12  ;;  %v1955_v14 = vpop.f32.mrf.mxu1  ;;  %3847 = vmatpush.bf16.msrb.mxu1 %v6157_v11 }
 0x204   : > { %v1865_v37 = vadd.f32 %v1864_v23, %v1776_v18 }
 0x206   : > { %v7224_v26 = vadd.f32 %v1953_v31, %v1865_v37 }
 0x207   : > { %v1688_v49 = vpop.f32.mrf.mxu2 }
 0x208   : > { %8279 = vst [vmem:[#allocation20_spill] sm:$0xff] %v7224_v26  ;;  %v1777_v29 = vpop.f32.mrf.mxu3  ;;  %v1689_v17 = vadd.f32 %v1688_v49, %v6871_v36  ;;  %v8237_v18 = vrot.slane %v7224_v26, 7 }
 0x209   : > { %v1869_v62 = vpop.f32.mrf.mxu0 }
 0x20a   : > { %v1778_v8 = vadd.f32 %v1777_v29, %v1689_v17 }
 0x20b   : > { %v1958_v47 = vpop.f32.mrf.mxu1 }
 0x20c   : > { %v1867_v48 = vadd.f32 %v1866_v6, %v1778_v8  ;;  %2552 = vmatmul.bf16.gmra.mxu2 %v7184_v7  ;;  %2730 = vmatmul.bf16.gmra.mxu0 %v7230_v28 }
 0x20d   : > { %2641 = vmatmul.bf16.gmra.mxu3 %v7210_v57 }
 0x20e   : > { %2819 = vmatmul.bf16.gmra.mxu1 %v6832_v33  ;;  %v1956_v23 = vadd.f32 %v1955_v14, %v1867_v48  ;;  %v6133_v33 = vld [vmem:[%s8222_s6 + $0x298] sm:$0xff] }
 0x20f   : > { %v1691_v31 = vpop.f32.mrf.mxu2  ;;  %v6141_v48 = vld [vmem:[%s8222_s6 + $0x2d8] sm:$0xff]  ;;  %2874 = vmatpush.bf16.msrb.mxu2 %v6133_v33 }
 0x210   : > { %v1780_v34 = vpop.f32.mrf.mxu3  ;;  %v2041_v36 = vrot.slane %v1956_v23, 7  ;;  %v1692_v37 = vadd.f32 %v1691_v31, %v8280_v10  ;;  %v6149_v14 = vld [vmem:[%s8222_s6 + $0x318] sm:$0xff]  ;;  %2963 = vmatpush.bf16.msrb.mxu3 %v6141_v48 }
 0x211   : > { %v1871_v29 = vpop.f32.mrf.mxu0  ;;  %3758 = vmatpush.bf16.msrb.mxu0 %v6149_v14 }
 0x212   : > { %v7239_v6 = vsel %vm2000_vm0, %v8237_v18, %v2041_v36  ;;  %v1781_v49 = vadd.f32 %v1780_v34, %v1692_v37  ;;  %v8283_v36 = vld [vmem:[#allocation5_spill] sm:$0xff] }
 0x213   : > { %8281 = vst [vmem:[#allocation4_spill] sm:$0xff] %v7239_v6  ;;  %v1960_v17 = vpop.f32.mrf.mxu1 }
 0x214   : > { %v1870_v8 = vadd.f32 %v1869_v62, %v1781_v49  ;;  %v7259_v62 = vld [vmem:[%s6546_s23 + $0x40] sm:$0xff] }
 0x216   : > { %v7250_v23 = vadd.f32 %v1958_v47, %v1870_v8  ;;  %v8284_v47 = vld [vmem:[#allocation2_spill] sm:$0xff] }
 0x217   : > { %v1693_v31 = vpop.f32.mrf.mxu2 }
 0x218   : > { %8282 = vst [vmem:[#allocation21_spill] sm:$0xff] %v7250_v23  ;;  %v1782_v34 = vpop.f32.mrf.mxu3  ;;  %v1694_v10 = vadd.f32 %v1693_v31, %v8283_v36  ;;  %v8244_v14 = vrot.slane %v7250_v23, 7  ;;  %v8285_v31 = vld [vmem:[#allocation6_spill] sm:$0xff] }
 0x219   : > { %v1874_v18 = vpop.f32.mrf.mxu0 }
 0x21a   : > { %v1783_v37 = vadd.f32 %v1782_v34, %v1694_v10 }
 0x21b   : > { %v1963_v45 = vpop.f32.mrf.mxu1 }
 0x21c   : > { %v1872_v2 = vadd.f32 %v1871_v29, %v1783_v37  ;;  %2557 = vmatmul.bf16.gmra.mxu2 %v7210_v57  ;;  %2735 = vmatmul.bf16.gmra.mxu0 %v7259_v62 }
 0x21d   : > { %2646 = vmatmul.bf16.gmra.mxu3 %v7230_v28 }
 0x21e   : > { %2824 = vmatmul.bf16.gmra.mxu1 %v8284_v47  ;;  %v1961_v49 = vadd.f32 %v1960_v17, %v1872_v2  ;;  %v8288_v17 = vld [vmem:[#allocation7_spill] sm:$0xff] }
 0x21f   : > { %v1696_v33 = vpop.f32.mrf.mxu2  ;;  %8291 = vst [vmem:[#allocation7_spill] sm:$0xff] %v7411_v42 }
 0x220   : > { %v1785_v48 = vpop.f32.mrf.mxu3  ;;  %v2044_v8 = vrot.slane %v1961_v49, 7  ;;  %v1697_v34 = vadd.f32 %v1696_v33, %v8285_v31 }
 0x221   : > { %v1876_v10 = vpop.f32.mrf.mxu0 }
 0x222   : > { %v7268_v29 = vsel %vm2000_vm0, %v8244_v14, %v2044_v8  ;;  %v1786_v36 = vadd.f32 %v1785_v48, %v1697_v34  ;;  %v6132_v48 = vld [vmem:[%s8222_s6 + $0x290] sm:$0xff]  ;;  %v7279_v8 = vld [vmem:[%s6546_s23 + $0x48] sm:$0xff] }
 0x223   : > { %8286 = vst [vmem:[#allocation5_spill] sm:$0xff] %v7268_v29  ;;  %v1965_v37 = vpop.f32.mrf.mxu1  ;;  %2875 = vmatpush.bf16.msrb.mxu2 %v6132_v48 }
 0x224   : > { %v1875_v3 = vadd.f32 %v1874_v18, %v1786_v36 }
 0x226   : > { %v7270_v47 = vadd.f32 %v1963_v45, %v1875_v3  ;;  %v8289_v3 = vld [vmem:[#allocation3_spill] sm:$0xff]  ;;  %v6140_v45 = vld [vmem:[%s8222_s6 + $0x2d0] sm:$0xff] }
 0x227   : > { %v1698_v2 = vpop.f32.mrf.mxu2  ;;  %2964 = vmatpush.bf16.msrb.mxu3 %v6140_v45 }
 0x228   : > { %8287 = vst [vmem:[#allocation2_spill] sm:$0xff] %v7270_v47  ;;  %v1787_v11 = vpop.f32.mrf.mxu3  ;;  %v1699_v6 = vadd.f32 %v1698_v2, %v8288_v17  ;;  %v8243_v31 = vrot.slane %v7270_v47, 7 }
 0x229   : > { %v2701_v49 = vpop.f32.mrf.mxu0 }
 0x22a   : > { %v1788_v26 = vadd.f32 %v1787_v11, %v1699_v6 }
 0x22b   : > { %v2790_v12 = vpop.f32.mrf.mxu1 }
 0x22c   : > { %v1877_v33 = vadd.f32 %v1876_v10, %v1788_v26  ;;  %2562 = vmatmul.bf16.gmra.mxu2 %v7230_v28  ;;  %2740 = vmatmul.bf16.gmra.mxu0 %v7279_v8 }
 0x22d   : > { %2651 = vmatmul.bf16.gmra.mxu3 %v7259_v62 }
 0x22e   : > { %2829 = vmatmul.bf16.gmra.mxu1 %v8289_v3  ;;  %v1966_v18 = vadd.f32 %v1965_v37, %v1877_v33  ;;  %v6148_v37 = vld [vmem:[%s8222_s6 + $0x310] sm:$0xff] }
 0x22f   : > { %v2523_v26 = vpop.f32.mrf.mxu2  ;;  %3759 = vmatpush.bf16.msrb.mxu0 %v6148_v37 }
 0x230   : > { %v2612_v6 = vpop.f32.mrf.mxu3  ;;  %v2047_v34 = vrot.slane %v1966_v18, 7 }
 0x231   : > { %v2613_v36 = vadd.f32 %v2612_v6, %v2523_v26  ;;  %v2703_v11 = vpop.f32.mrf.mxu0 }
 0x232   : > { %v7290_v10 = vsel %vm2000_vm0, %v8243_v31, %v2047_v34 }
 0x233   : > { %8290 = vst [vmem:[#allocation6_spill] sm:$0xff] %v7290_v10  ;;  %v2702_v2 = vadd.f32 %v2701_v49, %v2613_v36  ;;  %v2792_v17 = vpop.f32.mrf.mxu1  ;;  %v6156_v49 = vld [vmem:[%s8222_s6 + $0x350] sm:$0xff] }
 0x234   : > { %v7305_v36 = vld [vmem:[%s6546_s23 + $0x50] sm:$0xff]  ;;  %3848 = vmatpush.bf16.msrb.mxu1 %v6156_v49 }
 0x235   : > { %v7295_v33 = vadd.f32 %v2790_v12, %v2702_v2 }
 0x237   : > { %v2525_v48 = vpop.f32.mrf.mxu2 }
 0x238   : > { %v2614_v3 = vpop.f32.mrf.mxu3 }
 0x239   : > { %v2615_v45 = vadd.f32 %v2614_v3, %v2525_v48  ;;  %v2706_v26 = vpop.f32.mrf.mxu0 }
 0x23b   : > { %v2704_v18 = vadd.f32 %v2703_v11, %v2615_v45  ;;  %v2795_v6 = vpop.f32.mrf.mxu1 }
 0x23c   : > { %2567 = vmatmul.bf16.gmra.mxu2 %v7259_v62  ;;  %2745 = vmatmul.bf16.gmra.mxu0 %v7305_v36 }
 0x23d   : > { %2656 = vmatmul.bf16.gmra.mxu3 %v7279_v8  ;;  %v7302_v34 = vadd.f32 %v2792_v17, %v2704_v18 }
 0x23e   : > { %2834 = vmatmul.bf16.gmra.mxu1 %v6895_v15  ;;  %v6131_v15 = vld [vmem:[%s8222_s6 + $0x288] sm:$0xff] }
 0x23f   : > { %v2528_v12 = vpop.f32.mrf.mxu2  ;;  %2876 = vmatpush.bf16.msrb.mxu2 %v6131_v15 }
 0x240   : > { %v2617_v2 = vpop.f32.mrf.mxu3 }
 0x241   : > { %v2618_v11 = vadd.f32 %v2617_v2, %v2528_v12  ;;  %v2708_v48 = vpop.f32.mrf.mxu0 }
 0x243   : > { %v2707_v37 = vadd.f32 %v2706_v26, %v2618_v11  ;;  %v2797_v3 = vpop.f32.mrf.mxu1  ;;  %v7319_v26 = vld [vmem:[%s6546_s23 + $0x58] sm:$0xff] }
 0x245   : > { %v7309_v45 = vadd.f32 %v2795_v6, %v2707_v37 }
 0x247   : > { %v2530_v31 = vpop.f32.mrf.mxu2 }
 0x248   : > { %v2619_v14 = vpop.f32.mrf.mxu3 }
 0x249   : > { %v2620_v17 = vadd.f32 %v2619_v14, %v2530_v31  ;;  %v2711_v10 = vpop.f32.mrf.mxu0  ;;  %v6139_v14 = vld [vmem:[%s8222_s6 + $0x2c8] sm:$0xff] }
 0x24a   : > { %2965 = vmatpush.bf16.msrb.mxu3 %v6139_v14 }
 0x24b   : > { %v2709_v18 = vadd.f32 %v2708_v48, %v2620_v17  ;;  %v2800_v47 = vpop.f32.mrf.mxu1  ;;  %v6147_v48 = vld [vmem:[%s8222_s6 + $0x308] sm:$0xff] }
 0x24c   : > { %2572 = vmatmul.bf16.gmra.mxu2 %v7279_v8  ;;  %2750 = vmatmul.bf16.gmra.mxu0 %v7319_v26 }
 0x24d   : > { %2661 = vmatmul.bf16.gmra.mxu3 %v7305_v36  ;;  %v7316_v49 = vadd.f32 %v2797_v3, %v2709_v18  ;;  %3760 = vmatpush.bf16.msrb.mxu0 %v6147_v48 }
 0x24e   : > { %2839 = vmatmul.bf16.gmra.mxu1 %v6916_v9 }
 0x24f   : > { %v2533_v31 = vpop.f32.mrf.mxu2 }
 0x250   : > { %v2622_v6 = vpop.f32.mrf.mxu3 }
 0x251   : > { %v2623_v12 = vadd.f32 %v2622_v6, %v2533_v31  ;;  %v2713_v11 = vpop.f32.mrf.mxu0  ;;  %v7339_v31 = vld [vmem:[%s6546_s23 + $0x60] sm:$0xff] }
 0x253   : > { %v2712_v2 = vadd.f32 %v2711_v10, %v2623_v12  ;;  %v2802_v37 = vpop.f32.mrf.mxu1  ;;  %v6155_v10 = vld [vmem:[%s8222_s6 + $0x348] sm:$0xff] }
 0x254   : > { %3849 = vmatpush.bf16.msrb.mxu1 %v6155_v10 }
 0x255   : > { %v7329_v3 = vadd.f32 %v2800_v47, %v2712_v2 }
 0x257   : > { %v2535_v9 = vpop.f32.mrf.mxu2 }
 0x258   : > { %v2624_v17 = vpop.f32.mrf.mxu3 }
 0x259   : > { %v2625_v18 = vadd.f32 %v2624_v17, %v2535_v9  ;;  %v2716_v15 = vpop.f32.mrf.mxu0 }
 0x25b   : > { %v2714_v29 = vadd.f32 %v2713_v11, %v2625_v18  ;;  %v2805_v23 = vpop.f32.mrf.mxu1 }
 0x25c   : > { %2577 = vmatmul.bf16.gmra.mxu2 %v7305_v36  ;;  %2755 = vmatmul.bf16.gmra.mxu0 %v7339_v31 }
 0x25d   : > { %2666 = vmatmul.bf16.gmra.mxu3 %v7319_v26  ;;  %v7336_v14 = vadd.f32 %v2802_v37, %v2714_v29 }
 0x25e   : > { %2844 = vmatmul.bf16.gmra.mxu1 %v6933_v30  ;;  %v6130_v30 = vld [vmem:[%s8222_s6 + $0x280] sm:$0xff] }
 0x25f   : > { %v2538_v47 = vpop.f32.mrf.mxu2  ;;  %2877 = vmatpush.bf16.msrb.mxu2 %v6130_v30 }
 0x260   : > { %v2627_v6 = vpop.f32.mrf.mxu3 }
 0x261   : > { %v2628_v12 = vadd.f32 %v2627_v6, %v2538_v47  ;;  %v2718_v11 = vpop.f32.mrf.mxu0 }
 0x263   : > { %v2717_v2 = vadd.f32 %v2716_v15, %v2628_v12  ;;  %v2807_v48 = vpop.f32.mrf.mxu1  ;;  %v7353_v15 = vld [vmem:[%s6546_s23 + $0x68] sm:$0xff] }
 0x265   : > { %v7343_v9 = vadd.f32 %v2805_v23, %v2717_v2  ;;  %v6138_v23 = vld [vmem:[%s8222_s6 + $0x2c0] sm:$0xff] }
 0x266   : > { %2966 = vmatpush.bf16.msrb.mxu3 %v6138_v23 }
 0x267   : > { %v2540_v17 = vpop.f32.mrf.mxu2 }
 0x268   : > { %v2629_v18 = vpop.f32.mrf.mxu3 }
 0x269   : > { %v2630_v29 = vadd.f32 %v2629_v18, %v2540_v17  ;;  %v2721_v59 = vpop.f32.mrf.mxu0  ;;  %v6146_v17 = vld [vmem:[%s8222_s6 + $0x300] sm:$0xff] }
 0x26a   : > { %3761 = vmatpush.bf16.msrb.mxu0 %v6146_v17 }
 0x26b   : > { %v2719_v37 = vadd.f32 %v2718_v11, %v2630_v29  ;;  %v2810_v25 = vpop.f32.mrf.mxu1 }
 0x26c   : > { %2582 = vmatmul.bf16.gmra.mxu2 %v7319_v26  ;;  %2760 = vmatmul.bf16.gmra.mxu0 %v7353_v15 }
 0x26d   : > { %2671 = vmatmul.bf16.gmra.mxu3 %v7339_v31  ;;  %v7350_v10 = vadd.f32 %v2807_v48, %v2719_v37 }
 0x26e   : > { %2849 = vmatmul.bf16.gmra.mxu1 %v6956_v1 }
 0x26f   : > { %v2543_v47 = vpop.f32.mrf.mxu2 }
 0x270   : > { %v2632_v6 = vpop.f32.mrf.mxu3 }
 0x271   : > { %v2633_v12 = vadd.f32 %v2632_v6, %v2543_v47  ;;  %v2723_v11 = vpop.f32.mrf.mxu0  ;;  %v7373_v47 = vld [vmem:[%s6546_s23 + $0x70] sm:$0xff] }
 0x273   : > { %v2722_v2 = vadd.f32 %v2721_v59, %v2633_v12  ;;  %v2812_v48 = vpop.f32.mrf.mxu1  ;;  %v6154_v59 = vld [vmem:[%s8222_s6 + $0x340] sm:$0xff] }
 0x274   : > { %3850 = vmatpush.bf16.msrb.mxu1 %v6154_v59 }
 0x275   : > { %v7363_v18 = vadd.f32 %v2810_v25, %v2722_v2 }
 0x277   : > { %v2545_v1 = vpop.f32.mrf.mxu2 }
 0x278   : > { %v2634_v29 = vpop.f32.mrf.mxu3 }
 0x279   : > { %v2635_v37 = vadd.f32 %v2634_v29, %v2545_v1  ;;  %v2726_v30 = vpop.f32.mrf.mxu0 }
 0x27b   : > { %v2724_v55 = vadd.f32 %v2723_v11, %v2635_v37  ;;  %v2815_v54 = vpop.f32.mrf.mxu1 }
 0x27c   : > { %2587 = vmatmul.bf16.gmra.mxu2 %v7339_v31  ;;  %2765 = vmatmul.bf16.gmra.mxu0 %v7373_v47 }
 0x27d   : > { %2676 = vmatmul.bf16.gmra.mxu3 %v7353_v15  ;;  %v7370_v23 = vadd.f32 %v2812_v48, %v2724_v55 }
 0x27e   : > { %2854 = vmatmul.bf16.gmra.mxu1 %v6979_v43  ;;  %v6169_v43 = vld [vmem:[%s8222_s6 + $0x3b8] sm:$0xff] }
 0x27f   : > { %v2548_v25 = vpop.f32.mrf.mxu2  ;;  %3932 = vmatpush.bf16.msra.mxu2 %v6169_v43 }
 0x280   : > { %v2637_v6 = vpop.f32.mrf.mxu3 }
 0x281   : > { %v2638_v12 = vadd.f32 %v2637_v6, %v2548_v25  ;;  %v2728_v11 = vpop.f32.mrf.mxu0 }
 0x283   : > { %v2727_v2 = vadd.f32 %v2726_v30, %v2638_v12  ;;  %v2817_v17 = vpop.f32.mrf.mxu1  ;;  %v7387_v30 = vld [vmem:[%s6546_s23 + $0x78] sm:$0xff] }
 0x285   : > { %v7377_v1 = vadd.f32 %v2815_v54, %v2727_v2  ;;  %v6177_v54 = vld [vmem:[%s8222_s6 + $0x3f8] sm:$0xff] }
 0x286   : > { %4021 = vmatpush.bf16.msra.mxu3 %v6177_v54  ;;  %v6193_v54 = vld [vmem:[%s8222_s6 + $0x478] sm:$0xff] }
 0x287   : > { %v2550_v29 = vpop.f32.mrf.mxu2  ;;  %4199 = vmatpush.bf16.msra.mxu1 %v6193_v54  ;;  %v6176_v54 = vld [vmem:[%s8222_s6 + $0x3f0] sm:$0xff] }
 0x288   : > { %v2639_v37 = vpop.f32.mrf.mxu3 }
 0x289   : > { %v2640_v55 = vadd.f32 %v2639_v37, %v2550_v29  ;;  %v2731_v60 = vpop.f32.mrf.mxu0 }
 0x28a   : > { %4022 = vmatpush.bf16.msra.mxu3 %v6176_v54  ;;  %v6192_v54 = vld [vmem:[%s8222_s6 + $0x470] sm:$0xff] }
 0x28b   : > { %v2729_v48 = vadd.f32 %v2728_v11, %v2640_v55  ;;  %v2820_v41 = vpop.f32.mrf.mxu1  ;;  %4200 = vmatpush.bf16.msra.mxu1 %v6192_v54 }
 0x28c   : > { %2592 = vmatmul.bf16.gmra.mxu2 %v7353_v15  ;;  %2770 = vmatmul.bf16.gmra.mxu0 %v7387_v30 }
 0x28d   : > { %2681 = vmatmul.bf16.gmra.mxu3 %v7373_v47  ;;  %v7384_v59 = vadd.f32 %v2817_v17, %v2729_v48  ;;  %v6185_v17 = vld [vmem:[%s8222_s6 + $0x438] sm:$0xff] }
 0x28e   : > { %2859 = vmatmul.bf16.gmra.mxu1 %v7002_v50  ;;  %4110 = vmatpush.bf16.msra.mxu0 %v6185_v17 }
 0x28f   : > { %v2553_v25 = vpop.f32.mrf.mxu2 }
 0x290   : > { %v2642_v6 = vpop.f32.mrf.mxu3 }
 0x291   : > { %v2643_v12 = vadd.f32 %v2642_v6, %v2553_v25  ;;  %v2733_v11 = vpop.f32.mrf.mxu0 }
 0x293   : > { %v2732_v2 = vadd.f32 %v2731_v60, %v2643_v12  ;;  %v2822_v29 = vpop.f32.mrf.mxu1 }
 0x295   : > { %v7397_v37 = vadd.f32 %v2820_v41, %v2732_v2 }
 0x297   : > { %v2555_v50 = vpop.f32.mrf.mxu2 }
 0x298   : > { %v2644_v55 = vpop.f32.mrf.mxu3 }
 0x299   : > { %v2645_v48 = vadd.f32 %v2644_v55, %v2555_v50  ;;  %v2736_v13 = vpop.f32.mrf.mxu0 }
 0x29b   : > { %v2734_v53 = vadd.f32 %v2733_v11, %v2645_v48  ;;  %v2825_v43 = vpop.f32.mrf.mxu1 }
 0x29c   : > { %2597 = vmatmul.bf16.gmra.mxu2 %v7373_v47  ;;  %2775 = vmatmul.bf16.gmra.mxu0 %v6560_v22 }
 0x29d   : > { %2686 = vmatmul.bf16.gmra.mxu3 %v7387_v30  ;;  %v7404_v60 = vadd.f32 %v2822_v29, %v2734_v53 }
 0x29e   : > { %2864 = vmatmul.bf16.gmra.mxu1 %v7025_v20  ;;  %v7415_v20 = vld [vmem:[%s6742_s21 + $0x8] sm:$0xff] }
 0x29f   : > { %v2558_v41 = vpop.f32.mrf.mxu2  ;;  %8292 = vst [vmem:[#allocation3_spill] sm:$0xff] %v7415_v20 }
 0x2a0   : > { %v2647_v25 = vpop.f32.mrf.mxu3 }
 0x2a1   : > { %v2648_v6 = vadd.f32 %v2647_v25, %v2558_v41  ;;  %v2738_v2 = vpop.f32.mrf.mxu0 }
 0x2a3   : > { %v2737_v12 = vadd.f32 %v2736_v13, %v2648_v6  ;;  %v2827_v11 = vpop.f32.mrf.mxu1  ;;  %v6168_v13 = vld [vmem:[%s8222_s6 + $0x3b0] sm:$0xff] }
 0x2a4   : > { %3933 = vmatpush.bf16.msra.mxu2 %v6168_v13 }
 0x2a5   : > { %v7408_v17 = vadd.f32 %v2825_v43, %v2737_v12 }
 0x2a7   : > { %v2560_v50 = vpop.f32.mrf.mxu2 }
 0x2a8   : > { %v2649_v55 = vpop.f32.mrf.mxu3 }
 0x2a9   : > { %v2650_v48 = vadd.f32 %v2649_v55, %v2560_v50  ;;  %v2741_v29 = vpop.f32.mrf.mxu0 }
 0x2ab   : > { %v2739_v53 = vadd.f32 %v2738_v2, %v2650_v48  ;;  %v2830_v16 = vpop.f32.mrf.mxu1 }
 0x2ac   : > { %2878 = vmatmul.bf16.vlgmr.msrb.gmra.mxu2 %v7411_v42  ;;  %3762 = vmatmul.bf16.vlgmr.msrb.gmra.mxu0 %v6560_v22 }
 0x2ad   : > { %2967 = vmatmul.bf16.vlgmr.msrb.gmra.mxu3 %v7415_v20  ;;  %v7421_v43 = vadd.f32 %v2827_v11, %v2739_v53  ;;  %v6184_v11 = vld [vmem:[%s8222_s6 + $0x430] sm:$0xff] }
 0x2ae   : > { %3851 = vmatmul.bf16.vlgmr.msrb.gmra.mxu1 %v7110_v58  ;;  %4111 = vmatpush.bf16.msra.mxu0 %v6184_v11 }
 0x2af   : > { %8293 = vst [vmem:[#allocation22_spill] sm:$0xff] %v7421_v43  ;;  %v2563_v41 = vpop.f32.mrf.mxu2 }
 0x2b0   : > { %v2652_v25 = vpop.f32.mrf.mxu3 }
 0x2b1   : > { %v2653_v6 = vadd.f32 %v2652_v25, %v2563_v41  ;;  %v2743_v2 = vpop.f32.mrf.mxu0 }
 0x2b3   : > { %v2742_v12 = vadd.f32 %v2741_v29, %v2653_v6  ;;  %v2832_v50 = vpop.f32.mrf.mxu1  ;;  %v7438_v29 = vld [vmem:[%s6742_s21 + $0x10] sm:$0xff] }
 0x2b5   : > { %v7431_v55 = vadd.f32 %v2830_v16, %v2742_v12 }
 0x2b7   : > { %8294 = vst [vmem:[#allocation23_spill] sm:$0xff] %v7431_v55  ;;  %v2565_v48 = vpop.f32.mrf.mxu2 }
 0x2b8   : > { %v2654_v53 = vpop.f32.mrf.mxu3 }
 0x2b9   : > { %v2655_v63 = vadd.f32 %v2654_v53, %v2565_v48  ;;  %v2746_v13 = vpop.f32.mrf.mxu0 }
 0x2bb   : > { %v2744_v42 = vadd.f32 %v2743_v2, %v2655_v63  ;;  %v2835_v43 = vpop.f32.mrf.mxu1 }
 0x2bc   : > { %2883 = vmatmul.bf16.gmra.mxu2 %v7415_v20  ;;  %3767 = vmatmul.bf16.gmra.mxu0 %v7110_v58  ;;  %v7449_v58 = vld [vmem:[%s6742_s21 + $0x18] sm:$0xff] }
 0x2bd   : > { %2972 = vmatmul.bf16.gmra.mxu3 %v7438_v29  ;;  %v7441_v41 = vadd.f32 %v2832_v50, %v2744_v42  ;;  %8296 = vst [vmem:[#allocation25_spill] sm:$0xff] %v7449_v58 }
 0x2be   : > { %3856 = vmatmul.bf16.gmra.mxu1 %v7130_v27 }
 0x2bf   : > { %v2568_v63 = vpop.f32.mrf.mxu2 }
 0x2c0   : > { %v2657_v16 = vpop.f32.mrf.mxu3 }
 0x2c1   : > { %v2658_v25 = vadd.f32 %v2657_v16, %v2568_v63  ;;  %v2748_v12 = vpop.f32.mrf.mxu0 }
 0x2c3   : > { %v2747_v6 = vadd.f32 %v2746_v13, %v2658_v25  ;;  %v2837_v2 = vpop.f32.mrf.mxu1  ;;  %v6167_v13 = vld [vmem:[%s8222_s6 + $0x3a8] sm:$0xff] }
 0x2c4   : > { %3934 = vmatpush.bf16.msra.mxu2 %v6167_v13 }
 0x2c5   : > { %v7445_v11 = vadd.f32 %v2835_v43, %v2747_v6  ;;  %v6175_v43 = vld [vmem:[%s8222_s6 + $0x3e8] sm:$0xff] }
 0x2c6   : > { %4023 = vmatpush.bf16.msra.mxu3 %v6175_v43  ;;  %v6191_v43 = vld [vmem:[%s8222_s6 + $0x468] sm:$0xff] }
 0x2c7   : > { %8295 = vst [vmem:[#allocation24_spill] sm:$0xff] %v7445_v11  ;;  %v2570_v48 = vpop.f32.mrf.mxu2  ;;  %4201 = vmatpush.bf16.msra.mxu1 %v6191_v43 }
 0x2c8   : > { %v2659_v53 = vpop.f32.mrf.mxu3 }
 0x2c9   : > { %v2660_v55 = vadd.f32 %v2659_v53, %v2570_v48  ;;  %v2751_v42 = vpop.f32.mrf.mxu0 }
 0x2cb   : > { %v2749_v20 = vadd.f32 %v2748_v12, %v2660_v55  ;;  %v2840_v50 = vpop.f32.mrf.mxu1 }
 0x2cc   : > { %2888 = vmatmul.bf16.gmra.mxu2 %v7438_v29  ;;  %3772 = vmatmul.bf16.gmra.mxu0 %v7130_v27 }
 0x2cd   : > { %2977 = vmatmul.bf16.gmra.mxu3 %v7449_v58  ;;  %v7455_v54 = vadd.f32 %v2837_v2, %v2749_v20  ;;  %v6183_v20 = vld [vmem:[%s8222_s6 + $0x428] sm:$0xff] }
 0x2ce   : > { %3861 = vmatmul.bf16.gmra.mxu1 %v7134_v24  ;;  %4112 = vmatpush.bf16.msra.mxu0 %v6183_v20 }
 0x2cf   : > { %8297 = vst [vmem:[#allocation26_spill] sm:$0xff] %v7455_v54  ;;  %v2573_v55 = vpop.f32.mrf.mxu2 }
 0x2d0   : > { %v2662_v63 = vpop.f32.mrf.mxu3 }
 0x2d1   : > { %v2663_v16 = vadd.f32 %v2662_v63, %v2573_v55  ;;  %v2753_v6 = vpop.f32.mrf.mxu0 }
 0x2d3   : > { %v2752_v25 = vadd.f32 %v2751_v42, %v2663_v16  ;;  %v2842_v12 = vpop.f32.mrf.mxu1  ;;  %v7472_v42 = vld [vmem:[%s6742_s21 + $0x20] sm:$0xff] }
 0x2d5   : > { %v7465_v27 = vadd.f32 %v2840_v50, %v2752_v25 }
 0x2d7   : > { %8298 = vst [vmem:[#allocation27_spill] sm:$0xff] %v7465_v27  ;;  %v2575_v2 = vpop.f32.mrf.mxu2 }
 0x2d8   : > { %v2664_v48 = vpop.f32.mrf.mxu3 }
 0x2d9   : > { %v2665_v53 = vadd.f32 %v2664_v48, %v2575_v2  ;;  %v2756_v13 = vpop.f32.mrf.mxu0 }
 0x2db   : > { %v2754_v54 = vadd.f32 %v2753_v6, %v2665_v53  ;;  %v2845_v11 = vpop.f32.mrf.mxu1 }
 0x2dc   : > { %2893 = vmatmul.bf16.gmra.mxu2 %v7449_v58  ;;  %3777 = vmatmul.bf16.gmra.mxu0 %v7134_v24  ;;  %v7483_v24 = vld [vmem:[%s6742_s21 + $0x28] sm:$0xff] }
 0x2dd   : > { %2982 = vmatmul.bf16.gmra.mxu3 %v7472_v42  ;;  %v7475_v55 = vadd.f32 %v2842_v12, %v2754_v54  ;;  %8300 = vst [vmem:[#allocation29_spill] sm:$0xff] %v7483_v24 }
 0x2de   : > { %3866 = vmatmul.bf16.gmra.mxu1 %v7160_v35 }
 0x2df   : > { %v2578_v50 = vpop.f32.mrf.mxu2 }
 0x2e0   : > { %v2667_v63 = vpop.f32.mrf.mxu3 }
 0x2e1   : > { %v2668_v16 = vadd.f32 %v2667_v63, %v2578_v50  ;;  %v2758_v6 = vpop.f32.mrf.mxu0 }
 0x2e3   : > { %v2757_v25 = vadd.f32 %v2756_v13, %v2668_v16  ;;  %v2847_v20 = vpop.f32.mrf.mxu1  ;;  %v6166_v13 = vld [vmem:[%s8222_s6 + $0x3a0] sm:$0xff] }
 0x2e4   : > { %3935 = vmatpush.bf16.msra.mxu2 %v6166_v13 }
 0x2e5   : > { %v7479_v2 = vadd.f32 %v2845_v11, %v2757_v25  ;;  %v6174_v11 = vld [vmem:[%s8222_s6 + $0x3e0] sm:$0xff] }
 0x2e6   : > { %4024 = vmatpush.bf16.msra.mxu3 %v6174_v11  ;;  %v6190_v11 = vld [vmem:[%s8222_s6 + $0x460] sm:$0xff] }
 0x2e7   : > { %8299 = vst [vmem:[#allocation28_spill] sm:$0xff] %v7479_v2  ;;  %v2580_v48 = vpop.f32.mrf.mxu2  ;;  %4202 = vmatpush.bf16.msra.mxu1 %v6190_v11 }
 0x2e8   : > { %v2669_v53 = vpop.f32.mrf.mxu3 }
 0x2e9   : > { %v2670_v27 = vadd.f32 %v2669_v53, %v2580_v48  ;;  %v2761_v54 = vpop.f32.mrf.mxu0 }
 0x2eb   : > { %v2759_v58 = vadd.f32 %v2758_v6, %v2670_v27  ;;  %v2850_v12 = vpop.f32.mrf.mxu1 }
 0x2ec   : > { %2898 = vmatmul.bf16.gmra.mxu2 %v7472_v42  ;;  %3782 = vmatmul.bf16.gmra.mxu0 %v7160_v35 }
 0x2ed   : > { %2987 = vmatmul.bf16.gmra.mxu3 %v7483_v24  ;;  %v7489_v43 = vadd.f32 %v2847_v20, %v2759_v58  ;;  %v6182_v58 = vld [vmem:[%s8222_s6 + $0x420] sm:$0xff] }
 0x2ee   : > { %3871 = vmatmul.bf16.gmra.mxu1 %v7164_v19  ;;  %4113 = vmatpush.bf16.msra.mxu0 %v6182_v58 }
 0x2ef   : > { %8301 = vst [vmem:[#allocation30_spill] sm:$0xff] %v7489_v43  ;;  %v2583_v27 = vpop.f32.mrf.mxu2 }
 0x2f0   : > { %v2672_v50 = vpop.f32.mrf.mxu3 }
 0x2f1   : > { %v2673_v63 = vadd.f32 %v2672_v50, %v2583_v27  ;;  %v2763_v25 = vpop.f32.mrf.mxu0 }
 0x2f3   : > { %v2762_v16 = vadd.f32 %v2761_v54, %v2673_v63  ;;  %v2852_v6 = vpop.f32.mrf.mxu1  ;;  %v7506_v54 = vld [vmem:[%s6742_s21 + $0x30] sm:$0xff] }
 0x2f5   : > { %v7499_v35 = vadd.f32 %v2850_v12, %v2762_v16 }
 0x2f7   : > { %8302 = vst [vmem:[#allocation31_spill] sm:$0xff] %v7499_v35  ;;  %v2585_v20 = vpop.f32.mrf.mxu2 }
 0x2f8   : > { %v2674_v48 = vpop.f32.mrf.mxu3 }
 0x2f9   : > { %v2675_v53 = vadd.f32 %v2674_v48, %v2585_v20  ;;  %v2766_v13 = vpop.f32.mrf.mxu0 }
 0x2fb   : > { %v2764_v43 = vadd.f32 %v2763_v25, %v2675_v53  ;;  %v2855_v2 = vpop.f32.mrf.mxu1 }
 0x2fc   : > { %2903 = vmatmul.bf16.gmra.mxu2 %v7483_v24  ;;  %3787 = vmatmul.bf16.gmra.mxu0 %v7164_v19  ;;  %v7517_v19 = vld [vmem:[%s6742_s21 + $0x38] sm:$0xff] }
 0x2fd   : > { %2992 = vmatmul.bf16.gmra.mxu3 %v7506_v54  ;;  %v7509_v27 = vadd.f32 %v2852_v6, %v2764_v43 }
 0x2fe   : > { %3876 = vmatmul.bf16.gmra.mxu1 %v7184_v7 }
 0x2ff   : > { %v2588_v12 = vpop.f32.mrf.mxu2 }
 0x300   : > { %v2677_v50 = vpop.f32.mrf.mxu3 }
 0x301   : > { %v2678_v63 = vadd.f32 %v2677_v50, %v2588_v12  ;;  %v2768_v25 = vpop.f32.mrf.mxu0 }
 0x303   : > { %v2767_v16 = vadd.f32 %v2766_v13, %v2678_v63  ;;  %v2857_v58 = vpop.f32.mrf.mxu1  ;;  %v6165_v13 = vld [vmem:[%s8222_s6 + $0x398] sm:$0xff] }
 0x304   : > { %3936 = vmatpush.bf16.msra.mxu2 %v6165_v13 }
 0x305   : > { %v7513_v20 = vadd.f32 %v2855_v2, %v2767_v16  ;;  %v6173_v2 = vld [vmem:[%s8222_s6 + $0x3d8] sm:$0xff] }
 0x306   : > { %4025 = vmatpush.bf16.msra.mxu3 %v6173_v2  ;;  %v7537_v2 = vld [vmem:[%s6742_s21 + $0x40] sm:$0xff] }
 0x307   : > { %8303 = vst [vmem:[#allocation32_spill] sm:$0xff] %v7513_v20  ;;  %v2590_v48 = vpop.f32.mrf.mxu2 }
 0x308   : > { %v2679_v53 = vpop.f32.mrf.mxu3 }
 0x309   : > { %v2680_v35 = vadd.f32 %v2679_v53, %v2590_v48  ;;  %v2771_v43 = vpop.f32.mrf.mxu0 }
 0x30b   : > { %v2769_v24 = vadd.f32 %v2768_v25, %v2680_v35  ;;  %v2860_v6 = vpop.f32.mrf.mxu1 }
 0x30c   : > { %2908 = vmatmul.bf16.gmra.mxu2 %v7506_v54  ;;  %3792 = vmatmul.bf16.gmra.mxu0 %v7184_v7  ;;  %v6181_v7 = vld [vmem:[%s8222_s6 + $0x418] sm:$0xff] }
 0x30d   : > { %2997 = vmatmul.bf16.gmra.mxu3 %v7517_v19  ;;  %v7523_v11 = vadd.f32 %v2857_v58, %v2769_v24  ;;  %4114 = vmatpush.bf16.msra.mxu0 %v6181_v7 }
 0x30e   : > { %3881 = vmatmul.bf16.gmra.mxu1 %v7210_v57 }
 0x30f   : > { %8304 = vst [vmem:[#allocation33_spill] sm:$0xff] %v7523_v11  ;;  %v2593_v35 = vpop.f32.mrf.mxu2 }
 0x310   : > { %v2682_v12 = vpop.f32.mrf.mxu3 }
 0x311   : > { %v2683_v50 = vadd.f32 %v2682_v12, %v2593_v35  ;;  %v2773_v16 = vpop.f32.mrf.mxu0 }
 0x313   : > { %v2772_v63 = vadd.f32 %v2771_v43, %v2683_v50  ;;  %v2862_v25 = vpop.f32.mrf.mxu1 }
 0x315   : > { %v7530_v48 = vadd.f32 %v2860_v6, %v2772_v63 }
 0x317   : > { %8305 = vst [vmem:[#allocation34_spill] sm:$0xff] %v7530_v48  ;;  %v2595_v24 = vpop.f32.mrf.mxu2 }
 0x318   : > { %v2684_v58 = vpop.f32.mrf.mxu3 }
 0x319   : > { %v2685_v53 = vadd.f32 %v2684_v58, %v2595_v24  ;;  %v2776_v13 = vpop.f32.mrf.mxu0  ;;  %v6189_v24 = vld [vmem:[%s8222_s6 + $0x458] sm:$0xff] }
 0x31a   : > { %4203 = vmatpush.bf16.msra.mxu1 %v6189_v24 }
 0x31b   : > { %v2774_v11 = vadd.f32 %v2773_v16, %v2685_v53  ;;  %v2865_v20 = vpop.f32.mrf.mxu1 }
 0x31c   : > { %2913 = vmatmul.bf16.gmra.mxu2 %v7517_v19  ;;  %3797 = vmatmul.bf16.gmra.mxu0 %v7210_v57 }
 0x31d   : > { %3002 = vmatmul.bf16.gmra.mxu3 %v7537_v2  ;;  %v7540_v43 = vadd.f32 %v2862_v25, %v2774_v11 }
 0x31e   : > { %3886 = vmatmul.bf16.gmra.mxu1 %v7230_v28 }
 0x31f   : > { %8306 = vst [vmem:[#allocation35_spill] sm:$0xff] %v7540_v43  ;;  %v2598_v6 = vpop.f32.mrf.mxu2 }
 0x320   : > { %v2687_v35 = vpop.f32.mrf.mxu3 }
 0x321   : > { %v2688_v12 = vadd.f32 %v2687_v35, %v2598_v6  ;;  %v2778_v63 = vpop.f32.mrf.mxu0 }
 0x323   : > { %v2777_v50 = vadd.f32 %v2776_v13, %v2688_v12  ;;  %v2867_v16 = vpop.f32.mrf.mxu1  ;;  %v6356_v13 = vld [vmem:[%s6742_s21 + $0x48] sm:$0xff] }
 0x325   : > { %v7547_v58 = vadd.f32 %v2865_v20, %v2777_v50 }
 0x327   : > { %v2600_v11 = vpop.f32.mrf.mxu2 }
 0x328   : > { %v2689_v25 = vpop.f32.mrf.mxu3 }
 0x329   : > { %v2690_v7 = vadd.f32 %v2689_v25, %v2600_v11  ;;  %v3763_v53 = vpop.f32.mrf.mxu0 }
 0x32b   : > { %v2779_v57 = vadd.f32 %v2778_v63, %v2690_v7  ;;  %v3852_v43 = vpop.f32.mrf.mxu1 }
 0x32c   : > { %v7549_v48 = vadd.f32 %v3852_v43, %v3763_v53  ;;  %2918 = vmatmul.bf16.gmra.mxu2 %v7537_v2  ;;  %3802 = vmatmul.bf16.gmra.mxu0 %v7230_v28  ;;  %v6164_v43 = vld [vmem:[%s8222_s6 + $0x390] sm:$0xff] }
 0x32d   : > { %3007 = vmatmul.bf16.gmra.mxu3 %v6356_v13  ;;  %v7553_v6 = vadd.f32 %v2867_v16, %v2779_v57  ;;  %v6172_v16 = vld [vmem:[%s8222_s6 + $0x3d0] sm:$0xff]  ;;  %3937 = vmatpush.bf16.msra.mxu2 %v6164_v43 }
 0x32e   : > { %3891 = vmatmul.bf16.gmra.mxu1 %v7259_v62  ;;  %4026 = vmatpush.bf16.msra.mxu3 %v6172_v16  ;;  %v6357_v43 = vld [vmem:[%s6742_s21 + $0x50] sm:$0xff] }
 0x32f   : > { %v2879_v20 = vpop.f32.mrf.mxu2 }
 0x330   : > { %v2968_v35 = vpop.f32.mrf.mxu3  ;;  %v2880_v12 = vadd.f32 %v2879_v20, %v7295_v33  ;;  %v6180_v33 = vld [vmem:[%s8222_s6 + $0x410] sm:$0xff] }
 0x331   : > { %v3765_v63 = vpop.f32.mrf.mxu0  ;;  %4115 = vmatpush.bf16.msra.mxu0 %v6180_v33 }
 0x332   : > { %v2969_v50 = vadd.f32 %v2968_v35, %v2880_v12 }
 0x333   : > { %v3854_v24 = vpop.f32.mrf.mxu1 }
 0x334   : > { %v7564_v11 = vadd.f32 %v3854_v24, %v3765_v63  ;;  %v3080_v7 = vrot.slane %v2969_v50, 7 }
 0x336   : > { %v3160_v63 = vsel %vm2000_vm0, 0.0, %v3080_v7 }
 0x337   : > { %v2881_v28 = vpop.f32.mrf.mxu2  ;;  %v3225_v16 = vrot.slane %v3160_v63, 1 }
 0x338   : > { %v2970_v25 = vpop.f32.mrf.mxu3  ;;  %v2882_v57 = vadd.f32 %v2881_v28, %v7302_v34 }
 0x339   : > { %v3768_v20 = vpop.f32.mrf.mxu0 }
 0x33a   : > { %v2971_v53 = vadd.f32 %v2970_v25, %v2882_v57 }
 0x33b   : > { %v3857_v35 = vpop.f32.mrf.mxu1 }
 0x33c   : > { %v7570_v12 = vadd.f32 %v3857_v35, %v3768_v20  ;;  %v3081_v24 = vrot.slane %v2971_v53, 7  ;;  %2923 = vmatmul.bf16.gmra.mxu2 %v6356_v13  ;;  %3807 = vmatmul.bf16.gmra.mxu0 %v7259_v62  ;;  %v8308_v13 = vrot.slane %v6929_v39, 7 }
 0x33d   : > { %3012 = vmatmul.bf16.gmra.mxu3 %v6357_v43 }
 0x33e   : > { %8307 = vst [vmem:[#allocation36_spill] sm:$0xff] %v7570_v12  ;;  %3896 = vmatmul.bf16.gmra.mxu1 %v7279_v8  ;;  %v3082_v50 = vsel %vm2000_vm0, %v3080_v7, %v3081_v24  ;;  %v3176_v34 = vsel %vm2000_vm0, %v3081_v24, 0.0  ;;  %v2081_v53 = vsel %vm2000_vm0, 0.0, %v8308_v13 }
 0x33f   : > { %v3226_v28 = vrot.slane %v3082_v50, 1  ;;  %v3228_v25 = vrot.slane %v3176_v34, 1  ;;  %v2884_v33 = vpop.f32.mrf.mxu2 }
 0x340   : > { %v2973_v57 = vpop.f32.mrf.mxu3  ;;  %v2885_v20 = vadd.f32 %v2884_v33, %v7309_v45  ;;  %v6188_v45 = vld [vmem:[%s8222_s6 + $0x450] sm:$0xff] }
 0x341   : > { %v3227_v62 = vsel %vm3224_vm1, %v3225_v16, %v3226_v28  ;;  %v3229_v35 = vsel %vm3224_vm1, %v3226_v28, %v3228_v25  ;;  %v3770_v24 = vpop.f32.mrf.mxu0  ;;  %4204 = vmatpush.bf16.msra.mxu1 %v6188_v45 }
 0x342   : > { %v7584_v12 = vadd.f32 %v3227_v62, %v2081_v53  ;;  %v7587_v7 = vadd.f32 %v3229_v35, %v6947_v40  ;;  %v2974_v63 = vadd.f32 %v2973_v57, %v2885_v20  ;;  %v6358_v62 = vld [vmem:[%s6742_s21 + $0x58] sm:$0xff] }
 0x343   : > { %v3859_v50 = vpop.f32.mrf.mxu1 }
 0x344   : > { %v7592_v39 = vadd.f32 %v3859_v50, %v3770_v24  ;;  %v3083_v33 = vrot.slane %v2974_v63, 7 }
 0x346   : > { %v3161_v57 = vsel %vm2000_vm0, 0.0, %v3083_v33 }
 0x347   : > { %v2886_v34 = vpop.f32.mrf.mxu2 }
 0x348   : > { %v2975_v16 = vpop.f32.mrf.mxu3  ;;  %v2887_v28 = vadd.f32 %v2886_v34, %v7316_v49  ;;  %v3230_v49 = vrot.slane %v3161_v57, 1 }
 0x349   : > { %v3773_v13 = vpop.f32.mrf.mxu0 }
 0x34a   : > { %v2976_v25 = vadd.f32 %v2975_v16, %v2887_v28  ;;  %v8309_v28 = vrot.slane %v6952_v56, 7  ;;  %v6171_v56 = vld [vmem:[%s8222_s6 + $0x3c8] sm:$0xff] }
 0x34b   : > { %v3862_v40 = vpop.f32.mrf.mxu1  ;;  %4027 = vmatpush.bf16.msra.mxu3 %v6171_v56 }
 0x34c   : > { %v7595_v53 = vadd.f32 %v3862_v40, %v3773_v13  ;;  %v3084_v20 = vrot.slane %v2976_v25, 7  ;;  %2928 = vmatmul.bf16.gmra.mxu2 %v6357_v43  ;;  %3812 = vmatmul.bf16.gmra.mxu0 %v7279_v8  ;;  %v2082_v43 = vsel %vm2000_vm0, 0.0, %v8309_v28 }
 0x34d   : > { %3017 = vmatmul.bf16.gmra.mxu3 %v6358_v62 }
 0x34e   : > { %3901 = vmatmul.bf16.gmra.mxu1 %v7305_v36  ;;  %v3085_v35 = vsel %vm2000_vm0, %v3083_v33, %v3084_v20  ;;  %v3177_v63 = vsel %vm2000_vm0, %v3084_v20, 0.0 }
 0x34f   : > { %v3231_v24 = vrot.slane %v3085_v35, 1  ;;  %v3233_v50 = vrot.slane %v3177_v63, 1  ;;  %v2889_v45 = vpop.f32.mrf.mxu2 }
 0x350   : > { %v2978_v34 = vpop.f32.mrf.mxu3  ;;  %v2890_v16 = vadd.f32 %v2889_v45, %v7329_v3  ;;  %v6163_v3 = vld [vmem:[%s8222_s6 + $0x388] sm:$0xff] }
 0x351   : > { %v3232_v25 = vsel %vm3224_vm1, %v3230_v49, %v3231_v24  ;;  %v3234_v8 = vsel %vm3224_vm1, %v3231_v24, %v3233_v50  ;;  %v3775_v57 = vpop.f32.mrf.mxu0  ;;  %3938 = vmatpush.bf16.msra.mxu2 %v6163_v3 }
 0x352   : > { %v7609_v13 = vadd.f32 %v3232_v25, %v2082_v43  ;;  %v7612_v33 = vadd.f32 %v3234_v8, %v6967_v21  ;;  %v2979_v40 = vadd.f32 %v2978_v34, %v2890_v16  ;;  %v6179_v21 = vld [vmem:[%s8222_s6 + $0x408] sm:$0xff]  ;;  %v6359_v8 = vld [vmem:[%s6742_s21 + $0x60] sm:$0xff] }
 0x353   : > { %v3864_v20 = vpop.f32.mrf.mxu1  ;;  %4116 = vmatpush.bf16.msra.mxu0 %v6179_v21  ;;  %v8310_v21 = vrot.slane %v6975_v51, 7 }
 0x354   : > { %v7620_v35 = vadd.f32 %v3864_v20, %v3775_v57  ;;  %v3086_v24 = vrot.slane %v2979_v40, 7 }
 0x356   : > { %v3162_v43 = vsel %vm2000_vm0, 0.0, %v3086_v24 }
 0x357   : > { %v2891_v63 = vpop.f32.mrf.mxu2  ;;  %v3235_v57 = vrot.slane %v3162_v43, 1 }
 0x358   : > { %v2980_v49 = vpop.f32.mrf.mxu3  ;;  %v2892_v50 = vadd.f32 %v2891_v63, %v7336_v14 }
 0x359   : > { %v3778_v34 = vpop.f32.mrf.mxu0 }
 0x35a   : > { %v2981_v45 = vadd.f32 %v2980_v49, %v2892_v50 }
 0x35b   : > { %v3867_v16 = vpop.f32.mrf.mxu1 }
 0x35c   : > { %v7626_v28 = vadd.f32 %v3867_v16, %v3778_v34  ;;  %v3087_v25 = vrot.slane %v2981_v45, 7  ;;  %2933 = vmatmul.bf16.gmra.mxu2 %v6358_v62  ;;  %3817 = vmatmul.bf16.gmra.mxu0 %v7305_v36  ;;  %v2083_v62 = vsel %vm2000_vm0, 0.0, %v8310_v21  ;;  %v6360_v21 = vld [vmem:[%s6742_s21 + $0x68] sm:$0xff] }
 0x35d   : > { %3022 = vmatmul.bf16.gmra.mxu3 %v6359_v8 }
 0x35e   : > { %3906 = vmatmul.bf16.gmra.mxu1 %v7319_v26  ;;  %v3088_v40 = vsel %vm2000_vm0, %v3086_v24, %v3087_v25  ;;  %v3178_v14 = vsel %vm2000_vm0, %v3087_v25, 0.0 }
 0x35f   : > { %v3236_v20 = vrot.slane %v3088_v40, 1  ;;  %v3238_v3 = vrot.slane %v3178_v14, 1  ;;  %v2894_v56 = vpop.f32.mrf.mxu2 }
 0x360   : > { %v2983_v63 = vpop.f32.mrf.mxu3  ;;  %v2895_v49 = vadd.f32 %v2894_v56, %v7343_v9  ;;  %v6187_v9 = vld [vmem:[%s8222_s6 + $0x448] sm:$0xff] }
 0x361   : > { %v3237_v50 = vsel %vm3224_vm1, %v3235_v57, %v3236_v20  ;;  %v3239_v36 = vsel %vm3224_vm1, %v3236_v20, %v3238_v3  ;;  %v3780_v16 = vpop.f32.mrf.mxu0  ;;  %4205 = vmatpush.bf16.msra.mxu1 %v6187_v9 }
 0x362   : > { %v7640_v45 = vadd.f32 %v3237_v50, %v2083_v62  ;;  %v7643_v24 = vadd.f32 %v3239_v36, %v6993_v52  ;;  %v2984_v34 = vadd.f32 %v2983_v63, %v2895_v49 }
 0x363   : > { %v3869_v43 = vpop.f32.mrf.mxu1 }
 0x364   : > { %v7648_v51 = vadd.f32 %v3869_v43, %v3780_v16  ;;  %v3089_v14 = vrot.slane %v2984_v34, 7 }
 0x366   : > { %v3163_v63 = vsel %vm2000_vm0, 0.0, %v3089_v14 }
 0x367   : > { %v2896_v25 = vpop.f32.mrf.mxu2 }
 0x368   : > { %v2985_v40 = vpop.f32.mrf.mxu3  ;;  %v2897_v57 = vadd.f32 %v2896_v25, %v7350_v10  ;;  %v3240_v10 = vrot.slane %v3163_v63, 1  ;;  %v8311_v25 = vrot.slane %v6998_v61, 7  ;;  %v6170_v61 = vld [vmem:[%s8222_s6 + $0x3c0] sm:$0xff] }
 0x369   : > { %v3783_v3 = vpop.f32.mrf.mxu0  ;;  %4028 = vmatpush.bf16.msra.mxu3 %v6170_v61 }
 0x36a   : > { %v2986_v20 = vadd.f32 %v2985_v40, %v2897_v57 }
 0x36b   : > { %v3872_v52 = vpop.f32.mrf.mxu1 }
 0x36c   : > { %v7651_v56 = vadd.f32 %v3872_v52, %v3783_v3  ;;  %v3090_v49 = vrot.slane %v2986_v20, 7  ;;  %2938 = vmatmul.bf16.gmra.mxu2 %v6359_v8  ;;  %3822 = vmatmul.bf16.gmra.mxu0 %v7319_v26  ;;  %v2084_v8 = vsel %vm2000_vm0, 0.0, %v8311_v25 }
 0x36d   : > { %3027 = vmatmul.bf16.gmra.mxu3 %v6360_v21 }
 0x36e   : > { %3911 = vmatmul.bf16.gmra.mxu1 %v7339_v31  ;;  %v3091_v62 = vsel %vm2000_vm0, %v3089_v14, %v3090_v49  ;;  %v3179_v50 = vsel %vm2000_vm0, %v3090_v49, 0.0 }
 0x36f   : > { %v3241_v36 = vrot.slane %v3091_v62, 1  ;;  %v3243_v34 = vrot.slane %v3179_v50, 1  ;;  %v2899_v16 = vpop.f32.mrf.mxu2 }
 0x370   : > { %v2988_v43 = vpop.f32.mrf.mxu3  ;;  %v2900_v9 = vadd.f32 %v2899_v16, %v7363_v18  ;;  %v6162_v18 = vld [vmem:[%s8222_s6 + $0x380] sm:$0xff] }
 0x371   : > { %v3242_v40 = vsel %vm3224_vm1, %v3240_v10, %v3241_v36  ;;  %v3244_v26 = vsel %vm3224_vm1, %v3241_v36, %v3243_v34  ;;  %v3785_v3 = vpop.f32.mrf.mxu0  ;;  %3939 = vmatpush.bf16.msra.mxu2 %v6162_v18 }
 0x372   : > { %v7665_v57 = vadd.f32 %v3242_v40, %v2084_v8  ;;  %v7668_v14 = vadd.f32 %v3244_v26, %v7013_v32  ;;  %v2989_v20 = vadd.f32 %v2988_v43, %v2900_v9  ;;  %v6178_v32 = vld [vmem:[%s8222_s6 + $0x400] sm:$0xff]  ;;  %v6361_v8 = vld [vmem:[%s6742_s21 + $0x70] sm:$0xff] }
 0x373   : > { %v3874_v52 = vpop.f32.mrf.mxu1  ;;  %4117 = vmatpush.bf16.msra.mxu0 %v6178_v32 }
 0x374   : > { %v7676_v63 = vadd.f32 %v3874_v52, %v3785_v3  ;;  %v3092_v50 = vrot.slane %v2989_v20, 7 }
 0x376   : > { %v3164_v9 = vsel %vm2000_vm0, 0.0, %v3092_v50 }
 0x377   : > { %v2901_v49 = vpop.f32.mrf.mxu2  ;;  %v3245_v26 = vrot.slane %v3164_v9, 1 }
 0x378   : > { %v2990_v62 = vpop.f32.mrf.mxu3  ;;  %v2902_v10 = vadd.f32 %v2901_v49, %v7370_v23  ;;  %v8312_v49 = vrot.slane %v7021_v38, 7 }
 0x379   : > { %v3788_v34 = vpop.f32.mrf.mxu0 }
 0x37a   : > { %v2991_v36 = vadd.f32 %v2990_v62, %v2902_v10 }
 0x37b   : > { %v3877_v16 = vpop.f32.mrf.mxu1 }
 0x37c   : > { %v7682_v43 = vadd.f32 %v3877_v16, %v3788_v34  ;;  %v3093_v25 = vrot.slane %v2991_v36, 7  ;;  %2943 = vmatmul.bf16.gmra.mxu2 %v6360_v21  ;;  %3827 = vmatmul.bf16.gmra.mxu0 %v7339_v31  ;;  %v2085_v21 = vsel %vm2000_vm0, 0.0, %v8312_v49 }
 0x37d   : > { %3032 = vmatmul.bf16.gmra.mxu3 %v6361_v8 }
 0x37e   : > { %3916 = vmatmul.bf16.gmra.mxu1 %v7353_v15  ;;  %v3094_v40 = vsel %vm2000_vm0, %v3092_v50, %v3093_v25  ;;  %v3180_v23 = vsel %vm2000_vm0, %v3093_v25, 0.0 }
 0x37f   : > { %v3246_v20 = vrot.slane %v3094_v40, 1  ;;  %v3248_v3 = vrot.slane %v3180_v23, 1  ;;  %v2904_v52 = vpop.f32.mrf.mxu2 }
 0x380   : > { %v2993_v18 = vpop.f32.mrf.mxu3  ;;  %v2905_v61 = vadd.f32 %v2904_v52, %v7377_v1  ;;  %v6186_v1 = vld [vmem:[%s8222_s6 + $0x440] sm:$0xff] }
 0x381   : > { %v3247_v62 = vsel %vm3224_vm1, %v3245_v26, %v3246_v20  ;;  %v3249_v31 = vsel %vm3224_vm1, %v3246_v20, %v3248_v3  ;;  %v3790_v36 = vpop.f32.mrf.mxu0  ;;  %4206 = vmatpush.bf16.msra.mxu1 %v6186_v1 }
 0x382   : > { %v7696_v32 = vadd.f32 %v3247_v62, %v2085_v21  ;;  %v7699_v50 = vadd.f32 %v3249_v31, %v7039_v0  ;;  %v2994_v10 = vadd.f32 %v2993_v18, %v2905_v61  ;;  %v6362_v18 = vld [vmem:[%s6742_s21 + $0x78] sm:$0xff] }
 0x383   : > { %v3879_v34 = vpop.f32.mrf.mxu1 }
 0x384   : > { %v7704_v38 = vadd.f32 %v3879_v34, %v3790_v36  ;;  %v3095_v25 = vrot.slane %v2994_v10, 7  ;;  %v8313_v34 = vrot.slane %v7044_v4, 7 }
 0x386   : > { %v3165_v3 = vsel %vm2000_vm0, 0.0, %v3095_v25 }
 0x387   : > { %v2906_v16 = vpop.f32.mrf.mxu2 }
 0x388   : > { %v2995_v9 = vpop.f32.mrf.mxu3  ;;  %v2907_v40 = vadd.f32 %v2906_v16, %v7384_v59  ;;  %v3250_v59 = vrot.slane %v3165_v3, 1 }
 0x389   : > { %v3793_v26 = vpop.f32.mrf.mxu0 }
 0x38a   : > { %v2996_v23 = vadd.f32 %v2995_v9, %v2907_v40 }
 0x38b   : > { %v3882_v0 = vpop.f32.mrf.mxu1 }
 0x38c   : > { %v7707_v20 = vadd.f32 %v3882_v0, %v3793_v26  ;;  %v3096_v52 = vrot.slane %v2996_v23, 7  ;;  %2948 = vmatmul.bf16.gmra.mxu2 %v6361_v8  ;;  %3832 = vmatmul.bf16.gmra.mxu0 %v7353_v15  ;;  %v2086_v8 = vsel %vm2000_vm0, 0.0, %v8313_v34 }
 0x38d   : > { %3037 = vmatmul.bf16.gmra.mxu3 %v6362_v18 }
 0x38e   : > { %3921 = vmatmul.bf16.gmra.mxu1 %v7373_v47  ;;  %v3097_v61 = vsel %vm2000_vm0, %v3095_v25, %v3096_v52  ;;  %v3181_v49 = vsel %vm2000_vm0, %v3096_v52, 0.0 }
 0x38f   : > { %v3251_v21 = vrot.slane %v3097_v61, 1  ;;  %v3253_v62 = vrot.slane %v3181_v49, 1  ;;  %v2909_v31 = vpop.f32.mrf.mxu2 }
 0x390   : > { %v2998_v10 = vpop.f32.mrf.mxu3  ;;  %v2910_v36 = vadd.f32 %v2909_v31, %v7397_v37 }
 0x391   : > { %v3252_v1 = vsel %vm3224_vm1, %v3250_v59, %v3251_v21  ;;  %v3254_v15 = vsel %vm3224_vm1, %v3251_v21, %v3253_v62  ;;  %v3795_v40 = vpop.f32.mrf.mxu0 }
 0x392   : > { %v7721_v16 = vadd.f32 %v3252_v1, %v2086_v8  ;;  %v7724_v9 = vadd.f32 %v3254_v15, %v7056_v46  ;;  %v2999_v25 = vadd.f32 %v2998_v10, %v2910_v36  ;;  %v8314_v15 = vrot.slane %v7064_v44, 7 }
 0x393   : > { %v3884_v23 = vpop.f32.mrf.mxu1 }
 0x394   : > { %v7726_v26 = vadd.f32 %v3884_v23, %v3795_v40  ;;  %v3098_v3 = vrot.slane %v2999_v25, 7 }
 0x396   : > { %v3166_v21 = vsel %vm2000_vm0, 0.0, %v3098_v3 }
 0x397   : > { %v2911_v0 = vpop.f32.mrf.mxu2 }
 0x398   : > { %v3000_v37 = vpop.f32.mrf.mxu3  ;;  %v2912_v4 = vadd.f32 %v2911_v0, %v7404_v60  ;;  %v3255_v60 = vrot.slane %v3166_v21, 1 }
 0x399   : > { %v3798_v61 = vpop.f32.mrf.mxu0 }
 0x39a   : > { %v3001_v52 = vadd.f32 %v3000_v37, %v2912_v4 }
 0x39b   : > { %v3887_v49 = vpop.f32.mrf.mxu1 }
 0x39c   : > { %v7729_v59 = vadd.f32 %v3887_v49, %v3798_v61  ;;  %v3099_v62 = vrot.slane %v3001_v52, 7  ;;  %2953 = vmatmul.bf16.gmra.mxu2 %v6362_v18  ;;  %3837 = vmatmul.bf16.gmra.mxu0 %v7373_v47  ;;  %v2087_v18 = vsel %vm2000_vm0, 0.0, %v8314_v15  ;;  %v8315_v52 = vld [vmem:[#allocation22_spill] sm:$0xff] }
 0x39d   : > { %3042 = vmatmul.bf16.gmra.mxu3 %v6560_v22 }
 0x39e   : > { %3926 = vmatmul.bf16.gmra.mxu1 %v7387_v30  ;;  %v3100_v46 = vsel %vm2000_vm0, %v3098_v3, %v3099_v62  ;;  %v3182_v31 = vsel %vm2000_vm0, %v3099_v62, 0.0 }
 0x39f   : > { %v3256_v10 = vrot.slane %v3100_v46, 1  ;;  %v3258_v36 = vrot.slane %v3182_v31, 1  ;;  %v2914_v34 = vpop.f32.mrf.mxu2 }
 0x3a0   : > { %v3003_v8 = vpop.f32.mrf.mxu3  ;;  %v2915_v1 = vadd.f32 %v2914_v34, %v7408_v17 }
 0x3a1   : > { %v3257_v25 = vsel %vm3224_vm1, %v3255_v60, %v3256_v10  ;;  %v3259_v47 = vsel %vm3224_vm1, %v3256_v10, %v3258_v36  ;;  %v3800_v0 = vpop.f32.mrf.mxu0  ;;  %v8316_v10 = vld [vmem:[#allocation7_spill] sm:$0xff] }
 0x3a2   : > { %v7743_v30 = vadd.f32 %v3257_v25, %v2087_v18  ;;  %v7746_v40 = vadd.f32 %v3259_v47, %v7078_v5  ;;  %v3004_v23 = vadd.f32 %v3003_v8, %v2915_v1  ;;  %v6363_v5 = vld [vmem:[%s6546_s23 + $0x8] sm:$0xff] }
 0x3a3   : > { %v3889_v37 = vpop.f32.mrf.mxu1  ;;  %v8317_v36 = vld [vmem:[#allocation3_spill] sm:$0xff] }
 0x3a4   : > { %v7748_v3 = vadd.f32 %v3889_v37, %v3800_v0  ;;  %v3101_v44 = vrot.slane %v3004_v23, 7  ;;  %v8318_v23 = vld [vmem:[#allocation23_spill] sm:$0xff]  ;;  %v8319_v37 = vld [vmem:[#allocation8_spill] sm:$0xff] }
 0x3a6   : > { %v3167_v31 = vsel %vm2000_vm0, 0.0, %v3101_v44 }
 0x3a7   : > { %v2916_v17 = vpop.f32.mrf.mxu2  ;;  %v3260_v1 = vrot.slane %v3167_v31, 1 }
 0x3a8   : > { %v3005_v4 = vpop.f32.mrf.mxu3  ;;  %v2917_v61 = vadd.f32 %v2916_v17, %v8315_v52  ;;  %v8320_v17 = vrot.slane %v8319_v37, 7 }
 0x3a9   : > { %v3803_v21 = vpop.f32.mrf.mxu0 }
 0x3aa   : > { %v3006_v49 = vadd.f32 %v3005_v4, %v2917_v61  ;;  %v2088_v4 = vsel %vm2000_vm0, 0.0, %v8320_v17 }
 0x3ab   : > { %v3892_v62 = vpop.f32.mrf.mxu1 }
 0x3ac   : > { %v7751_v46 = vadd.f32 %v3892_v62, %v3803_v21  ;;  %v3102_v60 = vrot.slane %v3006_v49, 7  ;;  %3940 = vmatmul.bf16.vlgmr.msra.gmra.mxu2 %v6363_v5  ;;  %4118 = vmatmul.bf16.vlgmr.msra.gmra.mxu0 %v8316_v10 }
 0x3ad   : > { %4029 = vmatmul.bf16.vlgmr.msra.gmra.mxu3 %v6560_v22 }
 0x3ae   : > { %4207 = vmatmul.bf16.vlgmr.msra.gmra.mxu1 %v8317_v36  ;;  %v3103_v34 = vsel %vm2000_vm0, %v3101_v44, %v3102_v60  ;;  %v3183_v8 = vsel %vm2000_vm0, %v3102_v60, 0.0  ;;  %v8321_v44 = vld [vmem:[#allocation9_spill] sm:$0xff] }
 0x3af   : > { %v3261_v15 = vrot.slane %v3103_v34, 1  ;;  %v3263_v18 = vrot.slane %v3183_v8, 1  ;;  %v2919_v25 = vpop.f32.mrf.mxu2 }
 0x3b0   : > { %v3008_v47 = vpop.f32.mrf.mxu3  ;;  %v2920_v0 = vadd.f32 %v2919_v25, %v8318_v23 }
 0x3b1   : > { %v3262_v52 = vsel %vm3224_vm1, %v3260_v1, %v3261_v15  ;;  %v3264_v61 = vsel %vm3224_vm1, %v3261_v15, %v3263_v18  ;;  %v3805_v31 = vpop.f32.mrf.mxu0 }
 0x3b2   : > { %v7766_v49 = vadd.f32 %v3262_v52, %v2088_v4  ;;  %v7769_v21 = vadd.f32 %v3264_v61, %v8321_v44  ;;  %v3009_v62 = vadd.f32 %v3008_v47, %v2920_v0  ;;  %v6364_v52 = vld [vmem:[%s6546_s23 + $0x10] sm:$0xff] }
 0x3b3   : > { %v3894_v60 = vpop.f32.mrf.mxu1 }
 0x3b4   : > { %8322 = vst [vmem:[#allocation22_spill] sm:$0xff] %v7769_v21  ;;  %v7771_v5 = vadd.f32 %v3894_v60, %v3805_v31  ;;  %v3104_v25 = vrot.slane %v3009_v62, 7  ;;  %v8325_v60 = vld [vmem:[#allocation24_spill] sm:$0xff] }
 0x3b6   : > { %8323 = vst [vmem:[#allocation7_spill] sm:$0xff] %v7771_v5  ;;  %v3168_v18 = vsel %vm2000_vm0, 0.0, %v3104_v25 }
 0x3b7   : > { %v2921_v34 = vpop.f32.mrf.mxu2  ;;  %v3265_v0 = vrot.slane %v3168_v18, 1 }
 0x3b8   : > { %v3010_v8 = vpop.f32.mrf.mxu3  ;;  %v2922_v23 = vadd.f32 %v2921_v34, %v7441_v41 }
 0x3b9   : > { %v3808_v1 = vpop.f32.mrf.mxu0 }
 0x3ba   : > { %v3011_v37 = vadd.f32 %v3010_v8, %v2922_v23  ;;  %v8326_v8 = vld [vmem:[#allocation10_spill] sm:$0xff] }
 0x3bb   : > { %v3897_v17 = vpop.f32.mrf.mxu1  ;;  %v8327_v23 = vrot.slane %v8326_v8, 7 }
 0x3bc   : > { %v7774_v15 = vadd.f32 %v3897_v17, %v3808_v1  ;;  %v3105_v4 = vrot.slane %v3011_v37, 7  ;;  %3945 = vmatmul.bf16.gmra.mxu2 %v6364_v52  ;;  %4123 = vmatmul.bf16.gmra.mxu0 %v8317_v36 }
 0x3bd   : > { %4034 = vmatmul.bf16.gmra.mxu3 %v8316_v10  ;;  %v2089_v37 = vsel %vm2000_vm0, 0.0, %v8327_v23 }
 0x3be   : > { %8324 = vst [vmem:[#allocation3_spill] sm:$0xff] %v7774_v15  ;;  %4212 = vmatmul.bf16.gmra.mxu1 %v7438_v29  ;;  %v3106_v47 = vsel %vm2000_vm0, %v3104_v25, %v3105_v4  ;;  %v3184_v41 = vsel %vm2000_vm0, %v3105_v4, 0.0  ;;  %v8328_v25 = vld [vmem:[#allocation11_spill] sm:$0xff]  ;;  %v8331_v15 = vld [vmem:[#allocation26_spill] sm:$0xff] }
 0x3bf   : > { %v3266_v61 = vrot.slane %v3106_v47, 1  ;;  %v3268_v44 = vrot.slane %v3184_v41, 1  ;;  %v2924_v62 = vpop.f32.mrf.mxu2 }
 0x3c0   : > { %v3013_v31 = vpop.f32.mrf.mxu3  ;;  %v2925_v34 = vadd.f32 %v2924_v62, %v8325_v60 }
 0x3c1   : > { %v3267_v10 = vsel %vm3224_vm1, %v3265_v0, %v3266_v61  ;;  %v3269_v1 = vsel %vm3224_vm1, %v3266_v61, %v3268_v44  ;;  %v3810_v52 = vpop.f32.mrf.mxu0 }
 0x3c2   : > { %v7789_v17 = vadd.f32 %v3267_v10, %v2089_v37  ;;  %v7792_v4 = vadd.f32 %v3269_v1, %v8328_v25  ;;  %v3014_v18 = vadd.f32 %v3013_v31, %v2925_v34  ;;  %v6365_v10 = vld [vmem:[%s6546_s23 + $0x18] sm:$0xff] }
 0x3c3   : > { %v3899_v47 = vpop.f32.mrf.mxu1  ;;  %v8333_v31 = vld [vmem:[#allocation25_spill] sm:$0xff] }
 0x3c4   : > { %8329 = vst [vmem:[#allocation23_spill] sm:$0xff] %v7792_v4  ;;  %v7794_v41 = vadd.f32 %v3899_v47, %v3810_v52  ;;  %v3107_v8 = vrot.slane %v3014_v18, 7  ;;  %v8334_v47 = vld [vmem:[#allocation27_spill] sm:$0xff] }
 0x3c6   : > { %8330 = vst [vmem:[#allocation8_spill] sm:$0xff] %v7794_v41  ;;  %v3169_v44 = vsel %vm2000_vm0, 0.0, %v3107_v8 }
 0x3c7   : > { %v2926_v62 = vpop.f32.mrf.mxu2  ;;  %v3270_v1 = vrot.slane %v3169_v44, 1 }
 0x3c8   : > { %v3015_v60 = vpop.f32.mrf.mxu3  ;;  %v2927_v23 = vadd.f32 %v2926_v62, %v8331_v15 }
 0x3c9   : > { %v3813_v0 = vpop.f32.mrf.mxu0 }
 0x3ca   : > { %v3016_v5 = vadd.f32 %v3015_v60, %v2927_v23 }
 0x3cb   : > { %v3902_v21 = vpop.f32.mrf.mxu1 }
 0x3cc   : > { %v7797_v61 = vadd.f32 %v3902_v21, %v3813_v0  ;;  %v3108_v37 = vrot.slane %v3016_v5, 7  ;;  %3950 = vmatmul.bf16.gmra.mxu2 %v6365_v10  ;;  %4128 = vmatmul.bf16.gmra.mxu0 %v7438_v29  ;;  %v8335_v5 = vld [vmem:[#allocation12_spill] sm:$0xff] }
 0x3cd   : > { %4039 = vmatmul.bf16.gmra.mxu3 %v8317_v36  ;;  %v8336_v60 = vrot.slane %v8335_v5, 7 }
 0x3ce   : > { %8332 = vst [vmem:[#allocation9_spill] sm:$0xff] %v7797_v61  ;;  %4217 = vmatmul.bf16.gmra.mxu1 %v8333_v31  ;;  %v3109_v34 = vsel %vm2000_vm0, %v3107_v8, %v3108_v37  ;;  %v3185_v15 = vsel %vm2000_vm0, %v3108_v37, 0.0  ;;  %v8337_v8 = vld [vmem:[#allocation13_spill] sm:$0xff] }
 0x3cf   : > { %v3271_v25 = vrot.slane %v3109_v34, 1  ;;  %v3273_v18 = vrot.slane %v3185_v15, 1  ;;  %v2929_v21 = vpop.f32.mrf.mxu2  ;;  %v2090_v23 = vsel %vm2000_vm0, 0.0, %v8336_v60 }
 0x3d0   : > { %v3018_v52 = vpop.f32.mrf.mxu3  ;;  %v2930_v62 = vadd.f32 %v2929_v21, %v8334_v47 }
 0x3d1   : > { %v3272_v36 = vsel %vm3224_vm1, %v3270_v1, %v3271_v25  ;;  %v3274_v0 = vsel %vm3224_vm1, %v3271_v25, %v3273_v18  ;;  %v3815_v34 = vpop.f32.mrf.mxu0 }
 0x3d2   : > { %v7812_v10 = vadd.f32 %v3272_v36, %v2090_v23  ;;  %v7815_v37 = vadd.f32 %v3274_v0, %v8337_v8  ;;  %v3019_v44 = vadd.f32 %v3018_v52, %v2930_v62  ;;  %v6366_v36 = vld [vmem:[%s6546_s23 + $0x20] sm:$0xff] }
 0x3d3   : > { %v3904_v15 = vpop.f32.mrf.mxu1 }
 0x3d4   : > { %v7817_v61 = vadd.f32 %v3904_v15, %v3815_v34  ;;  %v3110_v5 = vrot.slane %v3019_v44, 7  ;;  %v8339_v34 = vld [vmem:[#allocation28_spill] sm:$0xff] }
 0x3d6   : > { %v3170_v18 = vsel %vm2000_vm0, 0.0, %v3110_v5 }
 0x3d7   : > { %v2931_v21 = vpop.f32.mrf.mxu2  ;;  %v3275_v62 = vrot.slane %v3170_v18, 1 }
 0x3d8   : > { %v3020_v47 = vpop.f32.mrf.mxu3  ;;  %v2932_v60 = vadd.f32 %v2931_v21, %v7475_v55 }
 0x3d9   : > { %v3818_v1 = vpop.f32.mrf.mxu0 }
 0x3da   : > { %v3021_v41 = vadd.f32 %v3020_v47, %v2932_v60 }
 0x3db   : > { %v3907_v4 = vpop.f32.mrf.mxu1 }
 0x3dc   : > { %v7820_v25 = vadd.f32 %v3907_v4, %v3818_v1  ;;  %v3111_v23 = vrot.slane %v3021_v41, 7  ;;  %3955 = vmatmul.bf16.gmra.mxu2 %v6366_v36  ;;  %4133 = vmatmul.bf16.gmra.mxu0 %v8333_v31  ;;  %v8340_v41 = vld [vmem:[#allocation14_spill] sm:$0xff] }
 0x3dd   : > { %4044 = vmatmul.bf16.gmra.mxu3 %v7438_v29  ;;  %v8341_v21 = vrot.slane %v8340_v41, 7  ;;  %v8345_v41 = vld [vmem:[#allocation30_spill] sm:$0xff] }
 0x3de   : > { %8338 = vst [vmem:[#allocation24_spill] sm:$0xff] %v7820_v25  ;;  %4222 = vmatmul.bf16.gmra.mxu1 %v7472_v42  ;;  %v3112_v52 = vsel %vm2000_vm0, %v3110_v5, %v3111_v23  ;;  %v3186_v55 = vsel %vm2000_vm0, %v3111_v23, 0.0  ;;  %v8342_v5 = vld [vmem:[#allocation15_spill] sm:$0xff] }
 0x3df   : > { %v3276_v0 = vrot.slane %v3112_v52, 1  ;;  %v3278_v8 = vrot.slane %v3186_v55, 1  ;;  %v2934_v4 = vpop.f32.mrf.mxu2  ;;  %v2091_v47 = vsel %vm2000_vm0, 0.0, %v8341_v21 }
 0x3e0   : > { %v3023_v44 = vpop.f32.mrf.mxu3  ;;  %v2935_v15 = vadd.f32 %v2934_v4, %v8339_v34 }
 0x3e1   : > { %v3277_v29 = vsel %vm3224_vm1, %v3275_v62, %v3276_v0  ;;  %v3279_v31 = vsel %vm3224_vm1, %v3276_v0, %v3278_v8  ;;  %v3820_v23 = vpop.f32.mrf.mxu0 }
 0x3e2   : > { %v7835_v60 = vadd.f32 %v3277_v29, %v2091_v47  ;;  %v7838_v1 = vadd.f32 %v3279_v31, %v8342_v5  ;;  %v3024_v18 = vadd.f32 %v3023_v44, %v2935_v15  ;;  %v6367_v31 = vld [vmem:[%s6546_s23 + $0x28] sm:$0xff]  ;;  %v6368_v44 = vld [vmem:[%s6742_s21 + $0x18] sm:$0xff] }
 0x3e3   : > { %v3909_v36 = vpop.f32.mrf.mxu1  ;;  %v8347_v15 = vld [vmem:[#allocation29_spill] sm:$0xff] }
 0x3e4   : > { %8343 = vst [vmem:[#allocation10_spill] sm:$0xff] %v7838_v1  ;;  %v7840_v52 = vadd.f32 %v3909_v36, %v3820_v23  ;;  %v3113_v34 = vrot.slane %v3024_v18, 7 }
 0x3e6   : > { %8344 = vst [vmem:[#allocation11_spill] sm:$0xff] %v7840_v52  ;;  %v3171_v47 = vsel %vm2000_vm0, 0.0, %v3113_v34 }
 0x3e7   : > { %v2936_v55 = vpop.f32.mrf.mxu2  ;;  %v3280_v23 = vrot.slane %v3171_v47, 1 }
 0x3e8   : > { %v3025_v4 = vpop.f32.mrf.mxu3  ;;  %v2937_v21 = vadd.f32 %v2936_v55, %v8345_v41  ;;  %v8348_v41 = vld [vmem:[#allocation31_spill] sm:$0xff] }
 0x3e9   : > { %v3823_v25 = vpop.f32.mrf.mxu0 }
 0x3ea   : > { %v3026_v62 = vadd.f32 %v3025_v4, %v2937_v21 }
 0x3eb   : > { %v3912_v0 = vpop.f32.mrf.mxu1 }
 0x3ec   : > { %v7843_v8 = vadd.f32 %v3912_v0, %v3823_v25  ;;  %v3114_v29 = vrot.slane %v3026_v62, 7  ;;  %3960 = vmatmul.bf16.gmra.mxu2 %v6367_v31  ;;  %4138 = vmatmul.bf16.gmra.mxu0 %v7472_v42  ;;  %v8349_v62 = vld [vmem:[#allocation16_spill] sm:$0xff] }
 0x3ed   : > { %4049 = vmatmul.bf16.gmra.mxu3 %v6368_v44  ;;  %v8350_v0 = vrot.slane %v8349_v62, 7 }
 0x3ee   : > { %8346 = vst [vmem:[#allocation26_spill] sm:$0xff] %v7843_v8  ;;  %4227 = vmatmul.bf16.gmra.mxu1 %v8347_v15  ;;  %v3115_v5 = vsel %vm2000_vm0, %v3113_v34, %v3114_v29  ;;  %v3187_v18 = vsel %vm2000_vm0, %v3114_v29, 0.0  ;;  %v8351_v34 = vld [vmem:[#allocation17_spill] sm:$0xff] }
 0x3ef   : > { %v3281_v36 = vrot.slane %v3115_v5, 1  ;;  %v3283_v55 = vrot.slane %v3187_v18, 1  ;;  %v2939_v25 = vpop.f32.mrf.mxu2  ;;  %v2092_v31 = vsel %vm2000_vm0, 0.0, %v8350_v0 }
 0x3f0   : > { %v3028_v4 = vpop.f32.mrf.mxu3  ;;  %v2940_v21 = vadd.f32 %v2939_v25, %v8348_v41 }
 0x3f1   : > { %v3282_v44 = vsel %vm3224_vm1, %v3280_v23, %v3281_v36  ;;  %v3284_v42 = vsel %vm3224_vm1, %v3281_v36, %v3283_v55  ;;  %v3825_v5 = vpop.f32.mrf.mxu0 }
 0x3f2   : > { %v7858_v8 = vadd.f32 %v3282_v44, %v2092_v31  ;;  %v7861_v29 = vadd.f32 %v3284_v42, %v8351_v34  ;;  %v3029_v47 = vadd.f32 %v3028_v4, %v2940_v21  ;;  %v6369_v42 = vld [vmem:[%s6546_s23 + $0x30] sm:$0xff]  ;;  %v6370_v4 = vld [vmem:[%s6742_s21 + $0x20] sm:$0xff] }
 0x3f3   : > { %v3914_v18 = vpop.f32.mrf.mxu1 }
 0x3f4   : > { %v7863_v52 = vadd.f32 %v3914_v18, %v3825_v5  ;;  %v3116_v62 = vrot.slane %v3029_v47, 7 }
 0x3f6   : > { %8352 = vst [vmem:[#allocation25_spill] sm:$0xff] %v7863_v52  ;;  %v3172_v31 = vsel %vm2000_vm0, 0.0, %v3116_v62 }
 0x3f7   : > { %v2941_v25 = vpop.f32.mrf.mxu2  ;;  %v3285_v34 = vrot.slane %v3172_v31, 1 }
 0x3f8   : > { %v3030_v41 = vpop.f32.mrf.mxu3  ;;  %v2942_v0 = vadd.f32 %v2941_v25, %v7509_v27  ;;  %v8354_v25 = vld [vmem:[#allocation32_spill] sm:$0xff] }
 0x3f9   : > { %v3828_v1 = vpop.f32.mrf.mxu0 }
 0x3fa   : > { %v3031_v23 = vadd.f32 %v3030_v41, %v2942_v0  ;;  %v8355_v0 = vld [vmem:[#allocation18_spill] sm:$0xff] }
 0x3fb   : > { %v3917_v36 = vpop.f32.mrf.mxu1 }
 0x3fc   : > { %v7866_v55 = vadd.f32 %v3917_v36, %v3828_v1  ;;  %v3117_v44 = vrot.slane %v3031_v23, 7  ;;  %3965 = vmatmul.bf16.gmra.mxu2 %v6369_v42  ;;  %4143 = vmatmul.bf16.gmra.mxu0 %v8347_v15  ;;  %v8356_v23 = vrot.slane %v8355_v0, 7 }
 0x3fd   : > { %4054 = vmatmul.bf16.gmra.mxu3 %v6370_v4 }
 0x3fe   : > { %8353 = vst [vmem:[#allocation27_spill] sm:$0xff] %v7866_v55  ;;  %4232 = vmatmul.bf16.gmra.mxu1 %v7506_v54  ;;  %v3118_v21 = vsel %vm2000_vm0, %v3116_v62, %v3117_v44  ;;  %v3188_v27 = vsel %vm2000_vm0, %v3117_v44, 0.0  ;;  %v2093_v36 = vsel %vm2000_vm0, 0.0, %v8356_v23  ;;  %v8358_v62 = vld [vmem:[#allocation19_spill] sm:$0xff]  ;;  %v8361_v23 = vld [vmem:[#allocation33_spill] sm:$0xff] }
 0x3ff   : > { %v3286_v47 = vrot.slane %v3118_v21, 1  ;;  %v3288_v5 = vrot.slane %v3188_v27, 1  ;;  %v2944_v1 = vpop.f32.mrf.mxu2 }
 0x400   : > { %v3033_v18 = vpop.f32.mrf.mxu3  ;;  %v2945_v41 = vadd.f32 %v2944_v1, %v8354_v25 }
 0x401   : > { %v3287_v42 = vsel %vm3224_vm1, %v3285_v34, %v3286_v47  ;;  %v3289_v15 = vsel %vm3224_vm1, %v3286_v47, %v3288_v5  ;;  %v3830_v4 = vpop.f32.mrf.mxu0 }
 0x402   : > { %v7881_v54 = vadd.f32 %v3287_v42, %v2093_v36  ;;  %v7884_v44 = vadd.f32 %v3289_v15, %v8358_v62  ;;  %v3034_v31 = vadd.f32 %v3033_v18, %v2945_v41  ;;  %v6371_v18 = vld [vmem:[%s6546_s23 + $0x38] sm:$0xff]  ;;  %v6372_v41 = vld [vmem:[%s6742_s21 + $0x28] sm:$0xff]  ;;  %v6373_v62 = vld [vmem:[%s6742_s21 + $0x30] sm:$0xff] }
 0x403   : > { %v3919_v21 = vpop.f32.mrf.mxu1 }
 0x404   : > { %8357 = vst [vmem:[#allocation12_spill] sm:$0xff] %v7881_v54  ;;  %v7886_v27 = vadd.f32 %v3919_v21, %v3830_v4  ;;  %v3119_v0 = vrot.slane %v3034_v31, 7 }
 0x405   : > { %8359 = vst [vmem:[#allocation13_spill] sm:$0xff] %v7884_v44 }
 0x406   : > { %8360 = vst [vmem:[#allocation28_spill] sm:$0xff] %v7886_v27  ;;  %v3173_v42 = vsel %vm2000_vm0, 0.0, %v3119_v0 }
 0x407   : > { %v2946_v1 = vpop.f32.mrf.mxu2  ;;  %v3290_v21 = vrot.slane %v3173_v42, 1 }
 0x408   : > { %v3035_v25 = vpop.f32.mrf.mxu3  ;;  %v2947_v34 = vadd.f32 %v2946_v1, %v8361_v23 }
 0x409   : > { %v3833_v47 = vpop.f32.mrf.mxu0 }
 0x40a   : > { %v3036_v55 = vadd.f32 %v3035_v25, %v2947_v34 }
 0x40b   : > { %v3922_v5 = vpop.f32.mrf.mxu1 }
 0x40c   : > { %v7889_v36 = vadd.f32 %v3922_v5, %v3833_v47  ;;  %v3120_v15 = vrot.slane %v3036_v55, 7  ;;  %3970 = vmatmul.bf16.gmra.mxu2 %v6371_v18  ;;  %4148 = vmatmul.bf16.gmra.mxu0 %v6373_v62  ;;  %v8363_v47 = vld [vmem:[#allocation34_spill] sm:$0xff]  ;;  %v8364_v55 = vld [vmem:[#allocation20_spill] sm:$0xff] }
 0x40d   : > { %4059 = vmatmul.bf16.gmra.mxu3 %v6372_v41 }
 0x40e   : > { %8362 = vst [vmem:[#allocation14_spill] sm:$0xff] %v7889_v36  ;;  %4237 = vmatmul.bf16.gmra.mxu1 %v7517_v19  ;;  %v3121_v31 = vsel %vm2000_vm0, %v3119_v0, %v3120_v15  ;;  %v3189_v4 = vsel %vm2000_vm0, %v3120_v15, 0.0  ;;  %v8365_v36 = vrot.slane %v8364_v55, 7  ;;  %v8366_v0 = vld [vmem:[#allocation4_spill] sm:$0xff] }
 0x40f   : > { %v3291_v1 = vrot.slane %v3121_v31, 1  ;;  %v3293_v25 = vrot.slane %v3189_v4, 1  ;;  %v2949_v23 = vpop.f32.mrf.mxu2 }
 0x410   : > { %v3038_v34 = vpop.f32.mrf.mxu3  ;;  %v2950_v5 = vadd.f32 %v2949_v23, %v8363_v47  ;;  %v2094_v18 = vsel %vm2000_vm0, 0.0, %v8365_v36  ;;  %v8369_v36 = vld [vmem:[#allocation35_spill] sm:$0xff] }
 0x411   : > { %v3292_v41 = vsel %vm3224_vm1, %v3290_v21, %v3291_v1  ;;  %v3294_v27 = vsel %vm3224_vm1, %v3291_v1, %v3293_v25  ;;  %v3835_v31 = vpop.f32.mrf.mxu0 }
 0x412   : > { %v7904_v19 = vadd.f32 %v3292_v41, %v2094_v18  ;;  %v7907_v15 = vadd.f32 %v3294_v27, %v8366_v0  ;;  %v3039_v42 = vadd.f32 %v3038_v34, %v2950_v5  ;;  %v6374_v41 = vld [vmem:[%s6546_s23 + $0x40] sm:$0xff]  ;;  %v6375_v34 = vld [vmem:[%s6742_s21 + $0x38] sm:$0xff] }
 0x413   : > { %v3924_v4 = vpop.f32.mrf.mxu1 }
 0x414   : > { %8367 = vst [vmem:[#allocation15_spill] sm:$0xff] %v7907_v15  ;;  %v7909_v44 = vadd.f32 %v3924_v4, %v3835_v31  ;;  %v3122_v55 = vrot.slane %v3039_v42, 7 }
 0x416   : > { %8368 = vst [vmem:[#allocation30_spill] sm:$0xff] %v7909_v44  ;;  %v3174_v18 = vsel %vm2000_vm0, 0.0, %v3122_v55 }
 0x417   : > { %v2951_v23 = vpop.f32.mrf.mxu2  ;;  %v3295_v42 = vrot.slane %v3174_v18, 1 }
 0x418   : > { %v3040_v47 = vpop.f32.mrf.mxu3  ;;  %v2952_v54 = vadd.f32 %v2951_v23, %v8369_v36 }
 0x419   : > { %v3838_v52 = vpop.f32.mrf.mxu0 }
 0x41a   : > { %v3041_v21 = vadd.f32 %v3040_v47, %v2952_v54  ;;  %v8371_v47 = vld [vmem:[#allocation21_spill] sm:$0xff] }
 0x41b   : > { %v3927_v1 = vpop.f32.mrf.mxu1  ;;  %v8372_v36 = vrot.slane %v8371_v47, 7 }
 0x41c   : > { %v7912_v25 = vadd.f32 %v3927_v1, %v3838_v52  ;;  %v3123_v27 = vrot.slane %v3041_v21, 7  ;;  %3975 = vmatmul.bf16.gmra.mxu2 %v6374_v41  ;;  %4153 = vmatmul.bf16.gmra.mxu0 %v6375_v34 }
 0x41d   : > { %4064 = vmatmul.bf16.gmra.mxu3 %v6373_v62  ;;  %v2095_v21 = vsel %vm2000_vm0, 0.0, %v8372_v36 }
 0x41e   : > { %8370 = vst [vmem:[#allocation29_spill] sm:$0xff] %v7912_v25  ;;  %4242 = vmatmul.bf16.gmra.mxu1 %v7537_v2  ;;  %v3124_v5 = vsel %vm2000_vm0, %v3122_v55, %v3123_v27  ;;  %v3190_v0 = vsel %vm2000_vm0, %v3123_v27, 0.0  ;;  %v8374_v55 = vld [vmem:[#allocation5_spill] sm:$0xff] }
 0x41f   : > { %v3296_v54 = vrot.slane %v3124_v5, 1  ;;  %v3298_v31 = vrot.slane %v3190_v0, 1  ;;  %v2954_v4 = vpop.f32.mrf.mxu2 }
 0x420   : > { %v3043_v52 = vpop.f32.mrf.mxu3  ;;  %v2955_v23 = vadd.f32 %v2954_v4, %v7547_v58 }
 0x421   : > { %v3297_v62 = vsel %vm3224_vm1, %v3295_v42, %v3296_v54  ;;  %v3299_v1 = vsel %vm3224_vm1, %v3296_v54, %v3298_v31  ;;  %v3840_v41 = vpop.f32.mrf.mxu0 }
 0x422   : > { %v7926_v2 = vadd.f32 %v3297_v62, %v2095_v21  ;;  %v7929_v27 = vadd.f32 %v3299_v1, %v8374_v55  ;;  %v3044_v18 = vadd.f32 %v3043_v52, %v2955_v23  ;;  %v6376_v1 = vld [vmem:[%s6546_s23 + $0x48] sm:$0xff]  ;;  %v6377_v52 = vld [vmem:[%s6742_s21 + $0x40] sm:$0xff] }
 0x423   : > { %v3929_v5 = vpop.f32.mrf.mxu1  ;;  %v7938_v23 = vld [vmem:[%s6742_s21 + $0x48] sm:$0xff] }
 0x424   : > { %8373 = vst [vmem:[#allocation31_spill] sm:$0xff] %v7926_v2  ;;  %v7931_v58 = vadd.f32 %v3929_v5, %v3840_v41  ;;  %v3125_v47 = vrot.slane %v3044_v18, 7 }
 0x425   : > { %8375 = vst [vmem:[#allocation16_spill] sm:$0xff] %v7929_v27 }
 0x426   : > { %8376 = vst [vmem:[#allocation17_spill] sm:$0xff] %v7931_v58  ;;  %v3175_v21 = vsel %vm2000_vm0, 0.0, %v3125_v47 }
 0x427   : > { %v2956_v0 = vpop.f32.mrf.mxu2 }
 0x428   : > { %v3045_v4 = vpop.f32.mrf.mxu3  ;;  %v2957_v42 = vadd.f32 %v2956_v0, %v7553_v6  ;;  %v3300_v6 = vrot.slane %v3175_v21, 1 }
 0x429   : > { %v4119_v54 = vpop.f32.mrf.mxu0 }
 0x42a   : > { %v3046_v36 = vadd.f32 %v3045_v4, %v2957_v42 }
 0x42b   : > { %v4208_v31 = vpop.f32.mrf.mxu1 }
 0x42c   : > { %v3126_v62 = vrot.slane %v3046_v36, 7  ;;  %3980 = vmatmul.bf16.gmra.mxu2 %v6376_v1  ;;  %4158 = vmatmul.bf16.gmra.mxu0 %v6377_v52  ;;  %v8377_v36 = vld [vmem:[#allocation2_spill] sm:$0xff] }
 0x42d   : > { %4069 = vmatmul.bf16.gmra.mxu3 %v6375_v34  ;;  %v8378_v1 = vrot.slane %v8377_v36, 7 }
 0x42e   : > { %4247 = vmatmul.bf16.gmra.mxu1 %v7938_v23  ;;  %v3127_v55 = vsel %vm2000_vm0, %v3125_v47, %v3126_v62  ;;  %v3191_v18 = vsel %vm2000_vm0, %v3126_v62, 0.0  ;;  %v8379_v47 = vld [vmem:[#allocation6_spill] sm:$0xff] }
 0x42f   : > { %v3301_v41 = vrot.slane %v3127_v55, 1  ;;  %v3303_v5 = vrot.slane %v3191_v18, 1  ;;  %v3941_v0 = vpop.f32.mrf.mxu2  ;;  %v2096_v34 = vsel %vm2000_vm0, 0.0, %v8378_v1 }
 0x430   : > { %v4030_v4 = vpop.f32.mrf.mxu3  ;;  %v3942_v42 = vadd.f32 %v3941_v0, %v7549_v48 }
 0x431   : > { %v3302_v58 = vsel %vm3224_vm1, %v3300_v6, %v3301_v41  ;;  %v3304_v27 = vsel %vm3224_vm1, %v3301_v41, %v3303_v5  ;;  %v4121_v55 = vpop.f32.mrf.mxu0 }
 0x432   : > { %v7949_v2 = vadd.f32 %v3302_v58, %v2096_v34  ;;  %v7952_v62 = vadd.f32 %v3304_v27, %v8379_v47  ;;  %v4031_v21 = vadd.f32 %v4030_v4, %v3942_v42  ;;  %v6379_v58 = vld [vmem:[%s6546_s23 + $0x50] sm:$0xff] }
 0x433   : > { %v4210_v18 = vpop.f32.mrf.mxu1  ;;  %v7958_v27 = vld [vmem:[%s6742_s21 + $0x50] sm:$0xff] }
 0x434   : > { %v4120_v25 = vadd.f32 %v4119_v54, %v4031_v21 }
 0x436   : > { %v4209_v36 = vadd.f32 %v4208_v31, %v4120_v25  ;;  %v8380_v31 = vld [vmem:[#allocation36_spill] sm:$0xff] }
 0x437   : > { %v3943_v48 = vpop.f32.mrf.mxu2 }
 0x438   : > { %v4032_v0 = vpop.f32.mrf.mxu3  ;;  %v3944_v1 = vadd.f32 %v3943_v48, %v7564_v11  ;;  %v4320_v41 = vrot.slane %v4209_v36, 7 }
 0x439   : > { %v4124_v6 = vpop.f32.mrf.mxu0 }
 0x43a   : > { %v4033_v44 = vadd.f32 %v4032_v0, %v3944_v1  ;;  %v4400_v25 = vsel %vm2000_vm0, 0.0, %v4320_v41 }
 0x43b   : > { %v4213_v15 = vpop.f32.mrf.mxu1  ;;  %v4465_v48 = vrot.slane %v4400_v25, 2 }
 0x43c   : > { %v4122_v5 = vadd.f32 %v4121_v55, %v4033_v44  ;;  %3985 = vmatmul.bf16.gmra.mxu2 %v6379_v58  ;;  %4163 = vmatmul.bf16.gmra.mxu0 %v7938_v23 }
 0x43d   : > { %4074 = vmatmul.bf16.gmra.mxu3 %v6377_v52 }
 0x43e   : > { %4252 = vmatmul.bf16.gmra.mxu1 %v7958_v27  ;;  %v4211_v54 = vadd.f32 %v4210_v18, %v4122_v5  ;;  %v7968_v18 = vld [vmem:[%s8223_s7] ss:$0 sm:$0xff] }
 0x43f   : > { %v3946_v4 = vpop.f32.mrf.mxu2 }
 0x440   : > { %v4035_v42 = vpop.f32.mrf.mxu3  ;;  %v4321_v11 = vrot.slane %v4211_v54, 7  ;;  %v3947_v34 = vadd.f32 %v3946_v4, %v8380_v31 }
 0x441   : > { %v4126_v21 = vpop.f32.mrf.mxu0 }
 0x442   : > { %v4322_v47 = vsel %vm2000_vm0, %v4320_v41, %v4321_v11  ;;  %v4416_v44 = vsel %vm2000_vm0, %v4321_v11, 0.0  ;;  %v4036_v52 = vadd.f32 %v4035_v42, %v3947_v34 }
 0x443   : > { %v4215_v55 = vpop.f32.mrf.mxu1  ;;  %v4466_v0 = vrot.slane %v4322_v47, 2  ;;  %v4468_v36 = vrot.slane %v4416_v44, 2 }
 0x444   : > { %v4125_v41 = vadd.f32 %v4124_v6, %v4036_v52 }
 0x445   : > { %v4467_v1 = vsel %vm4464_vm2, %v4465_v48, %v4466_v0  ;;  %v4469_v5 = vsel %vm4464_vm2, %v4466_v0, %v4468_v36  ;;  %v6381_v36 = vld [vmem:[%s6546_s23 + $0x58] sm:$0xff] }
 0x446   : > { %v4577_v58 = vadd.f32 %v4467_v1, %v7584_v12  ;;  %v4578_v54 = vadd.f32 %v4469_v5, %v7587_v7  ;;  %v4214_v6 = vadd.f32 %v4213_v15, %v4125_v41  ;;  %v7988_v5 = vld [vmem:[%s6742_s21 + $0x58] sm:$0xff] }
 0x447   : > { %v3948_v4 = vpop.f32.mrf.mxu2 }
 0x448   : > { %v4037_v42 = vpop.f32.mrf.mxu3  ;;  %v4613_v25 = vadd.f32 %v7968_v18, %v4577_v58  ;;  %v4614_v11 = vadd.f32 %v7968_v18, %v4578_v54  ;;  %v3949_v31 = vadd.f32 %v3948_v4, %v7592_v39  ;;  %v4323_v39 = vrot.slane %v4214_v6, 7 }
 0x449   : > { %v4129_v47 = vpop.f32.mrf.mxu0 }
 0x44a   : > { %v4645_v12 = vpack.c.bf16 %v4613_v25, %v4613_v25  ;;  %v4646_v34 = vpack.c.bf16 %v4614_v11, %v4614_v11  ;;  %v6197_v7 = vpack.c.bf16 %v4614_v11, %v4613_v25  ;;  %v4038_v52 = vadd.f32 %v4037_v42, %v3949_v31 }
 0x44b   : > { %v4218_v44 = vpop.f32.mrf.mxu1  ;;  %v4401_v31 = vsel %vm2000_vm0, 0.0, %v4323_v39 }
 0x44c   : > { %6198 = vst [vmem:[%s7981_s10] sm:$0xff] %v6197_v7   ;;  %v4709_v48 = vunpack.c.l.bf16 %v4645_v12  ;;  %v4710_v0 = vunpack.c.l.bf16 %v4646_v34  ;;  %3990 = vmatmul.bf16.gmra.mxu2 %v6381_v36  ;;  %v4127_v1 = vadd.f32 %v4126_v21, %v4038_v52  ;;  %4168 = vmatmul.bf16.gmra.mxu0 %v7958_v27  ;;  %v4470_v52 = vrot.slane %v4401_v31, 2 }
 0x44d   : > { %4079 = vmatmul.bf16.gmra.mxu3 %v7938_v23 }
 0x44e   : > { %4257 = vmatmul.bf16.gmra.mxu1 %v7988_v5  ;;  %v4741_v15 = vadd.f32 %v4710_v0, %v4709_v48  ;;  %v4778_v41 = vmul.f32 %v4709_v48, %v4709_v48  ;;  %v4779_v58 = vmul.f32 %v4710_v0, %v4710_v0  ;;  %v4216_v54 = vadd.f32 %v4215_v55, %v4127_v1 }
 0x44f   : > { %v3951_v4 = vpop.f32.mrf.mxu2 }
 0x450   : > { %v4040_v42 = vpop.f32.mrf.mxu3  ;;  %v4810_v25 = vadd.f32 %v4779_v58, %v4778_v41  ;;  %v3952_v11 = vadd.f32 %v3951_v4, %v7595_v53  ;;  %v4324_v23 = vrot.slane %v4216_v54, 7 }
 0x451   : > { %v4131_v21 = vpop.f32.mrf.mxu0 }
 0x452   : > { %v4041_v6 = vadd.f32 %v4040_v42, %v3952_v11  ;;  %v4325_v34 = vsel %vm2000_vm0, %v4323_v39, %v4324_v23  ;;  %v4417_v7 = vsel %vm2000_vm0, %v4324_v23, 0.0 }
 0x453   : > { %v4220_v12 = vpop.f32.mrf.mxu1  ;;  %v4471_v36 = vrot.slane %v4325_v34, 2  ;;  %v4473_v48 = vrot.slane %v4417_v7, 2 }
 0x454   : > { %v4130_v0 = vadd.f32 %v4129_v47, %v4041_v6 }
 0x455   : > { %v4472_v55 = vsel %vm4464_vm2, %v4470_v52, %v4471_v36  ;;  %v4474_v1 = vsel %vm4464_vm2, %v4471_v36, %v4473_v48  ;;  %v8007_v36 = vld [vmem:[%s6742_s21 + $0x60] sm:$0xff] }
 0x456   : > { %v4579_v53 = vadd.f32 %v4472_v55, %v7609_v13  ;;  %v4580_v41 = vadd.f32 %v4474_v1, %v7612_v33  ;;  %v4219_v4 = vadd.f32 %v4218_v44, %v4130_v0  ;;  %v6383_v33 = vld [vmem:[%s6546_s23 + $0x60] sm:$0xff] }
 0x457   : > { %v3953_v58 = vpop.f32.mrf.mxu2 }
 0x458   : > { %v4042_v54 = vpop.f32.mrf.mxu3  ;;  %v3954_v39 = vadd.f32 %v3953_v58, %v7620_v35  ;;  %v4615_v42 = vadd.f32 %v7968_v18, %v4579_v53  ;;  %v4616_v11 = vadd.f32 %v7968_v18, %v4580_v41  ;;  %v4326_v7 = vrot.slane %v4219_v4, 7 }
 0x459   : > { %v4134_v31 = vpop.f32.mrf.mxu0 }
 0x45a   : > { %v4043_v47 = vadd.f32 %v4042_v54, %v3954_v39  ;;  %v4647_v6 = vpack.c.bf16 %v4615_v42, %v4615_v42  ;;  %v4648_v34 = vpack.c.bf16 %v4616_v11, %v4616_v11  ;;  %v6202_v13 = vpack.c.bf16 %v4616_v11, %v4615_v42 }
 0x45b   : > { %v4223_v23 = vpop.f32.mrf.mxu1 }
 0x45c   : > { %v4132_v52 = vadd.f32 %v4131_v21, %v4043_v47  ;;  %3995 = vmatmul.bf16.gmra.mxu2 %v6383_v33  ;;  %6274 = vst [vmem:[%s7981_s10 + $0x8] sm:$0xff] %v6202_v13   ;;  %v4711_v44 = vunpack.c.l.bf16 %v4647_v6  ;;  %v4712_v35 = vunpack.c.l.bf16 %v4648_v34  ;;  %4173 = vmatmul.bf16.gmra.mxu0 %v7988_v5  ;;  %v4402_v21 = vsel %vm2000_vm0, 0.0, %v4326_v7 }
 0x45d   : > { %4084 = vmatmul.bf16.gmra.mxu3 %v7958_v27 }
 0x45e   : > { %4262 = vmatmul.bf16.gmra.mxu1 %v8007_v36  ;;  %v4221_v48 = vadd.f32 %v4220_v12, %v4132_v52  ;;  %v4742_v0 = vadd.f32 %v4741_v15, %v4711_v44  ;;  %v4780_v55 = vmul.f32 %v4711_v44, %v4711_v44  ;;  %v4781_v54 = vmul.f32 %v4712_v35, %v4712_v35 }
 0x45f   : > { %v3956_v1 = vpop.f32.mrf.mxu2  ;;  %v4475_v15 = vrot.slane %v4402_v21, 2 }
 0x460   : > { %v4045_v53 = vpop.f32.mrf.mxu3  ;;  %v4327_v41 = vrot.slane %v4221_v48, 7  ;;  %v3957_v58 = vadd.f32 %v3956_v1, %v7626_v28  ;;  %v4743_v27 = vadd.f32 %v4742_v0, %v4712_v35  ;;  %v4811_v4 = vadd.f32 %v4810_v25, %v4780_v55 }
 0x461   : > { %v4136_v47 = vpop.f32.mrf.mxu0 }
 0x462   : > { %v4328_v39 = vsel %vm2000_vm0, %v4326_v7, %v4327_v41  ;;  %v4418_v42 = vsel %vm2000_vm0, %v4327_v41, 0.0  ;;  %v4046_v11 = vadd.f32 %v4045_v53, %v3957_v58  ;;  %v4812_v12 = vadd.f32 %v4811_v4, %v4781_v54  ;;  %v6385_v4 = vld [vmem:[%s6546_s23 + $0x68] sm:$0xff] }
 0x463   : > { %v4225_v6 = vpop.f32.mrf.mxu1  ;;  %v4476_v34 = vrot.slane %v4328_v39, 2  ;;  %v4478_v13 = vrot.slane %v4418_v42, 2 }
 0x464   : > { %v4135_v28 = vadd.f32 %v4134_v31, %v4046_v11 }
 0x465   : > { %v4477_v52 = vsel %vm4464_vm2, %v4475_v15, %v4476_v34  ;;  %v4479_v33 = vsel %vm4464_vm2, %v4476_v34, %v4478_v13 }
 0x466   : > { %v4581_v44 = vadd.f32 %v4477_v52, %v7640_v45  ;;  %v4582_v25 = vadd.f32 %v4479_v33, %v7643_v24  ;;  %v4224_v1 = vadd.f32 %v4223_v23, %v4135_v28 }
 0x467   : > { %v3958_v7 = vpop.f32.mrf.mxu2 }
 0x468   : > { %v4047_v35 = vpop.f32.mrf.mxu3  ;;  %v4617_v48 = vadd.f32 %v7968_v18, %v4581_v44  ;;  %v4618_v0 = vadd.f32 %v7968_v18, %v4582_v25  ;;  %v3959_v55 = vadd.f32 %v3958_v7, %v7648_v51  ;;  %v4329_v39 = vrot.slane %v4224_v1, 7  ;;  %v8026_v51 = vld [vmem:[%s6742_s21 + $0x68] sm:$0xff] }
 0x469   : > { %v4139_v58 = vpop.f32.mrf.mxu0 }
 0x46a   : > { %v4649_v53 = vpack.c.bf16 %v4617_v48, %v4617_v48  ;;  %v4650_v21 = vpack.c.bf16 %v4618_v0, %v4618_v0  ;;  %v6207_v41 = vpack.c.bf16 %v4618_v0, %v4617_v48  ;;  %v4048_v54 = vadd.f32 %v4047_v35, %v3959_v55 }
 0x46b   : > { %v4228_v31 = vpop.f32.mrf.mxu1 }
 0x46c   : > { %6275 = vst [vmem:[%s7981_s10 + $0x10] sm:$0xff] %v6207_v41   ;;  %v4713_v45 = vunpack.c.l.bf16 %v4649_v53  ;;  %v4714_v24 = vunpack.c.l.bf16 %v4650_v21  ;;  %4000 = vmatmul.bf16.gmra.mxu2 %v6385_v4  ;;  %v4137_v42 = vadd.f32 %v4136_v47, %v4048_v54  ;;  %4178 = vmatmul.bf16.gmra.mxu0 %v8007_v36 }
 0x46d   : > { %4089 = vmatmul.bf16.gmra.mxu3 %v7988_v5  ;;  %v4403_v5 = vsel %vm2000_vm0, 0.0, %v4329_v39 }
 0x46e   : > { %4267 = vmatmul.bf16.gmra.mxu1 %v8026_v51  ;;  %v4744_v23 = vadd.f32 %v4743_v27, %v4713_v45  ;;  %v4782_v11 = vmul.f32 %v4713_v45, %v4713_v45  ;;  %v4226_v15 = vadd.f32 %v4225_v6, %v4137_v42  ;;  %v4783_v33 = vmul.f32 %v4714_v24, %v4714_v24 }
 0x46f   : > { %v3961_v34 = vpop.f32.mrf.mxu2  ;;  %v4480_v55 = vrot.slane %v4403_v5, 2 }
 0x470   : > { %v4050_v13 = vpop.f32.mrf.mxu3  ;;  %v4745_v52 = vadd.f32 %v4744_v23, %v4714_v24  ;;  %v4813_v28 = vadd.f32 %v4812_v12, %v4782_v11  ;;  %v3962_v44 = vadd.f32 %v3961_v34, %v7651_v56  ;;  %v4330_v25 = vrot.slane %v4226_v15, 7 }
 0x471   : > { %v4141_v35 = vpop.f32.mrf.mxu0 }
 0x472   : > { %v4814_v47 = vadd.f32 %v4813_v28, %v4783_v33  ;;  %v4051_v7 = vadd.f32 %v4050_v13, %v3962_v44  ;;  %v4331_v0 = vsel %vm2000_vm0, %v4329_v39, %v4330_v25  ;;  %v4419_v27 = vsel %vm2000_vm0, %v4330_v25, 0.0  ;;  %v8045_v28 = vld [vmem:[%s6742_s21 + $0x70] sm:$0xff] }
 0x473   : > { %v4230_v48 = vpop.f32.mrf.mxu1  ;;  %v4481_v6 = vrot.slane %v4331_v0, 2  ;;  %v4483_v1 = vrot.slane %v4419_v27, 2 }
 0x474   : > { %v4140_v53 = vadd.f32 %v4139_v58, %v4051_v7 }
 0x475   : > { %v4482_v21 = vsel %vm4464_vm2, %v4480_v55, %v4481_v6  ;;  %v4484_v12 = vsel %vm4464_vm2, %v4481_v6, %v4483_v1 }
 0x476   : > { %v4583_v56 = vadd.f32 %v4482_v21, %v7665_v57  ;;  %v4584_v41 = vadd.f32 %v4484_v12, %v7668_v14  ;;  %v4229_v24 = vadd.f32 %v4228_v31, %v4140_v53  ;;  %v6387_v14 = vld [vmem:[%s6546_s23 + $0x70] sm:$0xff] }
 0x477   : > { %v3963_v54 = vpop.f32.mrf.mxu2 }
 0x478   : > { %v4052_v45 = vpop.f32.mrf.mxu3  ;;  %v3964_v4 = vadd.f32 %v3963_v54, %v7676_v63  ;;  %v4619_v39 = vadd.f32 %v7968_v18, %v4583_v56  ;;  %v4620_v42 = vadd.f32 %v7968_v18, %v4584_v41  ;;  %v4332_v13 = vrot.slane %v4229_v24, 7 }
 0x479   : > { %v4144_v23 = vpop.f32.mrf.mxu0 }
 0x47a   : > { %v4053_v58 = vadd.f32 %v4052_v45, %v3964_v4  ;;  %v4651_v15 = vpack.c.bf16 %v4619_v39, %v4619_v39  ;;  %v4652_v34 = vpack.c.bf16 %v4620_v42, %v4620_v42  ;;  %v6212_v57 = vpack.c.bf16 %v4620_v42, %v4619_v39 }
 0x47b   : > { %v4233_v11 = vpop.f32.mrf.mxu1 }
 0x47c   : > { %v4142_v33 = vadd.f32 %v4141_v35, %v4053_v58  ;;  %4005 = vmatmul.bf16.gmra.mxu2 %v6387_v14  ;;  %6276 = vst [vmem:[%s7981_s10 + $0x18] sm:$0xff] %v6212_v57   ;;  %v4715_v31 = vunpack.c.l.bf16 %v4651_v15  ;;  %v4716_v63 = vunpack.c.l.bf16 %v4652_v34  ;;  %4183 = vmatmul.bf16.gmra.mxu0 %v8026_v51  ;;  %v4404_v35 = vsel %vm2000_vm0, 0.0, %v4332_v13 }
 0x47d   : > { %4094 = vmatmul.bf16.gmra.mxu3 %v8007_v36 }
 0x47e   : > { %4272 = vmatmul.bf16.gmra.mxu1 %v8045_v28  ;;  %v4231_v44 = vadd.f32 %v4230_v48, %v4142_v33  ;;  %v4746_v5 = vadd.f32 %v4745_v52, %v4715_v31  ;;  %v4784_v25 = vmul.f32 %v4715_v31, %v4715_v31  ;;  %v4785_v6 = vmul.f32 %v4716_v63, %v4716_v63 }
 0x47f   : > { %v3966_v7 = vpop.f32.mrf.mxu2  ;;  %v4485_v52 = vrot.slane %v4404_v35, 2 }
 0x480   : > { %v4055_v0 = vpop.f32.mrf.mxu3  ;;  %v4333_v27 = vrot.slane %v4231_v44, 7  ;;  %v3967_v55 = vadd.f32 %v3966_v7, %v7682_v43  ;;  %v4747_v36 = vadd.f32 %v4746_v5, %v4716_v63  ;;  %v4815_v1 = vadd.f32 %v4814_v47, %v4784_v25  ;;  %v6389_v5 = vld [vmem:[%s6546_s23 + $0x78] sm:$0xff] }
 0x481   : > { %v4146_v56 = vpop.f32.mrf.mxu0 }
 0x482   : > { %v4334_v53 = vsel %vm2000_vm0, %v4332_v13, %v4333_v27  ;;  %v4420_v21 = vsel %vm2000_vm0, %v4333_v27, 0.0  ;;  %v4056_v12 = vadd.f32 %v4055_v0, %v3967_v55  ;;  %v4816_v48 = vadd.f32 %v4815_v1, %v4785_v6 }
 0x483   : > { %v4235_v41 = vpop.f32.mrf.mxu1  ;;  %v4486_v54 = vrot.slane %v4334_v53, 2  ;;  %v4488_v45 = vrot.slane %v4420_v21, 2 }
 0x484   : > { %v4145_v43 = vadd.f32 %v4144_v23, %v4056_v12 }
 0x485   : > { %v4487_v24 = vsel %vm4464_vm2, %v4485_v52, %v4486_v54  ;;  %v4489_v4 = vsel %vm4464_vm2, %v4486_v54, %v4488_v45 }
 0x486   : > { %v4585_v39 = vadd.f32 %v4487_v24, %v7696_v32  ;;  %v4586_v47 = vadd.f32 %v4489_v4, %v7699_v50  ;;  %v4234_v13 = vadd.f32 %v4233_v11, %v4145_v43 }
 0x487   : > { %v3968_v42 = vpop.f32.mrf.mxu2 }
 0x488   : > { %v4057_v58 = vpop.f32.mrf.mxu3  ;;  %v4621_v15 = vadd.f32 %v7968_v18, %v4585_v39  ;;  %v4622_v34 = vadd.f32 %v7968_v18, %v4586_v47  ;;  %v3969_v57 = vadd.f32 %v3968_v42, %v7704_v38  ;;  %v4335_v25 = vrot.slane %v4234_v13, 7  ;;  %v6390_v38 = vld [vmem:[%s6742_s21 + $0x78] sm:$0xff]  ;;  %s5110_s21 = sshll.u32 %s8408_s28, 1 }
 0x489   : > { %v4149_v63 = vpop.f32.mrf.mxu0  ;;  %s682_s13 = scalar_lea.vmem %s8225_s9, %s5110_s21 }
 0x48a   : > { %v4653_v33 = vpack.c.bf16 %v4621_v15, %v4621_v15  ;;  %v4654_v14 = vpack.c.bf16 %v4622_v34, %v4622_v34  ;;  %v6217_v31 = vpack.c.bf16 %v4622_v34, %v4621_v15  ;;  %v4058_v44 = vadd.f32 %v4057_v58, %v3969_v57 }
 0x48b   : > { %v4238_v23 = vpop.f32.mrf.mxu1  ;;  %v4405_v12 = vsel %vm2000_vm0, 0.0, %v4335_v25 }
 0x48c   : > { %6277 = vst [vmem:[%s7981_s10 + $0x20] sm:$0xff] %v6217_v31   ;;  %v4717_v32 = vunpack.c.l.bf16 %v4653_v33  ;;  %v4718_v50 = vunpack.c.l.bf16 %v4654_v14  ;;  %4010 = vmatmul.bf16.gmra.mxu2 %v6389_v5  ;;  %v4147_v7 = vadd.f32 %v4146_v56, %v4058_v44  ;;  %4188 = vmatmul.bf16.gmra.mxu0 %v8045_v28  ;;  %v4490_v4 = vrot.slane %v4405_v12, 2 }
 0x48d   : > { %4099 = vmatmul.bf16.gmra.mxu3 %v8026_v51 }
 0x48e   : > { %4277 = vmatmul.bf16.gmra.mxu1 %v6390_v38  ;;  %v4748_v11 = vadd.f32 %v4747_v36, %v4717_v32  ;;  %v4786_v0 = vmul.f32 %v4717_v32, %v4717_v32  ;;  %v4236_v35 = vadd.f32 %v4235_v41, %v4147_v7  ;;  %v4787_v1 = vmul.f32 %v4718_v50, %v4718_v50 }
 0x48f   : > { %v3971_v27 = vpop.f32.mrf.mxu2 }
 0x490   : > { %v4060_v55 = vpop.f32.mrf.mxu3  ;;  %v4749_v6 = vadd.f32 %v4748_v11, %v4718_v50  ;;  %v4817_v53 = vadd.f32 %v4816_v48, %v4786_v0  ;;  %v3972_v21 = vadd.f32 %v3971_v27, %v7707_v20  ;;  %v4336_v52 = vrot.slane %v4236_v35, 7 }
 0x491   : > { %v4151_v56 = vpop.f32.mrf.mxu0 }
 0x492   : > { %v4818_v51 = vadd.f32 %v4817_v53, %v4787_v1  ;;  %v4061_v54 = vadd.f32 %v4060_v55, %v3972_v21  ;;  %v4337_v24 = vsel %vm2000_vm0, %v4335_v25, %v4336_v52  ;;  %v4421_v36 = vsel %vm2000_vm0, %v4336_v52, 0.0 }
 0x493   : > { %v4240_v45 = vpop.f32.mrf.mxu1  ;;  %v4491_v41 = vrot.slane %v4337_v24, 2  ;;  %v4493_v43 = vrot.slane %v4421_v36, 2 }
 0x494   : > { %v4150_v39 = vadd.f32 %v4149_v63, %v4061_v54 }
 0x495   : > { %v4492_v47 = vsel %vm4464_vm2, %v4490_v4, %v4491_v41  ;;  %v4494_v48 = vsel %vm4464_vm2, %v4491_v41, %v4493_v43 }
 0x496   : > { %v4587_v20 = vadd.f32 %v4492_v47, %v7721_v16  ;;  %v4588_v42 = vadd.f32 %v4494_v48, %v7724_v9  ;;  %v4239_v34 = vadd.f32 %v4238_v23, %v4150_v39 }
 0x497   : > { %v3973_v58 = vpop.f32.mrf.mxu2 }
 0x498   : > { %v4062_v15 = vpop.f32.mrf.mxu3  ;;  %v3974_v57 = vadd.f32 %v3973_v58, %v7726_v26  ;;  %v4623_v13 = vadd.f32 %v7968_v18, %v4587_v20  ;;  %v4624_v33 = vadd.f32 %v7968_v18, %v4588_v42  ;;  %v4338_v5 = vrot.slane %v4239_v34, 7 }
 0x499   : > { %v4154_v31 = vpop.f32.mrf.mxu0 }
 0x49a   : > { %v4063_v14 = vadd.f32 %v4062_v15, %v3974_v57  ;;  %v4655_v44 = vpack.c.bf16 %v4623_v13, %v4623_v13  ;;  %v4656_v32 = vpack.c.bf16 %v4624_v33, %v4624_v33  ;;  %v6222_v50 = vpack.c.bf16 %v4624_v33, %v4623_v13 }
 0x49b   : > { %v4243_v63 = vpop.f32.mrf.mxu1  ;;  %v4406_v35 = vsel %vm2000_vm0, 0.0, %v4338_v5 }
 0x49c   : > { %v4152_v16 = vadd.f32 %v4151_v56, %v4063_v14  ;;  %4015 = vmatmul.bf16.gmra.mxu2 %v6560_v22  ;;  %6278 = vst [vmem:[%s7981_s10 + $0x28] sm:$0xff] %v6222_v50   ;;  %v4719_v9 = vunpack.c.l.bf16 %v4655_v44  ;;  %v4720_v23 = vunpack.c.l.bf16 %v4656_v32  ;;  %4193 = vmatmul.bf16.gmra.mxu0 %v6390_v38 }
 0x49d   : > { %4104 = vmatmul.bf16.gmra.mxu3 %v8045_v28 }
 0x49e   : > { %4282 = vmatmul.bf16.gmra.mxu1 %v6560_v22  ;;  %v4241_v26 = vadd.f32 %v4240_v45, %v4152_v16  ;;  %v4750_v25 = vadd.f32 %v4749_v6, %v4719_v9  ;;  %v4788_v7 = vmul.f32 %v4719_v9, %v4719_v9  ;;  %v4789_v53 = vmul.f32 %v4720_v23, %v4720_v23 }
 0x49f   : > { %v3976_v11 = vpop.f32.mrf.mxu2  ;;  %v4495_v6 = vrot.slane %v4406_v35, 2 }
 0x4a0   : > { %v4065_v0 = vpop.f32.mrf.mxu3  ;;  %v4339_v27 = vrot.slane %v4241_v26, 7  ;;  %v3977_v55 = vadd.f32 %v3976_v11, %v7729_v59  ;;  %v4751_v1 = vadd.f32 %v4750_v25, %v4720_v23  ;;  %v4819_v21 = vadd.f32 %v4818_v51, %v4788_v7 }
 0x4a1   : > { %v4156_v52 = vpop.f32.mrf.mxu0 }
 0x4a2   : > { %v4340_v28 = vsel %vm2000_vm0, %v4338_v5, %v4339_v27  ;;  %v4422_v12 = vsel %vm2000_vm0, %v4339_v27, 0.0  ;;  %v4066_v38 = vadd.f32 %v4065_v0, %v3977_v55  ;;  %v4820_v54 = vadd.f32 %v4819_v21, %v4789_v53 }
 0x4a3   : > { %v4245_v22 = vpop.f32.mrf.mxu1  ;;  %v4496_v56 = vrot.slane %v4340_v28, 2  ;;  %v4498_v45 = vrot.slane %v4422_v12, 2 }
 0x4a4   : > { %v4155_v59 = vadd.f32 %v4154_v31, %v4066_v38  ;;  %v8381_v38 = vld [vmem:[#allocation22_spill] sm:$0xff] }
 0x4a5   : > { %v4497_v24 = vsel %vm4464_vm2, %v4495_v6, %v4496_v56  ;;  %v4499_v36 = vsel %vm4464_vm2, %v4496_v56, %v4498_v45  ;;  %v8382_v56 = vld [vmem:[#allocation7_spill] sm:$0xff] }
 0x4a6   : > { %v4589_v4 = vadd.f32 %v4497_v24, %v7743_v30  ;;  %v4590_v51 = vadd.f32 %v4499_v36, %v7746_v40  ;;  %v4244_v20 = vadd.f32 %v4243_v63, %v4155_v59 }
 0x4a7   : > { %v3978_v41 = vpop.f32.mrf.mxu2 }
 0x4a8   : > { %v4067_v43 = vpop.f32.mrf.mxu3  ;;  %v4625_v39 = vadd.f32 %v7968_v18, %v4589_v4  ;;  %v4626_v47 = vadd.f32 %v7968_v18, %v4590_v51  ;;  %v3979_v48 = vadd.f32 %v3978_v41, %v7748_v3  ;;  %v4341_v14 = vrot.slane %v4244_v20, 7 }
 0x4a9   : > { %v4159_v34 = vpop.f32.mrf.mxu0 }
 0x4aa   : > { %v4657_v42 = vpack.c.bf16 %v4625_v39, %v4625_v39  ;;  %v4658_v58 = vpack.c.bf16 %v4626_v47, %v4626_v47  ;;  %v6227_v15 = vpack.c.bf16 %v4626_v47, %v4625_v39  ;;  %v4068_v13 = vadd.f32 %v4067_v43, %v3979_v48 }
 0x4ab   : > { %v4248_v57 = vpop.f32.mrf.mxu1  ;;  %v4407_v23 = vsel %vm2000_vm0, 0.0, %v4341_v14 }
 0x4ac   : > { %6279 = vst [vmem:[%s7981_s10 + $0x30] sm:$0xff] %v6227_v15   ;;  %v4721_v33 = vunpack.c.l.bf16 %v4657_v42  ;;  %v4722_v30 = vunpack.c.l.bf16 %v4658_v58  ;;  %v4157_v40 = vadd.f32 %v4156_v52, %v4068_v13  ;;  %v4500_v55 = vrot.slane %v4407_v23, 2 }
 0x4ae   : > { %v4752_v31 = vadd.f32 %v4751_v1, %v4721_v33  ;;  %v4790_v44 = vmul.f32 %v4721_v33, %v4721_v33  ;;  %v4246_v32 = vadd.f32 %v4245_v22, %v4157_v40  ;;  %v4791_v9 = vmul.f32 %v4722_v30, %v4722_v30 }
 0x4af   : > { %v3981_v50 = vpop.f32.mrf.mxu2 }
 0x4b0   : > { %v4070_v5 = vpop.f32.mrf.mxu3  ;;  %v4753_v16 = vadd.f32 %v4752_v31, %v4722_v30  ;;  %v4821_v3 = vadd.f32 %v4820_v54, %v4790_v44  ;;  %v3982_v63 = vadd.f32 %v3981_v50, %v7751_v46  ;;  %v4342_v26 = vrot.slane %v4246_v32, 7  ;;  %v8383_v30 = vld [vmem:[#allocation3_spill] sm:$0xff] }
 0x4b1   : > { %v4161_v11 = vpop.f32.mrf.mxu0 }
 0x4b2   : > { %v4822_v25 = vadd.f32 %v4821_v3, %v4791_v9  ;;  %v4071_v7 = vadd.f32 %v4070_v5, %v3982_v63  ;;  %v4343_v35 = vsel %vm2000_vm0, %v4341_v14, %v4342_v26  ;;  %v4423_v27 = vsel %vm2000_vm0, %v4342_v26, 0.0 }
 0x4b3   : > { %v4250_v0 = vpop.f32.mrf.mxu1  ;;  %v4501_v1 = vrot.slane %v4343_v35, 2  ;;  %v4503_v53 = vrot.slane %v4423_v27, 2 }
 0x4b4   : > { %v4160_v21 = vadd.f32 %v4159_v34, %v4071_v7 }
 0x4b5   : > { %v4502_v28 = vsel %vm4464_vm2, %v4500_v55, %v4501_v1  ;;  %v4504_v12 = vsel %vm4464_vm2, %v4501_v1, %v4503_v53 }
 0x4b6   : > { %v4591_v46 = vadd.f32 %v4502_v28, %v7766_v49  ;;  %v4592_v52 = vadd.f32 %v4504_v12, %v8381_v38  ;;  %v4249_v6 = vadd.f32 %v4248_v57, %v4160_v21  ;;  %v8385_v28 = vld [vmem:[#allocation8_spill] sm:$0xff] }
 0x4b7   : > { %v3983_v22 = vpop.f32.mrf.mxu2 }
 0x4b8   : > { %v4072_v54 = vpop.f32.mrf.mxu3  ;;  %v3984_v45 = vadd.f32 %v3983_v22, %v8382_v56  ;;  %v4627_v24 = vadd.f32 %v7968_v18, %v4591_v46  ;;  %v4628_v36 = vadd.f32 %v7968_v18, %v4592_v52  ;;  %v4344_v47 = vrot.slane %v4249_v6, 7 }
 0x4b9   : > { %v4164_v4 = vpop.f32.mrf.mxu0 }
 0x4ba   : > { %v4073_v59 = vadd.f32 %v4072_v54, %v3984_v45  ;;  %v4659_v41 = vpack.c.bf16 %v4627_v24, %v4627_v24  ;;  %v4660_v43 = vpack.c.bf16 %v4628_v36, %v4628_v36  ;;  %v6232_v39 = vpack.c.bf16 %v4628_v36, %v4627_v24 }
 0x4bb   : > { %v4253_v51 = vpop.f32.mrf.mxu1  ;;  %v4408_v13 = vsel %vm2000_vm0, 0.0, %v4344_v47 }
 0x4bc   : > { %v4162_v49 = vadd.f32 %v4161_v11, %v4073_v59  ;;  %6280 = vst [vmem:[%s7981_s10 + $0x38] sm:$0xff] %v6232_v39   ;;  %v4723_v48 = vunpack.c.l.bf16 %v4659_v41  ;;  %v4724_v20 = vunpack.c.l.bf16 %v4660_v43 }
 0x4be   : > { %v4251_v42 = vadd.f32 %v4250_v0, %v4162_v49  ;;  %v4754_v58 = vadd.f32 %v4753_v16, %v4723_v48  ;;  %v4792_v15 = vmul.f32 %v4723_v48, %v4723_v48  ;;  %v4793_v31 = vmul.f32 %v4724_v20, %v4724_v20 }
 0x4bf   : > { %v3986_v34 = vpop.f32.mrf.mxu2  ;;  %v4505_v16 = vrot.slane %v4408_v13, 2 }
 0x4c0   : > { %v4075_v57 = vpop.f32.mrf.mxu3  ;;  %v4345_v33 = vrot.slane %v4251_v42, 7  ;;  %v3987_v14 = vadd.f32 %v3986_v34, %v8383_v30  ;;  %v4755_v40 = vadd.f32 %v4754_v58, %v4724_v20  ;;  %v4823_v44 = vadd.f32 %v4822_v25, %v4792_v15  ;;  %v8384_v25 = vld [vmem:[#allocation23_spill] sm:$0xff] }
 0x4c1   : > { %v4166_v9 = vpop.f32.mrf.mxu0 }
 0x4c2   : > { %v4346_v32 = vsel %vm2000_vm0, %v4344_v47, %v4345_v33  ;;  %v4424_v50 = vsel %vm2000_vm0, %v4345_v33, 0.0  ;;  %v4076_v5 = vadd.f32 %v4075_v57, %v3987_v14  ;;  %v4824_v63 = vadd.f32 %v4823_v44, %v4793_v31 }
 0x4c3   : > { %v4255_v3 = vpop.f32.mrf.mxu1  ;;  %v4506_v23 = vrot.slane %v4346_v32, 2  ;;  %v4508_v26 = vrot.slane %v4424_v50, 2 }
 0x4c4   : > { %v4165_v0 = vadd.f32 %v4164_v4, %v4076_v5 }
 0x4c5   : > { %v4507_v7 = vsel %vm4464_vm2, %v4505_v16, %v4506_v23  ;;  %v4509_v11 = vsel %vm4464_vm2, %v4506_v23, %v4508_v26 }
 0x4c6   : > { %v4593_v35 = vadd.f32 %v4507_v7, %v7789_v17  ;;  %v4594_v27 = vadd.f32 %v4509_v11, %v8384_v25  ;;  %v4254_v46 = vadd.f32 %v4253_v51, %v4165_v0  ;;  %v8386_v51 = vld [vmem:[#allocation9_spill] sm:$0xff] }
 0x4c7   : > { %v3988_v55 = vpop.f32.mrf.mxu2 }
 0x4c8   : > { %v4077_v1 = vpop.f32.mrf.mxu3  ;;  %v4629_v53 = vadd.f32 %v7968_v18, %v4593_v35  ;;  %v4630_v21 = vadd.f32 %v7968_v18, %v4594_v27  ;;  %v3989_v12 = vadd.f32 %v3988_v55, %v8385_v28  ;;  %v4347_v24 = vrot.slane %v4254_v46, 7 }
 0x4c9   : > { %v4169_v54 = vpop.f32.mrf.mxu0 }
 0x4ca   : > { %v4661_v38 = vpack.c.bf16 %v4629_v53, %v4629_v53  ;;  %v4662_v52 = vpack.c.bf16 %v4630_v21, %v4630_v21  ;;  %v6237_v22 = vpack.c.bf16 %v4630_v21, %v4629_v53  ;;  %v4078_v56 = vadd.f32 %v4077_v1, %v3989_v12 }
 0x4cb   : > { %v4258_v6 = vpop.f32.mrf.mxu1  ;;  %v4409_v42 = vsel %vm2000_vm0, 0.0, %v4347_v24 }
 0x4cc   : > { %6281 = vst [vmem:[%s7981_s10 + $0x40] sm:$0xff] %v6237_v22   ;;  %v4725_v45 = vunpack.c.l.bf16 %v4661_v38  ;;  %v4726_v17 = vunpack.c.l.bf16 %v4662_v52  ;;  %v4167_v36 = vadd.f32 %v4166_v9, %v4078_v56  ;;  %v4510_v14 = vrot.slane %v4409_v42, 2  ;;  %v8387_v22 = vld [vmem:[#allocation24_spill] sm:$0xff]  ;;  %v8388_v42 = vld [vmem:[#allocation10_spill] sm:$0xff] }
 0x4ce   : > { %v4756_v59 = vadd.f32 %v4755_v40, %v4725_v45  ;;  %v4794_v4 = vmul.f32 %v4725_v45, %v4725_v45  ;;  %v4256_v41 = vadd.f32 %v4255_v3, %v4167_v36  ;;  %v4795_v49 = vmul.f32 %v4726_v17, %v4726_v17 }
 0x4cf   : > { %v3991_v43 = vpop.f32.mrf.mxu2 }
 0x4d0   : > { %v4080_v39 = vpop.f32.mrf.mxu3  ;;  %v4757_v47 = vadd.f32 %v4756_v59, %v4726_v17  ;;  %v4825_v48 = vadd.f32 %v4824_v63, %v4794_v4  ;;  %v3992_v20 = vadd.f32 %v3991_v43, %v8386_v51  ;;  %v4348_v58 = vrot.slane %v4256_v41, 7 }
 0x4d1   : > { %v4171_v57 = vpop.f32.mrf.mxu0 }
 0x4d2   : > { %v4826_v15 = vadd.f32 %v4825_v48, %v4795_v49  ;;  %v4081_v34 = vadd.f32 %v4080_v39, %v3992_v20  ;;  %v4349_v33 = vsel %vm2000_vm0, %v4347_v24, %v4348_v58  ;;  %v4425_v30 = vsel %vm2000_vm0, %v4348_v58, 0.0 }
 0x4d3   : > { %v4260_v13 = vpop.f32.mrf.mxu1  ;;  %v4511_v40 = vrot.slane %v4349_v33, 2  ;;  %v4513_v31 = vrot.slane %v4425_v30, 2  ;;  %v8389_v33 = vld [vmem:[#allocation11_spill] sm:$0xff] }
 0x4d4   : > { %v4170_v44 = vadd.f32 %v4169_v54, %v4081_v34 }
 0x4d5   : > { %v4512_v32 = vsel %vm4464_vm2, %v4510_v14, %v4511_v40  ;;  %v4514_v50 = vsel %vm4464_vm2, %v4511_v40, %v4513_v31 }
 0x4d6   : > { %v4595_v5 = vadd.f32 %v4512_v32, %v7812_v10  ;;  %v4596_v9 = vadd.f32 %v4514_v50, %v7815_v37  ;;  %v4259_v16 = vadd.f32 %v4258_v6, %v4170_v44 }
 0x4d7   : > { %v3993_v3 = vpop.f32.mrf.mxu2 }
 0x4d8   : > { %v4082_v63 = vpop.f32.mrf.mxu3  ;;  %v3994_v23 = vadd.f32 %v3993_v3, %v7817_v61  ;;  %v4631_v26 = vadd.f32 %v7968_v18, %v4595_v5  ;;  %v4632_v7 = vadd.f32 %v7968_v18, %v4596_v9  ;;  %v4350_v1 = vrot.slane %v4259_v16, 7 }
 0x4d9   : > { %v4174_v0 = vpop.f32.mrf.mxu0 }
 0x4da   : > { %v4083_v11 = vadd.f32 %v4082_v63, %v3994_v23  ;;  %v4663_v25 = vpack.c.bf16 %v4631_v26, %v4631_v26  ;;  %v4664_v27 = vpack.c.bf16 %v4632_v7, %v4632_v7  ;;  %v6242_v55 = vpack.c.bf16 %v4632_v7, %v4631_v26 }
 0x4db   : > { %v4263_v35 = vpop.f32.mrf.mxu1  ;;  %v4410_v38 = vsel %vm2000_vm0, 0.0, %v4350_v1 }
 0x4dc   : > { %v4172_v10 = vadd.f32 %v4171_v57, %v4083_v11  ;;  %6282 = vst [vmem:[%s7981_s10 + $0x48] sm:$0xff] %v6242_v55   ;;  %v4727_v53 = vunpack.c.l.bf16 %v4663_v25  ;;  %v4728_v37 = vunpack.c.l.bf16 %v4664_v27  ;;  %v4515_v43 = vrot.slane %v4410_v38, 2 }
 0x4de   : > { %v4261_v21 = vadd.f32 %v4260_v13, %v4172_v10  ;;  %v4758_v28 = vadd.f32 %v4757_v47, %v4727_v53  ;;  %v4796_v12 = vmul.f32 %v4727_v53, %v4727_v53  ;;  %v4797_v56 = vmul.f32 %v4728_v37, %v4728_v37 }
 0x4df   : > { %v3996_v46 = vpop.f32.mrf.mxu2 }
 0x4e0   : > { %v4085_v61 = vpop.f32.mrf.mxu3  ;;  %v4351_v52 = vrot.slane %v4261_v21, 7  ;;  %v3997_v54 = vadd.f32 %v3996_v46, %v8387_v22  ;;  %v4759_v6 = vadd.f32 %v4758_v28, %v4728_v37  ;;  %v4827_v45 = vadd.f32 %v4826_v15, %v4796_v12 }
 0x4e1   : > { %v4176_v59 = vpop.f32.mrf.mxu0 }
 0x4e2   : > { %v4352_v17 = vsel %vm2000_vm0, %v4350_v1, %v4351_v52  ;;  %v4426_v24 = vsel %vm2000_vm0, %v4351_v52, 0.0  ;;  %v4086_v36 = vadd.f32 %v4085_v61, %v3997_v54  ;;  %v4828_v41 = vadd.f32 %v4827_v45, %v4797_v56 }
 0x4e3   : > { %v4265_v4 = vpop.f32.mrf.mxu1  ;;  %v4516_v39 = vrot.slane %v4352_v17, 2  ;;  %v4518_v47 = vrot.slane %v4426_v24, 2 }
 0x4e4   : > { %v4175_v51 = vadd.f32 %v4174_v0, %v4086_v36 }
 0x4e5   : > { %v4517_v49 = vsel %vm4464_vm2, %v4515_v43, %v4516_v39  ;;  %v4519_v48 = vsel %vm4464_vm2, %v4516_v39, %v4518_v47 }
 0x4e6   : > { %v4597_v20 = vadd.f32 %v4517_v49, %v7835_v60  ;;  %v4598_v58 = vadd.f32 %v4519_v48, %v8388_v42  ;;  %v4264_v14 = vadd.f32 %v4263_v35, %v4175_v51  ;;  %v8390_v35 = vld [vmem:[#allocation26_spill] sm:$0xff] }
 0x4e7   : > { %v3998_v15 = vpop.f32.mrf.mxu2 }
 0x4e8   : > { %v4087_v34 = vpop.f32.mrf.mxu3  ;;  %v4633_v57 = vadd.f32 %v7968_v18, %v4597_v20  ;;  %v4634_v13 = vadd.f32 %v7968_v18, %v4598_v58  ;;  %v3999_v30 = vadd.f32 %v3998_v15, %v8389_v33  ;;  %v4353_v3 = vrot.slane %v4264_v14, 7 }
 0x4e9   : > { %v4179_v32 = vpop.f32.mrf.mxu0 }
 0x4ea   : > { %v4665_v40 = vpack.c.bf16 %v4633_v57, %v4633_v57  ;;  %v4666_v31 = vpack.c.bf16 %v4634_v13, %v4634_v13  ;;  %v6247_v44 = vpack.c.bf16 %v4634_v13, %v4633_v57  ;;  %v4088_v5 = vadd.f32 %v4087_v34, %v3999_v30 }
 0x4eb   : > { %v4268_v50 = vpop.f32.mrf.mxu1  ;;  %v4411_v1 = vsel %vm2000_vm0, 0.0, %v4353_v3 }
 0x4ec   : > { %6283 = vst [vmem:[%s7981_s10 + $0x50] sm:$0xff] %v6247_v44   ;;  %v4729_v9 = vunpack.c.l.bf16 %v4665_v40  ;;  %v4730_v60 = vunpack.c.l.bf16 %v4666_v31  ;;  %v4177_v63 = vadd.f32 %v4176_v59, %v4088_v5  ;;  %v4520_v61 = vrot.slane %v4411_v1, 2  ;;  %v8391_v59 = vld [vmem:[#allocation25_spill] sm:$0xff] }
 0x4ee   : > { %v4760_v16 = vadd.f32 %v4759_v6, %v4729_v9  ;;  %v4798_v23 = vmul.f32 %v4729_v9, %v4729_v9  ;;  %v4266_v26 = vadd.f32 %v4265_v4, %v4177_v63  ;;  %v4799_v25 = vmul.f32 %v4730_v60, %v4730_v60 }
 0x4ef   : > { %v4001_v7 = vpop.f32.mrf.mxu2 }
 0x4f0   : > { %v4090_v11 = vpop.f32.mrf.mxu3  ;;  %v4761_v0 = vadd.f32 %v4760_v16, %v4730_v60  ;;  %v4829_v27 = vadd.f32 %v4828_v41, %v4798_v23  ;;  %v4002_v55 = vadd.f32 %v4001_v7, %v8390_v35  ;;  %v4354_v10 = vrot.slane %v4266_v26, 7 }
 0x4f1   : > { %v4181_v21 = vpop.f32.mrf.mxu0 }
 0x4f2   : > { %v4830_v53 = vadd.f32 %v4829_v27, %v4799_v25  ;;  %v4091_v37 = vadd.f32 %v4090_v11, %v4002_v55  ;;  %v4355_v12 = vsel %vm2000_vm0, %v4353_v3, %v4354_v10  ;;  %v4427_v46 = vsel %vm2000_vm0, %v4354_v10, 0.0  ;;  %v8394_v27 = vld [vmem:[#allocation13_spill] sm:$0xff] }
 0x4f3   : > { %v4270_v28 = vpop.f32.mrf.mxu1  ;;  %v4521_v38 = vrot.slane %v4355_v12, 2  ;;  %v4523_v52 = vrot.slane %v4427_v46, 2 }
 0x4f4   : > { %v4180_v22 = vadd.f32 %v4179_v32, %v4091_v37 }
 0x4f5   : > { %v4522_v54 = vsel %vm4464_vm2, %v4520_v61, %v4521_v38  ;;  %v4524_v6 = vsel %vm4464_vm2, %v4521_v38, %v4523_v52 }
 0x4f6   : > { %v4599_v56 = vadd.f32 %v4522_v54, %v7858_v8  ;;  %v4600_v45 = vadd.f32 %v4524_v6, %v7861_v29  ;;  %v4269_v36 = vadd.f32 %v4268_v50, %v4180_v22 }
 0x4f7   : > { %v4003_v17 = vpop.f32.mrf.mxu2 }
 0x4f8   : > { %v4092_v24 = vpop.f32.mrf.mxu3  ;;  %v4004_v4 = vadd.f32 %v4003_v17, %v8391_v59  ;;  %v4635_v41 = vadd.f32 %v7968_v18, %v4599_v56  ;;  %v4636_v43 = vadd.f32 %v7968_v18, %v4600_v45  ;;  %v4356_v20 = vrot.slane %v4269_v36, 7  ;;  %v8392_v18 = vld [vmem:[#allocation27_spill] sm:$0xff] }
 0x4f9   : > { %v4184_v47 = vpop.f32.mrf.mxu0 }
 0x4fa   : > { %v4093_v39 = vadd.f32 %v4092_v24, %v4004_v4  ;;  %v4667_v49 = vpack.c.bf16 %v4635_v41, %v4635_v41  ;;  %v4668_v48 = vpack.c.bf16 %v4636_v43, %v4636_v43  ;;  %v6252_v51 = vpack.c.bf16 %v4636_v43, %v4635_v41 }
 0x4fb   : > { %v4273_v8 = vpop.f32.mrf.mxu1  ;;  %v4412_v30 = vsel %vm2000_vm0, 0.0, %v4356_v20 }
 0x4fc   : > { %v4182_v42 = vadd.f32 %v4181_v21, %v4093_v39  ;;  %6284 = vst [vmem:[%s7981_s10 + $0x58] sm:$0xff] %v6252_v51   ;;  %v4731_v58 = vunpack.c.l.bf16 %v4667_v49  ;;  %v4732_v29 = vunpack.c.l.bf16 %v4668_v48  ;;  %v4525_v3 = vrot.slane %v4412_v30, 2  ;;  %v8396_v48 = vld [vmem:[#allocation14_spill] sm:$0xff] }
 0x4fe   : > { %v4271_v15 = vadd.f32 %v4270_v28, %v4182_v42  ;;  %v4762_v34 = vadd.f32 %v4761_v0, %v4731_v58  ;;  %v4800_v57 = vmul.f32 %v4731_v58, %v4731_v58  ;;  %v4801_v44 = vmul.f32 %v4732_v29, %v4732_v29  ;;  %v8393_v0 = vld [vmem:[#allocation12_spill] sm:$0xff] }
 0x4ff   : > { %v4006_v13 = vpop.f32.mrf.mxu2  ;;  %v8395_v28 = vld [vmem:[#allocation28_spill] sm:$0xff] }
 0x500   : > { %v4095_v33 = vpop.f32.mrf.mxu3  ;;  %v4357_v14 = vrot.slane %v4271_v15, 7  ;;  %v4007_v40 = vadd.f32 %v4006_v13, %v8392_v18  ;;  %v4763_v31 = vadd.f32 %v4762_v34, %v4732_v29  ;;  %v4831_v32 = vadd.f32 %v4830_v53, %v4800_v57  ;;  %v8162_v53 = vld [vmem:[%s8223_s7] ss:$0 sm:$0xff] }
 0x501   : > { %v4186_v23 = vpop.f32.mrf.mxu0 }
 0x502   : > { %v4358_v50 = vsel %vm2000_vm0, %v4356_v20, %v4357_v14  ;;  %v4428_v5 = vsel %vm2000_vm0, %v4357_v14, 0.0  ;;  %v4096_v9 = vadd.f32 %v4095_v33, %v4007_v40  ;;  %v4832_v60 = vadd.f32 %v4831_v32, %v4801_v44  ;;  %v8397_v40 = vld [vmem:[#allocation15_spill] sm:$0xff] }
 0x503   : > { %v4526_v63 = vrot.slane %v4358_v50, 2  ;;  %v4528_v16 = vrot.slane %v4428_v5, 2  ;;  %v4275_v55 = vpop.f32.mrf.mxu1 }
 0x504   : > { %v4185_v11 = vadd.f32 %v4184_v47, %v4096_v9  ;;  %v8398_v9 = vld [vmem:[#allocation30_spill] sm:$0xff] }
 0x505   : > { %v4527_v26 = vsel %vm4464_vm2, %v4525_v3, %v4526_v63  ;;  %v4529_v7 = vsel %vm4464_vm2, %v4526_v63, %v4528_v16 }
 0x506   : > { %v4601_v25 = vadd.f32 %v4527_v26, %v8393_v0  ;;  %v4602_v35 = vadd.f32 %v4529_v7, %v8394_v27  ;;  %v4274_v46 = vadd.f32 %v4273_v8, %v4185_v11 }
 0x507   : > { %v4008_v1 = vpop.f32.mrf.mxu2 }
 0x508   : > { %v4097_v10 = vpop.f32.mrf.mxu3  ;;  %v4637_v37 = vadd.f32 %v8162_v53, %v4601_v25  ;;  %v4638_v21 = vadd.f32 %v8162_v53, %v4602_v35  ;;  %v4009_v12 = vadd.f32 %v4008_v1, %v8395_v28  ;;  %v4359_v56 = vrot.slane %v4274_v46, 7  ;;  %v8399_v28 = vld [vmem:[#allocation29_spill] sm:$0xff] }
 0x509   : > { %v4189_v36 = vpop.f32.mrf.mxu0 }
 0x50a   : > { %v4669_v61 = vpack.c.bf16 %v4637_v37, %v4637_v37  ;;  %v4670_v38 = vpack.c.bf16 %v4638_v21, %v4638_v21  ;;  %v6257_v52 = vpack.c.bf16 %v4638_v21, %v4637_v37  ;;  %v4098_v22 = vadd.f32 %v4097_v10, %v4009_v12 }
 0x50b   : > { %v4278_v49 = vpop.f32.mrf.mxu1  ;;  %v4413_v20 = vsel %vm2000_vm0, 0.0, %v4359_v56 }
 0x50c   : > { %6285 = vst [vmem:[%s7981_s10 + $0x60] sm:$0xff] %v6257_v52   ;;  %v4733_v54 = vunpack.c.l.bf16 %v4669_v61  ;;  %v4734_v6 = vunpack.c.l.bf16 %v4670_v38  ;;  %v4187_v45 = vadd.f32 %v4186_v23, %v4098_v22  ;;  %v4530_v34 = vrot.slane %v4413_v20, 2 }
 0x50e   : > { %v4764_v17 = vadd.f32 %v4763_v31, %v4733_v54  ;;  %v4802_v24 = vmul.f32 %v4733_v54, %v4733_v54  ;;  %v4276_v59 = vadd.f32 %v4275_v55, %v4187_v45  ;;  %v4803_v39 = vmul.f32 %v4734_v6, %v4734_v6 }
 0x50f   : > { %v4011_v4 = vpop.f32.mrf.mxu2 }
 0x510   : > { %v4100_v41 = vpop.f32.mrf.mxu3  ;;  %v4765_v43 = vadd.f32 %v4764_v17, %v4734_v6  ;;  %v4833_v47 = vadd.f32 %v4832_v60, %v4802_v24  ;;  %v4012_v51 = vadd.f32 %v4011_v4, %v8396_v48  ;;  %v4360_v42 = vrot.slane %v4276_v59, 7 }
 0x511   : > { %v4191_v5 = vpop.f32.mrf.mxu0 }
 0x512   : > { %v4834_v8 = vadd.f32 %v4833_v47, %v4803_v39  ;;  %v4101_v58 = vadd.f32 %v4100_v41, %v4012_v51  ;;  %v4361_v29 = vsel %vm2000_vm0, %v4359_v56, %v4360_v42  ;;  %v4429_v15 = vsel %vm2000_vm0, %v4360_v42, 0.0  ;;  %v8400_v39 = vld [vmem:[#allocation31_spill] sm:$0xff] }
 0x513   : > { %v4531_v57 = vrot.slane %v4361_v29, 2  ;;  %v4533_v13 = vrot.slane %v4429_v15, 2  ;;  %v4280_v16 = vpop.f32.mrf.mxu1 }
 0x514   : > { %v4190_v33 = vadd.f32 %v4189_v36, %v4101_v58 }
 0x515   : > { %v4532_v30 = vsel %vm4464_vm2, %v4530_v34, %v4531_v57  ;;  %v4534_v14 = vsel %vm4464_vm2, %v4531_v57, %v4533_v13 }
 0x516   : > { %v4603_v18 = vadd.f32 %v4532_v30, %v7904_v19  ;;  %v4604_v31 = vadd.f32 %v4534_v14, %v8397_v40  ;;  %v4279_v50 = vadd.f32 %v4278_v49, %v4190_v33  ;;  %v8401_v49 = vld [vmem:[#allocation16_spill] sm:$0xff] }
 0x517   : > { %v4013_v44 = vpop.f32.mrf.mxu2 }
 0x518   : > { %v4102_v32 = vpop.f32.mrf.mxu3  ;;  %v4014_v60 = vadd.f32 %v4013_v44, %v8398_v9  ;;  %v4639_v3 = vadd.f32 %v8162_v53, %v4603_v18  ;;  %v4640_v63 = vadd.f32 %v8162_v53, %v4604_v31  ;;  %v4362_v0 = vrot.slane %v4279_v50, 7 }
 0x519   : > { %v4194_v6 = vpop.f32.mrf.mxu0 }
 0x51a   : > { %v4103_v23 = vadd.f32 %v4102_v32, %v4014_v60  ;;  %v4671_v26 = vpack.c.bf16 %v4639_v3, %v4639_v3  ;;  %v4672_v7 = vpack.c.bf16 %v4640_v63, %v4640_v63  ;;  %v6262_v11 = vpack.c.bf16 %v4640_v63, %v4639_v3 }
 0x51b   : > { %v4414_v37 = vsel %vm2000_vm0, 0.0, %v4362_v0  ;;  %v4283_v59 = vpop.f32.mrf.mxu1 }
 0x51c   : > { %v4192_v19 = vadd.f32 %v4191_v5, %v4103_v23  ;;  %6286 = vst [vmem:[%s7981_s10 + $0x68] sm:$0xff] %v6262_v11   ;;  %v4735_v25 = vunpack.c.l.bf16 %v4671_v26  ;;  %v4736_v27 = vunpack.c.l.bf16 %v4672_v7  ;;  %v4535_v17 = vrot.slane %v4414_v37, 2 }
 0x51e   : > { %v4281_v35 = vadd.f32 %v4280_v16, %v4192_v19  ;;  %v4766_v55 = vadd.f32 %v4765_v43, %v4735_v25  ;;  %v4804_v1 = vmul.f32 %v4735_v25, %v4735_v25  ;;  %v4805_v38 = vmul.f32 %v4736_v27, %v4736_v27 }
 0x51f   : > { %v4016_v10 = vpop.f32.mrf.mxu2 }
 0x520   : > { %v4363_v21 = vrot.slane %v4281_v35, 7  ;;  %v4017_v12 = vadd.f32 %v4016_v10, %v8399_v28  ;;  %v4105_v46 = vpop.f32.mrf.mxu3  ;;  %v4767_v61 = vadd.f32 %v4766_v55, %v4736_v27  ;;  %v4835_v52 = vadd.f32 %v4834_v8, %v4804_v1  ;;  %v8402_v8 = vld [vmem:[#allocation17_spill] sm:$0xff] }
 0x521   : > { %v4196_v18 = vpop.f32.mrf.mxu0 }
 0x522   : > { %v4364_v22 = vsel %vm2000_vm0, %v4362_v0, %v4363_v21  ;;  %v4430_v54 = vsel %vm2000_vm0, %v4363_v21, 0.0  ;;  %v4106_v56 = vadd.f32 %v4105_v46, %v4017_v12  ;;  %v4836_v45 = vadd.f32 %v4835_v52, %v4805_v38 }
 0x523   : > { %v4536_v24 = vrot.slane %v4364_v22, 2  ;;  %v4538_v36 = vrot.slane %v4430_v54, 2  ;;  %v4285_v50 = vpop.f32.mrf.mxu1 }
 0x524   : > { %v4195_v43 = vadd.f32 %v4194_v6, %v4106_v56 }
 0x525   : > { %v4537_v4 = vsel %vm4464_vm2, %v4535_v17, %v4536_v24  ;;  %v4539_v41 = vsel %vm4464_vm2, %v4536_v24, %v4538_v36 }
 0x526   : > { %v4605_v47 = vadd.f32 %v4537_v4, %v8400_v39  ;;  %v4606_v48 = vadd.f32 %v4539_v41, %v8401_v49  ;;  %v4284_v29 = vadd.f32 %v4283_v59, %v4195_v43 }
 0x527   : > { %v4018_v51 = vpop.f32.mrf.mxu2 }
 0x528   : > { %v4641_v20 = vadd.f32 %v8162_v53, %v4605_v47  ;;  %v4642_v42 = vadd.f32 %v8162_v53, %v4606_v48  ;;  %v4019_v58 = vadd.f32 %v4018_v51, %v8402_v8  ;;  %v4107_v13 = vpop.f32.mrf.mxu3  ;;  %v4365_v40 = vrot.slane %v4284_v29, 7 }
 0x52a   : > { %v4673_v15 = vpack.c.bf16 %v4641_v20, %v4641_v20  ;;  %v4674_v34 = vpack.c.bf16 %v4642_v42, %v4642_v42  ;;  %v6267_v57 = vpack.c.bf16 %v4642_v42, %v4641_v20  ;;  %v4108_v33 = vadd.f32 %v4107_v13, %v4019_v58 }
 0x52b   : > { %v4415_v63 = vsel %vm2000_vm0, 0.0, %v4365_v40 }
 0x52c   : > { %6287 = vst [vmem:[%s7981_s10 + $0x70] sm:$0xff] %v6267_v57   ;;  %v4737_v30 = vunpack.c.l.bf16 %v4673_v15  ;;  %v4738_v14 = vunpack.c.l.bf16 %v4674_v34  ;;  %v4197_v31 = vadd.f32 %v4196_v18, %v4108_v33  ;;  %v4540_v11 = vrot.slane %v4415_v63, 2 }
 0x52e   : > { %v4768_v44 = vadd.f32 %v4767_v61, %v4737_v30  ;;  %v4806_v32 = vmul.f32 %v4737_v30, %v4737_v30  ;;  %v4286_v5 = vadd.f32 %v4285_v50, %v4197_v31  ;;  %v4807_v60 = vmul.f32 %v4738_v14, %v4738_v14 }
 0x530   : > { %v4769_v9 = vadd.f32 %v4768_v44, %v4738_v14  ;;  %v4837_v3 = vadd.f32 %v4836_v45, %v4806_v32  ;;  %v4366_v16 = vrot.slane %v4286_v5, 7 }
 0x532   : > { %v4838_v23 = vadd.f32 %v4837_v3, %v4807_v60  ;;  %v4367_v26 = vsel %vm2000_vm0, %v4365_v40, %v4366_v16  ;;  %v4431_v7 = vsel %vm2000_vm0, %v4366_v16, 0.0 }
 0x533   : > { %v4541_v0 = vrot.slane %v4367_v26, 2  ;;  %v4543_v19 = vrot.slane %v4431_v7, 2 }
 0x535   : > { %v4542_v25 = vsel %vm4464_vm2, %v4540_v11, %v4541_v0  ;;  %v4544_v27 = vsel %vm4464_vm2, %v4541_v0, %v4543_v19 }
 0x536   : > { %v4607_v35 = vadd.f32 %v4542_v25, %v7949_v2  ;;  %v4608_v55 = vadd.f32 %v4544_v27, %v7952_v62 }
 0x538   : > { %v4643_v1 = vadd.f32 %v8162_v53, %v4607_v35  ;;  %v4644_v10 = vadd.f32 %v8162_v53, %v4608_v55 }
 0x53a   : > { %v4675_v37 = vpack.c.bf16 %v4643_v1, %v4643_v1  ;;  %v4676_v21 = vpack.c.bf16 %v4644_v10, %v4644_v10  ;;  %v6272_v28 = vpack.c.bf16 %v4644_v10, %v4643_v1 }
 0x53c   : > { %6288 = vst [vmem:[%s7981_s10 + $0x78] sm:$0xff] %v6272_v28   ;;  %v4739_v12 = vunpack.c.l.bf16 %v4675_v37  ;;  %v4740_v46 = vunpack.c.l.bf16 %v4676_v21 }
 0x53e   : > { %v4770_v61 = vadd.f32 %v4769_v9, %v4739_v12  ;;  %v4808_v38 = vmul.f32 %v4739_v12, %v4739_v12  ;;  %v4809_v22 = vmul.f32 %v4740_v46, %v4740_v46 }
 0x540   : > { %v4771_v52 = vadd.f32 %v4770_v61, %v4740_v46  ;;  %v4839_v54 = vadd.f32 %v4838_v23, %v4808_v38 }
 0x542   : > { %v4772_v6 = vrot.slane %v4771_v52, 4  ;;  %v4840_v2 = vadd.f32 %v4839_v54, %v4809_v22 }
 0x544   : > { %v4773_v56 = vadd.f32 %v4772_v6, %v4771_v52  ;;  %v4841_v62 = vrot.slane %v4840_v2, 4 }
 0x546   : > { %v4774_v45 = vrot.slane %v4773_v56, 2  ;;  %v4842_v17 = vadd.f32 %v4841_v62, %v4840_v2 }
 0x548   : > { %v4775_v24 = vadd.f32 %v4774_v45, %v4773_v56  ;;  %v4843_v53 = vrot.slane %v4842_v17, 2 }
 0x54a   : > { %v4776_v36 = vrot.slane %v4775_v24, 1  ;;  %v4844_v59 = vadd.f32 %v4843_v53, %v4842_v17 }
 0x54c   : > { %v4845_v4 = vrot.slane %v4844_v59, 1  ;;  %v4777_v41 = vadd.f32 %v4776_v36, %v4775_v24 }
 0x54e   : > { %v4846_v43 = vadd.f32 %v4845_v4, %v4844_v59 }
 0x550   : > { %v4847_v39 = vsel %vm2000_vm0, %v4777_v41, %v4846_v43 }
 0x551   : > { %4848 = vst [vmem:[%s682_s13] sm:$0x3] %v4847_v39 }
 0x552 PF: > { %s20_s29 = sadd.s32 1, %s6414_s29   ;;  %s8403_s28 = smov %s6410_s3 }
 0x553   : > { %p17_p5 = scmp.ge.s32.totalorder %s20_s29, 4   ;;  %s8404_s3 = smov %s8406_s5 }
 0x555   :  { %19 = sbr.rel (!%p17_p5) target bundleno = 2 (0x2), region = 111 }

</bundles_post_ra>
